<compile_context>
chip_gen: v6e
topology: v6e:2x2x1
jax: 0.10.0
libtpu: 0.0.40
codegen_flags: <defaults>
</compile_context>

<pallas_src>
import math
import functools

import jax
import jax.numpy as jnp
from jax.experimental import pallas as pl
from jax.experimental.pallas import tpu as pltpu


# ----------------------------- kernel ---------------------------------------

def _layernorm(x, gamma, beta, eps=1e-5):
    # x: (M, C); gamma/beta broadcastable to (M, C)  (biased variance, as nn.LayerNorm)
    mu = jnp.mean(x, axis=-1, keepdims=True)
    var = jnp.mean((x - mu) ** 2, axis=-1, keepdims=True)
    return (x - mu) * jax.lax.rsqrt(var + eps) * gamma + beta


def gpt_kernel(tok_ref, pos_ref,
               ln1_g_ref, ln1_b_ref,
               wqkv_ref, bqkv_ref, wp_ref, bp_ref,
               ln2_g_ref, ln2_b_ref,
               w1_ref, b1_ref, w2_ref, b2_ref,
               lnf_g_ref, lnf_b_ref,
               out_ref, x_scr, *, n_head, scale):
    l = pl.program_id(1)
    n_layer = pl.num_programs(1)
    Bt, S, C = tok_ref.shape
    M = Bt * S
    D = C // n_head

    # First layer step: build the resident activation (token + pos embedding).
    # TODO(synk): embedding/attn/resid dropout has no inference-mode equivalent (identity).
    @pl.when(l == 0)
    def _init():
        x_scr[...] = (tok_ref[...] + pos_ref[...]).reshape(M, C)

    x = x_scr[...]                                       # (M, C) f32, VMEM-resident

    # -------- attention sub-block:  x = x + proj(attn(ln1(x))) ---------------
    h = _layernorm(x, ln1_g_ref[0], ln1_b_ref[0])
    qkv = jnp.dot(h.astype(jnp.bfloat16), wqkv_ref[0],
                  preferred_element_type=jnp.float32)
    qkv = (qkv + bqkv_ref[0]).astype(jnp.bfloat16)       # (M, 3C) bf16 (half the vregs)

    def split_heads(mat):
        # (M, C) bf16 -> (n_head*Bt, S, D), heads stacked on the leading axis.
        return jnp.concatenate(
            [mat[:, hh * D:(hh + 1) * D].reshape(Bt, S, D) for hh in range(n_head)],
            axis=0)

    q = split_heads(qkv[:, 0 * C:1 * C])                 # 128-aligned lane slices
    k = split_heads(qkv[:, 1 * C:2 * C])
    v = split_heads(qkv[:, 2 * C:3 * C])

    # One batched score matmul over all (batch, head) pairs.
    att = jnp.einsum('gsd,gtd->gst', q, k,
                     preferred_element_type=jnp.float32) * scale     # f32 scores
    att = att - jnp.max(att, axis=-1, keepdims=True)
    p = jnp.exp(att)
    denom = jnp.sum(p, axis=-1, keepdims=True)
    y = jnp.einsum('gst,gtd->gsd', p.astype(jnp.bfloat16), v,
                   preferred_element_type=jnp.float32)               # (G, S, D)
    y = y / denom                                        # exact softmax normalization
    # Reassemble heads on the lane axis (head-major == torch concat order), then
    # one K=128 projection matmul instead of n_head K=D matmuls.
    y = jnp.concatenate([y[hh * Bt:(hh + 1) * Bt] for hh in range(n_head)], axis=-1)
    y = y.reshape(M, C).astype(jnp.bfloat16)
    x = x + jnp.dot(y, wp_ref[0], preferred_element_type=jnp.float32) + bp_ref[0]

    # -------- MLP sub-block:  x = x + mlp(ln2(x)) -----------------------------
    h = _layernorm(x, ln2_g_ref[0], ln2_b_ref[0])
    hmid = jnp.dot(h.astype(jnp.bfloat16), w1_ref[0],
                   preferred_element_type=jnp.float32) + b1_ref[0]
    hmid = jnp.maximum(hmid, 0.0)                        # ReLU
    x = x + jnp.dot(hmid.astype(jnp.bfloat16), w2_ref[0],
                    preferred_element_type=jnp.float32) + b2_ref[0]

    x_scr[...] = x

    # Last layer step: final LayerNorm and (lane-dense) output write.
    # NOTE: correctness relies on (a) the output BlockSpec index being constant
    # across the layer axis (block stays resident, written once per batch tile)
    # and (b) the layer axis remaining the inner "arbitrary" grid axis.
    @pl.when(l == n_layer - 1)
    def _final():
        y_out = _layernorm(x, lnf_g_ref[...], lnf_b_ref[...])
        out_ref[...] = y_out.reshape(Bt, S, C)


# ----------------------------- wrapper ---------------------------------------

def gpt_forward(radar1, radar2, params, *, n_embd, n_head, n_layer,
                seq_len, T_anchor_dim, batch_tile=None):
    B, C_in, T = radar1.shape
    S = 2 * T_anchor_dim
    Cm = n_embd
    D = Cm // n_head
    L = n_layer

    # --- token embedding assembly (glue, plain JAX; matches torch reshapes) ---
    r1 = radar1.reshape(B, seq_len, -1, T)
    r2 = radar2.reshape(B, seq_len, -1, T)
    tok = jnp.concatenate([r1, r2], axis=1)              # (B, 2*seq_len, C//seq_len, T)
    tok = jnp.transpose(tok, (0, 1, 3, 2))               # (B, 2*seq_len, T, C//seq_len)
    tok = tok.reshape(B, -1, Cm).astype(jnp.float32)     # (B, S, n_embd)
    assert tok.shape[1] == S, "shape config inconsistent with pos_emb"

    # Generation-aware batch tiling:
    #  * single TensorCore (v5e / v6e): 1 batch tile -> each layer's weights
    #    stream from HBM exactly once, M = B*S rows fills the MXU.
    #  * 2 TensorCores (v4 / v5p megacore, v7x): 2 parallel batch tiles so the
    #    "parallel" axis shards across cores; no smaller (weight re-streaming).
    if batch_tile is None:
        try:
            kind = jax.devices()[0].device_kind.lower()
        except Exception:
            kind = ""
        n_tc = 2 if ("v4" in kind or "v5p" in kind or "v7" in kind) else 1
        want_nb = min(n_tc, B)
        batch_tile = B
        for d in range(B, 0, -1):
            if B % d == 0 and B // d >= want_nb:
                batch_tile = d
                break
    assert B % batch_tile == 0
    nb = B // batch_tile

    # --- weight prep (glue): fuse QKV, cast matmul weights bf16 ----------------
    # (1/sqrt(D) is applied to the f32 scores in-kernel, not folded into bf16 Wq.)
    wqkv = jnp.concatenate([params["wq"], params["wk"], params["wv"]],
                           axis=-1).astype(jnp.bfloat16)               # (L, C, 3C)
    bqkv = jnp.concatenate([params["bq"], params["bk"], params["bv"]],
                           axis=-1)[:, None, :]                        # (L, 1, 3C) f32
    wp = params["wp"].astype(jnp.bfloat16)                             # (L, C, C)
    bp = params["bp"][:, None, :]
    w1 = params["w1"].astype(jnp.bfloat16)                             # (L, C, H)
    b1 = params["b1"][:, None, :]
    w2 = params["w2"].astype(jnp.bfloat16)                             # (L, H, C)
    b2 = params["b2"][:, None, :]
    ln1_g = params["ln1_g"][:, None, :]
    ln1_b = params["ln1_b"][:, None, :]
    ln2_g = params["ln2_g"][:, None, :]
    ln2_b = params["ln2_b"][:, None, :]
    lnf_g = params["lnf_g"]                                            # (1, C)
    lnf_b = params["lnf_b"]
    pos = params["pos_emb"]                                            # (S, C)

    def per_layer(arr, big=False):
        blk = (1,) + arr.shape[1:]
        idx = lambda b, l: (l,) + (0,) * (len(blk) - 1)
        if big and L >= 4:
            # Deeper weight pipeline only pays once there are enough layer steps
            # to hide the per-layer DMA; ~0.5 MiB extra VMEM here.
            return pl.BlockSpec(blk, idx, pipeline_mode=pl.Buffered(3))
        return pl.BlockSpec(blk, idx)

    def const(arr):
        return pl.BlockSpec(arr.shape, lambda b, l: (0,) * arr.ndim)

    in_specs = [
        pl.BlockSpec((batch_tile, S, Cm), lambda b, l: (b, 0, 0)),     # tokens
        const(pos),
        per_layer(ln1_g), per_layer(ln1_b),
        per_layer(wqkv, big=True), per_layer(bqkv),
        per_layer(wp), per_layer(bp),
        per_layer(ln2_g), per_layer(ln2_b),
        per_layer(w1, big=True), per_layer(b1),
        per_layer(w2, big=True), per_layer(b2),
        const(lnf_g), const(lnf_b),
    ]

    kernel = functools.partial(gpt_kernel, n_head=n_head, scale=1.0 / math.sqrt(D))

    # NOTE: the grid MUST stay (batch_tiles, layers) with the layer axis inner
    # and "arbitrary"; the output block index is constant across layers and is
    # only written on the last layer step.  Do not reorder / parallelize layers.
    out = pl.pallas_call(
        kernel,
        out_shape=jax.ShapeDtypeStruct((B, S, Cm), jnp.float32),
        grid=(nb, L),
        in_specs=in_specs,
        out_specs=pl.BlockSpec((batch_tile, S, Cm), lambda b, l: (b, 0, 0)),
        scratch_shapes=[pltpu.VMEM((batch_tile * S, Cm), jnp.float32)],
        compiler_params=pltpu.CompilerParams(
            dimension_semantics=("parallel", "arbitrary"),
            # ~0.4 MB/layer of weights double-buffered + small activations; 32 MiB
            # leaves headroom on all generations (re-derive vs 64 MiB if scaling
            # n_embd / block_exp on v7x).
            vmem_limit_bytes=32 * 1024 * 1024),
    )(tok, pos, ln1_g, ln1_b, wqkv, bqkv, wp, bp,
      ln2_g, ln2_b, w1, b1, w2, b2, lnf_g, lnf_b)

    # --- output unpack (glue, matches torch view/permute/slice) ---
    x = out.reshape(B, 2 * seq_len, T_anchor_dim, Cm)
    x = jnp.transpose(x, (0, 1, 3, 2))                   # (B, 2, n_embd, T_anchor_dim)
    return x[:, 0, :, :], x[:, 1, :, :]


# ----------------------------- parameter init --------------------------------

def init_params(key, *, n_embd, n_head, block_exp, n_layer, T_anchor_dim):
    C = n_embd
    H = block_exp * n_embd
    L = n_layer
    ks = jax.random.split(key, 8)

    def lin(k, shape):                                   # nn.Linear weights: N(0, 0.02)
        return 0.02 * jax.random.normal(k, shape, dtype=jnp.float32)

    params = {
        "pos_emb": jax.random.normal(ks[0], (2 * T_anchor_dim, C), dtype=jnp.float32),
        "ln1_g": jnp.ones((L, C), jnp.float32), "ln1_b": jnp.zeros((L, C), jnp.float32),
        "wq": lin(ks[1], (L, C, C)), "bq": jnp.zeros((L, C), jnp.float32),
        "wk": lin(ks[2], (L, C, C)), "bk": jnp.zeros((L, C), jnp.float32),
        "wv": lin(ks[3], (L, C, C)), "bv": jnp.zeros((L, C), jnp.float32),
        "wp": lin(ks[4], (L, C, C)), "bp": jnp.zeros((L, C), jnp.float32),
        "ln2_g": jnp.ones((L, C), jnp.float32), "ln2_b": jnp.zeros((L, C), jnp.float32),
        "w1": lin(ks[5], (L, C, H)), "b1": jnp.zeros((L, H), jnp.float32),
        "w2": lin(ks[6], (L, H, C)), "b2": jnp.zeros((L, C), jnp.float32),
        "lnf_g": jnp.ones((1, C), jnp.float32), "lnf_b": jnp.zeros((1, C), jnp.float32),
    }
    return params


# ----------------------------- pure-JAX f32 reference -------------------------

def gpt_reference(radar1, radar2, params, *, n_embd, n_head, n_layer,
                  seq_len, T_anchor_dim):
    B, C, T = radar1.shape
    S = 2 * T_anchor_dim
    D = n_embd // n_head
    r1 = radar1.reshape(B, seq_len, -1, T)
    r2 = radar2.reshape(B, seq_len, -1, T)
    tok = jnp.concatenate([r1, r2], axis=1).transpose(0, 1, 3, 2).reshape(B, -1, n_embd)
    x = tok + params["pos_emb"][None]

    def ln(v, g, b):
        mu = v.mean(-1, keepdims=True)
        var = ((v - mu) ** 2).mean(-1, keepdims=True)
        return (v - mu) / jnp.sqrt(var + 1e-5) * g + b

    for l in range(n_layer):
        h = ln(x, params["ln1_g"][l], params["ln1_b"][l])
        q = (h @ params["wq"][l] + params["bq"][l]).reshape(B, S, n_head, D).transpose(0, 2, 1, 3)
        k = (h @ params["wk"][l] + params["bk"][l]).reshape(B, S, n_head, D).transpose(0, 2, 1, 3)
        v = (h @ params["wv"][l] + params["bv"][l]).reshape(B, S, n_head, D).transpose(0, 2, 1, 3)
        att = jax.nn.softmax((q @ jnp.swapaxes(k, -1, -2)) / math.sqrt(D), axis=-1)
        y = (att @ v).transpose(0, 2, 1, 3).reshape(B, S, n_embd)
        x = x + y @ params["wp"][l] + params["bp"][l]
        h = ln(x, params["ln2_g"][l], params["ln2_b"][l])
        h = jax.nn.relu(h @ params["w1"][l] + params["b1"][l])
        x = x + h @ params["w2"][l] + params["b2"][l]
    x = ln(x, params["lnf_g"][0], params["lnf_b"][0])
    x = x.reshape(B, 2 * seq_len, T_anchor_dim, n_embd).transpose(0, 1, 3, 2)
    return x[:, 0, :, :], x[:, 1, :, :]


# ----------------------------- main -------------------------------------------

if __name__ == "__main__":
    # Config consistent with the module's forward constraints:
    #   seq_len = 1, n_embd = C (input channel dim), T_anchor_dim = T
    B = 8
    n_embd = 128          # multiple of 128 -> lane-dense activations / stores
    n_head = 4
    block_exp = 4
    n_layer = 2
    seq_len = 1
    T_anchor_dim = 16     # => radar tensors are (B, n_embd, T_anchor_dim), S = 32

    key = jax.random.PRNGKey(0)
    k_r1, k_r2, k_par = jax.random.split(key, 3)
    radar1 = jax.random.normal(k_r1, (B, n_embd * seq_len, T_anchor_dim), dtype=jnp.float32)
    radar2 = jax.random.normal(k_r2, (B, n_embd * seq_len, T_anchor_dim), dtype=jnp.float32)

    params = init_params(k_par, n_embd=n_embd, n_head=n_head, block_exp=block_exp,
                         n_layer=n_layer, T_anchor_dim=T_anchor_dim)

    out1, out2 = gpt_forward(radar1, radar2, params,
                             n_embd=n_embd, n_head=n_head, n_layer=n_layer,
                             seq_len=seq_len, T_anchor_dim=T_anchor_dim)
    jax.block_until_ready((out1, out2))
    assert out1.shape == (B, n_embd, T_anchor_dim)
    assert out2.shape == (B, n_embd, T_anchor_dim)

    # f32 reference check (kernel matmuls are bf16 -> loose tolerance).
    ref1, ref2 = gpt_reference(radar1, radar2, params,
                               n_embd=n_embd, n_head=n_head, n_layer=n_layer,
                               seq_len=seq_len, T_anchor_dim=T_anchor_dim)
    err = max(float(jnp.max(jnp.abs(out1 - ref1))),
              float(jnp.max(jnp.abs(out2 - ref2))))
    assert err < 0.25, f"kernel/reference mismatch: {err}"
    print("KERNEL_OK")
</pallas_src>

<mosaic_0001>
module attributes {stable_mosaic.version = 11 : i64} {
  func.func @gpt_kernel(%arg0: i32, %arg1: i32, %arg2: memref<8x32x128xf32, #tpu.memory_space<vmem>>, %arg3: memref<32x128xf32, #tpu.memory_space<vmem>>, %arg4: memref<1x1x128xf32, #tpu.memory_space<vmem>>, %arg5: memref<1x1x128xf32, #tpu.memory_space<vmem>>, %arg6: memref<1x128x384xbf16, #tpu.memory_space<vmem>>, %arg7: memref<1x1x384xf32, #tpu.memory_space<vmem>>, %arg8: memref<1x128x128xbf16, #tpu.memory_space<vmem>>, %arg9: memref<1x1x128xf32, #tpu.memory_space<vmem>>, %arg10: memref<1x1x128xf32, #tpu.memory_space<vmem>>, %arg11: memref<1x1x128xf32, #tpu.memory_space<vmem>>, %arg12: memref<1x128x512xbf16, #tpu.memory_space<vmem>>, %arg13: memref<1x1x512xf32, #tpu.memory_space<vmem>>, %arg14: memref<1x512x128xbf16, #tpu.memory_space<vmem>>, %arg15: memref<1x1x128xf32, #tpu.memory_space<vmem>>, %arg16: memref<1x128xf32, #tpu.memory_space<vmem>>, %arg17: memref<1x128xf32, #tpu.memory_space<vmem>>, %arg18: memref<8x32x128xf32, #tpu.memory_space<vmem>>, %arg19: memref<256x128xf32, #tpu.memory_space<vmem>>) attributes {dimension_semantics = [#tpu.dimension_semantics<parallel>, #tpu.dimension_semantics<arbitrary>], iteration_bounds = array<i64: 1, 2>, scalar_prefetch = 0 : i64, scratch_operands = 1 : i64, tpu.core_type = #tpu.core_type<tc>, window_params = [{transform_indices = @transform_0, window_bounds = array<i64: 8, 32, 128>}, {pipeline_mode = #tpu.pipeline_mode<synchronous>, transform_indices = @transform_1, window_bounds = array<i64: 32, 128>}, {transform_indices = @transform_2, window_bounds = array<i64: 1, 1, 128>}, {transform_indices = @transform_3, window_bounds = array<i64: 1, 1, 128>}, {transform_indices = @transform_4, window_bounds = array<i64: 1, 128, 384>}, {transform_indices = @transform_5, window_bounds = array<i64: 1, 1, 384>}, {transform_indices = @transform_6, window_bounds = array<i64: 1, 128, 128>}, {transform_indices = @transform_7, window_bounds = array<i64: 1, 1, 128>}, {transform_indices = @transform_8, window_bounds = array<i64: 1, 1, 128>}, {transform_indices = @transform_9, window_bounds = array<i64: 1, 1, 128>}, {transform_indices = @transform_10, window_bounds = array<i64: 1, 128, 512>}, {transform_indices = @transform_11, window_bounds = array<i64: 1, 1, 512>}, {transform_indices = @transform_12, window_bounds = array<i64: 1, 512, 128>}, {transform_indices = @transform_13, window_bounds = array<i64: 1, 1, 128>}, {pipeline_mode = #tpu.pipeline_mode<synchronous>, transform_indices = @transform_14, window_bounds = array<i64: 1, 128>}, {pipeline_mode = #tpu.pipeline_mode<synchronous>, transform_indices = @transform_15, window_bounds = array<i64: 1, 128>}, {transform_indices = @transform_16, window_bounds = array<i64: 8, 32, 128>}]} {
    %c0_i32 = arith.constant 0 : i32
    %0 = arith.cmpi eq, %arg1, %c0_i32 : i32
    %1 = arith.extui %0 : i1 to i32
    %c0_i32_0 = arith.constant 0 : i32
    %2 = arith.cmpi ne, %1, %c0_i32_0 : i32
    scf.if %2 {
      %c0_60 = arith.constant 0 : index
      %c0_61 = arith.constant 0 : index
      %c0_62 = arith.constant 0 : index
      %147 = vector.load %arg2[%c0_60, %c0_61, %c0_62] : memref<8x32x128xf32, #tpu.memory_space<vmem>>, vector<8x32x128xf32>
      %c0_63 = arith.constant 0 : index
      %c0_64 = arith.constant 0 : index
      %148 = vector.load %arg3[%c0_63, %c0_64] : memref<32x128xf32, #tpu.memory_space<vmem>>, vector<32x128xf32>
      %149 = vector.shape_cast %148 : vector<32x128xf32> to vector<1x32x128xf32>
      %150 = vector.broadcast %149 : vector<1x32x128xf32> to vector<8x32x128xf32>
      %151 = arith.addf %147, %150 : vector<8x32x128xf32>
      %152 = vector.shape_cast %151 : vector<8x32x128xf32> to vector<256x128xf32>
      %c0_65 = arith.constant 0 : index
      %c0_66 = arith.constant 0 : index
      %153 = vector.load %arg19[%c0_65, %c0_66] : memref<256x128xf32, #tpu.memory_space<vmem>>, vector<256x128xf32>
      tpu.vector_store %arg19[%c0_65, %c0_66], %152 {strides = array<i32>} : memref<256x128xf32, #tpu.memory_space<vmem>>, vector<256x128xf32>,
    } else {
    }
    %c0 = arith.constant 0 : index
    %c0_1 = arith.constant 0 : index
    %3 = vector.load %arg19[%c0, %c0_1] : memref<256x128xf32, #tpu.memory_space<vmem>>, vector<256x128xf32>
    %c0_2 = arith.constant 0 : index
    %c0_3 = arith.constant 0 : index
    %c0_4 = arith.constant 0 : index
    %4 = vector.load %arg4[%c0_2, %c0_3, %c0_4] : memref<1x1x128xf32, #tpu.memory_space<vmem>>, vector<1x1x128xf32>
    %5 = vector.shape_cast %4 : vector<1x1x128xf32> to vector<1x128xf32>
    %c0_5 = arith.constant 0 : index
    %c0_6 = arith.constant 0 : index
    %c0_7 = arith.constant 0 : index
    %6 = vector.load %arg5[%c0_5, %c0_6, %c0_7] : memref<1x1x128xf32, #tpu.memory_space<vmem>>, vector<1x1x128xf32>
    %7 = vector.shape_cast %6 : vector<1x1x128xf32> to vector<1x128xf32>
    %cst = arith.constant dense<0.000000e+00> : vector<256xf32>
    %8 = vector.multi_reduction <add>, %3, %cst [1] : vector<256x128xf32> to vector<256xf32>
    %9 = vector.shape_cast %8 : vector<256xf32> to vector<256x1xf32>
    %cst_8 = arith.constant 1.280000e+02 : f32
    %10 = vector.broadcast %cst_8 : f32 to vector<256x1xf32>
    %11 = arith.divf %9, %10 : vector<256x1xf32>
    %12 = vector.broadcast %11 : vector<256x1xf32> to vector<256x128xf32>
    %13 = arith.subf %3, %12 : vector<256x128xf32>
    %14 = arith.mulf %13, %13 : vector<256x128xf32>
    %cst_9 = arith.constant dense<0.000000e+00> : vector<256xf32>
    %15 = vector.multi_reduction <add>, %14, %cst_9 [1] : vector<256x128xf32> to vector<256xf32>
    %16 = vector.shape_cast %15 : vector<256xf32> to vector<256x1xf32>
    %cst_10 = arith.constant 1.280000e+02 : f32
    %17 = vector.broadcast %cst_10 : f32 to vector<256x1xf32>
    %18 = arith.divf %16, %17 : vector<256x1xf32>
    %19 = vector.broadcast %11 : vector<256x1xf32> to vector<256x128xf32>
    %20 = arith.subf %3, %19 : vector<256x128xf32>
    %cst_11 = arith.constant 9.99999974E-6 : f32
    %21 = vector.broadcast %cst_11 : f32 to vector<256x1xf32>
    %22 = arith.addf %18, %21 : vector<256x1xf32>
    %23 = math.rsqrt %22 : vector<256x1xf32>
    %24 = vector.broadcast %23 : vector<256x1xf32> to vector<256x128xf32>
    %25 = arith.mulf %20, %24 : vector<256x128xf32>
    %26 = vector.broadcast %5 : vector<1x128xf32> to vector<256x128xf32>
    %27 = arith.mulf %25, %26 : vector<256x128xf32>
    %28 = vector.broadcast %7 : vector<1x128xf32> to vector<256x128xf32>
    %29 = arith.addf %27, %28 : vector<256x128xf32>
    %30 = arith.truncf %29 : vector<256x128xf32> to vector<256x128xbf16>
    %c0_12 = arith.constant 0 : index
    %c0_13 = arith.constant 0 : index
    %c0_14 = arith.constant 0 : index
    %31 = vector.load %arg6[%c0_12, %c0_13, %c0_14] : memref<1x128x384xbf16, #tpu.memory_space<vmem>>, vector<1x128x384xbf16>
    %32 = vector.shape_cast %31 : vector<1x128x384xbf16> to vector<128x384xbf16>
    %cst_15 = arith.constant dense<0.000000e+00> : vector<256x384xf32>
    %33 = tpu.matmul %30, %32, %cst_15 {dimension_numbers = #tpu.dot_dimension_numbers<[1], [0], [0], [1], [0, 0, 1, 1], [], []>} : vector<256x128xbf16>, vector<128x384xbf16>, vector<256x384xf32> -> vector<256x384xf32>
    %c0_16 = arith.constant 0 : index
    %c0_17 = arith.constant 0 : index
    %c0_18 = arith.constant 0 : index
    %34 = vector.load %arg7[%c0_16, %c0_17, %c0_18] : memref<1x1x384xf32, #tpu.memory_space<vmem>>, vector<1x1x384xf32>
    %35 = vector.shape_cast %34 : vector<1x1x384xf32> to vector<1x384xf32>
    %36 = vector.broadcast %35 : vector<1x384xf32> to vector<256x384xf32>
    %37 = arith.addf %33, %36 : vector<256x384xf32>
    %38 = arith.truncf %37 : vector<256x384xf32> to vector<256x384xbf16>
    %39 = vector.extract_strided_slice %38 {offsets = [0, 0], sizes = [256, 128], strides = [1, 1]} : vector<256x384xbf16> to vector<256x128xbf16>
    %40 = vector.extract_strided_slice %39 {offsets = [0, 0], sizes = [256, 32], strides = [1, 1]} : vector<256x128xbf16> to vector<256x32xbf16>
    %41 = vector.shape_cast %40 : vector<256x32xbf16> to vector<8x32x32xbf16>
    %42 = vector.extract_strided_slice %39 {offsets = [0, 32], sizes = [256, 32], strides = [1, 1]} : vector<256x128xbf16> to vector<256x32xbf16>
    %43 = vector.shape_cast %42 : vector<256x32xbf16> to vector<8x32x32xbf16>
    %44 = vector.extract_strided_slice %39 {offsets = [0, 64], sizes = [256, 32], strides = [1, 1]} : vector<256x128xbf16> to vector<256x32xbf16>
    %45 = vector.shape_cast %44 : vector<256x32xbf16> to vector<8x32x32xbf16>
    %46 = vector.extract_strided_slice %39 {offsets = [0, 96], sizes = [256, 32], strides = [1, 1]} : vector<256x128xbf16> to vector<256x32xbf16>
    %47 = vector.shape_cast %46 : vector<256x32xbf16> to vector<8x32x32xbf16>
    %48 = tpu.concatenate %41, %43, %45, %47 in 0 : vector<8x32x32xbf16>, vector<8x32x32xbf16>, vector<8x32x32xbf16>, vector<8x32x32xbf16> -> vector<32x32x32xbf16>
    %49 = vector.extract_strided_slice %38 {offsets = [0, 128], sizes = [256, 128], strides = [1, 1]} : vector<256x384xbf16> to vector<256x128xbf16>
    %50 = vector.extract_strided_slice %49 {offsets = [0, 0], sizes = [256, 32], strides = [1, 1]} : vector<256x128xbf16> to vector<256x32xbf16>
    %51 = vector.shape_cast %50 : vector<256x32xbf16> to vector<8x32x32xbf16>
    %52 = vector.extract_strided_slice %49 {offsets = [0, 32], sizes = [256, 32], strides = [1, 1]} : vector<256x128xbf16> to vector<256x32xbf16>
    %53 = vector.shape_cast %52 : vector<256x32xbf16> to vector<8x32x32xbf16>
    %54 = vector.extract_strided_slice %49 {offsets = [0, 64], sizes = [256, 32], strides = [1, 1]} : vector<256x128xbf16> to vector<256x32xbf16>
    %55 = vector.shape_cast %54 : vector<256x32xbf16> to vector<8x32x32xbf16>
    %56 = vector.extract_strided_slice %49 {offsets = [0, 96], sizes = [256, 32], strides = [1, 1]} : vector<256x128xbf16> to vector<256x32xbf16>
    %57 = vector.shape_cast %56 : vector<256x32xbf16> to vector<8x32x32xbf16>
    %58 = tpu.concatenate %51, %53, %55, %57 in 0 : vector<8x32x32xbf16>, vector<8x32x32xbf16>, vector<8x32x32xbf16>, vector<8x32x32xbf16> -> vector<32x32x32xbf16>
    %59 = vector.extract_strided_slice %38 {offsets = [0, 256], sizes = [256, 128], strides = [1, 1]} : vector<256x384xbf16> to vector<256x128xbf16>
    %60 = vector.extract_strided_slice %59 {offsets = [0, 0], sizes = [256, 32], strides = [1, 1]} : vector<256x128xbf16> to vector<256x32xbf16>
    %61 = vector.shape_cast %60 : vector<256x32xbf16> to vector<8x32x32xbf16>
    %62 = vector.extract_strided_slice %59 {offsets = [0, 32], sizes = [256, 32], strides = [1, 1]} : vector<256x128xbf16> to vector<256x32xbf16>
    %63 = vector.shape_cast %62 : vector<256x32xbf16> to vector<8x32x32xbf16>
    %64 = vector.extract_strided_slice %59 {offsets = [0, 64], sizes = [256, 32], strides = [1, 1]} : vector<256x128xbf16> to vector<256x32xbf16>
    %65 = vector.shape_cast %64 : vector<256x32xbf16> to vector<8x32x32xbf16>
    %66 = vector.extract_strided_slice %59 {offsets = [0, 96], sizes = [256, 32], strides = [1, 1]} : vector<256x128xbf16> to vector<256x32xbf16>
    %67 = vector.shape_cast %66 : vector<256x32xbf16> to vector<8x32x32xbf16>
    %68 = tpu.concatenate %61, %63, %65, %67 in 0 : vector<8x32x32xbf16>, vector<8x32x32xbf16>, vector<8x32x32xbf16>, vector<8x32x32xbf16> -> vector<32x32x32xbf16>
    "tpu.trace_start"() <{level = 10 : i32, message = "gsd,gtd->gst"}> : () -> ()
    %cst_19 = arith.constant dense<0.000000e+00> : vector<32x32x32xf32>
    %69 = tpu.matmul %48, %58, %cst_19 {dimension_numbers = #tpu.dot_dimension_numbers<[2], [2], [1], [1], [0, 0, 0, 1, 1, 1], [0], [0]>} : vector<32x32x32xbf16>, vector<32x32x32xbf16>, vector<32x32x32xf32> -> vector<32x32x32xf32>
    "tpu.trace_stop"() : () -> ()
    %cst_20 = arith.constant 0.176776692 : f32
    %70 = vector.broadcast %cst_20 : f32 to vector<32x32x32xf32>
    %71 = arith.mulf %69, %70 : vector<32x32x32xf32>
    %cst_21 = arith.constant dense<0xFF800000> : vector<32x32xf32>
    %72 = vector.multi_reduction <maximumf>, %71, %cst_21 [2] : vector<32x32x32xf32> to vector<32x32xf32>
    %73 = vector.shape_cast %72 : vector<32x32xf32> to vector<32x32x1xf32>
    %74 = vector.broadcast %73 : vector<32x32x1xf32> to vector<32x32x32xf32>
    %75 = arith.subf %71, %74 : vector<32x32x32xf32>
    %76 = math.exp %75 : vector<32x32x32xf32>
    %cst_22 = arith.constant dense<0.000000e+00> : vector<32x32xf32>
    %77 = vector.multi_reduction <add>, %76, %cst_22 [2] : vector<32x32x32xf32> to vector<32x32xf32>
    %78 = vector.shape_cast %77 : vector<32x32xf32> to vector<32x32x1xf32>
    %79 = arith.truncf %76 : vector<32x32x32xf32> to vector<32x32x32xbf16>
    "tpu.trace_start"() <{level = 10 : i32, message = "gst,gtd->gsd"}> : () -> ()
    %cst_23 = arith.constant dense<0.000000e+00> : vector<32x32x32xf32>
    %80 = tpu.matmul %79, %68, %cst_23 {dimension_numbers = #tpu.dot_dimension_numbers<[2], [1], [1], [2], [0, 0, 0, 1, 1, 2], [0], [0]>} : vector<32x32x32xbf16>, vector<32x32x32xbf16>, vector<32x32x32xf32> -> vector<32x32x32xf32>
    "tpu.trace_stop"() : () -> ()
    %81 = vector.broadcast %78 : vector<32x32x1xf32> to vector<32x32x32xf32>
    %82 = arith.divf %80, %81 : vector<32x32x32xf32>
    %83 = vector.extract_strided_slice %82 {offsets = [0, 0, 0], sizes = [8, 32, 32], strides = [1, 1, 1]} : vector<32x32x32xf32> to vector<8x32x32xf32>
    %84 = vector.extract_strided_slice %82 {offsets = [8, 0, 0], sizes = [8, 32, 32], strides = [1, 1, 1]} : vector<32x32x32xf32> to vector<8x32x32xf32>
    %85 = vector.extract_strided_slice %82 {offsets = [16, 0, 0], sizes = [8, 32, 32], strides = [1, 1, 1]} : vector<32x32x32xf32> to vector<8x32x32xf32>
    %86 = vector.extract_strided_slice %82 {offsets = [24, 0, 0], sizes = [8, 32, 32], strides = [1, 1, 1]} : vector<32x32x32xf32> to vector<8x32x32xf32>
    %87 = tpu.concatenate %83, %84, %85, %86 in 2 : vector<8x32x32xf32>, vector<8x32x32xf32>, vector<8x32x32xf32>, vector<8x32x32xf32> -> vector<8x32x128xf32>
    %88 = vector.shape_cast %87 : vector<8x32x128xf32> to vector<256x128xf32>
    %89 = arith.truncf %88 : vector<256x128xf32> to vector<256x128xbf16>
    %c0_24 = arith.constant 0 : index
    %c0_25 = arith.constant 0 : index
    %c0_26 = arith.constant 0 : index
    %90 = vector.load %arg8[%c0_24, %c0_25, %c0_26] : memref<1x128x128xbf16, #tpu.memory_space<vmem>>, vector<1x128x128xbf16>
    %91 = vector.shape_cast %90 : vector<1x128x128xbf16> to vector<128x128xbf16>
    %cst_27 = arith.constant dense<0.000000e+00> : vector<256x128xf32>
    %92 = tpu.matmul %89, %91, %cst_27 {dimension_numbers = #tpu.dot_dimension_numbers<[1], [0], [0], [1], [0, 0, 1, 1], [], []>} : vector<256x128xbf16>, vector<128x128xbf16>, vector<256x128xf32> -> vector<256x128xf32>
    %93 = arith.addf %3, %92 : vector<256x128xf32>
    %c0_28 = arith.constant 0 : index
    %c0_29 = arith.constant 0 : index
    %c0_30 = arith.constant 0 : index
    %94 = vector.load %arg9[%c0_28, %c0_29, %c0_30] : memref<1x1x128xf32, #tpu.memory_space<vmem>>, vector<1x1x128xf32>
    %95 = vector.shape_cast %94 : vector<1x1x128xf32> to vector<1x128xf32>
    %96 = vector.broadcast %95 : vector<1x128xf32> to vector<256x128xf32>
    %97 = arith.addf %93, %96 : vector<256x128xf32>
    %c0_31 = arith.constant 0 : index
    %c0_32 = arith.constant 0 : index
    %c0_33 = arith.constant 0 : index
    %98 = vector.load %arg10[%c0_31, %c0_32, %c0_33] : memref<1x1x128xf32, #tpu.memory_space<vmem>>, vector<1x1x128xf32>
    %99 = vector.shape_cast %98 : vector<1x1x128xf32> to vector<1x128xf32>
    %c0_34 = arith.constant 0 : index
    %c0_35 = arith.constant 0 : index
    %c0_36 = arith.constant 0 : index
    %100 = vector.load %arg11[%c0_34, %c0_35, %c0_36] : memref<1x1x128xf32, #tpu.memory_space<vmem>>, vector<1x1x128xf32>
    %101 = vector.shape_cast %100 : vector<1x1x128xf32> to vector<1x128xf32>
    %cst_37 = arith.constant dense<0.000000e+00> : vector<256xf32>
    %102 = vector.multi_reduction <add>, %97, %cst_37 [1] : vector<256x128xf32> to vector<256xf32>
    %103 = vector.shape_cast %102 : vector<256xf32> to vector<256x1xf32>
    %cst_38 = arith.constant 1.280000e+02 : f32
    %104 = vector.broadcast %cst_38 : f32 to vector<256x1xf32>
    %105 = arith.divf %103, %104 : vector<256x1xf32>
    %106 = vector.broadcast %105 : vector<256x1xf32> to vector<256x128xf32>
    %107 = arith.subf %97, %106 : vector<256x128xf32>
    %108 = arith.mulf %107, %107 : vector<256x128xf32>
    %cst_39 = arith.constant dense<0.000000e+00> : vector<256xf32>
    %109 = vector.multi_reduction <add>, %108, %cst_39 [1] : vector<256x128xf32> to vector<256xf32>
    %110 = vector.shape_cast %109 : vector<256xf32> to vector<256x1xf32>
    %cst_40 = arith.constant 1.280000e+02 : f32
    %111 = vector.broadcast %cst_40 : f32 to vector<256x1xf32>
    %112 = arith.divf %110, %111 : vector<256x1xf32>
    %113 = vector.broadcast %105 : vector<256x1xf32> to vector<256x128xf32>
    %114 = arith.subf %97, %113 : vector<256x128xf32>
    %cst_41 = arith.constant 9.99999974E-6 : f32
    %115 = vector.broadcast %cst_41 : f32 to vector<256x1xf32>
    %116 = arith.addf %112, %115 : vector<256x1xf32>
    %117 = math.rsqrt %116 : vector<256x1xf32>
    %118 = vector.broadcast %117 : vector<256x1xf32> to vector<256x128xf32>
    %119 = arith.mulf %114, %118 : vector<256x128xf32>
    %120 = vector.broadcast %99 : vector<1x128xf32> to vector<256x128xf32>
    %121 = arith.mulf %119, %120 : vector<256x128xf32>
    %122 = vector.broadcast %101 : vector<1x128xf32> to vector<256x128xf32>
    %123 = arith.addf %121, %122 : vector<256x128xf32>
    %124 = arith.truncf %123 : vector<256x128xf32> to vector<256x128xbf16>
    %c0_42 = arith.constant 0 : index
    %c0_43 = arith.constant 0 : index
    %c0_44 = arith.constant 0 : index
    %125 = vector.load %arg12[%c0_42, %c0_43, %c0_44] : memref<1x128x512xbf16, #tpu.memory_space<vmem>>, vector<1x128x512xbf16>
    %126 = vector.shape_cast %125 : vector<1x128x512xbf16> to vector<128x512xbf16>
    %cst_45 = arith.constant dense<0.000000e+00> : vector<256x512xf32>
    %127 = tpu.matmul %124, %126, %cst_45 {dimension_numbers = #tpu.dot_dimension_numbers<[1], [0], [0], [1], [0, 0, 1, 1], [], []>} : vector<256x128xbf16>, vector<128x512xbf16>, vector<256x512xf32> -> vector<256x512xf32>
    %c0_46 = arith.constant 0 : index
    %c0_47 = arith.constant 0 : index
    %c0_48 = arith.constant 0 : index
    %128 = vector.load %arg13[%c0_46, %c0_47, %c0_48] : memref<1x1x512xf32, #tpu.memory_space<vmem>>, vector<1x1x512xf32>
    %129 = vector.shape_cast %128 : vector<1x1x512xf32> to vector<1x512xf32>
    %130 = vector.broadcast %129 : vector<1x512xf32> to vector<256x512xf32>
    %131 = arith.addf %127, %130 : vector<256x512xf32>
    %cst_49 = arith.constant 0.000000e+00 : f32
    %132 = vector.broadcast %cst_49 : f32 to vector<256x512xf32>
    %133 = arith.maximumf %131, %132 : vector<256x512xf32>
    %134 = arith.truncf %133 : vector<256x512xf32> to vector<256x512xbf16>
    %c0_50 = arith.constant 0 : index
    %c0_51 = arith.constant 0 : index
    %c0_52 = arith.constant 0 : index
    %135 = vector.load %arg14[%c0_50, %c0_51, %c0_52] : memref<1x512x128xbf16, #tpu.memory_space<vmem>>, vector<1x512x128xbf16>
    %136 = vector.shape_cast %135 : vector<1x512x128xbf16> to vector<512x128xbf16>
    %cst_53 = arith.constant dense<0.000000e+00> : vector<256x128xf32>
    %137 = tpu.matmul %134, %136, %cst_53 {dimension_numbers = #tpu.dot_dimension_numbers<[1], [0], [0], [1], [0, 0, 1, 1], [], []>} : vector<256x512xbf16>, vector<512x128xbf16>, vector<256x128xf32> -> vector<256x128xf32>
    %138 = arith.addf %97, %137 : vector<256x128xf32>
    %c0_54 = arith.constant 0 : index
    %c0_55 = arith.constant 0 : index
    %c0_56 = arith.constant 0 : index
    %139 = vector.load %arg15[%c0_54, %c0_55, %c0_56] : memref<1x1x128xf32, #tpu.memory_space<vmem>>, vector<1x1x128xf32>
    %140 = vector.shape_cast %139 : vector<1x1x128xf32> to vector<1x128xf32>
    %141 = vector.broadcast %140 : vector<1x128xf32> to vector<256x128xf32>
    %142 = arith.addf %138, %141 : vector<256x128xf32>
    %c0_57 = arith.constant 0 : index
    %c0_58 = arith.constant 0 : index
    %143 = vector.load %arg19[%c0_57, %c0_58] : memref<256x128xf32, #tpu.memory_space<vmem>>, vector<256x128xf32>
    tpu.vector_store %arg19[%c0_57, %c0_58], %142 {strides = array<i32>} : memref<256x128xf32, #tpu.memory_space<vmem>>, vector<256x128xf32>,
    %c1_i32 = arith.constant 1 : i32
    %144 = arith.cmpi eq, %arg1, %c1_i32 : i32
    %145 = arith.extui %144 : i1 to i32
    %c0_i32_59 = arith.constant 0 : i32
    %146 = arith.cmpi ne, %145, %c0_i32_59 : i32
    scf.if %146 {
      %c0_60 = arith.constant 0 : index
      %c0_61 = arith.constant 0 : index
      %147 = vector.load %arg16[%c0_60, %c0_61] : memref<1x128xf32, #tpu.memory_space<vmem>>, vector<1x128xf32>
      %c0_62 = arith.constant 0 : index
      %c0_63 = arith.constant 0 : index
      %148 = vector.load %arg17[%c0_62, %c0_63] : memref<1x128xf32, #tpu.memory_space<vmem>>, vector<1x128xf32>
      %cst_64 = arith.constant dense<0.000000e+00> : vector<256xf32>
      %149 = vector.multi_reduction <add>, %142, %cst_64 [1] : vector<256x128xf32> to vector<256xf32>
      %150 = vector.shape_cast %149 : vector<256xf32> to vector<256x1xf32>
      %cst_65 = arith.constant 1.280000e+02 : f32
      %151 = vector.broadcast %cst_65 : f32 to vector<256x1xf32>
      %152 = arith.divf %150, %151 : vector<256x1xf32>
      %153 = vector.broadcast %152 : vector<256x1xf32> to vector<256x128xf32>
      %154 = arith.subf %142, %153 : vector<256x128xf32>
      %155 = arith.mulf %154, %154 : vector<256x128xf32>
      %cst_66 = arith.constant dense<0.000000e+00> : vector<256xf32>
      %156 = vector.multi_reduction <add>, %155, %cst_66 [1] : vector<256x128xf32> to vector<256xf32>
      %157 = vector.shape_cast %156 : vector<256xf32> to vector<256x1xf32>
      %cst_67 = arith.constant 1.280000e+02 : f32
      %158 = vector.broadcast %cst_67 : f32 to vector<256x1xf32>
      %159 = arith.divf %157, %158 : vector<256x1xf32>
      %160 = vector.broadcast %152 : vector<256x1xf32> to vector<256x128xf32>
      %161 = arith.subf %142, %160 : vector<256x128xf32>
      %cst_68 = arith.constant 9.99999974E-6 : f32
      %162 = vector.broadcast %cst_68 : f32 to vector<256x1xf32>
      %163 = arith.addf %159, %162 : vector<256x1xf32>
      %164 = math.rsqrt %163 : vector<256x1xf32>
      %165 = vector.broadcast %164 : vector<256x1xf32> to vector<256x128xf32>
      %166 = arith.mulf %161, %165 : vector<256x128xf32>
      %167 = vector.broadcast %147 : vector<1x128xf32> to vector<256x128xf32>
      %168 = arith.mulf %166, %167 : vector<256x128xf32>
      %169 = vector.broadcast %148 : vector<1x128xf32> to vector<256x128xf32>
      %170 = arith.addf %168, %169 : vector<256x128xf32>
      %171 = vector.shape_cast %170 : vector<256x128xf32> to vector<8x32x128xf32>
      %c0_69 = arith.constant 0 : index
      %c0_70 = arith.constant 0 : index
      %c0_71 = arith.constant 0 : index
      %172 = vector.load %arg18[%c0_69, %c0_70, %c0_71] : memref<8x32x128xf32, #tpu.memory_space<vmem>>, vector<8x32x128xf32>
      tpu.vector_store %arg18[%c0_69, %c0_70, %c0_71], %171 {strides = array<i32>} : memref<8x32x128xf32, #tpu.memory_space<vmem>>, vector<8x32x128xf32>,
    } else {
    }
    return
  }
  func.func @transform_0(%arg0: i32, %arg1: i32) -> (i32, i32, i32) {
    %c0_i32 = arith.constant 0 : i32
    %c0_i32_0 = arith.constant 0 : i32
    %c0_i32_1 = arith.constant 0 : i32
    return %arg0, %c0_i32, %c0_i32_0 : i32, i32, i32
  }
  func.func @transform_1(%arg0: i32, %arg1: i32) -> (i32, i32) {
    %c0_i32 = arith.constant 0 : i32
    %c0_i32_0 = arith.constant 0 : i32
    %c0_i32_1 = arith.constant 0 : i32
    return %c0_i32, %c0_i32_0 : i32, i32
  }
  func.func @transform_2(%arg0: i32, %arg1: i32) -> (i32, i32, i32) {
    %c0_i32 = arith.constant 0 : i32
    %c0_i32_0 = arith.constant 0 : i32
    %c0_i32_1 = arith.constant 0 : i32
    return %arg1, %c0_i32, %c0_i32_0 : i32, i32, i32
  }
  func.func @transform_3(%arg0: i32, %arg1: i32) -> (i32, i32, i32) {
    %c0_i32 = arith.constant 0 : i32
    %c0_i32_0 = arith.constant 0 : i32
    %c0_i32_1 = arith.constant 0 : i32
    return %arg1, %c0_i32, %c0_i32_0 : i32, i32, i32
  }
  func.func @transform_4(%arg0: i32, %arg1: i32) -> (i32, i32, i32) {
    %c0_i32 = arith.constant 0 : i32
    %c0_i32_0 = arith.constant 0 : i32
    %c0_i32_1 = arith.constant 0 : i32
    return %arg1, %c0_i32, %c0_i32_0 : i32, i32, i32
  }
  func.func @transform_5(%arg0: i32, %arg1: i32) -> (i32, i32, i32) {
    %c0_i32 = arith.constant 0 : i32
    %c0_i32_0 = arith.constant 0 : i32
    %c0_i32_1 = arith.constant 0 : i32
    return %arg1, %c0_i32, %c0_i32_0 : i32, i32, i32
  }
  func.func @transform_6(%arg0: i32, %arg1: i32) -> (i32, i32, i32) {
    %c0_i32 = arith.constant 0 : i32
    %c0_i32_0 = arith.constant 0 : i32
    %c0_i32_1 = arith.constant 0 : i32
    return %arg1, %c0_i32, %c0_i32_0 : i32, i32, i32
  }
  func.func @transform_7(%arg0: i32, %arg1: i32) -> (i32, i32, i32) {
    %c0_i32 = arith.constant 0 : i32
    %c0_i32_0 = arith.constant 0 : i32
    %c0_i32_1 = arith.constant 0 : i32
    return %arg1, %c0_i32, %c0_i32_0 : i32, i32, i32
  }
  func.func @transform_8(%arg0: i32, %arg1: i32) -> (i32, i32, i32) {
    %c0_i32 = arith.constant 0 : i32
    %c0_i32_0 = arith.constant 0 : i32
    %c0_i32_1 = arith.constant 0 : i32
    return %arg1, %c0_i32, %c0_i32_0 : i32, i32, i32
  }
  func.func @transform_9(%arg0: i32, %arg1: i32) -> (i32, i32, i32) {
    %c0_i32 = arith.constant 0 : i32
    %c0_i32_0 = arith.constant 0 : i32
    %c0_i32_1 = arith.constant 0 : i32
    return %arg1, %c0_i32, %c0_i32_0 : i32, i32, i32
  }
  func.func @transform_10(%arg0: i32, %arg1: i32) -> (i32, i32, i32) {
    %c0_i32 = arith.constant 0 : i32
    %c0_i32_0 = arith.constant 0 : i32
    %c0_i32_1 = arith.constant 0 : i32
    return %arg1, %c0_i32, %c0_i32_0 : i32, i32, i32
  }
  func.func @transform_11(%arg0: i32, %arg1: i32) -> (i32, i32, i32) {
    %c0_i32 = arith.constant 0 : i32
    %c0_i32_0 = arith.constant 0 : i32
    %c0_i32_1 = arith.constant 0 : i32
    return %arg1, %c0_i32, %c0_i32_0 : i32, i32, i32
  }
  func.func @transform_12(%arg0: i32, %arg1: i32) -> (i32, i32, i32) {
    %c0_i32 = arith.constant 0 : i32
    %c0_i32_0 = arith.constant 0 : i32
    %c0_i32_1 = arith.constant 0 : i32
    return %arg1, %c0_i32, %c0_i32_0 : i32, i32, i32
  }
  func.func @transform_13(%arg0: i32, %arg1: i32) -> (i32, i32, i32) {
    %c0_i32 = arith.constant 0 : i32
    %c0_i32_0 = arith.constant 0 : i32
    %c0_i32_1 = arith.constant 0 : i32
    return %arg1, %c0_i32, %c0_i32_0 : i32, i32, i32
  }
  func.func @transform_14(%arg0: i32, %arg1: i32) -> (i32, i32) {
    %c0_i32 = arith.constant 0 : i32
    %c0_i32_0 = arith.constant 0 : i32
    %c0_i32_1 = arith.constant 0 : i32
    return %c0_i32, %c0_i32_0 : i32, i32
  }
  func.func @transform_15(%arg0: i32, %arg1: i32) -> (i32, i32) {
    %c0_i32 = arith.constant 0 : i32
    %c0_i32_0 = arith.constant 0 : i32
    %c0_i32_1 = arith.constant 0 : i32
    return %c0_i32, %c0_i32_0 : i32, i32
  }
  func.func @transform_16(%arg0: i32, %arg1: i32) -> (i32, i32, i32) {
    %c0_i32 = arith.constant 0 : i32
    %c0_i32_0 = arith.constant 0 : i32
    %c0_i32_1 = arith.constant 0 : i32
    return %arg0, %c0_i32, %c0_i32_0 : i32, i32, i32
  }
}

</mosaic_0001>

<bundles_post_ra>
// kernel: tpu_custom_call.1
= control target key start
LH: loop header
LB: loop body
LE: loop exit
PB: predicated region body
PF: predicated region fallthrough
CT: control target
= control target key end

     0   :  { %s19762_s0 = inlined_call_operand.hbm [shape: f32[8,32,128], index: 0, kind: input, shape index: {}]   ;;  %s19763_s1 = inlined_call_operand.hbm [shape: f32[32,128], index: 1, kind: input, shape index: {}]   ;;  %s19764_s2 = inlined_call_operand.vmem [shape: f32[2,1,128], index: 2, kind: input, shape index: {}]   ;;  %s19765_s3 = inlined_call_operand.hbm [shape: f32[2,1,128], index: 3, kind: input, shape index: {}]   ;;  %s19766_s4 = inlined_call_operand.hbm [shape: bf16[2,128,384], index: 4, kind: input, shape index: {}]   ;;  %s19767_s5 = inlined_call_operand.vmem [shape: f32[2,1,384], index: 5, kind: input, shape index: {}]   ;;  %s19768_s6 = inlined_call_operand.hbm [shape: bf16[2,128,128], index: 6, kind: input, shape index: {}]   ;;  %s19769_s7 = inlined_call_operand.hbm [shape: f32[2,1,128], index: 7, kind: input, shape index: {}]   ;;  %s19770_s8 = inlined_call_operand.hbm [shape: f32[2,1,128], index: 8, kind: input, shape index: {}]   ;;  %s19771_s9 = inlined_call_operand.hbm [shape: f32[2,1,128], index: 9, kind: input, shape index: {}]   ;;  %s19772_s10 = inlined_call_operand.hbm [shape: bf16[2,128,512], index: 10, kind: input, shape index: {}]   ;;  %s19773_s11 = inlined_call_operand.vmem [shape: f32[2,1,512], index: 11, kind: input, shape index: {}]   ;;  %s19774_s12 = inlined_call_operand.hbm [shape: bf16[2,512,128], index: 12, kind: input, shape index: {}]   ;;  %s19775_s13 = inlined_call_operand.vmem [shape: f32[2,1,128], index: 13, kind: input, shape index: {}]   ;;  %s19776_s14 = inlined_call_operand.vmem [shape: f32[1,128], index: 14, kind: input, shape index: {}]   ;;  %s19777_s15 = inlined_call_operand.vmem [shape: f32[1,128], index: 15, kind: input, shape index: {}]   ;;  %s19778_s16 = inlined_call_operand.hbm [shape: f32[8,32,128], index: 16, kind: output, shape index: {}]  }
   0x1   :  { %20014 = sst [smem:[#allocation150_spill]] %s19762_s0 }
   0x2   :  { %20015 = sst [smem:[#allocation151_spill]] %s19763_s1 }
   0x3   :  { %20016 = sst [smem:[#allocation152_spill]] %s19764_s2 }
   0x4   :  { %20017 = sst [smem:[#allocation153_spill]] %s19765_s3 }
   0x5   :  { %20018 = sst [smem:[#allocation154_spill]] %s19766_s4 }
   0x6   :  { %20019 = sst [smem:[#allocation155_spill]] %s19767_s5 }
   0x7   :  { %20020 = sst [smem:[#allocation156_spill]] %s19768_s6 }
   0x8   :  { %20021 = sst [smem:[#allocation157_spill]] %s19769_s7 }
   0x9   :  { %20022 = sst [smem:[#allocation158_spill]] %s19770_s8 }
   0xa   :  { %20023 = sst [smem:[#allocation159_spill]] %s19773_s11 }
   0xb   :  { %20024 = sst [smem:[#allocation160_spill]] %s19775_s13 }
   0xc   :  { %20025 = sst [smem:[#allocation161_spill]] %s19776_s14 }
   0xd   :  { %20026 = sst [smem:[#allocation162_spill]] %s19777_s15 }
   0xe   :  { %20027 = sst [smem:[#allocation163_spill]] %s19778_s16 }
   0xf   :  { %21 = vsyncpa [#allocation4], 0 }
  0x10   :  { %22 = vsyncpa [#allocation7], 0 }
  0x11   :  { %23 = vsyncpa [#allocation5], 0  ;;  %s14373_s21 = smov 0   ;;  %s14375_s22 = smov 0  }
  0x12   :  { %s14377_s23 = smov 0   ;;  %s14379_s24 = smov 0  }
  0x13   :  { %s14381_s25 = smov 0   ;;  %s14383_s26 = smov 0  }
  0x14 LB: > { %20028 = sst [smem:[#allocation21_spill]] %s14245_s22  ;;  %s14402_s27 = sadd.s32 4294967295, %s14261_s26   ;;  %s14261_s26 = sphi %s14383_s26, %s29_s26   ;;  %s14257_s25 = sphi %s14381_s25, %s20695_s25   ;;  %s14253_s24 = sphi %s14379_s24, %s20694_s24   ;;  %s14249_s23 = sphi %s14377_s23, %s20692_s23   ;;  %s14245_s22 = sphi %s14375_s22, %s20691_s22   ;;  %s14241_s21 = sphi %s14373_s21, %s20690_s21  }
  0x15   : > { %20029 = sst [smem:[#allocation22_spill]] %s14249_s23  ;;  %p128_p0 = scmp.ne.s32.totalorder %s14249_s23, %s14245_s22 }
  0x16   : > { %20030 = sst [smem:[#allocation23_spill]] %s14253_s24  ;;  %p129_p1 = scmp.eq.s32.totalorder %s14261_s26, 0 }
  0x17   : > { %20031 = sst [smem:[#allocation24_spill]] %s14261_s26  ;;  %p134_p2 = scmp.ne.s32.totalorder %s14245_s22, %s14241_s21 }
  0x18   : > { %p19779_p3 = scmp.eq.s32.totalorder %s14402_s27, 0  ;;  %p130_p4 = por %p129_p1, %p128_p0 }
  0x19   : > { %p11185_p5 = scmp.ge.s32.totalorder %s14261_s26, 1  ;;  %p473_p7 = scmp.lt.s32.totalorder %s14261_s26, 3 }
  0x1a   : > { %p14413_p6 = por %p19779_p3, %p134_p2  ;;  %s14263_s0 = smov [#allocation3]  }
  0x1b   : > { %p14418_p8 = pnand %p11185_p5, %p473_p7  ;;  %s489_s17 = sshll.u32 %s14263_s0, 4  ;;  %s490_s17 = int_to_ptr.vmem [resolvable:$true] %s489_s17 }
  0x1c   : > { %s20032_s29 = scalar_select %p14413_p6, 1, 0 }
  0x1d   : > { %p12699_p9 = pneg %p14418_p8  ;;  %p12733_p10 = scmp.lt.s32.totalorder %s14261_s26, 2 }
  0x1e   : > { %20033 = sst [smem:[#allocation25_spill]] %s20032_s29  ;;  %s38_s20 = sadd.s32 1, %s14257_s25 }
  0x1f   : > { %p14427_p11 = pnand %p12699_p9, %p19779_p3  ;;  %p14431_p12 = pnand %p12733_p10, %p130_p4 }
  0x20   : > { %s13910_s21 = scalar_lea.vmem %s490_s17, 4096  ;;  %p13918_p5 = scmp.lt.s32.totalorder %s490_s17, %s490_s17 }
  0x21   : > { %p13901_p13 = pneg %p14427_p11  ;;  %p13911_p0 = scmp.ne.s32.totalorder %s490_s17, %s13910_s21 }
  0x22   : > { %p13919_p7 = scmp.lt.s32.totalorder %s13910_s21, %s13910_s21 }
  0x23   : > { %p13913_p1 = pnand %p13911_p0, %p13901_p13 }
  0x24   : > { %p13920_p9 = por %p13919_p7, %p13918_p5 }
  0x25   : > { %p13914_p2 = pneg %p13913_p1 }
  0x27   : > { %p13921_p3 = pnand %p13920_p9, %p13914_p2 }
  0x29   : > { %13924 = shalt.err (!%p13921_p3)
}
  0x2a   : > { %s19781_s0 = smov 128   ;;  %s19782_s28 = smov 8  }
  0x2b   : > { %s20037_s14 = sld [smem:[#allocation150_spill]]  ;;  %p39_p4 = scmp.ge.s32.totalorder %s38_s20, 2 }
  0x2c   : > { %s528_s21 = sand.u32 1, %s14261_s26   ;;  %s14451_s11 = sand.u32 1, %s14249_s23  }
  0x2d   : > { %s20697_s20 = smov (%p39_p4, %s38_s20), 0  ;;  %s14458_s13 = sshll.u32 %s14257_s25, 4 }
  0x2e   : > { %20038 = sst [smem:[#allocation26_spill]] %s20697_s20  ;;  %s118_s5 = ssub.s32 %s14257_s25, %s20697_s20 }
  0x2f   : > { %p119_p3 = scmp.eq.s32.totalorder %s118_s5, 0  ;;  %s20039_s3 = sld [smem:[#allocation153_spill]] }
  0x30   : > { %s531_s16 = scalar_lea.vmem [#allocation8], %s14451_s11  ;;  %s14471_s26 = scalar_lea.sflag [#allocation4], %s528_s21 }
  0x31   : > { %12702 = dma.hbm_to_vmem [thread:$0]  (!%p14427_p11), %s20037_s14, 4096, %s490_s17, [#allocation4], %s19781_s0, %s19781_s0, %s19782_s28  }
  0x32   : > { %s538_s14 = sshll.u32 %s531_s16, 4  ;;  %s12667_s17 = smul.u32 192, %s14451_s11  ;;  %s539_s14 = int_to_ptr.vmem [resolvable:$true] %s538_s14 }
  0x33   : > { %s20040_s0 = sadd.s32 1, %s14249_s23  ;;  %p14475_p10 = pneg %p14431_p12 }
  0x34   : > { %s14469_s28 = scalar_select %p119_p3, %s14249_s23, %s20040_s0  }
  0x35   : > { %s536_s15 = scalar_lea.hbm %s20039_s3, %s14458_s13  ;;  %s13938_s5 = scalar_lea.vmem %s539_s14, 16 }
  0x36   : > { %20041 = sst [smem:[#allocation27_spill]] %s14469_s28  ;;  %p13939_p0 = scmp.ne.s32.totalorder %s539_s14, %s13938_s5 }
  0x37   : > { %s14266_s2 = smov [#allocation8]  }
  0x38   : > { %p13941_p1 = pnand %p13939_p0, %p14475_p10  ;;  %s13943_s24 = sshll.u32 %s14266_s2, 4  ;;  %s13944_s24 = int_to_ptr.vmem [resolvable:$false] %s13943_s24 }
  0x39   : > { %s13945_s16 = scalar_lea.vmem %s13944_s24, 32  ;;  %p13946_p5 = scmp.lt.s32.totalorder %s539_s14, %s13944_s24 }
  0x3a   : > { %p13942_p2 = pneg %p13941_p1  ;;  %p13947_p7 = scmp.lt.s32.totalorder %s13945_s16, %s13938_s5 }
  0x3c   : > { %p13948_p9 = por %p13947_p7, %p13946_p5 }
  0x3e   : > { %p13949_p4 = pnand %p13948_p9, %p13942_p2 }
  0x40   : > { %13952 = shalt.err (!%p13949_p4)
}
  0x41   : > { %12709 = dma.hbm_to_vmem [thread:$0]  (!%p14431_p12), %s536_s15, 16, %s539_s14, %s14471_s26  }
  0x42   : > { %s12668_s0 = smul.u32 3072, %s14257_s25  ;;  %s549_s21 = scalar_lea.vmem [#allocation9], %s12667_s17 }
  0x43   : > { %s556_s3 = sshll.u32 %s549_s21, 4  ;;  %s20043_s4 = sld [smem:[#allocation154_spill]]  ;;  %s557_s3 = int_to_ptr.vmem [resolvable:$true] %s556_s3 }
  0x44   : > { %s13966_s29 = scalar_lea.vmem %s557_s3, 3072  ;;  %s14267_s5 = smov [#allocation9]  }
  0x45   : > { %p13967_p3 = scmp.ne.s32.totalorder %s557_s3, %s13966_s29  ;;  %s13971_s24 = sshll.u32 %s14267_s5, 4  ;;  %s13972_s24 = int_to_ptr.vmem [resolvable:$false] %s13971_s24 }
  0x46   : > { %s13973_s16 = scalar_lea.vmem %s13972_s24, 6144  ;;  %p13974_p2 = scmp.lt.s32.totalorder %s557_s3, %s13972_s24 }
  0x47   : > { %p13969_p0 = pnand %p13967_p3, %p14475_p10  ;;  %p13975_p5 = scmp.lt.s32.totalorder %s13973_s16, %s13966_s29 }
  0x49   : > { %s555_s2 = scalar_lea.hbm %s20043_s4, %s12668_s0  ;;  %p13970_p1 = pneg %p13969_p0 }
  0x4a   : > { %p13976_p7 = por %p13975_p5, %p13974_p2 }
  0x4c   : > { %p13977_p9 = pnand %p13976_p7, %p13970_p1 }
  0x4e   : > { %13980 = shalt.err (!%p13977_p9)
}
  0x4f   : > { %s14268_s15 = smov 192   ;;  %s14269_s23 = smov 12  }
  0x50   : > { %12712 = dma.hbm_to_vmem [thread:$0]  (!%p14431_p12), %s555_s2, 3072, %s557_s3, %s14471_s26, %s14268_s15, %s14268_s15, %s14269_s23  }
  0x51   : > { %s11191_s28 = sshll.u32 %s14451_s11, 6  ;;  %s11448_s14 = sshll.u32 %s14257_s25, 10 }
  0x52   : > { %s20044_s6 = sld [smem:[#allocation156_spill]]  ;;  %s577_s5 = scalar_lea.vmem [#allocation10], %s11191_s28 }
  0x53   : > { %s584_s29 = sshll.u32 %s577_s5, 4  ;;  %s14270_s16 = smov [#allocation10]   ;;  %s585_s29 = int_to_ptr.vmem [resolvable:$true] %s584_s29 }
  0x54   : > { %s13994_s24 = scalar_lea.vmem %s585_s29, 1024  ;;  %s13999_s4 = sshll.u32 %s14270_s16, 4  ;;  %s14000_s4 = int_to_ptr.vmem [resolvable:$false] %s13999_s4 }
  0x55   : > { %p13995_p4 = scmp.ne.s32.totalorder %s585_s29, %s13994_s24  ;;  %s14001_s22 = scalar_lea.vmem %s14000_s4, 2048 }
  0x56   : > { %p14002_p1 = scmp.lt.s32.totalorder %s585_s29, %s14000_s4  ;;  %p14003_p2 = scmp.lt.s32.totalorder %s14001_s22, %s13994_s24 }
  0x57   : > { %p13997_p3 = pnand %p13995_p4, %p14475_p10 }
  0x58   : > { %s583_s21 = scalar_lea.hbm %s20044_s6, %s11448_s14  ;;  %p14004_p5 = por %p14003_p2, %p14002_p1 }
  0x59   : > { %p13998_p0 = pneg %p13997_p3 }
  0x5b   : > { %p14005_p7 = pnand %p14004_p5, %p13998_p0 }
  0x5d   : > { %14008 = shalt.err (!%p14005_p7)
}
  0x5e   : > { %s14271_s3 = smov 64   ;;  %s14272_s2 = smov 4  }
  0x5f   : > { %12715 = dma.hbm_to_vmem [thread:$0]  (!%p14431_p12), %s583_s21, 1024, %s585_s29, %s14471_s26, %s14271_s3, %s14271_s3, %s14272_s2  }
  0x60   : > { %s20045_s7 = sld [smem:[#allocation157_spill]]  ;;  %s597_s22 = scalar_lea.vmem [#allocation11], %s14451_s11 }
  0x61   : > { %s604_s28 = sshll.u32 %s597_s22, 4  ;;  %s20046_s8 = sld [smem:[#allocation158_spill]]  ;;  %s605_s28 = int_to_ptr.vmem [resolvable:$true] %s604_s28 }
  0x62   : > { %s14022_s5 = scalar_lea.vmem %s605_s28, 16  ;;  %s14273_s24 = smov [#allocation11]  }
  0x63   : > { %p14023_p9 = scmp.ne.s32.totalorder %s605_s28, %s14022_s5  ;;  %s14027_s16 = sshll.u32 %s14273_s24, 4  ;;  %s14028_s16 = int_to_ptr.vmem [resolvable:$false] %s14027_s16 }
  0x64   : > { %s14029_s21 = scalar_lea.vmem %s14028_s16, 32  ;;  %p14030_p0 = scmp.lt.s32.totalorder %s605_s28, %s14028_s16 }
  0x65   : > { %p14025_p4 = pnand %p14023_p9, %p14475_p10  ;;  %p14031_p1 = scmp.lt.s32.totalorder %s14029_s21, %s14022_s5 }
  0x66   : > { %s602_s4 = scalar_lea.hbm %s20045_s7, %s14458_s13 }
  0x67   : > { %s619_s0 = scalar_lea.hbm %s20046_s8, %s14458_s13  ;;  %p14026_p3 = pneg %p14025_p4 }
  0x68   : > { %p14032_p2 = por %p14031_p1, %p14030_p0 }
  0x6a   : > { %p14033_p5 = pnand %p14032_p2, %p14026_p3 }
  0x6c   : > { %14036 = shalt.err (!%p14033_p5)
}
  0x6d   : > { %12718 = dma.hbm_to_vmem [thread:$0]  (!%p14431_p12), %s602_s4, 16, %s605_s28, %s14471_s26  }
  0x6e   : > { %s614_s29 = scalar_lea.vmem [#allocation12], %s14451_s11  ;;  %s636_s14 = scalar_lea.hbm %s19771_s9, %s14458_s13 }
  0x6f   : > { %s621_s15 = sshll.u32 %s614_s29, 4  ;;  %s14274_s5 = smov [#allocation12]   ;;  %s622_s15 = int_to_ptr.vmem [resolvable:$true] %s621_s15 }
  0x70   : > { %s14050_s17 = scalar_lea.vmem %s622_s15, 16  ;;  %s14055_s24 = sshll.u32 %s14274_s5, 4  ;;  %s14056_s24 = int_to_ptr.vmem [resolvable:$false] %s14055_s24 }
  0x71   : > { %p14051_p7 = scmp.ne.s32.totalorder %s622_s15, %s14050_s17  ;;  %s14057_s16 = scalar_lea.vmem %s14056_s24, 32 }
  0x72   : > { %p14058_p3 = scmp.lt.s32.totalorder %s622_s15, %s14056_s24  ;;  %p14059_p0 = scmp.lt.s32.totalorder %s14057_s16, %s14050_s17 }
  0x73   : > { %p14053_p9 = pnand %p14051_p7, %p14475_p10 }
  0x74   : > { %p14060_p1 = por %p14059_p0, %p14058_p3 }
  0x75   : > { %p14054_p4 = pneg %p14053_p9 }
  0x77   : > { %p14061_p2 = pnand %p14060_p1, %p14054_p4 }
  0x79   : > { %14064 = shalt.err (!%p14061_p2)
}
  0x7a   : > { %12721 = dma.hbm_to_vmem [thread:$0]  (!%p14431_p12), %s619_s0, 16, %s622_s15, %s14471_s26  }
  0x7b   : > { %s631_s21 = scalar_lea.vmem [#allocation13], %s14451_s11  ;;  %s11197_s23 = sshll.u32 %s14451_s11, 8 }
  0x7c   : > { %s638_s29 = sshll.u32 %s631_s21, 4  ;;  %s14275_s17 = smov [#allocation13]   ;;  %s639_s29 = int_to_ptr.vmem [resolvable:$true] %s638_s29 }
  0x7d   : > { %s14078_s22 = scalar_lea.vmem %s639_s29, 16  ;;  %s14083_s5 = sshll.u32 %s14275_s17, 4  ;;  %s14084_s5 = int_to_ptr.vmem [resolvable:$false] %s14083_s5 }
  0x7e   : > { %p14079_p5 = scmp.ne.s32.totalorder %s639_s29, %s14078_s22  ;;  %s14085_s24 = scalar_lea.vmem %s14084_s5, 32 }
  0x7f   : > { %p14086_p4 = scmp.lt.s32.totalorder %s639_s29, %s14084_s5  ;;  %p14087_p3 = scmp.lt.s32.totalorder %s14085_s24, %s14078_s22 }
  0x80   : > { %p14081_p7 = pnand %p14079_p5, %p14475_p10 }
  0x81   : > { %p14088_p0 = por %p14087_p3, %p14086_p4 }
  0x82   : > { %p14082_p9 = pneg %p14081_p7 }
  0x84   : > { %p14089_p1 = pnand %p14088_p0, %p14082_p9 }
  0x86   : > { %14092 = shalt.err (!%p14089_p1)
}
  0x87   : > { %12724 = dma.hbm_to_vmem [thread:$0]  (!%p14431_p12), %s636_s14, 16, %s639_s29, %s14471_s26  }
  0x88   : > { %s11449_s16 = sshll.u32 %s14257_s25, 12  ;;  %s649_s4 = scalar_lea.vmem [#allocation14], %s11197_s23 }
  0x89   : > { %s656_s28 = sshll.u32 %s649_s4, 4  ;;  %s655_s17 = scalar_lea.hbm %s19772_s10, %s11449_s16  ;;  %s657_s28 = int_to_ptr.vmem [resolvable:$true] %s656_s28 }
  0x8a   : > { %s14106_s5 = scalar_lea.vmem %s657_s28, 4096  ;;  %s14276_s24 = smov [#allocation14]  }
  0x8b   : > { %p14107_p2 = scmp.ne.s32.totalorder %s657_s28, %s14106_s5  ;;  %s14111_s13 = sshll.u32 %s14276_s24, 4  ;;  %s14112_s13 = int_to_ptr.vmem [resolvable:$false] %s14111_s13 }
  0x8c   : > { %s14113_s0 = scalar_lea.vmem %s14112_s13, 8192  ;;  %p14114_p9 = scmp.lt.s32.totalorder %s657_s28, %s14112_s13 }
  0x8d   : > { %p14109_p5 = pnand %p14107_p2, %p14475_p10  ;;  %p14115_p4 = scmp.lt.s32.totalorder %s14113_s0, %s14106_s5 }
  0x8f   : > { %p14110_p7 = pneg %p14109_p5  ;;  %p14116_p3 = por %p14115_p4, %p14114_p9 }
  0x91   : > { %p14117_p0 = pnand %p14116_p3, %p14110_p7 }
  0x93   : > { %14120 = shalt.err (!%p14117_p0)
}
  0x94   : > { %s14277_s14 = smov 256   ;;  %s14278_s29 = smov 16  }
  0x95   : > { %12727 = dma.hbm_to_vmem [thread:$0]  (!%p14431_p12), %s655_s17, 4096, %s657_s28, %s14471_s26, %s14277_s14, %s14277_s14, %s14278_s29  }
  0x96   : > { %s14279_s15 = smov [#allocation6]   ;;  %s14561_s24 = scalar_lea.hbm %s19774_s12, %s11449_s16 }
  0x97   : > { %s502_s4 = sshll.u32 %s14279_s15, 4  ;;  %s677_s5 = scalar_lea.vmem [#allocation15], %s11197_s23  ;;  %s503_s4 = int_to_ptr.vmem [resolvable:$true] %s502_s4 }
  0x98   : > { %s684_s13 = sshll.u32 %s677_s5, 4  ;;  %s14132_s0 = scalar_lea.vmem %s503_s4, 512  ;;  %s685_s13 = int_to_ptr.vmem [resolvable:$true] %s684_s13 }
  0x99   : > { %p14133_p1 = scmp.ne.s32.totalorder %s503_s4, %s14132_s0  ;;  %p14140_p7 = scmp.lt.s32.totalorder %s503_s4, %s503_s4 }
  0x9a   : > { %p14141_p9 = scmp.lt.s32.totalorder %s14132_s0, %s14132_s0 }
  0x9b   : > { %p14135_p2 = pnand %p14133_p1, %p13901_p13 }
  0x9c   : > { %p14142_p4 = por %p14141_p9, %p14140_p7 }
  0x9d   : > { %p14136_p5 = pneg %p14135_p2 }
  0x9f   : > { %p14143_p3 = pnand %p14142_p4, %p14136_p5 }
  0xa1   : > { %14146 = shalt.err (!%p14143_p3)
}
  0xa2   : > { %s20047_s28 = smov 8   ;;  %s20048_s16 = smov 128  }
  0xa3   : > { %s20049_s1 = sld [smem:[#allocation151_spill]]  ;;  %s14160_s23 = scalar_lea.vmem %s685_s13, 4096 }
  0xa4   : > { %p14161_p0 = scmp.ne.s32.totalorder %s685_s13, %s14160_s23  ;;  %s14280_s14 = smov [#allocation15]  }
  0xa5   : > { %s14165_s29 = sshll.u32 %s14280_s14, 4  ;;  %s14166_s29 = int_to_ptr.vmem [resolvable:$false] %s14165_s29 }
  0xa6   : > { %p14163_p13 = pnand %p14161_p0, %p14475_p10  ;;  %s14167_s15 = scalar_lea.vmem %s14166_s29, 8192 }
  0xa7   : > { %p14168_p2 = scmp.lt.s32.totalorder %s685_s13, %s14166_s29  ;;  %p14169_p5 = scmp.lt.s32.totalorder %s14167_s15, %s14160_s23 }
  0xa8   : > { %p14164_p1 = pneg %p14163_p13 }
  0xa9   : > { %12705 = dma.hbm_to_vmem [thread:$0]  (!%p14427_p11), %s20049_s1, 512, %s503_s4, [#allocation7], %s20048_s16, %s20048_s16, %s20047_s28  }
  0xaa   : > { %p14170_p7 = por %p14169_p5, %p14168_p2 }
  0xac   : > { %p14171_p9 = pnand %p14170_p7, %p14164_p1 }
  0xae   : > { %14174 = shalt.err (!%p14171_p9)
}
  0xaf   : > { %12730 = dma.hbm_to_vmem [thread:$0]  (!%p14431_p12), %s14561_s24, 4096, %s685_s13, %s14471_s26, %s14271_s3, %s14271_s3, %s14272_s2  }
  0xb0   : > { %702 = sbr.rel (%p14418_p8) target bundleno = 3870 (0xf1e), region = 84 }
  0xb5   : > { %p20050_p11 = scmp.eq.s32.totalorder %s14402_s27, 0 }
  0xb7   : > { %14224 = dma.done.wait (%p20050_p11), [#allocation4], 4096   ;;  %p20051_p10 = pmov %p20050_p11 }
  0xb9   : > { %14226 = vsyncadd (%p20051_p10), [#allocation4], 4294963200  ;;  %p20052_p4 = pmov %p20051_p10 }
  0xbb   : > { %14228 = dma.done.wait (%p20052_p4), [#allocation7], 512   ;;  %p20053_p3 = pmov %p20052_p4 }
  0xbc   : > { %s20054_s18 = sld [smem:[#allocation21_spill]]  ;;  %s712_s20 = sand.u32 1, %s14402_s27  }
  0xbd   : > { %14230 = vsyncadd (%p20053_p3), [#allocation7], 4294966784  ;;  %s713_s30 = scalar_lea.sflag [#allocation4], %s712_s20 }
  0xc2   : > { %s14597_s26 = sand.u32 1, %s20054_s18  }
  0xc3   : > { %14232 = dma.done.wait (%p14413_p6), %s713_s30, 12352  }
  0xc4   : > { %14234 = vsyncadd (%p14413_p6), %s713_s30, 4294954944  ;;  %s20056_s2 = sld [smem:[#allocation23_spill]]  ;;  %s12669_s4 = smul.u32 192, %s14597_s26 }
  0xc5   : > { %s11206_s21 = sshll.u32 %s14597_s26, 6  ;;  %s11207_s22 = sshll.u32 %s14597_s26, 8 }
  0xc6   : > { %s20058_s14 = sld [smem:[#allocation160_spill]]  ;;  %s14631_s5 = scalar_lea.vmem [#allocation9], %s12669_s4 }
  0xc7   : > { %s20059_s19 = sld [smem:[#allocation155_spill]]  ;;  %s14633_s13 = scalar_lea.vmem [#allocation10], %s11206_s21 }
  0xc8   : > { %s20060_s1 = sld [smem:[#allocation159_spill]]  ;;  %s741_s0 = scalar_lea.vmem [#allocation11], %s14597_s26 }
  0xc9   : > { %s749_s28 = scalar_lea.vmem [#allocation12], %s14597_s26  ;;  %s757_s7 = scalar_lea.vmem [#allocation13], %s14597_s26 }
  0xca   : > { %p865_p8 = scmp.lt.s32.totalorder %s20056_s2, 1  ;;  %s14638_s8 = scalar_lea.vmem [#allocation14], %s11207_s22 }
  0xcb   : > { %s14640_s11 = scalar_lea.vmem [#allocation15], %s11207_s22  ;;  %p11210_p6 = scmp.ne.s32.totalorder %s20056_s2, 0 }
  0xcc   : > { %s14609_s24 = scalar_select %p865_p8, %s20056_s2, 1 }
  0xcd   : > { %884 = sbr.rel (%p11210_p6) target bundleno = 230 (0xe6), region = 128 }
  0xce   : > { %s12670_s16 = smul.u32 3, %s14609_s24  ;;  %s11209_s17 = sshll.u32 %s14609_s24, 2 }
  0xcf   : > { %s878_s29 = scalar_lea.vmem %s20058_s14, %s14609_s24  ;;  %s14629_s6 = scalar_lea.vmem %s20060_s1, %s11209_s17 }
  0xd0   : > { %s14624_s20 = scalar_lea.vmem %s20059_s19, %s12670_s16 }
  0xd2   : > { %v885_v0 = vld [vmem:[#allocation3] sm:$0xff]  ;;  %v886_v2 = vld [vmem:[#allocation3 + $0x8] sm:$0xff]  ;;  %v887_v5 = vld [vmem:[#allocation3 + $0x10] sm:$0xff] }
  0xd3   : > { %v14643_v1 = vld [vmem:[#allocation6] sm:$0xff]  ;;  %v14646_v4 = vld [vmem:[#allocation6 + $0x8] sm:$0xff]  ;;  %v14648_v6 = vld [vmem:[#allocation6 + $0x10] sm:$0xff] }
  0xd4   : > { %v921_v3 = vadd.f32 %v14643_v1, %v885_v0  ;;  %v922_v7 = vadd.f32 %v14646_v4, %v886_v2  ;;  %v923_v8 = vadd.f32 %v14648_v6, %v887_v5  ;;  %v888_v9 = vld [vmem:[#allocation3 + $0x18] sm:$0xff]  ;;  %v889_v11 = vld [vmem:[#allocation3 + $0x20] sm:$0xff]  ;;  %v890_v14 = vld [vmem:[#allocation3 + $0x28] sm:$0xff] }
  0xd5   : > { %v14652_v10 = vld [vmem:[#allocation6 + $0x18] sm:$0xff]  ;;  %v925_v13 = vadd.f32 %v14643_v1, %v889_v11  ;;  %v891_v15 = vld [vmem:[#allocation3 + $0x30] sm:$0xff]  ;;  %v926_v17 = vadd.f32 %v14646_v4, %v890_v14  ;;  %v893_v20 = vld [vmem:[#allocation3 + $0x40] sm:$0xff] }
  0xd6   : > { %953 = vst [vmem:[#allocation2 + $0xb0] sm:$0xff] %v921_v3  ;;  %v924_v12 = vadd.f32 %v14652_v10, %v888_v9  ;;  %v892_v16 = vld [vmem:[#allocation3 + $0x38] sm:$0xff]  ;;  %954 = vst [vmem:[#allocation2] sm:$0xff] %v922_v7  ;;  %v927_v18 = vadd.f32 %v14648_v6, %v891_v15  ;;  %v894_v21 = vld [vmem:[#allocation3 + $0x48] sm:$0xff]  ;;  %v929_v23 = vadd.f32 %v14643_v1, %v893_v20 }
  0xd7   : > { %955 = vst [vmem:[#allocation2 + $0xd8] sm:$0xff] %v923_v8  ;;  %v928_v19 = vadd.f32 %v14652_v10, %v892_v16  ;;  %v895_v22 = vld [vmem:[#allocation3 + $0x50] sm:$0xff]  ;;  %957 = vst [vmem:[#allocation2 + $0x50] sm:$0xff] %v925_v13  ;;  %v930_v24 = vadd.f32 %v14646_v4, %v894_v21  ;;  %v896_v26 = vld [vmem:[#allocation3 + $0x58] sm:$0xff] }
  0xd8   : > { %956 = vst [vmem:[#allocation2 + $0x18] sm:$0xff] %v924_v12  ;;  %v931_v25 = vadd.f32 %v14648_v6, %v895_v22  ;;  %v897_v27 = vld [vmem:[#allocation3 + $0x60] sm:$0xff]  ;;  %v898_v28 = vld [vmem:[#allocation3 + $0x68] sm:$0xff]  ;;  %958 = vst [vmem:[#allocation2 + $0x68] sm:$0xff] %v926_v17  ;;  %v932_v29 = vadd.f32 %v14652_v10, %v896_v26 }
  0xd9   : > { %959 = vst [vmem:[#allocation2 + $0x30] sm:$0xff] %v927_v18  ;;  %960 = vst [vmem:[#allocation2 + $0x48] sm:$0xff] %v928_v19  ;;  %v933_v30 = vadd.f32 %v14643_v1, %v897_v27  ;;  %v934_v31 = vadd.f32 %v14646_v4, %v898_v28  ;;  %v899_v32 = vld [vmem:[#allocation3 + $0x70] sm:$0xff]  ;;  %v900_v33 = vld [vmem:[#allocation3 + $0x78] sm:$0xff] }
  0xda   : > { %v901_v34 = vld [vmem:[#allocation3 + $0x80] sm:$0xff]  ;;  %961 = vst [vmem:[#allocation2 + $0x80] sm:$0xff] %v929_v23  ;;  %962 = vst [vmem:[#allocation2 + $0x88] sm:$0xff] %v930_v24  ;;  %v935_v35 = vadd.f32 %v14648_v6, %v899_v32  ;;  %v936_v36 = vadd.f32 %v14652_v10, %v900_v33  ;;  %v902_v38 = vld [vmem:[#allocation3 + $0x88] sm:$0xff] }
  0xdb   : > { %963 = vst [vmem:[#allocation2 + $0xe8] sm:$0xff] %v931_v25  ;;  %v937_v37 = vadd.f32 %v14643_v1, %v901_v34  ;;  %v903_v39 = vld [vmem:[#allocation3 + $0x90] sm:$0xff]  ;;  %v904_v40 = vld [vmem:[#allocation3 + $0x98] sm:$0xff]  ;;  %964 = vst [vmem:[#allocation2 + $0xb8] sm:$0xff] %v932_v29  ;;  %v938_v41 = vadd.f32 %v14646_v4, %v902_v38 }
  0xdc   : > { %965 = vst [vmem:[#allocation2 + $0x60] sm:$0xff] %v933_v30  ;;  %966 = vst [vmem:[#allocation2 + $0xf0] sm:$0xff] %v934_v31  ;;  %v939_v42 = vadd.f32 %v14648_v6, %v903_v39  ;;  %v940_v43 = vadd.f32 %v14652_v10, %v904_v40  ;;  %v905_v44 = vld [vmem:[#allocation3 + $0xa0] sm:$0xff]  ;;  %v906_v45 = vld [vmem:[#allocation3 + $0xa8] sm:$0xff] }
  0xdd   : > { %v907_v46 = vld [vmem:[#allocation3 + $0xb0] sm:$0xff]  ;;  %967 = vst [vmem:[#allocation2 + $0x8] sm:$0xff] %v935_v35  ;;  %968 = vst [vmem:[#allocation2 + $0x78] sm:$0xff] %v936_v36  ;;  %v941_v47 = vadd.f32 %v14643_v1, %v905_v44  ;;  %v942_v48 = vadd.f32 %v14646_v4, %v906_v45  ;;  %v908_v50 = vld [vmem:[#allocation3 + $0xb8] sm:$0xff] }
  0xde   : > { %969 = vst [vmem:[#allocation2 + $0x38] sm:$0xff] %v937_v37  ;;  %v943_v49 = vadd.f32 %v14648_v6, %v907_v46  ;;  %v909_v51 = vld [vmem:[#allocation3 + $0xc0] sm:$0xff]  ;;  %v910_v52 = vld [vmem:[#allocation3 + $0xc8] sm:$0xff]  ;;  %970 = vst [vmem:[#allocation2 + $0x58] sm:$0xff] %v938_v41  ;;  %v944_v53 = vadd.f32 %v14652_v10, %v908_v50 }
  0xdf   : > { %971 = vst [vmem:[#allocation2 + $0x40] sm:$0xff] %v939_v42  ;;  %972 = vst [vmem:[#allocation2 + $0xc8] sm:$0xff] %v940_v43  ;;  %v945_v54 = vadd.f32 %v14643_v1, %v909_v51  ;;  %v946_v55 = vadd.f32 %v14646_v4, %v910_v52  ;;  %v911_v56 = vld [vmem:[#allocation3 + $0xd0] sm:$0xff]  ;;  %v912_v57 = vld [vmem:[#allocation3 + $0xd8] sm:$0xff] }
  0xe0   : > { %v913_v58 = vld [vmem:[#allocation3 + $0xe0] sm:$0xff]  ;;  %973 = vst [vmem:[#allocation2 + $0xe0] sm:$0xff] %v941_v47  ;;  %974 = vst [vmem:[#allocation2 + $0x90] sm:$0xff] %v942_v48  ;;  %v947_v59 = vadd.f32 %v14648_v6, %v911_v56  ;;  %v948_v60 = vadd.f32 %v14652_v10, %v912_v57  ;;  %v914_v62 = vld [vmem:[#allocation3 + $0xe8] sm:$0xff] }
  0xe1   : > { %975 = vst [vmem:[#allocation2 + $0x70] sm:$0xff] %v943_v49  ;;  %v949_v61 = vadd.f32 %v14643_v1, %v913_v58  ;;  %v915_v63 = vld [vmem:[#allocation3 + $0xf0] sm:$0xff]  ;;  %v916_v0 = vld [vmem:[#allocation3 + $0xf8] sm:$0xff]  ;;  %976 = vst [vmem:[#allocation2 + $0xc0] sm:$0xff] %v944_v53  ;;  %v950_v2 = vadd.f32 %v14646_v4, %v914_v62 }
  0xe2   : > { %977 = vst [vmem:[#allocation2 + $0xa8] sm:$0xff] %v945_v54  ;;  %978 = vst [vmem:[#allocation2 + $0xd0] sm:$0xff] %v946_v55  ;;  %v951_v3 = vadd.f32 %v14648_v6, %v915_v63  ;;  %v952_v5 = vadd.f32 %v14652_v10, %v916_v0 }
  0xe3   : > { %979 = vst [vmem:[#allocation2 + $0x10] sm:$0xff] %v947_v59  ;;  %980 = vst [vmem:[#allocation2 + $0x28] sm:$0xff] %v948_v60 }
  0xe4   : > { %981 = vst [vmem:[#allocation2 + $0xa0] sm:$0xff] %v949_v61  ;;  %982 = vst [vmem:[#allocation2 + $0xf8] sm:$0xff] %v950_v2 }
  0xe5   : > { %983 = vst [vmem:[#allocation2 + $0x20] sm:$0xff] %v951_v3  ;;  %984 = vst [vmem:[#allocation2 + $0x98] sm:$0xff] %v952_v5 }
  0xe6 PF: > { %v14683_v1 = vld [vmem:[#allocation2 + $0xb0] sm:$0xff]  ;;  %v14685_v7 = vld [vmem:[#allocation2 + $0xd8] sm:$0xff]  ;;  %v14689_v4 = vld [vmem:[#allocation2] sm:$0xff]  ;;  %s20061_s2 = sld [smem:[#allocation152_spill]]  ;;  %s20063_s21 = scalar_lea.vmem [#allocation8], %s14597_s26  ;;  %vm2427_vm0 = vcmask 261120  }
  0xe7   : > { %1019 = vadd.xlane.f32.xlu0 %v14683_v1  ;;  %1023 = vadd.xlane.f32.xlu1 %v14685_v7  ;;  %v14691_v6 = vld [vmem:[#allocation2 + $0x18] sm:$0xff]  ;;  %v14695_v8 = vld [vmem:[#allocation2 + $0x50] sm:$0xff]  ;;  %v14697_v9 = vld [vmem:[#allocation2 + $0x68] sm:$0xff]  ;;  %s14282_s22 = smov 32   ;;  %s14283_s16 = smov 96   ;;  %vm8156_vm1 = vcmask 523264  }
  0xe8   : > { %v14701_v10 = vld [vmem:[#allocation2 + $0x30] sm:$0xff]  ;;  %v14703_v11 = vld [vmem:[#allocation2 + $0x48] sm:$0xff]  ;;  %v14705_v12 = vld [vmem:[#allocation2 + $0x80] sm:$0xff]  ;;  %s14284_s17 = smov 64   ;;  %vm8189_vm2 = vcmask 785408   ;;  %s20685_s26 = sld [smem:[#allocation23_spill]] }
  0xe9   : > { %v14707_v13 = vld [vmem:[#allocation2 + $0x88] sm:$0xff]  ;;  %v14713_v15 = vld [vmem:[#allocation2 + $0xb8] sm:$0xff]  ;;  %v14717_v16 = vld [vmem:[#allocation2 + $0x60] sm:$0xff] }
  0xea   : > { %v14711_v14 = vld [vmem:[#allocation2 + $0xe8] sm:$0xff]  ;;  %v14719_v17 = vld [vmem:[#allocation2 + $0xf0] sm:$0xff]  ;;  %v14725_v19 = vld [vmem:[#allocation2 + $0x78] sm:$0xff] }
  0xeb   : > { %1021 = vadd.xlane.f32.xlu0 %v14689_v4  ;;  %1025 = vadd.xlane.f32.xlu1 %v14691_v6  ;;  %v14723_v18 = vld [vmem:[#allocation2 + $0x8] sm:$0xff]  ;;  %v14729_v20 = vld [vmem:[#allocation2 + $0x38] sm:$0xff]  ;;  %v14735_v22 = vld [vmem:[#allocation2 + $0x40] sm:$0xff] }
  0xec   : > { %v14731_v21 = vld [vmem:[#allocation2 + $0x58] sm:$0xff]  ;;  %v14737_v23 = vld [vmem:[#allocation2 + $0xc8] sm:$0xff]  ;;  %v14741_v24 = vld [vmem:[#allocation2 + $0xe0] sm:$0xff]  ;;  %s20062_s4 = scalar_lea.vmem %s20061_s2, %s14609_s24 }
  0xed   : > { %v14743_v25 = vld [vmem:[#allocation2 + $0x90] sm:$0xff]  ;;  %v14747_v26 = vld [vmem:[#allocation2 + $0xa8] sm:$0xff]  ;;  %v14755_v29 = vld [vmem:[#allocation2 + $0xc0] sm:$0xff] }
  0xee   : > { %v14749_v27 = vld [vmem:[#allocation2 + $0xd0] sm:$0xff]  ;;  %v14761_v31 = vld [vmem:[#allocation2 + $0x28] sm:$0xff]  ;;  %v14765_v32 = vld [vmem:[#allocation2 + $0xa0] sm:$0xff]  ;;  %p11441_p12 = scmp.ne.s32.totalorder %s20685_s26, 1 }
  0xef   : > { %1027 = vadd.xlane.f32.xlu0 %v14695_v8  ;;  %1029 = vadd.xlane.f32.xlu1 %v14697_v9  ;;  %v14753_v28 = vld [vmem:[#allocation2 + $0x70] sm:$0xff]  ;;  %v14767_v33 = vld [vmem:[#allocation2 + $0xf8] sm:$0xff]  ;;  %v14771_v34 = vld [vmem:[#allocation2 + $0x20] sm:$0xff]  ;;  %s20686_s23 = sld [smem:[#allocation161_spill]] (!%p11441_p12) }
  0xf0   : > { %v14759_v30 = vld [vmem:[#allocation2 + $0x10] sm:$0xff]  ;;  %v14775_v35 = vld [vmem:[#allocation2 + $0x98] sm:$0xff]  ;;  %s20687_s15 = sld [smem:[#allocation162_spill]] (!%p11441_p12) }
  0xf1   : > { %v13043_v36 = vld [vmem:[%s14631_s5 + $0xac] ss:$12 sps:$4 sm:$0xff]   ;;  %v13045_v37 = vld [vmem:[%s14631_s5 + $0xa8] ss:$12 sps:$4 sm:$0xff]  }
  0xf2   : > { %1641 = vmatprep.subr.bf16.mxu0 %v13043_v36  ;;  %12587 = vmatprep.subr.bf16.mxu1 %v13043_v36  ;;  %v13048_v36 = vld [vmem:[%s14631_s5 + $0x90] ss:$12 sps:$4 sm:$0xff]  }
  0xf3   : > { %1031 = vadd.xlane.f32.xlu0 %v14701_v10  ;;  %1033 = vadd.xlane.f32.xlu1 %v14703_v11 }
  0xf4   : > { %1642 = vmatpush1.bf16.msra.mxu0 %v13045_v37  ;;  %12595 = vmatpush1.bf16.msra.mxu1 %v13045_v37 }
  0xf7   : > { %1035 = vadd.xlane.f32.xlu0 %v14705_v12  ;;  %1037 = vadd.xlane.f32.xlu1 %v14707_v13 }
  0xfb   : > { %1039 = vadd.xlane.f32.xlu0 %v14711_v14  ;;  %1041 = vadd.xlane.f32.xlu1 %v14713_v15 }
  0xff   : > { %1043 = vadd.xlane.f32.xlu0 %v14717_v16  ;;  %1045 = vadd.xlane.f32.xlu1 %v14719_v17 }
 0x103   : > { %1047 = vadd.xlane.f32.xlu0 %v14723_v18  ;;  %1049 = vadd.xlane.f32.xlu1 %v14725_v19 }
 0x107   : > { %1051 = vadd.xlane.f32.xlu0 %v14729_v20  ;;  %1053 = vadd.xlane.f32.xlu1 %v14731_v21 }
 0x10b   : > { %1055 = vadd.xlane.f32.xlu0 %v14735_v22  ;;  %1057 = vadd.xlane.f32.xlu1 %v14737_v23 }
 0x10f   : > { %1059 = vadd.xlane.f32.xlu0 %v14741_v24  ;;  %1061 = vadd.xlane.f32.xlu1 %v14743_v25 }
 0x113   : > { %1067 = vadd.xlane.f32.xlu0 %v14747_v26  ;;  %1069 = vadd.xlane.f32.xlu1 %v14749_v27 }
 0x117   : > { %1063 = vadd.xlane.f32.xlu0 %v14753_v28  ;;  %1065 = vadd.xlane.f32.xlu1 %v14755_v29 }
 0x11b   : > { %1071 = vadd.xlane.f32.xlu0 %v14759_v30  ;;  %1073 = vadd.xlane.f32.xlu1 %v14761_v31 }
 0x11f   : > { %1075 = vadd.xlane.f32.xlu0 %v14765_v32  ;;  %1077 = vadd.xlane.f32.xlu1 %v14767_v33 }
 0x123   : > { %1079 = vadd.xlane.f32.xlu0 %v14771_v34  ;;  %1081 = vadd.xlane.f32.xlu1 %v14775_v35 }
 0x170   : > { %v1020_v38 = vpop.xlane.xlu0 %1019  ;;  %v1024_v39 = vpop.xlane.xlu1 %1023 }
 0x171   : > { %v1084_v40 = vmul.f32 0.0078125, %v1020_v38  ;;  %v1086_v41 = vmul.f32 0.0078125, %v1024_v39 }
 0x173   : > { %v14782_v42 = vsub.f32 %v14683_v1, %v1084_v40  ;;  %v14785_v43 = vsub.f32 %v14685_v7, %v1086_v41 }
 0x174   : > { %v1022_v44 = vpop.xlane.xlu0 %1021  ;;  %v1026_v45 = vpop.xlane.xlu1 %1025 }
 0x175   : > { %v1085_v46 = vmul.f32 0.0078125, %v1022_v44  ;;  %v1148_v47 = vmul.f32 %v14782_v42, %v14782_v42  ;;  %v1087_v48 = vmul.f32 0.0078125, %v1026_v45  ;;  %v1150_v49 = vmul.f32 %v14785_v43, %v14785_v43  ;;  %v13049_v45 = vld [vmem:[%s14631_s5 + $0x7c] ss:$12 sps:$4 sm:$0xff]  }
 0x177   : > { %1180 = vadd.xlane.f32.xlu0 %v1148_v47  ;;  %v14792_v50 = vsub.f32 %v14689_v4, %v1085_v46  ;;  %v14795_v51 = vsub.f32 %v14691_v6, %v1087_v48  ;;  %v13051_v47 = vld [vmem:[%s14631_s5 + $0x78] ss:$12 sps:$4 sm:$0xff]  }
 0x178   : > { %v1028_v52 = vpop.xlane.xlu0 %1027  ;;  %v1030_v53 = vpop.xlane.xlu1 %1029 }
 0x179   : > { %v1088_v54 = vmul.f32 0.0078125, %v1028_v52  ;;  %v1149_v55 = vmul.f32 %v14792_v50, %v14792_v50  ;;  %v1089_v56 = vmul.f32 0.0078125, %v1030_v53  ;;  %v1151_v57 = vmul.f32 %v14795_v51, %v14795_v51 }
 0x17b   : > { %1184 = vadd.xlane.f32.xlu0 %v1150_v49  ;;  %1182 = vadd.xlane.f32.xlu1 %v1149_v55  ;;  %v14802_v58 = vsub.f32 %v14695_v8, %v1088_v54  ;;  %v14805_v59 = vsub.f32 %v14697_v9, %v1089_v56  ;;  %v13046_v9 = vld [vmem:[%s14631_s5 + $0x94] ss:$12 sps:$4 sm:$0xff]   ;;  %v13052_v55 = vld [vmem:[%s14631_s5 + $0x64] ss:$12 sps:$4 sm:$0xff]  }
 0x17c   : > { %v1032_v60 = vpop.xlane.xlu0 %1031  ;;  %v1034_v61 = vpop.xlane.xlu1 %1033  ;;  %1643 = vmatprep.subr.bf16.mxu0 %v13046_v9  ;;  %12588 = vmatprep.subr.bf16.mxu1 %v13046_v9 }
 0x17d   : > { %v1090_v62 = vmul.f32 0.0078125, %v1032_v60  ;;  %v1152_v63 = vmul.f32 %v14802_v58, %v14802_v58  ;;  %v1091_v0 = vmul.f32 0.0078125, %v1034_v61  ;;  %v1153_v2 = vmul.f32 %v14805_v59, %v14805_v59  ;;  %1644 = vmatpush1.bf16.msra.mxu0 %v13048_v36  ;;  %12596 = vmatpush1.bf16.msra.mxu1 %v13048_v36 }
 0x17e   : > { %1645 = vmatprep.subr.bf16.mxu0 %v13049_v45  ;;  %12589 = vmatprep.subr.bf16.mxu1 %v13049_v45 }
 0x17f   : > { %1186 = vadd.xlane.f32.xlu1 %v1151_v57  ;;  %1188 = vadd.xlane.f32.xlu0 %v1152_v63  ;;  %v14812_v3 = vsub.f32 %v14701_v10, %v1090_v62  ;;  %v14815_v5 = vsub.f32 %v14703_v11, %v1091_v0  ;;  %v13054_v57 = vld [vmem:[%s14631_s5 + $0x60] ss:$12 sps:$4 sm:$0xff]  }
 0x180   : > { %v1036_v1 = vpop.xlane.xlu0 %1035  ;;  %v1038_v7 = vpop.xlane.xlu1 %1037 }
 0x181   : > { %v1092_v4 = vmul.f32 0.0078125, %v1036_v1  ;;  %v1154_v6 = vmul.f32 %v14812_v3, %v14812_v3  ;;  %v1093_v8 = vmul.f32 0.0078125, %v1038_v7  ;;  %v1155_v37 = vmul.f32 %v14815_v5, %v14815_v5  ;;  %1646 = vmatpush1.bf16.msra.mxu0 %v13051_v47  ;;  %12597 = vmatpush1.bf16.msra.mxu1 %v13051_v47  ;;  %v13057_v7 = vld [vmem:[%s14631_s5 + $0x48] ss:$12 sps:$4 sm:$0xff]  }
 0x182   : > { %1647 = vmatprep.subr.bf16.mxu0 %v13052_v55  ;;  %12590 = vmatprep.subr.bf16.mxu1 %v13052_v55  ;;  %v13061_v47 = vld [vmem:[%s14631_s5 + $0x1c] ss:$12 sps:$4 sm:$0xff]  }
 0x183   : > { %1190 = vadd.xlane.f32.xlu1 %v1153_v2  ;;  %1192 = vadd.xlane.f32.xlu0 %v1154_v6  ;;  %v14824_v10 = vsub.f32 %v14705_v12, %v1092_v4  ;;  %v14827_v11 = vsub.f32 %v14707_v13, %v1093_v8  ;;  %v13055_v2 = vld [vmem:[%s14631_s5 + $0x4c] ss:$12 sps:$4 sm:$0xff]  }
 0x184   : > { %v1040_v38 = vpop.xlane.xlu0 %1039  ;;  %v1042_v39 = vpop.xlane.xlu1 %1041 }
 0x185   : > { %v1094_v40 = vmul.f32 0.0078125, %v1040_v38  ;;  %v1156_v41 = vmul.f32 %v14824_v10, %v14824_v10  ;;  %v1095_v44 = vmul.f32 0.0078125, %v1042_v39  ;;  %v1157_v12 = vmul.f32 %v14827_v11, %v14827_v11  ;;  %1648 = vmatpush1.bf16.msra.mxu0 %v13054_v57  ;;  %12598 = vmatpush1.bf16.msra.mxu1 %v13054_v57  ;;  %v13060_v39 = vld [vmem:[%s14631_s5 + $0x30] ss:$12 sps:$4 sm:$0xff]  }
 0x186   : > { %1649 = vmatprep.subr.bf16.mxu0 %v13055_v2  ;;  %12591 = vmatprep.subr.bf16.mxu1 %v13055_v2  ;;  %v13064_v57 = vld [vmem:[%s14631_s5 + $0x4] ss:$12 sps:$4 sm:$0xff]  }
 0x187   : > { %1194 = vadd.xlane.f32.xlu1 %v1155_v37  ;;  %1196 = vadd.xlane.f32.xlu0 %v1156_v41  ;;  %v14835_v13 = vsub.f32 %v14711_v14, %v1094_v40  ;;  %v14838_v46 = vsub.f32 %v14713_v15, %v1095_v44  ;;  %v13058_v37 = vld [vmem:[%s14631_s5 + $0x34] ss:$12 sps:$4 sm:$0xff]  }
 0x188   : > { %v1044_v48 = vpop.xlane.xlu0 %1043  ;;  %v1046_v49 = vpop.xlane.xlu1 %1045 }
 0x189   : > { %v1096_v52 = vmul.f32 0.0078125, %v1044_v48  ;;  %v1158_v53 = vmul.f32 %v14835_v13, %v14835_v13  ;;  %v1097_v54 = vmul.f32 0.0078125, %v1046_v49  ;;  %v1159_v14 = vmul.f32 %v14838_v46, %v14838_v46  ;;  %1650 = vmatpush1.bf16.msra.mxu0 %v13057_v7  ;;  %12599 = vmatpush1.bf16.msra.mxu1 %v13057_v7  ;;  %v13063_v49 = vld [vmem:[%s14631_s5 + $0x18] ss:$12 sps:$4 sm:$0xff]  }
 0x18a   : > { %1651 = vmatprep.subr.bf16.mxu0 %v13058_v37  ;;  %12592 = vmatprep.subr.bf16.mxu1 %v13058_v37 }
 0x18b   : > { %1198 = vadd.xlane.f32.xlu1 %v1157_v12  ;;  %1200 = vadd.xlane.f32.xlu0 %v1158_v53  ;;  %v14847_v15 = vsub.f32 %v14717_v16, %v1096_v52  ;;  %v14850_v56 = vsub.f32 %v14719_v17, %v1097_v54 }
 0x18c   : > { %v1048_v60 = vpop.xlane.xlu0 %1047  ;;  %v1050_v61 = vpop.xlane.xlu1 %1049 }
 0x18d   : > { %v1098_v62 = vmul.f32 0.0078125, %v1048_v60  ;;  %v1160_v63 = vmul.f32 %v14847_v15, %v14847_v15  ;;  %v1099_v0 = vmul.f32 0.0078125, %v1050_v61  ;;  %v1161_v16 = vmul.f32 %v14850_v56, %v14850_v56  ;;  %1652 = vmatpush1.bf16.msra.mxu0 %v13060_v39  ;;  %12600 = vmatpush1.bf16.msra.mxu1 %v13060_v39  ;;  %v13066_v61 = vld [vmem:[%s14631_s5] ss:$12 sps:$4 sm:$0xff]  }
 0x18e   : > { %1653 = vmatprep.subr.bf16.mxu0 %v13061_v47  ;;  %12593 = vmatprep.subr.bf16.mxu1 %v13061_v47 }
 0x18f   : > { %1202 = vadd.xlane.f32.xlu1 %v1159_v14  ;;  %1204 = vadd.xlane.f32.xlu0 %v1160_v63  ;;  %v14859_v17 = vsub.f32 %v14723_v18, %v1098_v62  ;;  %v14862_v1 = vsub.f32 %v14725_v19, %v1099_v0 }
 0x190   : > { %v1052_v4 = vpop.xlane.xlu0 %1051  ;;  %v1054_v6 = vpop.xlane.xlu1 %1053 }
 0x191   : > { %v1100_v8 = vmul.f32 0.0078125, %v1052_v4  ;;  %v1162_v9 = vmul.f32 %v14859_v17, %v14859_v17  ;;  %v1101_v36 = vmul.f32 0.0078125, %v1054_v6  ;;  %v1163_v18 = vmul.f32 %v14862_v1, %v14862_v1  ;;  %1654 = vmatpush1.bf16.msra.mxu0 %v13063_v49  ;;  %12601 = vmatpush1.bf16.msra.mxu1 %v13063_v49 }
 0x192   : > { %1655 = vmatprep.subr.bf16.mxu0 %v13064_v57  ;;  %12594 = vmatprep.subr.bf16.mxu1 %v13064_v57 }
 0x193   : > { %1206 = vadd.xlane.f32.xlu1 %v1161_v16  ;;  %1208 = vadd.xlane.f32.xlu0 %v1162_v9  ;;  %v14871_v19 = vsub.f32 %v14729_v20, %v1100_v8  ;;  %v14874_v38 = vsub.f32 %v14731_v21, %v1101_v36  ;;  %v19792_v8 = vmov 0  }
 0x194   : > { %v1056_v40 = vpop.xlane.xlu0 %1055  ;;  %v1058_v41 = vpop.xlane.xlu1 %1057  ;;  %1673 = vmatprep.mubr.bf16.mxu0 %v19792_v8  ;;  %1793 = vmatprep.mubr.bf16.mxu1 %v19792_v8 }
 0x195   : > { %v1102_v44 = vmul.f32 0.0078125, %v1056_v40  ;;  %v1164_v45 = vmul.f32 %v14871_v19, %v14871_v19  ;;  %v1103_v12 = vmul.f32 0.0078125, %v1058_v41  ;;  %v1165_v20 = vmul.f32 %v14874_v38, %v14874_v38  ;;  %1656 = vmatpush1.bf16.msra.mxu0 %v13066_v61  ;;  %12602 = vmatpush1.bf16.msra.mxu1 %v13066_v61 }
 0x197   : > { %1210 = vadd.xlane.f32.xlu1 %v1163_v18  ;;  %1212 = vadd.xlane.f32.xlu0 %v1164_v45  ;;  %v14883_v21 = vsub.f32 %v14735_v22, %v1102_v44  ;;  %v14886_v48 = vsub.f32 %v14737_v23, %v1103_v12 }
 0x198   : > { %v1060_v52 = vpop.xlane.xlu0 %1059  ;;  %v1062_v53 = vpop.xlane.xlu1 %1061 }
 0x199   : > { %v1104_v54 = vmul.f32 0.0078125, %v1060_v52  ;;  %v1166_v55 = vmul.f32 %v14883_v21, %v14883_v21  ;;  %v1105_v14 = vmul.f32 0.0078125, %v1062_v53  ;;  %v1167_v22 = vmul.f32 %v14886_v48, %v14886_v48 }
 0x19b   : > { %1214 = vadd.xlane.f32.xlu1 %v1165_v20  ;;  %1216 = vadd.xlane.f32.xlu0 %v1166_v55  ;;  %v14895_v23 = vsub.f32 %v14741_v24, %v1104_v54  ;;  %v14898_v60 = vsub.f32 %v14743_v25, %v1105_v14 }
 0x19c   : > { %v1068_v62 = vpop.xlane.xlu0 %1067  ;;  %v1070_v63 = vpop.xlane.xlu1 %1069 }
 0x19d   : > { %v1108_v0 = vmul.f32 0.0078125, %v1068_v62  ;;  %v1168_v2 = vmul.f32 %v14895_v23, %v14895_v23  ;;  %v1109_v16 = vmul.f32 0.0078125, %v1070_v63  ;;  %v1169_v24 = vmul.f32 %v14898_v60, %v14898_v60 }
 0x19f   : > { %1218 = vadd.xlane.f32.xlu1 %v1167_v22  ;;  %1220 = vadd.xlane.f32.xlu0 %v1168_v2  ;;  %v14906_v25 = vsub.f32 %v14747_v26, %v1108_v0  ;;  %v14909_v7 = vsub.f32 %v14749_v27, %v1109_v16  ;;  %v14958_v2 = vld [vmem:[%s14631_s5 + $0xb0] ss:$12 sps:$4 sm:$0xff]  }
 0x1a0   : > { %v1064_v4 = vpop.xlane.xlu0 %1063  ;;  %v1066_v6 = vpop.xlane.xlu1 %1065  ;;  %11979 = vmatprep.subr.bf16.mxu1 %v14958_v2 }
 0x1a1   : > { %v1106_v9 = vmul.f32 0.0078125, %v1064_v4  ;;  %v1172_v36 = vmul.f32 %v14906_v25, %v14906_v25  ;;  %v1107_v37 = vmul.f32 0.0078125, %v1066_v6  ;;  %v1173_v26 = vmul.f32 %v14909_v7, %v14909_v7 }
 0x1a3   : > { %1222 = vadd.xlane.f32.xlu1 %v1169_v24  ;;  %1228 = vadd.xlane.f32.xlu0 %v1172_v36  ;;  %v14918_v27 = vsub.f32 %v14753_v28, %v1106_v9  ;;  %v14921_v18 = vsub.f32 %v14755_v29, %v1107_v37 }
 0x1a4   : > { %v1072_v39 = vpop.xlane.xlu0 %1071  ;;  %v1074_v40 = vpop.xlane.xlu1 %1073 }
 0x1a5   : > { %v1110_v41 = vmul.f32 0.0078125, %v1072_v39  ;;  %v1170_v44 = vmul.f32 %v14918_v27, %v14918_v27  ;;  %v1111_v45 = vmul.f32 0.0078125, %v1074_v40  ;;  %v1171_v12 = vmul.f32 %v14921_v18, %v14921_v18 }
 0x1a7   : > { %1230 = vadd.xlane.f32.xlu1 %v1173_v26  ;;  %1224 = vadd.xlane.f32.xlu0 %v1170_v44  ;;  %v14928_v47 = vsub.f32 %v14759_v30, %v1110_v41  ;;  %v14931_v28 = vsub.f32 %v14761_v31, %v1111_v45 }
 0x1a8   : > { %v1076_v29 = vpop.xlane.xlu0 %1075  ;;  %v1078_v20 = vpop.xlane.xlu1 %1077 }
 0x1a9   : > { %v1112_v49 = vmul.f32 0.0078125, %v1076_v29  ;;  %v1174_v52 = vmul.f32 %v14928_v47, %v14928_v47  ;;  %v1113_v53 = vmul.f32 0.0078125, %v1078_v20  ;;  %v1175_v54 = vmul.f32 %v14931_v28, %v14931_v28 }
 0x1ab   : > { %1226 = vadd.xlane.f32.xlu1 %v1171_v12  ;;  %1232 = vadd.xlane.f32.xlu0 %v1174_v52  ;;  %v14938_v55 = vsub.f32 %v14765_v32, %v1112_v49  ;;  %v14941_v30 = vsub.f32 %v14767_v33, %v1113_v53 }
 0x1ac   : > { %v1080_v31 = vpop.xlane.xlu0 %1079  ;;  %v1082_v14 = vpop.xlane.xlu1 %1081 }
 0x1ad   : > { %v1114_v57 = vmul.f32 0.0078125, %v1080_v31  ;;  %v1176_v22 = vmul.f32 %v14938_v55, %v14938_v55  ;;  %v1115_v61 = vmul.f32 0.0078125, %v1082_v14  ;;  %v1177_v62 = vmul.f32 %v14941_v30, %v14941_v30 }
 0x1af   : > { %1234 = vadd.xlane.f32.xlu1 %v1175_v54  ;;  %1236 = vadd.xlane.f32.xlu0 %v1176_v22  ;;  %v14948_v63 = vsub.f32 %v14771_v34, %v1114_v57  ;;  %v14951_v32 = vsub.f32 %v14775_v35, %v1115_v61 }
 0x1b1   : > { %v1178_v33 = vmul.f32 %v14948_v63, %v14948_v63  ;;  %v1179_v0 = vmul.f32 %v14951_v32, %v14951_v32 }
 0x1b3   : > { %1238 = vadd.xlane.f32.xlu1 %v1177_v62  ;;  %1240 = vadd.xlane.f32.xlu0 %v1178_v33  ;;  %v14967_v62 = vld [vmem:[%s20062_s4] ss:$0 sm:$0xff] }
 0x1b7   : > { %1242 = vadd.xlane.f32.xlu1 %v1179_v0 }
 0x200   : > { %v1181_v16 = vpop.xlane.xlu0 %1180 }
 0x201   : > { %v1244_v24 = vmul.f32 0.0078125, %v1181_v16 }
 0x203   : > { %v1276_v34 = vadd.f32 1e-05, %v1244_v24 }
 0x204   : > { %v1183_v4 = vpop.xlane.xlu1 %1182  ;;  %v1185_v6 = vpop.xlane.xlu0 %1184 }
 0x205   : > { %13163 = vrsqrt.f32 %v1276_v34  ;;  %v1245_v35 = vmul.f32 0.0078125, %v1183_v4  ;;  %v1246_v9 = vmul.f32 0.0078125, %v1185_v6 }
 0x207   : > { %v1277_v36 = vadd.f32 1e-05, %v1245_v35  ;;  %v1278_v37 = vadd.f32 1e-05, %v1246_v9 }
 0x208   : > { %v1187_v26 = vpop.xlane.xlu1 %1186  ;;  %v1189_v39 = vpop.xlane.xlu0 %1188 }
 0x209   : > { %13165 = vrsqrt.f32 %v1277_v36  ;;  %v1247_v40 = vmul.f32 0.0078125, %v1187_v26  ;;  %v1248_v41 = vmul.f32 0.0078125, %v1189_v39 }
 0x20a   : > { %13167 = vrsqrt.f32 %v1278_v37 }
 0x20b   : > { %v1279_v44 = vadd.f32 1e-05, %v1247_v40  ;;  %v1280_v20 = vadd.f32 1e-05, %v1248_v41 }
 0x20c   : > { %v1191_v45 = vpop.xlane.xlu1 %1190  ;;  %v1193_v12 = vpop.xlane.xlu0 %1192 }
 0x20d   : > { %13169 = vrsqrt.f32 %v1279_v44  ;;  %v1249_v29 = vmul.f32 0.0078125, %v1191_v45  ;;  %v1250_v14 = vmul.f32 0.0078125, %v1193_v12 }
 0x20f   : > { %v1281_v49 = vadd.f32 1e-05, %v1249_v29  ;;  %v1282_v16 = vadd.f32 1e-05, %v1250_v14 }
 0x210   : > { %v1195_v52 = vpop.xlane.xlu1 %1194  ;;  %v1197_v53 = vpop.xlane.xlu0 %1196 }
 0x211   : > { %13171 = vrsqrt.f32 %v1281_v49  ;;  %v1251_v54 = vmul.f32 0.0078125, %v1195_v52  ;;  %v1252_v26 = vmul.f32 0.0078125, %v1197_v53 }
 0x212   : > { %v13164_v31 = vpop.eup %13163  ;;  %13173 = vrsqrt.f32 %v1280_v20 }
 0x213   : > { %v1340_v57 = vmul.f32 %v13164_v31, %v14782_v42  ;;  %v1283_v33 = vadd.f32 1e-05, %v1251_v54  ;;  %v14973_v42 = vld [vmem:[%s20063_s21] ss:$0 sm:$0xff]  ;;  %v1284_v49 = vadd.f32 1e-05, %v1252_v26 }
 0x214   : > { %v1199_v22 = vpop.xlane.xlu1 %1198  ;;  %v1201_v61 = vpop.xlane.xlu0 %1200 }
 0x215   : > { %v1378_v34 = vmul.f32 %v14967_v62, %v1340_v57  ;;  %v1253_v6 = vmul.f32 0.0078125, %v1199_v22  ;;  %13175 = vrsqrt.f32 %v1283_v33  ;;  %v1254_v31 = vmul.f32 0.0078125, %v1201_v61 }
 0x216   : > { %v13166_v0 = vpop.eup %13165  ;;  %13177 = vrsqrt.f32 %v1282_v16 }
 0x217   : > { %v1341_v24 = vmul.f32 %v13166_v0, %v14792_v50  ;;  %v13168_v4 = vpop.eup %13167  ;;  %v1416_v39 = vadd.f32 %v14973_v42, %v1378_v34  ;;  %v1285_v44 = vadd.f32 1e-05, %v1253_v6  ;;  %v1286_v16 = vadd.f32 1e-05, %v1254_v31 }
 0x218   : > { %v1203_v35 = vpop.xlane.xlu1 %1202  ;;  %v1205_v9 = vpop.xlane.xlu0 %1204  ;;  %v1342_v50 = vmul.f32 %v13168_v4, %v14785_v43 }
 0x219   : > { %v1379_v36 = vmul.f32 %v14967_v62, %v1341_v24  ;;  %13179 = vrsqrt.f32 %v1285_v44  ;;  %v1255_v14 = vmul.f32 0.0078125, %v1203_v35  ;;  %v1256_v4 = vmul.f32 0.0078125, %v1205_v9 }
 0x21a   : > { %v13170_v37 = vpop.eup %13169  ;;  %v1380_v53 = vmul.f32 %v14967_v62, %v1342_v50  ;;  %13181 = vrsqrt.f32 %v1284_v49 }
 0x21b   : > { %v1417_v40 = vadd.f32 %v14973_v42, %v1379_v36  ;;  %v1343_v41 = vmul.f32 %v13170_v37, %v14795_v51  ;;  %v1287_v34 = vadd.f32 1e-05, %v1255_v14  ;;  %v1288_v9 = vadd.f32 1e-05, %v1256_v4 }
 0x21c   : > { %v1207_v45 = vpop.xlane.xlu1 %1206  ;;  %v1209_v12 = vpop.xlane.xlu0 %1208  ;;  %v1418_v24 = vadd.f32 %v14973_v42, %v1380_v53 }
 0x21d   : > { %v14980_v29 = vpack.c.bf16 %v1417_v40, %v1416_v39  ;;  %v1381_v52 = vmul.f32 %v14967_v62, %v1343_v41  ;;  %v1257_v44 = vmul.f32 0.0078125, %v1207_v45 }
 0x21e   : > { %v13172_v20 = vpop.eup %13171 }
 0x21f   : > { %v13174_v54 = vpop.eup %13173  ;;  %1674 = vmatmul.mubr.bf16.vlgmr.msra.gmra.mxu0 %v14980_v29  ;;  %v1345_v51 = vmul.f32 %v13172_v20, %v14805_v59  ;;  %v1419_v33 = vadd.f32 %v14973_v42, %v1381_v52  ;;  %v1289_v45 = vadd.f32 1e-05, %v1257_v44 }
 0x220   : > { %v1211_v43 = vpop.xlane.xlu1 %1210  ;;  %v1213_v57 = vpop.xlane.xlu0 %1212  ;;  %1683 = vmatprep.mubr.bf16.mxu0 %v19792_v8  ;;  %v1344_v0 = vmul.f32 %v13174_v54, %v14802_v58 }
 0x221   : > { %v1260_v22 = vmul.f32 0.0078125, %v1213_v57  ;;  %v1383_v36 = vmul.f32 %v14967_v62, %v1345_v51  ;;  %v14991_v39 = vpack.c.bf16 %v1419_v33, %v1418_v24  ;;  %v1258_v33 = vmul.f32 0.0078125, %v1209_v12 }
 0x222   : > { %v13176_v59 = vpop.eup %13175  ;;  %v1382_v40 = vmul.f32 %v14967_v62, %v1344_v0 }
 0x223   : > { %v1292_v61 = vadd.f32 1e-05, %v1260_v22  ;;  %v13178_v50 = vpop.eup %13177  ;;  %v1421_v52 = vadd.f32 %v14973_v42, %v1383_v36  ;;  %v1347_v53 = vmul.f32 %v13176_v59, %v14815_v5  ;;  %v1290_v12 = vadd.f32 1e-05, %v1258_v33 }
 0x224   : > { %v1215_v6 = vpop.xlane.xlu1 %1214  ;;  %v1217_v35 = vpop.xlane.xlu0 %1216  ;;  %v1420_v14 = vadd.f32 %v14973_v42, %v1382_v40  ;;  %v1346_v22 = vmul.f32 %v13178_v50, %v14812_v3 }
 0x225   : > { %v1261_v37 = vmul.f32 0.0078125, %v1215_v6  ;;  %v1262_v26 = vmul.f32 0.0078125, %v1217_v35  ;;  %13183 = vrsqrt.f32 %v1292_v61  ;;  %v1385_v5 = vmul.f32 %v14967_v62, %v1347_v53 }
 0x226   : > { %13185 = vrsqrt.f32 %v1286_v16  ;;  %v15000_v61 = vpack.c.bf16 %v1421_v52, %v1420_v14  ;;  %v13180_v24 = vpop.eup %13179  ;;  %v1259_v35 = vmul.f32 0.0078125, %v1211_v43  ;;  %v1384_v3 = vmul.f32 %v14967_v62, %v1346_v22 }
 0x227   : > { %v1293_v58 = vadd.f32 1e-05, %v1261_v37  ;;  %v1294_v41 = vadd.f32 1e-05, %v1262_v26  ;;  %1684 = vmatmul.mubr.bf16.gmra.mxu0 %v14991_v39  ;;  %13187 = vrsqrt.f32 %v1287_v34  ;;  %v13182_v6 = vpop.eup %13181  ;;  %v1349_v40 = vmul.f32 %v13180_v24, %v14827_v11 }
 0x228   : > { %v1219_v20 = vpop.xlane.xlu1 %1218  ;;  %v1221_v49 = vpop.xlane.xlu0 %1220  ;;  %1693 = vmatprep.mubr.bf16.mxu0 %v19792_v8  ;;  %v1348_v43 = vmul.f32 %v13182_v6, %v14824_v10  ;;  %v1291_v44 = vadd.f32 1e-05, %v1259_v35  ;;  %v1422_v52 = vadd.f32 %v14973_v42, %v1384_v3 }
 0x229   : > { %13189 = vrsqrt.f32 %v1293_v58  ;;  %v1263_v54 = vmul.f32 0.0078125, %v1219_v20  ;;  %v1264_v31 = vmul.f32 0.0078125, %v1221_v49  ;;  %v1387_v11 = vmul.f32 %v14967_v62, %v1349_v40 }
 0x22a   : > { %13191 = vrsqrt.f32 %v1294_v41  ;;  %v1423_v41 = vadd.f32 %v14973_v42, %v1385_v5  ;;  %v1386_v33 = vmul.f32 %v14967_v62, %v1348_v43 }
 0x22b   : > { %v1295_v57 = vadd.f32 1e-05, %v1263_v54  ;;  %v1296_v51 = vadd.f32 1e-05, %v1264_v31  ;;  %13193 = vrsqrt.f32 %v1288_v9  ;;  %v1425_v6 = vadd.f32 %v14973_v42, %v1387_v11 }
 0x22c   : > { %v1223_v0 = vpop.xlane.xlu1 %1222  ;;  %v1229_v16 = vpop.xlane.xlu0 %1228 }
 0x22d   : > { %13195 = vrsqrt.f32 %v1295_v57  ;;  %v1265_v34 = vmul.f32 0.0078125, %v1223_v0  ;;  %v1268_v4 = vmul.f32 0.0078125, %v1229_v16 }
 0x22e   : > { %13197 = vrsqrt.f32 %v1296_v51 }
 0x22f   : > { %v1297_v36 = vadd.f32 1e-05, %v1265_v34  ;;  %v1300_v37 = vadd.f32 1e-05, %v1268_v4  ;;  %1694 = vmatmul.mubr.bf16.gmra.mxu0 %v15000_v61  ;;  %13199 = vrsqrt.f32 %v1289_v45  ;;  %v15012_v45 = vpack.c.bf16 %v1423_v41, %v1422_v52 }
 0x230   : > { %v1231_v26 = vpop.xlane.xlu1 %1230  ;;  %v1225_v59 = vpop.xlane.xlu0 %1224  ;;  %1703 = vmatprep.mubr.bf16.mxu0 %v19792_v8 }
 0x231   : > { %13201 = vrsqrt.f32 %v1297_v36  ;;  %v1269_v50 = vmul.f32 0.0078125, %v1231_v26  ;;  %v1266_v58 = vmul.f32 0.0078125, %v1225_v59 }
 0x232   : > { %13203 = vrsqrt.f32 %v1300_v37  ;;  %v13184_v9 = vpop.eup %13183 }
 0x233   : > { %v1301_v20 = vadd.f32 1e-05, %v1269_v50  ;;  %v1298_v49 = vadd.f32 1e-05, %v1266_v58  ;;  %v13186_v54 = vpop.eup %13185  ;;  %13205 = vrsqrt.f32 %v1290_v12  ;;  %v1356_v14 = vmul.f32 %v13184_v9, %v14871_v19 }
 0x234   : > { %v1227_v31 = vpop.xlane.xlu1 %1226  ;;  %v1233_v53 = vpop.xlane.xlu0 %1232  ;;  %v1350_v50 = vmul.f32 %v13186_v54, %v14835_v13 }
 0x235   : > { %v13188_v57 = vpop.eup %13187  ;;  %13207 = vrsqrt.f32 %v1301_v20  ;;  %v1267_v51 = vmul.f32 0.0078125, %v1227_v31  ;;  %v1270_v22 = vmul.f32 0.0078125, %v1233_v53  ;;  %v1394_v0 = vmul.f32 %v14967_v62, %v1356_v14 }
 0x236   : > { %v13190_v10 = vpop.eup %13189  ;;  %13209 = vrsqrt.f32 %v1298_v49  ;;  %v1351_v35 = vmul.f32 %v13188_v57, %v14838_v46 }
 0x237   : > { %v13192_v16 = vpop.eup %13191  ;;  %13211 = vrsqrt.f32 %v1291_v44  ;;  %v1299_v24 = vadd.f32 1e-05, %v1267_v51  ;;  %v1302_v34 = vadd.f32 1e-05, %v1270_v22  ;;  %1704 = vmatmul.mubr.bf16.gmra.mxu0 %v15012_v45  ;;  %v1357_v19 = vmul.f32 %v13190_v10, %v14874_v38 }
 0x238   : > { %v1235_v4 = vpop.xlane.xlu1 %1234  ;;  %v1237_v5 = vpop.xlane.xlu0 %1236  ;;  %1713 = vmatprep.mubr.bf16.mxu0 %v19792_v8  ;;  %v1432_v36 = vadd.f32 %v14973_v42, %v1394_v0  ;;  %v1358_v37 = vmul.f32 %v13192_v16, %v14883_v21  ;;  %v1424_v38 = vadd.f32 %v14973_v42, %v1386_v33  ;;  %v1389_v52 = vmul.f32 %v14967_v62, %v1351_v35 }
 0x239   : > { %v13194_v3 = vpop.eup %13193  ;;  %13213 = vrsqrt.f32 %v1299_v24  ;;  %v1271_v12 = vmul.f32 0.0078125, %v1235_v4  ;;  %v1272_v26 = vmul.f32 0.0078125, %v1237_v5  ;;  %v1395_v59 = vmul.f32 %v14967_v62, %v1357_v19 }
 0x23a   : > { %v13196_v40 = vpop.eup %13195  ;;  %13215 = vrsqrt.f32 %v1302_v34  ;;  %v1396_v58 = vmul.f32 %v14967_v62, %v1358_v37  ;;  %v15029_v49 = vpack.c.bf16 %v1425_v6, %v1424_v38  ;;  %v1388_v51 = vmul.f32 %v14967_v62, %v1350_v50 }
 0x23b   : > { %v13198_v41 = vpop.eup %13197  ;;  %v1303_v46 = vadd.f32 1e-05, %v1271_v12  ;;  %v1304_v43 = vadd.f32 1e-05, %v1272_v26  ;;  %v1433_v9 = vadd.f32 %v14973_v42, %v1395_v59  ;;  %v1359_v21 = vmul.f32 %v13196_v40, %v14886_v48 }
 0x23c   : > { %v1239_v44 = vpop.xlane.xlu1 %1238  ;;  %v1241_v20 = vpop.xlane.xlu0 %1240  ;;  %v1434_v31 = vadd.f32 %v14973_v42, %v1396_v58  ;;  %v1360_v53 = vmul.f32 %v13198_v41, %v14895_v23  ;;  %v1427_v35 = vadd.f32 %v14973_v42, %v1389_v52  ;;  %v1352_v12 = vmul.f32 %v13194_v3, %v14847_v15 }
 0x23d   : > { %v13200_v13 = vpop.eup %13199  ;;  %13217 = vrsqrt.f32 %v1303_v46  ;;  %v1273_v54 = vmul.f32 0.0078125, %v1239_v44  ;;  %v1274_v11 = vmul.f32 0.0078125, %v1241_v20  ;;  %v15034_v14 = vpack.c.bf16 %v1433_v9, %v1432_v36 }
 0x23e   : > { %v13202_v57 = vpop.eup %13201  ;;  %v1397_v48 = vmul.f32 %v14967_v62, %v1359_v21  ;;  %v1398_v22 = vmul.f32 %v14967_v62, %v1360_v53  ;;  %13219 = vrsqrt.f32 %v1304_v43  ;;  %v1353_v34 = vmul.f32 %v13200_v13, %v14850_v56 }
 0x23f   : > { %v13204_v10 = vpop.eup %13203  ;;  %v1305_v33 = vadd.f32 1e-05, %v1273_v54  ;;  %v1306_v0 = vadd.f32 1e-05, %v1274_v11  ;;  %1714 = vmatmul.mubr.bf16.gmra.mxu0 %v15029_v49  ;;  %v1361_v23 = vmul.f32 %v13202_v57, %v14898_v60  ;;  %v1426_v60 = vadd.f32 %v14973_v42, %v1388_v51  ;;  %v13068_v54 = vld [vmem:[%s14631_s5 + $0x98] ss:$12 sps:$4 sm:$0xff]  }
 0x240   : > { %v1243_v16 = vpop.xlane.xlu1 %1242  ;;  %1723 = vmatprep.mubr.bf16.mxu0 %v19792_v8  ;;  %v1364_v24 = vmul.f32 %v13204_v10, %v14906_v25  ;;  %v1435_v19 = vadd.f32 %v14973_v42, %v1397_v48  ;;  %v1436_v4 = vadd.f32 %v14973_v42, %v1398_v22  ;;  %v13206_v5 = vpop.eup %13205  ;;  %v1391_v58 = vmul.f32 %v14967_v62, %v1353_v34 }
 0x241   : > { %13221 = vrsqrt.f32 %v1305_v33  ;;  %v1275_v6 = vmul.f32 0.0078125, %v1243_v16  ;;  %v1399_v36 = vmul.f32 %v14967_v62, %v1361_v23  ;;  %v15057_v46 = vpack.c.bf16 %v1427_v35, %v1426_v60 }
 0x242   : > { %v13208_v37 = vpop.eup %13207  ;;  %13223 = vrsqrt.f32 %v1306_v0  ;;  %v15050_v25 = vpack.c.bf16 %v1435_v19, %v1434_v31  ;;  %v1402_v40 = vmul.f32 %v14967_v62, %v1364_v24  ;;  %v1429_v13 = vadd.f32 %v14973_v42, %v1391_v58  ;;  %v13069_v0 = vld [vmem:[%s14631_s5 + $0x80] ss:$12 sps:$4 sm:$0xff]  }
 0x243   : > { %v13210_v56 = vpop.eup %13209  ;;  %v1307_v26 = vadd.f32 1e-05, %v1275_v6  ;;  %v1365_v59 = vmul.f32 %v13208_v37, %v14909_v7  ;;  %v1437_v38 = vadd.f32 %v14973_v42, %v1399_v36  ;;  %v1354_v48 = vmul.f32 %v13206_v5, %v14859_v17  ;;  %v13070_v37 = vld [vmem:[%s14631_s5 + $0x68] ss:$12 sps:$4 sm:$0xff]  }
 0x244   : > { %v13212_v50 = vpop.eup %13211  ;;  %v1362_v41 = vmul.f32 %v13210_v56, %v14918_v27  ;;  %v1440_v21 = vadd.f32 %v14973_v42, %v1402_v40  ;;  %v1390_v27 = vmul.f32 %v14967_v62, %v1352_v12 }
 0x245   : > { %13225 = vrsqrt.f32 %v1307_v26  ;;  %v1403_v15 = vmul.f32 %v14967_v62, %v1365_v59  ;;  %v15060_v3 = vpack.c.bf16 %v1437_v38, %v1436_v4  ;;  %v1355_v11 = vmul.f32 %v13212_v50, %v14862_v1  ;;  %v13071_v38 = vld [vmem:[%s14631_s5 + $0x50] ss:$12 sps:$4 sm:$0xff]  }
 0x246   : > { %v13214_v43 = vpop.eup %13213  ;;  %v1400_v7 = vmul.f32 %v14967_v62, %v1362_v41  ;;  %v1392_v24 = vmul.f32 %v14967_v62, %v1354_v48 }
 0x247   : > { %v13216_v9 = vpop.eup %13215  ;;  %1724 = vmatmul.mubr.bf16.gmra.mxu0 %v15057_v46  ;;  %v1441_v44 = vadd.f32 %v14973_v42, %v1403_v15  ;;  %v1363_v20 = vmul.f32 %v13214_v43, %v14921_v18  ;;  %v1428_v18 = vadd.f32 %v14973_v42, %v1390_v27  ;;  %v1393_v23 = vmul.f32 %v14967_v62, %v1355_v11  ;;  %v13072_v15 = vld [vmem:[%s14631_s5 + $0x38] ss:$12 sps:$4 sm:$0xff]  }
 0x248   : > { %1733 = vmatprep.mubr.bf16.mxu0 %v19792_v8  ;;  %v1366_v52 = vmul.f32 %v13216_v9, %v14928_v47  ;;  %v1438_v31 = vadd.f32 %v14973_v42, %v1400_v7  ;;  %v13073_v7 = vld [vmem:[%s14631_s5 + $0x20] ss:$12 sps:$4 sm:$0xff]  }
 0x249   : > { %v15071_v53 = vpack.c.bf16 %v1441_v44, %v1440_v21  ;;  %v1401_v57 = vmul.f32 %v14967_v62, %v1363_v20  ;;  %v15085_v1 = vpack.c.bf16 %v1429_v13, %v1428_v18  ;;  %v1431_v36 = vadd.f32 %v14973_v42, %v1393_v23 }
 0x24a   : > { %v13218_v51 = vpop.eup %13217  ;;  %v1404_v22 = vmul.f32 %v14967_v62, %v1366_v52 }
 0x24b   : > { %1794 = vmatmul.mubr.bf16.vlgmr.msra.gmra.mxu1 %v15071_v53  ;;  %v1367_v47 = vmul.f32 %v13218_v51, %v14931_v28  ;;  %v1439_v10 = vadd.f32 %v14973_v42, %v1401_v57  ;;  %v13220_v33 = vpop.eup %13219 }
 0x24c   : > { %11980 = vmatpush3.bf16.msra.mxu1 %v14958_v2  ;;  %1803 = vmatprep.mubr.bf16.mxu1 %v19792_v8  ;;  %v1442_v2 = vadd.f32 %v14973_v42, %v1404_v22  ;;  %v1368_v4 = vmul.f32 %v13220_v33, %v14938_v55  ;;  %v1430_v55 = vadd.f32 %v14973_v42, %v1392_v24 }
 0x24d   : > { %11981 = vmatprep.subr.bf16.mxu1 %v13068_v54  ;;  %v1405_v17 = vmul.f32 %v14967_v62, %v1367_v47  ;;  %v15090_v16 = vpack.c.bf16 %v1439_v10, %v1438_v31 }
 0x24e   : > { %v13222_v28 = vpop.eup %13221  ;;  %v1455_v59 = vpack.c.bf16 %v1431_v36, %v1430_v55 }
 0x24f   : > { %v13224_v34 = vpop.eup %13223  ;;  %1734 = vmatmul.mubr.bf16.gmra.mxu0 %v15085_v1  ;;  %v1443_v19 = vadd.f32 %v14973_v42, %v1405_v17  ;;  %v1369_v5 = vmul.f32 %v13222_v28, %v14941_v30  ;;  %v1406_v30 = vmul.f32 %v14967_v62, %v1368_v4 }
 0x250   : > { %11982 = vmatpush3.bf16.msra.mxu1 %v13068_v54  ;;  %1743 = vmatprep.mubr.bf16.mxu0 %v19792_v8  ;;  %v1370_v6 = vmul.f32 %v13224_v34, %v14948_v63 }
 0x251   : > { %v1461_v35 = vpack.c.bf16 %v1443_v19, %v1442_v2  ;;  %11983 = vmatprep.subr.bf16.mxu1 %v13069_v0  ;;  %v1407_v60 = vmul.f32 %v14967_v62, %v1369_v5  ;;  %v1444_v58 = vadd.f32 %v14973_v42, %v1406_v30 }
 0x252   : > { %v13226_v12 = vpop.eup %13225  ;;  %v1408_v56 = vmul.f32 %v14967_v62, %v1370_v6 }
 0x253   : > { %1804 = vmatmul.mubr.bf16.gmra.mxu1 %v1461_v35  ;;  %v1371_v26 = vmul.f32 %v13226_v12, %v14951_v32  ;;  %v1445_v40 = vadd.f32 %v14973_v42, %v1407_v60 }
 0x254   : > { %11984 = vmatpush3.bf16.msra.mxu1 %v13069_v0  ;;  %1813 = vmatprep.mubr.bf16.mxu1 %v19792_v8  ;;  %v1446_v63 = vadd.f32 %v14973_v42, %v1408_v56 }
 0x255   : > { %11985 = vmatprep.subr.bf16.mxu1 %v13070_v37  ;;  %v1409_v50 = vmul.f32 %v14967_v62, %v1371_v26  ;;  %v1462_v32 = vpack.c.bf16 %v1445_v40, %v1444_v58  ;;  %v13074_v62 = vld [vmem:[%s14631_s5 + $0x8] ss:$12 sps:$4 sm:$0xff]  }
 0x257   : > { %1744 = vmatmul.mubr.bf16.gmra.mxu0 %v1455_v59  ;;  %v1447_v41 = vadd.f32 %v14973_v42, %v1409_v50  ;;  %v1498_v42 = vlaneseq }
 0x258   : > { %11986 = vmatpush3.bf16.msra.mxu1 %v13070_v37  ;;  %1753 = vmatprep.mubr.bf16.mxu0 %v19792_v8 }
 0x259   : > { %11987 = vmatprep.subr.bf16.mxu1 %v13071_v38  ;;  %v1463_v43 = vpack.c.bf16 %v1447_v41, %v1446_v63 }
 0x25b   : > { %1814 = vmatmul.mubr.bf16.gmra.mxu1 %v1462_v32 }
 0x25c   : > { %11988 = vmatpush3.bf16.msra.mxu1 %v13071_v38  ;;  %1823 = vmatprep.mubr.bf16.mxu1 %v19792_v8 }
 0x25d   : > { %11989 = vmatprep.subr.bf16.mxu1 %v13072_v15 }
 0x25f   : > { %1754 = vmatmul.mubr.bf16.gmra.mxu0 %v15034_v14 }
 0x260   : > { %11990 = vmatpush3.bf16.msra.mxu1 %v13072_v15  ;;  %1763 = vmatprep.mubr.bf16.mxu0 %v19792_v8 }
 0x261   : > { %11991 = vmatprep.subr.bf16.mxu1 %v13073_v7 }
 0x263   : > { %1824 = vmatmul.mubr.bf16.gmra.mxu1 %v1463_v43 }
 0x264   : > { %11992 = vmatpush3.bf16.msra.mxu1 %v13073_v7  ;;  %11995 = vmatprep.mubr.bf16.mxu1 %v14980_v29  ;;  %v15138_v29 = vshrl.u32 %v1498_v42, 7 }
 0x265   : > { %11993 = vmatprep.subr.bf16.mxu1 %v13074_v62 }
 0x266   : > { %20064 = vst [vmem:[#allocation28_spill] sm:$0xff] %v15138_v29  ;;  %v19791_v27 = vsub.s32 1, %v15138_v29 }
 0x267   : > { %1764 = vmatmul.mubr.bf16.gmra.mxu0 %v15050_v25 }
 0x268   : > { %11994 = vmatpush3.bf16.msra.mxu1 %v13074_v62  ;;  %1773 = vmatprep.mubr.bf16.mxu0 %v19792_v8 }
 0x26b   : > { %11996 = vmatmul.mubr.bf16.vlgmr.msra.gmra.mxu1 %v14991_v39  ;;  %v19790_v39 = vsub.s32 0, %v15138_v29 }
 0x26c   : > { %11999 = vmatprep.mubr.bf16.mxu1 %v15000_v61  ;;  %v15142_v61 = vld [vmem:[%s14624_s20] sm:$0x7] }
 0x26d   : > { %v15163_v31 = vrot.slane %v15142_v61, %v19791_v27 }
 0x26f   : > { %1774 = vmatmul.mubr.bf16.gmra.mxu0 %v15060_v3 }
 0x270   : > { %1783 = vmatprep.mubr.bf16.mxu0 %v19792_v8 }
 0x273   : > { %12000 = vmatmul.mubr.bf16.gmra.mxu1 %v15012_v45 }
 0x274   : > { %12003 = vmatprep.mubr.bf16.mxu1 %v15029_v49  ;;  %v15147_v49 = vrot.slane %v15142_v61, %v19790_v39 }
 0x277   : > { %1784 = vmatmul.mubr.bf16.gmra.mxu0 %v15090_v16 }
 0x27b   : > { %12004 = vmatmul.mubr.bf16.gmra.mxu1 %v15057_v46 }
 0x27c   : > { %12007 = vmatprep.mubr.bf16.mxu1 %v15085_v1 }
 0x283   : > { %12008 = vmatmul.mubr.bf16.gmra.mxu1 %v1455_v59 }
 0x284   : > { %12011 = vmatprep.mubr.bf16.mxu1 %v15034_v14 }
 0x28b   : > { %12012 = vmatmul.mubr.bf16.gmra.mxu1 %v15050_v25 }
 0x28c   : > { %12015 = vmatprep.mubr.bf16.mxu1 %v15060_v3 }
 0x293   : > { %12016 = vmatmul.mubr.bf16.gmra.mxu1 %v15090_v16 }
 0x294   : > { %12019 = vmatprep.mubr.bf16.mxu1 %v15071_v53 }
 0x29b   : > { %12020 = vmatmul.mubr.bf16.gmra.mxu1 %v1461_v35 }
 0x29c   : > { %12023 = vmatprep.mubr.bf16.mxu1 %v1462_v32 }
 0x2a3   : > { %12024 = vmatmul.mubr.bf16.gmra.mxu1 %v1463_v43 }
 0x2df   : > { %v1675_v45 = vpop.f32.mrf.mxu0 }
 0x2e0   : > { %v1676_v46 = vadd.f32 %v1675_v45, %v15147_v49 }
 0x2e1   : > { %v1677_v14 = vpop.f32.mrf.mxu0 }
 0x2e2   : > { %v1678_v51 = vadd.f32 %v1677_v14, %v15163_v31 }
 0x2e3   : > { %v1679_v25 = vpop.f32.mrf.mxu0 }
 0x2e4   : > { %v1680_v3 = vadd.f32 %v1679_v25, %v15147_v49 }
 0x2e5   : > { %v1681_v9 = vpop.f32.mrf.mxu0 }
 0x2e6   : > { %v15151_v21 = vpack.c.bf16 %v1680_v3, %v1676_v46  ;;  %v1682_v13 = vadd.f32 %v1681_v9, %v15163_v31 }
 0x2e7   : > { %v1685_v44 = vpop.f32.mrf.mxu0 }
 0x2e8   : > { %2123 = vrot.lane.b32.xlu0 %v15151_v21, %s14282_s22  ;;  %2059 = vrot.lane.b32.xlu1 %v15151_v21, %s14283_s16  ;;  %v15171_v47 = vpack.c.bf16 %v1682_v13, %v1678_v51  ;;  %v1686_v34 = vadd.f32 %v1685_v44, %v15147_v49 }
 0x2e9   : > { %12031 = vmatprep.mubr.msk.bf16.mxu1 %vm2427_vm0, %v15151_v21  ;;  %v1687_v20 = vpop.f32.mrf.mxu0 }
 0x2ea   : > { %v1688_v54 = vadd.f32 %v1687_v20, %v15163_v31  ;;  %v2435_v0 = vsel %vm2427_vm0, %v15171_v47, 0 }
 0x2eb   : > { %v1689_v52 = vpop.f32.mrf.mxu0 }
 0x2ec   : > { %v1690_v16 = vadd.f32 %v1689_v52, %v15147_v49 }
 0x2ed   : > { %v1691_v53 = vpop.f32.mrf.mxu0 }
 0x2ee   : > { %v1692_v11 = vadd.f32 %v1691_v53, %v15163_v31  ;;  %v15188_v35 = vpack.c.bf16 %v1690_v16, %v1686_v34 }
 0x2ef   : > { %v1695_v57 = vpop.f32.mrf.mxu0 }
 0x2f0   : > { %v15169_v48 = vpack.c.bf16 %v1692_v11, %v1688_v54  ;;  %v1696_v5 = vadd.f32 %v1695_v57, %v15147_v49 }
 0x2f1   : > { %v1697_v18 = vpop.f32.mrf.mxu0 }
 0x2f2   : > { %12603 = vmatprep.subr.msk.bf16.mxu1 %vm2427_vm0, %v15169_v48  ;;  %v2438_v22 = vsel %vm2427_vm0, %v15169_v48, 0  ;;  %v1698_v36 = vadd.f32 %v1697_v18, %v15163_v31 }
 0x2f3   : > { %v1699_v10 = vpop.f32.mrf.mxu0  ;;  %12028 = vmatpush3.bf16.xpose.msra.mxu1 %v2438_v22 }
 0x2f4   : > { %12604 = vmatprep.subr.msk.bf16.mxu1 %vm2427_vm0, %v15171_v47  ;;  %v1700_v28 = vadd.f32 %v1699_v10, %v15147_v49 }
 0x2f5   : > { %v1701_v33 = vpop.f32.mrf.mxu0 }
 0x2f6   : > { %v1702_v2 = vadd.f32 %v1701_v33, %v15163_v31  ;;  %v15193_v60 = vpack.c.bf16 %v1700_v28, %v1696_v5 }
 0x2f7   : > { %v1705_v1 = vpop.f32.mrf.mxu0 }
 0x2f8   : > { %v15195_v56 = vpack.c.bf16 %v1702_v2, %v1698_v36  ;;  %v1706_v43 = vadd.f32 %v1705_v1, %v15147_v49 }
 0x2f9   : > { %v1707_v17 = vpop.f32.mrf.mxu0 }
 0x2fa   : > { %v1708_v19 = vadd.f32 %v1707_v17, %v15163_v31  ;;  %v2496_v40 = vsel %vm2427_vm0, %v15195_v56, 0 }
 0x2fb   : > { %v1709_v23 = vpop.f32.mrf.mxu0  ;;  %12030 = vmatpush3.bf16.xpose.msra.mxu1 %v2435_v0 }
 0x2fc   : > { %v1710_v58 = vadd.f32 %v1709_v23, %v15147_v49 }
 0x2fd   : > { %v1711_v24 = vpop.f32.mrf.mxu0 }
 0x2fe   : > { %v1712_v4 = vadd.f32 %v1711_v24, %v15163_v31  ;;  %v15216_v46 = vpack.c.bf16 %v1710_v58, %v1706_v43 }
 0x2ff   : > { %v1715_v6 = vpop.f32.mrf.mxu0 }
 0x300   : > { %v15191_v37 = vpack.c.bf16 %v1712_v4, %v1708_v19  ;;  %v1716_v42 = vadd.f32 %v1715_v6, %v15147_v49 }
 0x301   : > { %v1717_v12 = vpop.f32.mrf.mxu0 }
 0x302   : > { %12032 = vmatmul.mubr.msk.bf16.vlgmr.msra.gmra.mxu1 %vm2427_vm0, %v15188_v35  ;;  %12605 = vmatprep.subr.msk.bf16.mxu1 %vm2427_vm0, %v15191_v37  ;;  %v2499_v55 = vsel %vm2427_vm0, %v15191_v37, 0  ;;  %v1718_v20 = vadd.f32 %v1717_v12, %v15163_v31 }
 0x303   : > { %v1719_v30 = vpop.f32.mrf.mxu0  ;;  %12036 = vmatpush3.bf16.xpose.msra.mxu1 %v2499_v55  ;;  %12039 = vmatprep.mubr.msk.bf16.mxu1 %vm2427_vm0, %v15193_v60 }
 0x304   : > { %12606 = vmatprep.subr.msk.bf16.mxu1 %vm2427_vm0, %v15195_v56  ;;  %v1720_v41 = vadd.f32 %v1719_v30, %v15147_v49 }
 0x305   : > { %v1721_v26 = vpop.f32.mrf.mxu0 }
 0x306   : > { %v1722_v45 = vadd.f32 %v1721_v26, %v15163_v31  ;;  %v15223_v52 = vpack.c.bf16 %v1720_v41, %v1716_v42 }
 0x307   : > { %v1725_v63 = vpop.f32.mrf.mxu0 }
 0x308   : > { %v15233_v57 = vpack.c.bf16 %v1722_v45, %v1718_v20 }
 0x309   : > { %v1727_v59 = vpop.f32.mrf.mxu0 }
 0x30a   : > { %v1728_v7 = vadd.f32 %v1727_v59, %v15163_v31  ;;  %v2557_v16 = vsel %vm2427_vm0, %v15233_v57, 0 }
 0x30b   : > { %v1729_v38 = vpop.f32.mrf.mxu0  ;;  %v1795_v50 = vpop.f32.mrf.mxu1  ;;  %12038 = vmatpush3.bf16.xpose.msra.mxu1 %v2496_v40 }
 0x30c   : > { %v1796_v3 = vadd.f32 %v1795_v50, %v15147_v49  ;;  %v1730_v34 = vadd.f32 %v1729_v38, %v15147_v49 }
 0x30d   : > { %v1731_v32 = vpop.f32.mrf.mxu0  ;;  %v1797_v15 = vpop.f32.mrf.mxu1 }
 0x30e   : > { %v1732_v62 = vadd.f32 %v1731_v32, %v15163_v31 }
 0x30f   : > { %v1735_v14 = vpop.f32.mrf.mxu0  ;;  %v1799_v25 = vpop.f32.mrf.mxu1 }
 0x310   : > { %v15219_v9 = vpack.c.bf16 %v1732_v62, %v1728_v7  ;;  %v1800_v44 = vadd.f32 %v1799_v25, %v15147_v49  ;;  %v1736_v30 = vadd.f32 %v1735_v14, %v15147_v49 }
 0x311   : > { %v1737_v53 = vpop.f32.mrf.mxu0  ;;  %v1801_v13 = vpop.f32.mrf.mxu1 }
 0x312   : > { %v15225_v54 = vpack.c.bf16 %v1800_v44, %v1796_v3  ;;  %12040 = vmatmul.mubr.msk.bf16.vlgmr.msra.gmra.mxu1 %vm2427_vm0, %v15216_v46  ;;  %12607 = vmatprep.subr.msk.bf16.mxu1 %vm2427_vm0, %v15219_v9  ;;  %v2560_v11 = vsel %vm2427_vm0, %v15219_v9, 0  ;;  %v1802_v6 = vadd.f32 %v1801_v13, %v15163_v31  ;;  %v1738_v58 = vadd.f32 %v1737_v53, %v15163_v31 }
 0x313   : > { %v1739_v51 = vpop.f32.mrf.mxu0  ;;  %v15235_v18 = vpop.f32.mrf.mxu1  ;;  %12044 = vmatpush3.bf16.xpose.msra.mxu1 %v2560_v11  ;;  %12047 = vmatprep.mubr.msk.bf16.mxu1 %vm2427_vm0, %v15223_v52 }
 0x314   : > { %2147 = vrot.lane.b32.xlu0 %v15225_v54, %s14282_s22  ;;  %2083 = vrot.lane.b32.xlu1 %v15225_v54, %s14283_s16  ;;  %v1740_v19 = vadd.f32 %v1739_v51, %v15147_v49 }
 0x315   : > { %12608 = vmatprep.subr.msk.bf16.mxu1 %vm2427_vm0, %v15233_v57  ;;  %v1741_v22 = vpop.f32.mrf.mxu0  ;;  %v1807_v10 = vpop.f32.mrf.mxu1 }
 0x316   : > { %v1808_v2 = vadd.f32 %v1807_v10, %v15163_v31  ;;  %v1742_v26 = vadd.f32 %v1741_v22, %v15163_v31  ;;  %v15283_v41 = vpack.c.bf16 %v1740_v19, %v1736_v30 }
 0x317   : > { %v15245_v33 = vpop.f32.mrf.mxu0  ;;  %v15247_v1 = vpop.f32.mrf.mxu1 }
 0x318   : > { %2125 = vrot.lane.b32.xlu0 %v15188_v35, %s14282_s22  ;;  %2091 = vrot.lane.b32.xlu1 %v15151_v21, %s14284_s17  ;;  %v1726_v21 = vadd.f32 %v1725_v63, %v15147_v49  ;;  %v1798_v63 = vadd.f32 %v1797_v15, %v15163_v31  ;;  %v15293_v7 = vpack.c.bf16 %v1742_v26, %v1738_v58 }
 0x319   : > { %v1747_v17 = vpop.f32.mrf.mxu0  ;;  %v1811_v0 = vpop.f32.mrf.mxu1 }
 0x31a   : > { %v1812_v23 = vadd.f32 %v1811_v0, %v15163_v31  ;;  %v1748_v36 = vadd.f32 %v1747_v17, %v15163_v31  ;;  %v15273_v40 = vpack.c.bf16 %v1730_v34, %v1726_v21  ;;  %v15285_v43 = vpack.c.bf16 %v1802_v6, %v1798_v63 }
 0x31b   : > { %v1749_v28 = vpop.f32.mrf.mxu0  ;;  %v1815_v24 = vpop.f32.mrf.mxu1  ;;  %12046 = vmatpush3.bf16.xpose.msra.mxu1 %v2557_v16  ;;  %v2618_v11 = vsel %vm2427_vm0, %v15293_v7, 0  ;;  %v1746_v17 = vadd.f32 %v15245_v33, %v15147_v49 }
 0x31c   : > { %2173 = vrot.lane.b32.xlu0 %v15169_v48, %s14283_s16  ;;  %2115 = vrot.lane.b32.xlu1 %v15225_v54, %s14284_s17  ;;  %v15268_v12 = vpack.c.bf16 %v1812_v23, %v1808_v2  ;;  %v1816_v25 = vadd.f32 %v1815_v24, %v15147_v49  ;;  %v1750_v22 = vadd.f32 %v1749_v28, %v15147_v49 }
 0x31d   : > { %v1751_v4 = vpop.f32.mrf.mxu0  ;;  %v15264_v5 = vpop.f32.mrf.mxu1 }
 0x31e   : > { %v1752_v55 = vadd.f32 %v1751_v4, %v15163_v31  ;;  %v15329_v34 = vpack.c.bf16 %v1750_v22, %v1746_v17  ;;  %v1818_v58 = vadd.f32 %v15264_v5, %v15163_v31  ;;  %v2804_v17 = vsel %vm2427_vm0, %v15268_v12, 0 }
 0x31f   : > { %v1755_v59 = vpop.f32.mrf.mxu0  ;;  %v1819_v50 = vpop.f32.mrf.mxu1 }
 0x320   : > { %v15276_v38 = vpack.c.bf16 %v1752_v55, %v1748_v36  ;;  %2171 = vrot.lane.b32.xlu1 %v15171_v47, %s14283_s16  ;;  %2261 = vrot.lane.b32.xlu0 %v15268_v12, %s14282_s22  ;;  %v1820_v62 = vadd.f32 %v1819_v50, %v15147_v49  ;;  %v1756_v45 = vadd.f32 %v1755_v59, %v15147_v49 }
 0x321   : > { %v1757_v32 = vpop.f32.mrf.mxu0  ;;  %v1821_v4 = vpop.f32.mrf.mxu1  ;;  %v1810_v55 = vadd.f32 %v15247_v1, %v15147_v49  ;;  %v1806_v50 = vadd.f32 %v15235_v18, %v15147_v49 }
 0x322   : > { %12048 = vmatmul.mubr.msk.bf16.vlgmr.msra.gmra.mxu1 %vm2427_vm0, %v15273_v40  ;;  %12609 = vmatprep.subr.msk.bf16.mxu1 %vm2427_vm0, %v15276_v38  ;;  %v2621_v15 = vsel %vm2427_vm0, %v15276_v38, 0  ;;  %v15309_v20 = vpack.c.bf16 %v1820_v62, %v1816_v25  ;;  %v1758_v28 = vadd.f32 %v1757_v32, %v15163_v31  ;;  %v1822_v26 = vadd.f32 %v1821_v4, %v15163_v31 }
 0x323   : > { %v1759_v42 = vpop.f32.mrf.mxu0  ;;  %12052 = vmatpush3.bf16.xpose.msra.mxu1 %v2621_v15  ;;  %12055 = vmatprep.mubr.msk.bf16.mxu1 %vm2427_vm0, %v15283_v41  ;;  %v1825_v59 = vpop.f32.mrf.mxu1  ;;  %v2034_v32 = vpack.c.bf16 %v1810_v55, %v1806_v50  ;;  %v19789_v55 = vsub.s32 2, %v15138_v29 }
 0x324   : > { %v1760_v14 = vadd.f32 %v1759_v42, %v15147_v49  ;;  %2195 = vrot.lane.b32.xlu1 %v15285_v43, %s14283_s16  ;;  %2063 = vrot.lane.b32.xlu0 %v15193_v60, %s14283_s16  ;;  %v15371_v62 = vpack.c.bf16 %v1822_v26, %v1818_v58 }
 0x325   : > { %12610 = vmatprep.subr.msk.bf16.mxu1 %vm2427_vm0, %v15293_v7  ;;  %v1761_v3 = vpop.f32.mrf.mxu0  ;;  %v1827_v18 = vpop.f32.mrf.mxu1  ;;  %v15463_v26 = vrot.slane %v15142_v61, %v19789_v55 }
 0x326   : > { %v15307_v44 = vpack.c.bf16 %v1760_v14, %v1756_v45  ;;  %v1762_v0 = vadd.f32 %v1761_v3, %v15163_v31 }
 0x327   : > { %v1765_v53 = vpop.f32.mrf.mxu0 }
 0x328   : > { %2203 = vrot.lane.b32.xlu1 %v15171_v47, %s14284_s17  ;;  %12063 = vmatprep.mubr.msk.bf16.mxu0 %vm2427_vm0, %v15307_v44  ;;  %v15338_v21 = vpack.c.bf16 %v1762_v0, %v1758_v28  ;;  %v1766_v14 = vadd.f32 %v1765_v53, %v15147_v49  ;;  %v1826_v28 = vadd.f32 %v1825_v59, %v15147_v49 }
 0x329   : > { %2087 = vrot.lane.b32.xlu0 %v15309_v20, %s14283_s16  ;;  %v1767_v13 = vpop.f32.mrf.mxu0 }
 0x32a   : > { %v1768_v23 = vadd.f32 %v1767_v13, %v15163_v31  ;;  %v2679_v15 = vsel %vm2427_vm0, %v15338_v21, 0  ;;  %v1829_v13 = vpop.f32.mrf.mxu1 }
 0x32b   : > { %v1769_v51 = vpop.f32.mrf.mxu0  ;;  %12054 = vmatpush3.bf16.xpose.msra.mxu1 %v2618_v11 }
 0x32c   : > { %2227 = vrot.lane.b32.xlu1 %v15285_v43, %s14284_s17  ;;  %v1770_v45 = vadd.f32 %v1769_v51, %v15147_v49  ;;  %v1831_v0 = vpop.f32.mrf.mxu1 }
 0x32d   : > { %2095 = vrot.lane.b32.xlu0 %v15193_v60, %s14284_s17  ;;  %v1771_v10 = vpop.f32.mrf.mxu0 }
 0x32e   : > { %v1772_v16 = vadd.f32 %v1771_v10, %v15163_v31  ;;  %v15382_v11 = vpack.c.bf16 %v1770_v45, %v1766_v14 }
 0x32f   : > { %v1775_v24 = vpop.f32.mrf.mxu0 }
 0x330   : > { %v15332_v2 = vpack.c.bf16 %v1772_v16, %v1768_v23  ;;  %2235 = vrot.lane.b32.xlu1 %v15171_v47, %s14282_s22  ;;  %v1776_v47 = vadd.f32 %v1775_v24, %v15147_v49  ;;  %v1832_v23 = vadd.f32 %v1831_v0, %v15163_v31  ;;  %v1830_v16 = vadd.f32 %v1829_v13, %v15147_v49 }
 0x331   : > { %2127 = vrot.lane.b32.xlu0 %v15193_v60, %s14282_s22  ;;  %v1777_v33 = vpop.f32.mrf.mxu0  ;;  %v1828_v24 = vadd.f32 %v1827_v18, %v15163_v31 }
 0x332   : > { %12056 = vmatmul.mubr.msk.bf16.vlgmr.msra.gmra.mxu1 %vm2427_vm0, %v15329_v34  ;;  %12611 = vmatprep.subr.msk.bf16.mxu0 %vm2427_vm0, %v15332_v2  ;;  %v2682_v19 = vsel %vm2427_vm0, %v15332_v2, 0  ;;  %v1778_v10 = vadd.f32 %v1777_v33, %v15163_v31  ;;  %v2040_v4 = vpack.c.bf16 %v1830_v16, %v1826_v28 }
 0x333   : > { %v1779_v6 = vpop.f32.mrf.mxu0  ;;  %12060 = vmatpush3.bf16.xpose.msra.mxu0 %v2682_v19  ;;  %v2801_v19 = vsel %vm2427_vm0, %v15285_v43, 0 }
 0x334   : > { %v1780_v36 = vadd.f32 %v1779_v6, %v15147_v49  ;;  %12612 = vmatprep.subr.msk.bf16.mxu0 %vm2427_vm0, %v15338_v21  ;;  %2259 = vrot.lane.b32.xlu1 %v15285_v43, %s14282_s22 }
 0x335   : > { %2151 = vrot.lane.b32.xlu0 %v15309_v20, %s14282_s22  ;;  %v1781_v60 = vpop.f32.mrf.mxu0 }
 0x336   : > { %v15356_v30 = vpack.c.bf16 %v1780_v36, %v1776_v47  ;;  %v1782_v51 = vadd.f32 %v1781_v60, %v15163_v31  ;;  %v2862_v36 = vsel %vm2427_vm0, %v15371_v62, 0  ;;  %v11997_v60 = vpop.f32.mrf.mxu1 }
 0x337   : > { %v1785_v63 = vpop.f32.mrf.mxu0 }
 0x338   : > { %2061 = vrot.lane.b32.xlu1 %v15188_v35, %s14283_s16  ;;  %12071 = vmatprep.mubr.msk.bf16.mxu1 %vm2427_vm0, %v15356_v30 }
 0x339   : > { %2175 = vrot.lane.b32.xlu0 %v15195_v56, %s14283_s16  ;;  %v1787_v1 = vpop.f32.mrf.mxu0 }
 0x33a   : > { %v1788_v25 = vadd.f32 %v1787_v1, %v15163_v31 }
 0x33b   : > { %v1789_v42 = vpop.f32.mrf.mxu0  ;;  %12062 = vmatpush3.bf16.xpose.msra.mxu0 %v2679_v15 }
 0x33c   : > { %12615 = vmatprep.subr.msk.bf16.mxu0 %vm2427_vm0, %v15268_v12  ;;  %2085 = vrot.lane.b32.xlu1 %v2034_v32, %s14283_s16  ;;  %v1790_v6 = vadd.f32 %v1789_v42, %v15147_v49 }
 0x33d   : > { %2199 = vrot.lane.b32.xlu0 %v15371_v62, %s14283_s16  ;;  %v1791_v5 = vpop.f32.mrf.mxu0 }
 0x33e   : > { %v1792_v3 = vadd.f32 %v1791_v5, %v15163_v31  ;;  %v1786_v31 = vadd.f32 %v1785_v63, %v15147_v49 }
 0x340   : > { %v15385_v22 = vpack.c.bf16 %v1792_v3, %v1788_v25  ;;  %2093 = vrot.lane.b32.xlu1 %v15188_v35, %s14284_s17  ;;  %v15400_v35 = vpack.c.bf16 %v1782_v51, %v1778_v10  ;;  %v15428_v47 = vpack.c.bf16 %v1790_v6, %v1786_v31 }
 0x341   : > { %2207 = vrot.lane.b32.xlu0 %v15195_v56, %s14284_s17 }
 0x342   : > { %12064 = vmatmul.mubr.msk.bf16.vlgmr.msra.gmra.mxu0 %vm2427_vm0, %v15382_v11  ;;  %12613 = vmatprep.subr.msk.bf16.mxu1 %vm2427_vm0, %v15385_v22  ;;  %v2743_v53 = vsel %vm2427_vm0, %v15385_v22, 0  ;;  %v2740_v33 = vsel %vm2427_vm0, %v15400_v35, 0 }
 0x343   : > { %12068 = vmatpush3.bf16.xpose.msra.mxu1 %v2743_v53  ;;  %12076 = vmatpush3.bf16.xpose.msra.mxu0 %v2804_v17 }
 0x344   : > { %12079 = vmatprep.mubr.msk.bf16.mxu0 %vm2427_vm0, %v15225_v54  ;;  %12616 = vmatprep.subr.msk.bf16.mxu0 %vm2427_vm0, %v15285_v43  ;;  %v2041_v54 = vpack.c.bf16 %v1832_v23, %v1828_v24 }
 0x345   : > { %2117 = vrot.lane.b32.xlu1 %v2034_v32, %s14284_s17  ;;  %2231 = vrot.lane.b32.xlu0 %v15371_v62, %s14284_s17 }
 0x346   : > { %12614 = vmatprep.subr.msk.bf16.mxu1 %vm2427_vm0, %v15400_v35  ;;  %v2865_v43 = vsel %vm2427_vm0, %v2041_v54, 0 }
 0x349   : > { %2149 = vrot.lane.b32.xlu1 %v2034_v32, %s14282_s22  ;;  %2065 = vrot.lane.b32.xlu0 %v15216_v46, %s14283_s16 }
 0x34b   : > { %12070 = vmatpush3.bf16.xpose.msra.mxu1 %v2740_v33  ;;  %12078 = vmatpush3.bf16.xpose.msra.mxu0 %v2801_v19 }
 0x34c   : > { %12617 = vmatprep.subr.msk.bf16.mxu1 %vm2427_vm0, %v2041_v54 }
 0x34d   : > { %2197 = vrot.lane.b32.xlu1 %v15268_v12, %s14283_s16  ;;  %2089 = vrot.lane.b32.xlu0 %v2040_v4, %s14283_s16 }
 0x351   : > { %2205 = vrot.lane.b32.xlu1 %v15169_v48, %s14284_s17  ;;  %2097 = vrot.lane.b32.xlu0 %v15216_v46, %s14284_s17 }
 0x352   : > { %12072 = vmatmul.mubr.msk.bf16.vlgmr.msra.gmra.mxu1 %vm2427_vm0, %v15428_v47  ;;  %12080 = vmatmul.mubr.msk.bf16.vlgmr.msra.gmra.mxu0 %vm2427_vm0, %v2034_v32 }
 0x353   : > { %12084 = vmatpush3.bf16.xpose.msra.mxu1 %v2865_v43  ;;  %12087 = vmatprep.mubr.msk.bf16.mxu1 %vm2427_vm0, %v15309_v20 }
 0x354   : > { %12618 = vmatprep.subr.msk.bf16.mxu1 %vm2427_vm0, %v15371_v62 }
 0x355   : > { %2229 = vrot.lane.b32.xlu1 %v15268_v12, %s14284_s17  ;;  %2121 = vrot.lane.b32.xlu0 %v2040_v4, %s14284_s17  ;;  %v1868_v12 = vpop.f32.mrf.mxu1 }
 0x356   : > { %v1869_v1 = vadd.f32 %v1868_v12, %v15463_v26 }
 0x359   : > { %2237 = vrot.lane.b32.xlu1 %v15169_v48, %s14282_s22  ;;  %2201 = vrot.lane.b32.xlu0 %v2041_v54, %s14283_s16  ;;  %v11998_v48 = vpop.f32.mrf.mxu1 }
 0x35a   : > { %v2060_v49 = vpop.permute.xlu1 %2059  ;;  %v15507_v42 = vpop.permute.xlu0 %2123 }
 0x35b   : > { %12086 = vmatpush3.bf16.xpose.msra.mxu1 %v2862_v36  ;;  %12095 = vmatprep.mubr.msk.bf16.mxu0 %vm2427_vm0, %v2060_v49  ;;  %v1871_v59 = vpop.f32.mrf.mxu1 }
 0x35c   : > { %v1872_v50 = vadd.f32 %v1871_v59, %v15463_v26 }
 0x35d   : > { %2119 = vrot.lane.b32.xlu1 %v15309_v20, %s14284_s17  ;;  %2209 = vrot.lane.b32.xlu0 %v15191_v37, %s14284_s17  ;;  %v1880_v20 = vadd.f32 %v11998_v48, %v15463_v26  ;;  %v12001_v61 = vpop.f32.mrf.mxu1 }
 0x35f   : > { %v1884_v58 = vpop.f32.mrf.mxu1 }
 0x360   : > { %v1885_v5 = vadd.f32 %v1884_v58, %v15463_v26 }
 0x361   : > { %2239 = vrot.lane.b32.xlu1 %v15195_v56, %s14282_s22  ;;  %2233 = vrot.lane.b32.xlu0 %v2041_v54, %s14284_s17  ;;  %v1877_v56 = vadd.f32 %v11997_v60, %v15463_v26  ;;  %v12002_v32 = vpop.f32.mrf.mxu1 }
 0x362   : > { %12088 = vmatmul.mubr.msk.bf16.vlgmr.msra.gmra.mxu1 %vm2427_vm0, %v2040_v4  ;;  %v1896_v15 = vadd.f32 %v12002_v32, %v15463_v26 }
 0x363   : > { %v15474_v63 = vpack.c.bf16 %v1880_v20, %v1877_v56 }
 0x365   : > { %2263 = vrot.lane.b32.xlu1 %v15371_v62, %s14282_s22  ;;  %2265 = vrot.lane.b32.xlu0 %v2041_v54, %s14282_s22  ;;  %20065 = vst [vmem:[#allocation29_spill] sm:$0xff] %v15474_v63  ;;  %v1893_v62 = vadd.f32 %v12001_v61, %v15463_v26 }
 0x367   : > { %v15497_v18 = vpack.c.bf16 %v1896_v15, %v1893_v62 }
 0x369   : > { %2129 = vrot.lane.b32.xlu1 %v15216_v46, %s14282_s22  ;;  %2131 = vrot.lane.b32.xlu0 %v15223_v52, %s14282_s22  ;;  %v15485_v46 = vpack.c.bf16 %v1872_v50, %v1869_v1  ;;  %20067 = vst [vmem:[#allocation31_spill] sm:$0xff] %v15497_v18 }
 0x36b   : > { %20066 = vst [vmem:[#allocation30_spill] sm:$0xff] %v15485_v46 }
 0x36d   : > { %2153 = vrot.lane.b32.xlu1 %v2040_v4, %s14282_s22  ;;  %2285 = vrot.lane.b32.xlu0 %v15474_v63, %s14283_s16 }
 0x371   : > { %2177 = vrot.lane.b32.xlu1 %v15191_v37, %s14283_s16  ;;  %2381 = vrot.lane.b32.xlu0 %v15474_v63, %s14282_s22 }
 0x375   : > { %2241 = vrot.lane.b32.xlu1 %v15191_v37, %s14282_s22  ;;  %2331 = vrot.lane.b32.xlu0 %v15485_v46, %s14284_s17  ;;  %v1887_v37 = vpop.f32.mrf.mxu1 }
 0x376   : > { %v1888_v45 = vadd.f32 %v1887_v37, %v15463_v26 }
 0x377   : > { %v12005_v17 = vpop.f32.mrf.mxu1 }
 0x378   : > { %v15519_v25 = vpack.c.bf16 %v1888_v45, %v1885_v5  ;;  %v1909_v6 = vadd.f32 %v12005_v17, %v15463_v26 }
 0x379   : > { %2067 = vrot.lane.b32.xlu1 %v15223_v52, %s14283_s16  ;;  %2379 = vrot.lane.b32.xlu0 %v15485_v46, %s14282_s22  ;;  %v1900_v23 = vpop.f32.mrf.mxu1 }
 0x37a   : > { %20069 = vst [vmem:[#allocation33_spill] sm:$0xff] %v15519_v25  ;;  %v1901_v59 = vadd.f32 %v1900_v23, %v15463_v26 }
 0x37b   : > { %v12006_v54 = vpop.f32.mrf.mxu1 }
 0x37c   : > { %v1912_v19 = vadd.f32 %v12006_v54, %v15463_v26 }
 0x37d   : > { %2099 = vrot.lane.b32.xlu1 %v15223_v52, %s14284_s17  ;;  %2385 = vrot.lane.b32.xlu0 %v15497_v18, %s14282_s22 }
 0x37e   : > { %v15568_v43 = vpack.c.bf16 %v1912_v19, %v1909_v6 }
 0x380   : > { %20071 = vst [vmem:[#allocation35_spill] sm:$0xff] %v15568_v43 }
 0x381   : > { %2333 = vrot.lane.b32.xlu1 %v15474_v63, %s14284_s17  ;;  %2181 = vrot.lane.b32.xlu0 %v15219_v9, %s14283_s16 }
 0x385   : > { %2179 = vrot.lane.b32.xlu1 %v15233_v57, %s14283_s16  ;;  %2245 = vrot.lane.b32.xlu0 %v15219_v9, %s14282_s22 }
 0x386   : > { %v15515_v52 = vpop.permute.xlu1 %2083  ;;  %v15517_v14 = vpop.permute.xlu0 %2147 }
 0x387   : > { %20068 = vst [vmem:[#allocation32_spill] sm:$0xff] %v15517_v14 }
 0x389   : > { %2211 = vrot.lane.b32.xlu1 %v15233_v57, %s14284_s17  ;;  %2287 = vrot.lane.b32.xlu0 %v15519_v25, %s14283_s16 }
 0x38a   : > { %v15525_v3 = vpop.permute.xlu1 %2091  ;;  %v15527_v13 = vpop.permute.xlu0 %2125 }
 0x38d   : > { %2243 = vrot.lane.b32.xlu1 %v15233_v57, %s14282_s22  ;;  %2335 = vrot.lane.b32.xlu0 %v15519_v25, %s14284_s17 }
 0x38e   : > { %v15533_v51 = vpop.permute.xlu1 %2115  ;;  %v2174_v10 = vpop.permute.xlu0 %2173 }
 0x38f   : > { %12619 = vmatprep.subr.msk.bf16.mxu0 %vm2427_vm0, %v2174_v10  ;;  %v2926_v53 = vsel %vm2427_vm0, %v2174_v10, 0 }
 0x390   : > { %12092 = vmatpush3.bf16.xpose.msra.mxu0 %v2926_v53 }
 0x391   : > { %2283 = vrot.lane.b32.xlu1 %v15485_v46, %s14283_s16  ;;  %2383 = vrot.lane.b32.xlu0 %v15519_v25, %s14282_s22 }
 0x392   : > { %v2172_v0 = vpop.permute.xlu1 %2171  ;;  %v15541_v57 = vpop.permute.xlu0 %2261 }
 0x393   : > { %20070 = vst [vmem:[#allocation34_spill] sm:$0xff] %v15541_v57  ;;  %12620 = vmatprep.subr.msk.bf16.mxu0 %vm2427_vm0, %v2172_v0  ;;  %v2923_v28 = vsel %vm2427_vm0, %v2172_v0, 0 }
 0x395   : > { %2069 = vrot.lane.b32.xlu1 %v15273_v40, %s14283_s16  ;;  %2071 = vrot.lane.b32.xlu0 %v15283_v41, %s14283_s16 }
 0x396   : > { %v15548_v16 = vpop.permute.xlu1 %2195  ;;  %v2064_v24 = vpop.permute.xlu0 %2063 }
 0x397   : > { %12103 = vmatprep.mubr.msk.bf16.mxu1 %vm2427_vm0, %v2064_v24 }
 0x398   : > { %12094 = vmatpush3.bf16.xpose.msra.mxu0 %v2923_v28 }
 0x399   : > { %2101 = vrot.lane.b32.xlu1 %v15273_v40, %s14284_s17  ;;  %2103 = vrot.lane.b32.xlu0 %v15283_v41, %s14284_s17 }
 0x39a   : > { %v15556_v33 = vpop.permute.xlu1 %2203 }
 0x39b   : > { %v15559_v4 = vpop.permute.xlu0 %2087 }
 0x39d   : > { %2133 = vrot.lane.b32.xlu1 %v15273_v40, %s14282_s22  ;;  %2135 = vrot.lane.b32.xlu0 %v15283_v41, %s14282_s22  ;;  %v1903_v40 = vpop.f32.mrf.mxu1 }
 0x39e   : > { %v15566_v31 = vpop.permute.xlu1 %2227  ;;  %v1904_v12 = vadd.f32 %v1903_v40, %v15463_v26 }
 0x39f   : > { %v15570_v49 = vpop.permute.xlu0 %2095  ;;  %v12009_v20 = vpop.f32.mrf.mxu1 }
 0x3a0   : > { %v15594_v61 = vpack.c.bf16 %v1904_v12, %v1901_v59  ;;  %v1925_v5 = vadd.f32 %v12009_v20, %v15463_v26 }
 0x3a1   : > { %2289 = vrot.lane.b32.xlu1 %v15497_v18, %s14283_s16  ;;  %2293 = vrot.lane.b32.xlu0 %v15568_v43, %s14283_s16  ;;  %v1916_v58 = vpop.f32.mrf.mxu1 }
 0x3a2   : > { %v15576_v36 = vpop.permute.xlu1 %2235  ;;  %20075 = vst [vmem:[#allocation39_spill] sm:$0xff] %v15594_v61  ;;  %v1917_v20 = vadd.f32 %v1916_v58, %v15463_v26 }
 0x3a3   : > { %v15578_v60 = vpop.permute.xlu0 %2127  ;;  %v12010_v32 = vpop.f32.mrf.mxu1 }
 0x3a4   : > { %20072 = vst [vmem:[#allocation36_spill] sm:$0xff] %v15578_v60  ;;  %v1928_v62 = vadd.f32 %v12010_v32, %v15463_v26 }
 0x3a5   : > { %2337 = vrot.lane.b32.xlu1 %v15497_v18, %s14284_s17  ;;  %2183 = vrot.lane.b32.xlu0 %v15293_v7, %s14283_s16  ;;  %v1919_v45 = vpop.f32.mrf.mxu1 }
 0x3a6   : > { %v15584_v41 = vpop.permute.xlu1 %2259  ;;  %v15621_v10 = vpack.c.bf16 %v1928_v62, %v1925_v5 }
 0x3a7   : > { %20073 = vst [vmem:[#allocation37_spill] sm:$0xff] %v15584_v41  ;;  %v15587_v48 = vpop.permute.xlu0 %2151  ;;  %v12013_v17 = vpop.f32.mrf.mxu1 }
 0x3a8   : > { %20074 = vst [vmem:[#allocation38_spill] sm:$0xff] %v15587_v48  ;;  %20076 = vst [vmem:[#allocation40_spill] sm:$0xff] %v15621_v10  ;;  %v1941_v59 = vadd.f32 %v12013_v17, %v15463_v26 }
 0x3a9   : > { %2213 = vrot.lane.b32.xlu1 %v15219_v9, %s14284_s17  ;;  %2215 = vrot.lane.b32.xlu0 %v15293_v7, %s14284_s17  ;;  %v1932_v24 = vpop.f32.mrf.mxu1 }
 0x3aa   : > { %v2062_v56 = vpop.permute.xlu1 %2061 }
 0x3ab   : > { %v15596_v50 = vpop.permute.xlu0 %2175  ;;  %12096 = vmatmul.mubr.msk.bf16.vlgmr.msra.gmra.mxu0 %vm2427_vm0, %v2062_v56  ;;  %v12014_v19 = vpop.f32.mrf.mxu1 }
 0x3ac   : > { %v1944_v6 = vadd.f32 %v12014_v19, %v15463_v26 }
 0x3ad   : > { %2341 = vrot.lane.b32.xlu1 %v15568_v43, %s14284_s17  ;;  %2291 = vrot.lane.b32.xlu0 %v15594_v61, %s14283_s16  ;;  %v1935_v5 = vpop.f32.mrf.mxu1 }
 0x3ae   : > { %v15603_v1 = vpop.permute.xlu1 %2085  ;;  %v15661_v32 = vpack.c.bf16 %v1944_v6, %v1941_v59  ;;  %v1936_v19 = vadd.f32 %v1935_v5, %v15463_v26  ;;  %v1933_v59 = vadd.f32 %v1932_v24, %v15463_v26 }
 0x3af   : > { %v15605_v9 = vpop.permute.xlu0 %2199 }
 0x3b0   : > { %20079 = vst [vmem:[#allocation43_spill] sm:$0xff] %v15661_v32  ;;  %v15689_v55 = vpack.c.bf16 %v1936_v19, %v1933_v59 }
 0x3b1   : > { %2247 = vrot.lane.b32.xlu1 %v15293_v7, %s14282_s22  ;;  %2339 = vrot.lane.b32.xlu0 %v15594_v61, %s14284_s17 }
 0x3b2   : > { %v15611_v15 = vpop.permute.xlu1 %2093  ;;  %20081 = vst [vmem:[#allocation45_spill] sm:$0xff] %v15689_v55 }
 0x3b3   : > { %v15614_v37 = vpop.permute.xlu0 %2207 }
 0x3b5   : > { %2137 = vrot.lane.b32.xlu1 %v15329_v34, %s14282_s22  ;;  %2073 = vrot.lane.b32.xlu0 %v15329_v34, %s14283_s16 }
 0x3b7   : > { %v15623_v7 = vpop.permute.xlu1 %2117  ;;  %v15625_v53 = vpop.permute.xlu0 %2231 }
 0x3b9   : > { %2297 = vrot.lane.b32.xlu1 %v15621_v10, %s14283_s16  ;;  %2105 = vrot.lane.b32.xlu0 %v15329_v34, %s14284_s17  ;;  %v1920_v34 = vadd.f32 %v1919_v45, %v15463_v26 }
 0x3bb   : > { %v15631_v0 = vpop.permute.xlu1 %2149  ;;  %v15633_v23 = vpop.permute.xlu0 %2065  ;;  %v15659_v56 = vpack.c.bf16 %v1920_v34, %v1917_v20 }
 0x3bc   : > { %20077 = vst [vmem:[#allocation41_spill] sm:$0xff] %v15631_v0 }
 0x3bd   : > { %2345 = vrot.lane.b32.xlu1 %v15621_v10, %s14284_s17  ;;  %2185 = vrot.lane.b32.xlu0 %v15276_v38, %s14283_s16  ;;  %20078 = vst [vmem:[#allocation42_spill] sm:$0xff] %v15659_v56 }
 0x3bf   : > { %v15639_v28 = vpop.permute.xlu1 %2197  ;;  %v15641_v54 = vpop.permute.xlu0 %2089 }
 0x3c1   : > { %2075 = vrot.lane.b32.xlu1 %v15307_v44, %s14283_s16  ;;  %2217 = vrot.lane.b32.xlu0 %v15276_v38, %s14284_s17 }
 0x3c3   : > { %v15649_v40 = vpop.permute.xlu1 %2205  ;;  %v15651_v12 = vpop.permute.xlu0 %2097 }
 0x3c5   : > { %2107 = vrot.lane.b32.xlu1 %v15307_v44, %s14284_s17  ;;  %2249 = vrot.lane.b32.xlu0 %v15276_v38, %s14282_s22  ;;  %v12017_v38 = vpop.f32.mrf.mxu1 }
 0x3c7   : > { %v15663_v62 = vpop.permute.xlu1 %2229  ;;  %v15665_v45 = vpop.permute.xlu0 %2121 }
 0x3c8   : > { %20080 = vst [vmem:[#allocation44_spill] sm:$0xff] %v15665_v45  ;;  %v1948_v20 = vpop.f32.mrf.mxu1 }
 0x3c9   : > { %2301 = vrot.lane.b32.xlu1 %v15661_v32, %s14283_s16  ;;  %2295 = vrot.lane.b32.xlu0 %v15659_v56, %s14283_s16 }
 0x3ca   : > { %v12018_v5 = vpop.f32.mrf.mxu1 }
 0x3cb   : > { %v15671_v58 = vpop.permute.xlu1 %2237  ;;  %v15673_v17 = vpop.permute.xlu0 %2201 }
 0x3cc   : > { %v1951_v29 = vpop.f32.mrf.mxu1 }
 0x3cd   : > { %2349 = vrot.lane.b32.xlu1 %v15661_v32, %s14284_s17  ;;  %2343 = vrot.lane.b32.xlu0 %v15659_v56, %s14284_s17  ;;  %v1949_v56 = vadd.f32 %v1948_v20, %v15463_v26 }
 0x3cf   : > { %v15680_v34 = vpop.permute.xlu1 %2119  ;;  %v15682_v6 = vpop.permute.xlu0 %2209 }
 0x3d1   : > { %2187 = vrot.lane.b32.xlu1 %v15338_v21, %s14283_s16  ;;  %2139 = vrot.lane.b32.xlu0 %v15307_v44, %s14282_s22  ;;  %v1952_v44 = vadd.f32 %v1951_v29, %v15463_v26  ;;  %v1960_v29 = vadd.f32 %v12018_v5, %v15463_v26 }
 0x3d3   : > { %v15691_v39 = vpop.permute.xlu1 %2239  ;;  %v15693_v27 = vpop.permute.xlu0 %2233  ;;  %v15717_v10 = vpack.c.bf16 %v1952_v44, %v1949_v56  ;;  %v1957_v44 = vadd.f32 %v12017_v38, %v15463_v26 }
 0x3d4   : > { %20082 = vst [vmem:[#allocation46_spill] sm:$0xff] %v15691_v39 }
 0x3d5   : > { %2219 = vrot.lane.b32.xlu1 %v15338_v21, %s14284_s17  ;;  %2299 = vrot.lane.b32.xlu0 %v15689_v55, %s14283_s16  ;;  %20086 = vst [vmem:[#allocation50_spill] sm:$0xff] %v15717_v10  ;;  %v15739_v5 = vpack.c.bf16 %v1960_v29, %v1957_v44  ;;  %v2984_v29 = vsel %vm2427_vm0, %v15596_v50, 0 }
 0x3d7   : > { %v15699_v24 = vpop.permute.xlu1 %2263  ;;  %v15701_v8 = vpop.permute.xlu0 %2265  ;;  %20090 = vst [vmem:[#allocation54_spill] sm:$0xff] %v15739_v5 }
 0x3d8   : > { %20083 = vst [vmem:[#allocation47_spill] sm:$0xff] %v15699_v24  ;;  %20084 = vst [vmem:[#allocation48_spill] sm:$0xff] %v15701_v8 }
 0x3d9   : > { %2251 = vrot.lane.b32.xlu1 %v15338_v21, %s14282_s22  ;;  %2347 = vrot.lane.b32.xlu0 %v15689_v55, %s14284_s17 }
 0x3db   : > { %v15708_v19 = vpop.permute.xlu1 %2129  ;;  %v15710_v59 = vpop.permute.xlu0 %2131 }
 0x3dc   : > { %20085 = vst [vmem:[#allocation49_spill] sm:$0xff] %v15708_v19 }
 0x3dd   : > { %2077 = vrot.lane.b32.xlu1 %v15382_v11, %s14283_s16  ;;  %2253 = vrot.lane.b32.xlu0 %v15332_v2, %s14282_s22 }
 0x3df   : > { %v15719_v21 = vpop.permute.xlu1 %2153  ;;  %v15721_v25 = vpop.permute.xlu0 %2285 }
 0x3e0   : > { %20087 = vst [vmem:[#allocation51_spill] sm:$0xff] %v15719_v21  ;;  %20088 = vst [vmem:[#allocation52_spill] sm:$0xff] %v15721_v25  ;;  %v12021_v25 = vpop.f32.mrf.mxu1 }
 0x3e1   : > { %2109 = vrot.lane.b32.xlu1 %v15382_v11, %s14284_s17  ;;  %2303 = vrot.lane.b32.xlu0 %v15717_v10, %s14283_s16 }
 0x3e3   : > { %v2178_v20 = vpop.permute.xlu1 %2177  ;;  %v15728_v18 = vpop.permute.xlu0 %2381 }
 0x3e4   : > { %20089 = vst [vmem:[#allocation53_spill] sm:$0xff] %v15728_v18  ;;  %12621 = vmatprep.subr.msk.bf16.mxu1 %vm2427_vm0, %v2178_v20  ;;  %v2987_v56 = vsel %vm2427_vm0, %v2178_v20, 0  ;;  %v1964_v20 = vpop.f32.mrf.mxu1 }
 0x3e5   : > { %2141 = vrot.lane.b32.xlu1 %v15382_v11, %s14282_s22  ;;  %12100 = vmatpush3.bf16.xpose.msra.mxu1 %v2987_v56 }
 0x3e6   : > { %2351 = vrot.lane.b32.xlu0 %v15717_v10, %s14284_s17  ;;  %12622 = vmatprep.subr.msk.bf16.mxu1 %vm2427_vm0, %v15596_v50  ;;  %v1973_v10 = vadd.f32 %v12021_v25, %v15463_v26  ;;  %v1965_v25 = vadd.f32 %v1964_v20, %v15463_v26 }
 0x3e7   : > { %v15741_v21 = vpop.permute.xlu1 %2241  ;;  %v15743_v18 = vpop.permute.xlu0 %2331 }
 0x3e8   : > { %20091 = vst [vmem:[#allocation55_spill] sm:$0xff] %v15741_v21  ;;  %20092 = vst [vmem:[#allocation56_spill] sm:$0xff] %v15743_v18  ;;  %v12022_v18 = vpop.f32.mrf.mxu1 }
 0x3e9   : > { %2305 = vrot.lane.b32.xlu1 %v15739_v5, %s14283_s16  ;;  %v1976_v50 = vadd.f32 %v12022_v18, %v15463_v26 }
 0x3ea   : > { %2079 = vrot.lane.b32.xlu0 %v15356_v30, %s14283_s16 }
 0x3eb   : > { %v2068_v11 = vpop.permute.xlu1 %2067  ;;  %v15749_v38 = vpop.permute.xlu0 %2379 }
 0x3ec   : > { %20093 = vst [vmem:[#allocation57_spill] sm:$0xff] %v15749_v38  ;;  %12111 = vmatprep.mubr.msk.bf16.mxu0 %vm2427_vm0, %v2068_v11 }
 0x3ed   : > { %2353 = vrot.lane.b32.xlu1 %v15739_v5, %s14284_s17  ;;  %12102 = vmatpush3.bf16.xpose.msra.mxu1 %v2984_v29  ;;  %v1967_v29 = vpop.f32.mrf.mxu1 }
 0x3ee   : > { %2111 = vrot.lane.b32.xlu0 %v15356_v30, %s14284_s17 }
 0x3ef   : > { %v15758_v56 = vpop.permute.xlu1 %2099  ;;  %v15760_v44 = vpop.permute.xlu0 %2385 }
 0x3f0   : > { %20094 = vst [vmem:[#allocation58_spill] sm:$0xff] %v15760_v44  ;;  %v12025_v5 = vpop.f32.mrf.mxu1 }
 0x3f1   : > { %2189 = vrot.lane.b32.xlu1 %v15332_v2, %s14283_s16 }
 0x3f2   : > { %2143 = vrot.lane.b32.xlu0 %v15356_v30, %s14282_s22  ;;  %v15778_v30 = vpack.c.bf16 %v1976_v50, %v1973_v10 }
 0x3f3   : > { %v15767_v11 = vpop.permute.xlu1 %2333  ;;  %v2182_v38 = vpop.permute.xlu0 %2181 }
 0x3f4   : > { %20095 = vst [vmem:[#allocation59_spill] sm:$0xff] %v15767_v11  ;;  %12104 = vmatmul.mubr.msk.bf16.vlgmr.msra.gmra.mxu1 %vm2427_vm0, %v15633_v23  ;;  %12623 = vmatprep.subr.msk.bf16.mxu0 %vm2427_vm0, %v2182_v38  ;;  %v3048_v44 = vsel %vm2427_vm0, %v2182_v38, 0  ;;  %20096 = vst [vmem:[#allocation60_spill] sm:$0xff] %v15778_v30  ;;  %v1968_v23 = vadd.f32 %v1967_v29, %v15463_v26 }
 0x3f5   : > { %2221 = vrot.lane.b32.xlu1 %v15332_v2, %s14284_s17  ;;  %12108 = vmatpush3.bf16.xpose.msra.mxu0 %v3048_v44  ;;  %v1980_v44 = vpop.f32.mrf.mxu1 }
 0x3f6   : > { %2191 = vrot.lane.b32.xlu0 %v15400_v35, %s14283_s16  ;;  %v15793_v38 = vpack.c.bf16 %v1968_v23, %v1965_v25 }
 0x3f7   : > { %v2180_v18 = vpop.permute.xlu1 %2179  ;;  %v15780_v11 = vpop.permute.xlu0 %2245 }
 0x3f8   : > { %12624 = vmatprep.subr.msk.bf16.mxu0 %vm2427_vm0, %v2180_v18  ;;  %20098 = vst [vmem:[#allocation62_spill] sm:$0xff] %v15793_v38  ;;  %v3045_v50 = vsel %vm2427_vm0, %v2180_v18, 0  ;;  %v12026_v55 = vpop.f32.mrf.mxu1 }
 0x3f9   : > { %2309 = vrot.lane.b32.xlu1 %v15778_v30, %s14283_s16  ;;  %v1992_v18 = vadd.f32 %v12026_v55, %v15463_v26  ;;  %v1981_v55 = vadd.f32 %v1980_v44, %v15463_v26 }
 0x3fa   : > { %2223 = vrot.lane.b32.xlu0 %v15400_v35, %s14284_s17 }
 0x3fb   : > { %v15789_v2 = vpop.permute.xlu1 %2211  ;;  %v15791_v10 = vpop.permute.xlu0 %2287 }
 0x3fc   : > { %20097 = vst [vmem:[#allocation61_spill] sm:$0xff] %v15791_v10  ;;  %v1989_v10 = vadd.f32 %v12025_v5, %v15463_v26 }
 0x3fd   : > { %2357 = vrot.lane.b32.xlu1 %v15778_v30, %s14284_s17  ;;  %12110 = vmatpush3.bf16.xpose.msra.mxu0 %v3045_v50  ;;  %v1983_v50 = vpop.f32.mrf.mxu1 }
 0x3fe   : > { %2307 = vrot.lane.b32.xlu0 %v15793_v38, %s14283_s16 }
 0x3ff   : > { %v15800_v20 = vpop.permute.xlu1 %2243  ;;  %v15802_v29 = vpop.permute.xlu0 %2335 }
 0x400   : > { %20099 = vst [vmem:[#allocation63_spill] sm:$0xff] %v15802_v29  ;;  %v15818_v29 = vpack.c.bf16 %v1992_v18, %v1989_v10  ;;  %v12033_v5 = vpop.f32.mrf.mxu1 }
 0x401   : > { %2255 = vrot.lane.b32.xlu1 %v15400_v35, %s14282_s22  ;;  %v1984_v35 = vadd.f32 %v1983_v50, %v15463_v26 }
 0x402   : > { %2355 = vrot.lane.b32.xlu0 %v15793_v38, %s14284_s17  ;;  %20102 = vst [vmem:[#allocation66_spill] sm:$0xff] %v15818_v29 }
 0x403   : > { %v15809_v23 = vpop.permute.xlu1 %2283  ;;  %v15811_v25 = vpop.permute.xlu0 %2383 }
 0x404   : > { %20100 = vst [vmem:[#allocation64_spill] sm:$0xff] %v15809_v23  ;;  %20101 = vst [vmem:[#allocation65_spill] sm:$0xff] %v15811_v25  ;;  %v15828_v25 = vpack.c.bf16 %v1984_v35, %v1981_v55 }
 0x405   : > { %2145 = vrot.lane.b32.xlu1 %v15428_v47, %s14282_s22 }
 0x406   : > { %2081 = vrot.lane.b32.xlu0 %v15428_v47, %s14283_s16  ;;  %20103 = vst [vmem:[#allocation67_spill] sm:$0xff] %v15828_v25 }
 0x407   : > { %v2070_v38 = vpop.permute.xlu1 %2069  ;;  %v2072_v30 = vpop.permute.xlu0 %2071 }
 0x408   : > { %12112 = vmatmul.mubr.msk.bf16.vlgmr.msra.gmra.mxu0 %vm2427_vm0, %v2070_v38  ;;  %12119 = vmatprep.mubr.msk.bf16.mxu1 %vm2427_vm0, %v2072_v30  ;;  %v2474_v38 = vpop.f32.mrf.mxu1 }
 0x409   : > { %2313 = vrot.lane.b32.xlu1 %v15818_v29, %s14283_s16 }
 0x40a   : > { %2113 = vrot.lane.b32.xlu0 %v15428_v47, %s14284_s17  ;;  %v15842_v44 = vpop.f32.mrf.mxu1 }
 0x40b   : > { %v15830_v10 = vpop.permute.xlu1 %2101  ;;  %v15832_v18 = vpop.permute.xlu0 %2103 }
 0x40c   : > { %v2477_v35 = vpop.f32.mrf.mxu1 }
 0x40d   : > { %2359 = vrot.lane.b32.xlu1 %v15828_v25, %s14284_s17 }
 0x40e   : > { %2361 = vrot.lane.b32.xlu0 %v15818_v29, %s14284_s17  ;;  %v15854_v23 = vpop.f32.mrf.mxu1 }
 0x40f   : > { %v15838_v26 = vpop.permute.xlu1 %2133  ;;  %v15840_v30 = vpop.permute.xlu0 %2135 }
 0x410   : > { %20104 = vst [vmem:[#allocation68_spill] sm:$0xff] %v15838_v26  ;;  %20105 = vst [vmem:[#allocation69_spill] sm:$0xff] %v15840_v30  ;;  %v15862_v32 = vpop.f32.mrf.mxu1 }
 0x412   : > { %2193 = vrot.lane.b32.xlu0 %v15385_v22, %s14283_s16 }
 0x413   : > { %v15846_v47 = vpop.permute.xlu1 %2289  ;;  %v15848_v50 = vpop.permute.xlu0 %2293 }
 0x414   : > { %20106 = vst [vmem:[#allocation70_spill] sm:$0xff] %v15846_v47  ;;  %20107 = vst [vmem:[#allocation71_spill] sm:$0xff] %v15848_v50 }
 0x416   : > { %2225 = vrot.lane.b32.xlu0 %v15385_v22, %s14284_s17 }
 0x417   : > { %v15852_v55 = vpop.permute.xlu1 %2337  ;;  %v2184_v29 = vpop.permute.xlu0 %2183 }
 0x418   : > { %20108 = vst [vmem:[#allocation72_spill] sm:$0xff] %v15852_v55  ;;  %v12042_v55 = vpop.f32.mrf.mxu1 }
 0x419   : > { %v15888_v30 = vmul.f32 0.17677669, %v12042_v55 }
 0x41a   : > { %2257 = vrot.lane.b32.xlu0 %v15385_v22, %s14282_s22  ;;  %v2538_v43 = vpop.f32.mrf.mxu1 }
 0x41b   : > { %v15858_v24 = vpop.permute.xlu1 %2213  ;;  %v15860_v48 = vpop.permute.xlu0 %2215  ;;  %20117 = vst [vmem:[#allocation81_spill] sm:$0xff] %v15888_v30  ;;  %v15897_v57 = vmul.f32 0.17677669, %v2538_v43  ;;  %v4529_v55 = vsel %vm2427_vm0, %v15888_v30, -inf }
 0x41c   : > { %v15874_v22 = vpop.f32.mrf.mxu1 }
 0x41d   : > { %20118 = vst [vmem:[#allocation82_spill] sm:$0xff] %v15897_v57  ;;  %v4523_v43 = vsel %vm2427_vm0, %v15897_v57, -inf }
 0x41e   : > { %2311 = vrot.lane.b32.xlu0 %v15828_v25, %s14283_s16  ;;  %v15878_v63 = vpop.f32.mrf.mxu1 }
 0x41f   : > { %v15866_v47 = vpop.permute.xlu1 %2341  ;;  %v15868_v50 = vpop.permute.xlu0 %2291 }
 0x420   : > { %20109 = vst [vmem:[#allocation73_spill] sm:$0xff] %v15866_v47  ;;  %20110 = vst [vmem:[#allocation74_spill] sm:$0xff] %v15868_v50  ;;  %v15884_v47 = vmul.f32 0.17677669, %v2477_v35  ;;  %v12050_v50 = vpop.f32.mrf.mxu1 }
 0x421   : > { %v15912_v39 = vmul.f32 0.17677669, %v12050_v50 }
 0x422   : > { %20115 = vst [vmem:[#allocation79_spill] sm:$0xff] %v15884_v47 }
 0x423   : > { %v15870_v61 = vpop.permute.xlu1 %2247  ;;  %v15872_v8 = vpop.permute.xlu0 %2339  ;;  %20121 = vst [vmem:[#allocation85_spill] sm:$0xff] %v15912_v39 }
 0x424   : > { %20111 = vst [vmem:[#allocation75_spill] sm:$0xff] %v15870_v61  ;;  %20112 = vst [vmem:[#allocation76_spill] sm:$0xff] %v15872_v8  ;;  %v4511_v8 = vsel %vm2427_vm0, %v15884_v47, -inf  ;;  %v15904_v47 = vpop.f32.mrf.mxu0 }
 0x427   : > { %v15876_v46 = vpop.permute.xlu1 %2137  ;;  %v2074_v0 = vpop.permute.xlu0 %2073 }
 0x428   : > { %20113 = vst [vmem:[#allocation77_spill] sm:$0xff] %v15876_v46 }
 0x42b   : > { %v15880_v41 = vpop.permute.xlu1 %2297  ;;  %v15882_v25 = vpop.permute.xlu0 %2105 }
 0x42c   : > { %20114 = vst [vmem:[#allocation78_spill] sm:$0xff] %v15880_v41  ;;  %v2599_v41 = vpop.f32.mrf.mxu1 }
 0x42f   : > { %v15886_v14 = vpop.permute.xlu1 %2345  ;;  %v2186_v61 = vpop.permute.xlu0 %2185 }
 0x430   : > { %20116 = vst [vmem:[#allocation80_spill] sm:$0xff] %v15886_v14  ;;  %12625 = vmatprep.subr.msk.bf16.mxu1 %vm2427_vm0, %v2186_v61  ;;  %v3109_v46 = vsel %vm2427_vm0, %v2186_v61, 0  ;;  %v15902_v14 = vpop.f32.mrf.mxu1  ;;  %v15910_v61 = vmul.f32 0.17677669, %v12033_v5  ;;  %v15927_v5 = vmul.f32 0.17677669, %v2599_v41 }
 0x431   : > { %4512 = vmax.xlane.f32.xlu1 %v4511_v8  ;;  %12116 = vmatpush3.bf16.xpose.msra.mxu1 %v3109_v46 }
 0x432   : > { %12626 = vmatprep.subr.msk.bf16.mxu1 %vm2427_vm0, %v2184_v29  ;;  %20120 = vst [vmem:[#allocation84_spill] sm:$0xff] %v15910_v61  ;;  %v15917_v60 = vpop.f32.mrf.mxu1  ;;  %20125 = vst [vmem:[#allocation89_spill] sm:$0xff] %v15927_v5  ;;  %v4514_v50 = vsel %vm2427_vm0, %v15910_v61, -inf  ;;  %v15967_v61 = vmul.f32 0.17677669, %v15862_v32 }
 0x433   : > { %v2076_v35 = vpop.permute.xlu1 %2075  ;;  %v15895_v19 = vpop.permute.xlu0 %2217  ;;  %v15984_v32 = vmul.f32 0.17677669, %v15874_v22  ;;  %v15999_v22 = vmul.f32 0.17677669, %v15878_v63 }
 0x434   : > { %12127 = vmatprep.mubr.msk.bf16.mxu0 %vm2427_vm0, %v2076_v35  ;;  %v3106_v35 = vsel %vm2427_vm0, %v2184_v29, 0  ;;  %v4541_v29 = vsel %vm2427_vm0, %v15912_v39, -inf  ;;  %v12058_v57 = vpop.f32.mrf.mxu1  ;;  %20134 = vst [vmem:[#allocation98_spill] sm:$0xff] %v15967_v61 }
 0x435   : > { %4530 = vmax.xlane.f32.xlu1 %v4529_v55  ;;  %v15919_v55 = vpop.f32.mrf.mxu0  ;;  %20138 = vst [vmem:[#allocation102_spill] sm:$0xff] %v15984_v32  ;;  %20141 = vst [vmem:[#allocation105_spill] sm:$0xff] %v15999_v22 }
 0x437   : > { %v15906_v8 = vpop.permute.xlu1 %2107  ;;  %v15908_v46 = vpop.permute.xlu0 %2249 }
 0x438   : > { %20119 = vst [vmem:[#allocation83_spill] sm:$0xff] %v15908_v46  ;;  %v15925_v46 = vmul.f32 0.17677669, %v2474_v38  ;;  %v15940_v38 = vmul.f32 0.17677669, %v12058_v57 }
 0x439   : > { %4524 = vmax.xlane.f32.xlu1 %v4523_v43  ;;  %12118 = vmatpush3.bf16.xpose.msra.mxu1 %v3106_v35  ;;  %v12066_v43 = vpop.f32.mrf.mxu0 }
 0x43a   : > { %20124 = vst [vmem:[#allocation88_spill] sm:$0xff] %v15925_v46  ;;  %20129 = vst [vmem:[#allocation93_spill] sm:$0xff] %v15940_v38  ;;  %v4508_v41 = vsel %vm2427_vm0, %v15925_v46, -inf }
 0x43b   : > { %v15921_v30 = vpop.permute.xlu1 %2301  ;;  %v15923_v26 = vpop.permute.xlu0 %2295 }
 0x43c   : > { %20122 = vst [vmem:[#allocation86_spill] sm:$0xff] %v15921_v30  ;;  %20123 = vst [vmem:[#allocation87_spill] sm:$0xff] %v15923_v26  ;;  %v15938_v26 = vmul.f32 0.17677669, %v15842_v44  ;;  %v4535_v30 = vsel %vm2427_vm0, %v15927_v5, -inf }
 0x43d   : > { %4515 = vmax.xlane.f32.xlu0 %v4514_v50  ;;  %4542 = vmax.xlane.f32.xlu1 %v4541_v29  ;;  %v2660_v50 = vpop.f32.mrf.mxu1  ;;  %v2721_v29 = vpop.f32.mrf.mxu0  ;;  %v15952_v44 = vmul.f32 0.17677669, %v15854_v23  ;;  %v15969_v23 = vmul.f32 0.17677669, %v12066_v43 }
 0x43e   : > { %20128 = vst [vmem:[#allocation92_spill] sm:$0xff] %v15938_v26  ;;  %v15954_v57 = vmul.f32 0.17677669, %v2660_v50  ;;  %v4517_v39 = vsel %vm2427_vm0, %v15938_v26, -inf  ;;  %v15986_v43 = vmul.f32 0.17677669, %v2721_v29 }
 0x43f   : > { %v15933_v35 = vpop.permute.xlu1 %2349  ;;  %v15935_v45 = vpop.permute.xlu0 %2343  ;;  %20131 = vst [vmem:[#allocation95_spill] sm:$0xff] %v15952_v44  ;;  %20135 = vst [vmem:[#allocation99_spill] sm:$0xff] %v15969_v23  ;;  %v4526_v26 = vsel %vm2427_vm0, %v15952_v44, -inf  ;;  %v4520_v44 = vsel %vm2427_vm0, %v15967_v61, -inf }
 0x440   : > { %20126 = vst [vmem:[#allocation90_spill] sm:$0xff] %v15933_v35  ;;  %20127 = vst [vmem:[#allocation91_spill] sm:$0xff] %v15935_v45  ;;  %12120 = vmatmul.mubr.msk.bf16.vlgmr.msra.gmra.mxu1 %vm2427_vm0, %v2074_v0  ;;  %v4553_v0 = vsel %vm2427_vm0, %v15940_v38, -inf  ;;  %v15960_v5 = vpop.f32.mrf.mxu0  ;;  %v15971_v50 = vpop.f32.mrf.mxu1  ;;  %v4547_v38 = vsel %vm2427_vm0, %v15954_v57, -inf  ;;  %v4559_v61 = vsel %vm2427_vm0, %v15986_v43, -inf }
 0x441   : > { %4509 = vmax.xlane.f32.xlu0 %v4508_v41  ;;  %4536 = vmax.xlane.f32.xlu1 %v4535_v30  ;;  %20132 = vst [vmem:[#allocation96_spill] sm:$0xff] %v15954_v57  ;;  %20139 = vst [vmem:[#allocation103_spill] sm:$0xff] %v15986_v43  ;;  %v4565_v57 = vsel %vm2427_vm0, %v15969_v23, -inf  ;;  %v16012_v23 = vmul.f32 0.17677669, %v15902_v14 }
 0x442   : > { %v15977_v46 = vpop.f32.mrf.mxu0 }
 0x443   : > { %v15947_v35 = vpop.permute.xlu1 %2187  ;;  %v15949_v45 = vpop.permute.xlu0 %2139  ;;  %20144 = vst [vmem:[#allocation108_spill] sm:$0xff] %v16012_v23 }
 0x444   : > { %20130 = vst [vmem:[#allocation94_spill] sm:$0xff] %v15949_v45  ;;  %v12082_v45 = vpop.f32.mrf.mxu0 }
 0x445   : > { %4518 = vmax.xlane.f32.xlu0 %v4517_v39  ;;  %4554 = vmax.xlane.f32.xlu1 %v4553_v0 }
 0x447   : > { %v15962_v30 = vpop.permute.xlu1 %2219  ;;  %v15964_v41 = vpop.permute.xlu0 %2299 }
 0x448   : > { %20133 = vst [vmem:[#allocation97_spill] sm:$0xff] %v15964_v41  ;;  %v15988_v41 = vpop.f32.mrf.mxu1 }
 0x449   : > { %4527 = vmax.xlane.f32.xlu0 %v4526_v26  ;;  %4548 = vmax.xlane.f32.xlu1 %v4547_v38 }
 0x44a   : > { %v12074_v29 = vpop.f32.mrf.mxu1 }
 0x44b   : > { %v15979_v39 = vpop.permute.xlu1 %2251  ;;  %v15981_v0 = vpop.permute.xlu0 %2347  ;;  %v16014_v63 = vmul.f32 0.17677669, %v12074_v29  ;;  %v4550_v29 = vsel %vm2427_vm0, %v16012_v23, -inf }
 0x44c   : > { %20136 = vst [vmem:[#allocation100_spill] sm:$0xff] %v15979_v39  ;;  %20137 = vst [vmem:[#allocation101_spill] sm:$0xff] %v15981_v0  ;;  %v16001_v0 = vmul.f32 0.17677669, %v12082_v45  ;;  %v4538_v39 = vsel %vm2427_vm0, %v15984_v32, -inf  ;;  %v4532_v45 = vsel %vm2427_vm0, %v15999_v22, -inf }
 0x44d   : > { %4521 = vmax.xlane.f32.xlu0 %v4520_v44  ;;  %4566 = vmax.xlane.f32.xlu1 %v4565_v57  ;;  %20145 = vst [vmem:[#allocation109_spill] sm:$0xff] %v16014_v63  ;;  %v4577_v22 = vsel %vm2427_vm0, %v16014_v63, -inf }
 0x44e   : > { %20142 = vst [vmem:[#allocation106_spill] sm:$0xff] %v16001_v0  ;;  %v4589_v32 = vsel %vm2427_vm0, %v16001_v0, -inf  ;;  %v16040_v0 = vmul.f32 0.17677669, %v15904_v47 }
 0x44f   : > { %v15994_v26 = vpop.permute.xlu1 %2077  ;;  %v15996_v38 = vpop.permute.xlu0 %2253 }
 0x450   : > { %20140 = vst [vmem:[#allocation104_spill] sm:$0xff] %v15996_v38  ;;  %v2782_v38 = vpop.f32.mrf.mxu1  ;;  %v4562_v63 = vsel %vm2427_vm0, %v16040_v0, -inf }
 0x451   : > { %4539 = vmax.xlane.f32.xlu0 %v4538_v39  ;;  %4560 = vmax.xlane.f32.xlu1 %v4559_v61  ;;  %v2843_v39 = vpop.f32.mrf.mxu0 }
 0x452   : > { %v16020_v61 = vpop.f32.mrf.mxu1  ;;  %v16033_v21 = vmul.f32 0.17677669, %v2843_v39 }
 0x453   : > { %v16007_v44 = vpop.permute.xlu1 %2109  ;;  %v16009_v57 = vpop.permute.xlu0 %2303 }
 0x454   : > { %20143 = vst [vmem:[#allocation107_spill] sm:$0xff] %v16009_v57  ;;  %v16025_v57 = vmul.f32 0.17677669, %v15917_v60  ;;  %v4583_v39 = vsel %vm2427_vm0, %v16033_v21, -inf }
 0x455   : > { %4533 = vmax.xlane.f32.xlu0 %v4532_v45  ;;  %4590 = vmax.xlane.f32.xlu1 %v4589_v32  ;;  %v16035_v32 = vpop.f32.mrf.mxu1 }
 0x456   : > { %20147 = vst [vmem:[#allocation111_spill] sm:$0xff] %v16025_v57 }
 0x457   : > { %v16022_v43 = vpop.permute.xlu1 %2141 }
 0x458   : > { %20146 = vst [vmem:[#allocation110_spill] sm:$0xff] %v16022_v43  ;;  %v16027_v14 = vpop.permute.xlu0 %2351  ;;  %v16044_v43 = vmul.f32 0.17677669, %v2782_v38 }
 0x459   : > { %20148 = vst [vmem:[#allocation112_spill] sm:$0xff] %v16027_v14  ;;  %4551 = vmax.xlane.f32.xlu0 %v4550_v29  ;;  %4578 = vmax.xlane.f32.xlu1 %v4577_v22  ;;  %v4544_v14 = vsel %vm2427_vm0, %v16025_v57, -inf  ;;  %v12090_v22 = vpop.f32.mrf.mxu1 }
 0x45a   : > { %20150 = vst [vmem:[#allocation114_spill] sm:$0xff] %v16044_v43  ;;  %v16058_v38 = vmul.f32 0.17677669, %v12090_v22 }
 0x45b   : > { %v16037_v45 = vpop.permute.xlu1 %2305 }
 0x45c   : > { %20149 = vst [vmem:[#allocation113_spill] sm:$0xff] %v16037_v45  ;;  %v2080_v60 = vpop.permute.xlu0 %2079  ;;  %v16052_v45 = vmul.f32 0.17677669, %v15919_v55  ;;  %20152 = vst [vmem:[#allocation116_spill] sm:$0xff] %v16058_v38 }
 0x45d   : > { %4545 = vmax.xlane.f32.xlu0 %v4544_v14  ;;  %12135 = vmatprep.mubr.msk.bf16.mxu1 %vm2427_vm0, %v2080_v60  ;;  %v4571_v14 = vsel %vm2427_vm0, %v16044_v43, -inf  ;;  %v2904_v60 = vpop.f32.mrf.mxu1 }
 0x45e   : > { %4584 = vmax.xlane.f32.xlu1 %v4583_v39  ;;  %v16063_v39 = vmul.f32 0.17677669, %v15960_v5  ;;  %v4556_v55 = vsel %vm2427_vm0, %v16052_v45, -inf  ;;  %v16071_v57 = vmul.f32 0.17677669, %v2904_v60 }
 0x45f   : > { %v16049_v29 = vpop.permute.xlu1 %2353  ;;  %v16078_v5 = vmul.f32 0.17677669, %v15971_v50  ;;  %v3167_v50 = vsel %vm2427_vm0, %v15947_v35, 0 }
 0x460   : > { %20151 = vst [vmem:[#allocation115_spill] sm:$0xff] %v16049_v29  ;;  %v16054_v47 = vpop.permute.xlu0 %2111  ;;  %20153 = vst [vmem:[#allocation117_spill] sm:$0xff] %v16063_v39  ;;  %v4586_v43 = vsel %vm2427_vm0, %v16063_v39, -inf }
 0x461   : > { %4563 = vmax.xlane.f32.xlu0 %v4562_v63  ;;  %20154 = vst [vmem:[#allocation118_spill] sm:$0xff] %v16071_v57  ;;  %v4601_v63 = vsel %vm2427_vm0, %v16058_v38, -inf  ;;  %20155 = vst [vmem:[#allocation119_spill] sm:$0xff] %v16078_v5 }
 0x462   : > { %4572 = vmax.xlane.f32.xlu1 %v4571_v14 }
 0x463   : > { %v2190_v23 = vpop.permute.xlu1 %2189 }
 0x464   : > { %v16065_v29 = vpop.permute.xlu0 %2143  ;;  %12627 = vmatprep.subr.msk.bf16.mxu0 %vm2427_vm0, %v2190_v23  ;;  %v3170_v22 = vsel %vm2427_vm0, %v2190_v23, 0  ;;  %v4595_v23 = vsel %vm2427_vm0, %v16071_v57, -inf }
 0x465   : > { %4557 = vmax.xlane.f32.xlu0 %v4556_v55  ;;  %12124 = vmatpush3.bf16.xpose.msra.mxu0 %v3170_v22  ;;  %v16085_v55 = vmul.f32 0.17677669, %v15977_v46 }
 0x466   : > { %4602 = vmax.xlane.f32.xlu1 %v4601_v63  ;;  %12628 = vmatprep.subr.msk.bf16.mxu0 %vm2427_vm0, %v15947_v35  ;;  %v4574_v63 = vsel %vm2427_vm0, %v16078_v5, -inf }
 0x467   : > { %v4580_v5 = vsel %vm2427_vm0, %v16085_v55, -inf }
 0x468   : > { %v2192_v14 = vpop.permute.xlu0 %2191 }
 0x469   : > { %4587 = vmax.xlane.f32.xlu0 %v4586_v43 }
 0x46a   : > { %4596 = vmax.xlane.f32.xlu1 %v4595_v23  ;;  %v16096_v23 = vmul.f32 0.17677669, %v15988_v41 }
 0x46b   : > { %v12097_v60 = vpop.f32.mrf.mxu0 }
 0x46c   : > { %v16087_v22 = vpop.permute.xlu0 %2223 }
 0x46d   : > { %4575 = vmax.xlane.f32.xlu0 %v4574_v63  ;;  %12126 = vmatpush3.bf16.xpose.msra.mxu0 %v3167_v50  ;;  %v2962_v38 = vpop.f32.mrf.mxu0  ;;  %v16109_v50 = vmul.f32 0.17677669, %v16020_v61 }
 0x46e   : > { %12631 = vmatprep.subr.msk.bf16.mxu0 %vm2427_vm0, %v15639_v28 }
 0x46f   : > { %v12098_v43 = vpop.f32.mrf.mxu0 }
 0x470   : > { %v16098_v46 = vpop.permute.xlu0 %2307  ;;  %v16100_v57 = vmul.f32 0.17677669, %v12098_v43  ;;  %v4568_v43 = vsel %vm2427_vm0, %v16096_v23, -inf }
 0x471   : > { %4581 = vmax.xlane.f32.xlu0 %v4580_v5  ;;  %v2965_v39 = vpop.f32.mrf.mxu0  ;;  %v3292_v5 = vsel %vm2427_vm0, %v15639_v28, 0  ;;  %v16130_v28 = vmul.f32 0.17677669, %v12097_v60 }
 0x472   : > { %v16104_v35 = vmul.f32 0.17677669, %v2965_v39  ;;  %v4613_v63 = vsel %vm2427_vm0, %v16100_v57, -inf }
 0x473   : > { %4614 = vmax.xlane.f32.xlu1 %v4613_v63  ;;  %v4598_v63 = vsel %vm2427_vm0, %v16109_v50, -inf  ;;  %v4610_v60 = vsel %vm2427_vm0, %v16130_v28, -inf }
 0x474   : > { %v16111_v41 = vpop.permute.xlu0 %2355  ;;  %12128 = vmatmul.mubr.msk.bf16.vlgmr.msra.gmra.mxu0 %vm2427_vm0, %v15994_v26  ;;  %v4607_v61 = vsel %vm2427_vm0, %v16104_v35, -inf  ;;  %v16126_v26 = vmul.f32 0.17677669, %v16035_v32  ;;  %v16140_v32 = vmul.f32 0.17677669, %v2962_v38  ;;  %v3414_v38 = vsel %vm2427_vm0, %v15649_v40, 0 }
 0x475   : > { %20156 = vst [vmem:[#allocation120_spill] sm:$0xff] %v16111_v41  ;;  %4569 = vmax.xlane.f32.xlu0 %v4568_v43  ;;  %12140 = vmatpush3.bf16.xpose.msra.mxu0 %v3292_v5  ;;  %v3289_v5 = vsel %vm2427_vm0, %v15548_v16, 0  ;;  %v20176_v41 = vld [vmem:[#allocation110_spill] sm:$0xff] }
 0x476   : > { %12143 = vmatprep.mubr.msk.bf16.mxu0 %vm2427_vm0, %v15515_v52  ;;  %12632 = vmatprep.subr.msk.bf16.mxu0 %vm2427_vm0, %v15548_v16  ;;  %v4592_v52 = vsel %vm2427_vm0, %v16126_v26, -inf  ;;  %v4604_v16 = vsel %vm2427_vm0, %v16140_v32, -inf }
 0x477   : > { %4608 = vmax.xlane.f32.xlu1 %v4607_v61 }
 0x478   : > { %v2082_v39 = vpop.permute.xlu0 %2081 }
 0x479   : > { %4599 = vmax.xlane.f32.xlu0 %v4598_v63 }
 0x47c   : > { %v16132_v43 = vpop.permute.xlu0 %2113 }
 0x47d   : > { %4593 = vmax.xlane.f32.xlu0 %v4592_v52  ;;  %12142 = vmatpush3.bf16.xpose.msra.mxu0 %v3289_v5  ;;  %v3411_v5 = vsel %vm2427_vm0, %v15556_v33, 0 }
 0x47e   : > { %12635 = vmatprep.subr.msk.bf16.mxu0 %vm2427_vm0, %v15649_v40  ;;  %v2222_v40 = vpop.permute.xlu1 %2221 }
 0x480   : > { %v16142_v61 = vpop.permute.xlu0 %2361 }
 0x481   : > { %20157 = vst [vmem:[#allocation121_spill] sm:$0xff] %v16142_v61  ;;  %4611 = vmax.xlane.f32.xlu0 %v4610_v60  ;;  %v3780_v60 = vsel %vm2427_vm0, %v15663_v62, 0  ;;  %v20174_v61 = vld [vmem:[#allocation49_spill] sm:$0xff] }
 0x484   : > { %v2194_v63 = vpop.permute.xlu0 %2193  ;;  %12144 = vmatmul.mubr.msk.bf16.vlgmr.msra.gmra.mxu0 %vm2427_vm0, %v15603_v1  ;;  %v3228_v1 = vsel %vm2427_vm0, %v2192_v14, 0 }
 0x485   : > { %4605 = vmax.xlane.f32.xlu0 %v4604_v16  ;;  %12629 = vmatprep.subr.msk.bf16.mxu1 %vm2427_vm0, %v2194_v63  ;;  %v3231_v52 = vsel %vm2427_vm0, %v2194_v63, 0 }
 0x486   : > { %12132 = vmatpush3.bf16.xpose.msra.mxu1 %v3231_v52  ;;  %12156 = vmatpush3.bf16.xpose.msra.mxu0 %v3414_v38 }
 0x487   : > { %12159 = vmatprep.mubr.msk.bf16.mxu0 %vm2427_vm0, %v15525_v3  ;;  %12630 = vmatprep.subr.msk.bf16.mxu1 %vm2427_vm0, %v2192_v14  ;;  %v3353_v3 = vsel %vm2427_vm0, %v15673_v17, 0  ;;  %v16175_v14 = vpop.permute.xlu1 %2309 }
 0x488   : > { %12636 = vmatprep.subr.msk.bf16.mxu0 %vm2427_vm0, %v15556_v33  ;;  %v3536_v33 = vsel %vm2427_vm0, %v15858_v24, 0 }
 0x48e   : > { %12134 = vmatpush3.bf16.xpose.msra.mxu1 %v3228_v1  ;;  %12158 = vmatpush3.bf16.xpose.msra.mxu0 %v3411_v5  ;;  %v3594_v5 = vsel %vm2427_vm0, %v15860_v48, 0 }
 0x48f   : > { %12633 = vmatprep.subr.msk.bf16.mxu1 %vm2427_vm0, %v15673_v17  ;;  %12639 = vmatprep.subr.msk.bf16.mxu0 %vm2427_vm0, %v15858_v24  ;;  %v3533_v17 = vsel %vm2427_vm0, %v15789_v2, 0 }
 0x495   : > { %12136 = vmatmul.mubr.msk.bf16.vlgmr.msra.gmra.mxu1 %vm2427_vm0, %v2082_v39  ;;  %12160 = vmatmul.mubr.msk.bf16.vlgmr.msra.gmra.mxu0 %vm2427_vm0, %v15611_v15  ;;  %v16183_v15 = vpop.permute.xlu1 %2357 }
 0x496   : > { %12148 = vmatpush3.bf16.xpose.msra.mxu1 %v3353_v3  ;;  %12151 = vmatprep.mubr.msk.bf16.mxu1 %vm2427_vm0, %v15559_v4  ;;  %20158 = vst [vmem:[#allocation122_spill] sm:$0xff] %v16183_v15  ;;  %v3350_v4 = vsel %vm2427_vm0, %v15605_v9, 0 }
 0x497   : > { %12172 = vmatpush3.bf16.xpose.msra.mxu0 %v3536_v33  ;;  %12175 = vmatprep.mubr.msk.bf16.mxu0 %vm2427_vm0, %v15758_v56  ;;  %v3475_v56 = vsel %vm2427_vm0, %v15682_v6, 0 }
 0x498   : > { %12634 = vmatprep.subr.msk.bf16.mxu1 %vm2427_vm0, %v15605_v9  ;;  %12640 = vmatprep.subr.msk.bf16.mxu0 %vm2427_vm0, %v15789_v2  ;;  %v3658_v9 = vsel %vm2427_vm0, %v2222_v40, 0  ;;  %v3655_v2 = vsel %vm2427_vm0, %v15962_v30, 0 }
 0x499   : > { %v16192_v24 = vpop.permute.xlu1 %2255 }
 0x49e   : > { %12150 = vmatpush3.bf16.xpose.msra.mxu1 %v3350_v4 }
 0x49f   : > { %12174 = vmatpush3.bf16.xpose.msra.mxu0 %v3533_v17  ;;  %12637 = vmatprep.subr.msk.bf16.mxu1 %vm2427_vm0, %v15682_v6  ;;  %v3472_v6 = vsel %vm2427_vm0, %v15614_v37, 0 }
 0x4a0   : > { %12643 = vmatprep.subr.msk.bf16.mxu0 %vm2427_vm0, %v2222_v40  ;;  %v3777_v40 = vsel %vm2427_vm0, %v15566_v31, 0 }
 0x4a5   : > { %12152 = vmatmul.mubr.msk.bf16.vlgmr.msra.gmra.mxu1 %vm2427_vm0, %v15641_v54  ;;  %v16207_v54 = vpop.permute.xlu1 %2145 }
 0x4a6   : > { %12176 = vmatmul.mubr.msk.bf16.vlgmr.msra.gmra.mxu0 %vm2427_vm0, %v15830_v10  ;;  %12164 = vmatpush3.bf16.xpose.msra.mxu1 %v3475_v56 }
 0x4a7   : > { %12167 = vmatprep.mubr.msk.bf16.mxu1 %vm2427_vm0, %v15570_v49  ;;  %12188 = vmatpush3.bf16.xpose.msra.mxu0 %v3658_v9 }
 0x4a8   : > { %12191 = vmatprep.mubr.msk.bf16.mxu0 %vm2427_vm0, %v15906_v8  ;;  %12638 = vmatprep.subr.msk.bf16.mxu1 %vm2427_vm0, %v15614_v37  ;;  %v3597_v37 = vsel %vm2427_vm0, %v15895_v19, 0 }
 0x4a9   : > { %12644 = vmatprep.subr.msk.bf16.mxu0 %vm2427_vm0, %v15962_v30  ;;  %v16215_v49 = vpop.permute.xlu1 %2313  ;;  %v2226_v30 = vpop.permute.xlu0 %2225 }
 0x4ad   : > { %v16221_v8 = vpop.permute.xlu1 %2359  ;;  %v16253_v38 = vpop.permute.xlu0 %2257 }
 0x4ae   : > { %12166 = vmatpush3.bf16.xpose.msra.mxu1 %v3472_v6  ;;  %20159 = vst [vmem:[#allocation123_spill] sm:$0xff] %v16221_v8 }
 0x4af   : > { %12190 = vmatpush3.bf16.xpose.msra.mxu0 %v3655_v2  ;;  %12641 = vmatprep.subr.msk.bf16.mxu1 %vm2427_vm0, %v15895_v19 }
 0x4b0   : > { %12647 = vmatprep.subr.msk.bf16.mxu0 %vm2427_vm0, %v15663_v62 }
 0x4b1   : > { %v16268_v4 = vpop.permute.xlu0 %2311 }
 0x4b4   : > { %v12105_v10 = vpop.f32.mrf.mxu1 }
 0x4b5   : > { %v16223_v39 = vmul.f32 0.17677669, %v12105_v10  ;;  %12168 = vmatmul.mubr.msk.bf16.vlgmr.msra.gmra.mxu1 %vm2427_vm0, %v15651_v12 }
 0x4b6   : > { %12192 = vmatmul.mubr.msk.bf16.vlgmr.msra.gmra.mxu0 %vm2427_vm0, %v16007_v44  ;;  %12180 = vmatpush3.bf16.xpose.msra.mxu1 %v3597_v37  ;;  %v3023_v63 = vpop.f32.mrf.mxu1  ;;  %v3716_v37 = vsel %vm2427_vm0, %v16087_v22, 0 }
 0x4b7   : > { %12183 = vmatprep.mubr.msk.bf16.mxu1 %vm2427_vm0, %v15832_v18  ;;  %12204 = vmatpush3.bf16.xpose.msra.mxu0 %v3780_v60  ;;  %v4622_v16 = vsel %vm2427_vm0, %v16223_v39, -inf  ;;  %v16239_v12 = vmul.f32 0.17677669, %v3023_v63  ;;  %v3899_v60 = vsel %vm2427_vm0, %v15576_v36, 0 }
 0x4b8   : > { %12207 = vmatprep.mubr.msk.bf16.mxu0 %vm2427_vm0, %v15533_v51  ;;  %12642 = vmatprep.subr.msk.bf16.mxu1 %vm2427_vm0, %v15860_v48  ;;  %v12106_v19 = vpop.f32.mrf.mxu1  ;;  %v3902_v48 = vsel %vm2427_vm0, %v15671_v58, 0 }
 0x4b9   : > { %12648 = vmatprep.subr.msk.bf16.mxu0 %vm2427_vm0, %v15566_v31  ;;  %v16245_v62 = vmul.f32 0.17677669, %v12106_v19  ;;  %4623 = vmax.xlane.f32.xlu0 %v4622_v16  ;;  %v4616_v1 = vsel %vm2427_vm0, %v16239_v12, -inf  ;;  %v3719_v31 = vsel %vm2427_vm0, %v2226_v30, 0 }
 0x4ba   : > { %v16247_v18 = vpop.xlane.xlu1 %4512  ;;  %v3026_v44 = vpop.f32.mrf.mxu1 }
 0x4bb   : > { %v16249_v52 = vmul.f32 0.17677669, %v3026_v44  ;;  %v4625_v51 = vsel %vm2427_vm0, %v16245_v62, -inf }
 0x4bc   : > { %4626 = vmax.xlane.f32.xlu1 %v4625_v51 }
 0x4bd   : > { %4617 = vmax.xlane.f32.xlu0 %v4616_v1  ;;  %v4619_v33 = vsel %vm2427_vm0, %v16249_v52, -inf }
 0x4be   : > { %12182 = vmatpush3.bf16.xpose.msra.mxu1 %v3594_v5  ;;  %v16261_v3 = vpop.xlane.xlu1 %4530 }
 0x4bf   : > { %12206 = vmatpush3.bf16.xpose.msra.mxu0 %v3777_v40  ;;  %12645 = vmatprep.subr.msk.bf16.mxu1 %vm2427_vm0, %v2226_v30  ;;  %v3841_v40 = vsel %vm2427_vm0, %v15693_v27, 0 }
 0x4c0   : > { %12651 = vmatprep.subr.msk.bf16.mxu0 %vm2427_vm0, %v15671_v58  ;;  %4620 = vmax.xlane.f32.xlu1 %v4619_v33  ;;  %v4024_v33 = vsel %vm2427_vm0, %v15780_v11, 0 }
 0x4c2   : > { %v16270_v17 = vpop.xlane.xlu1 %4524 }
 0x4c5   : > { %12184 = vmatmul.mubr.msk.bf16.vlgmr.msra.gmra.mxu1 %vm2427_vm0, %v15882_v25 }
 0x4c6   : > { %12208 = vmatmul.mubr.msk.bf16.vlgmr.msra.gmra.mxu0 %vm2427_vm0, %v15623_v7  ;;  %12196 = vmatpush3.bf16.xpose.msra.mxu1 %v3719_v31  ;;  %v16279_v56 = vpop.xlane.xlu0 %4515  ;;  %v16281_v9 = vpop.xlane.xlu1 %4542 }
 0x4c7   : > { %12199 = vmatprep.mubr.msk.bf16.mxu1 %vm2427_vm0, %v16054_v47  ;;  %12220 = vmatpush3.bf16.xpose.msra.mxu0 %v3902_v48 }
 0x4c8   : > { %12223 = vmatprep.mubr.msk.bf16.mxu0 %vm2427_vm0, %v15507_v42  ;;  %12646 = vmatprep.subr.msk.bf16.mxu1 %vm2427_vm0, %v16087_v22  ;;  %v12113_v25 = vpop.f32.mrf.mxu0 }
 0x4c9   : > { %12652 = vmatprep.subr.msk.bf16.mxu0 %vm2427_vm0, %v15576_v36  ;;  %v16291_v7 = vmul.f32 0.17677669, %v12113_v25  ;;  %v20161_v25 = vld [vmem:[#allocation104_spill] sm:$0xff] }
 0x4ca   : > { %v16293_v58 = vpop.xlane.xlu0 %4509  ;;  %v16295_v6 = vpop.xlane.xlu1 %4536 }
 0x4cb   : > { %v3084_v2 = vpop.f32.mrf.mxu0  ;;  %v4634_v47 = vsel %vm2427_vm0, %v16291_v7, -inf }
 0x4cc   : > { %v16299_v10 = vmul.f32 0.17677669, %v3084_v2  ;;  %4635 = vmax.xlane.f32.xlu0 %v4634_v47  ;;  %v20162_v47 = vld [vmem:[#allocation44_spill] sm:$0xff] }
 0x4cd   : > { %v12114_v42 = vpop.f32.mrf.mxu0 }
 0x4ce   : > { %v16303_v30 = vmul.f32 0.17677669, %v12114_v42  ;;  %12198 = vmatpush3.bf16.xpose.msra.mxu1 %v3716_v37  ;;  %v16307_v63 = vpop.xlane.xlu0 %4518  ;;  %v16309_v16 = vpop.xlane.xlu1 %4554  ;;  %v4628_v44 = vsel %vm2427_vm0, %v16299_v10, -inf  ;;  %v4146_v37 = vsel %vm2427_vm0, %v20161_v25, 0 }
 0x4cf   : > { %12222 = vmatpush3.bf16.xpose.msra.mxu0 %v3899_v60  ;;  %v3087_v19 = vpop.f32.mrf.mxu0  ;;  %12649 = vmatprep.subr.msk.bf16.mxu1 %vm2427_vm0, %v15693_v27 }
 0x4d0   : > { %v16315_v51 = vmul.f32 0.17677669, %v3087_v19  ;;  %12655 = vmatprep.subr.msk.bf16.mxu0 %vm2427_vm0, %v15780_v11  ;;  %v4637_v36 = vsel %vm2427_vm0, %v16303_v30, -inf  ;;  %4629 = vmax.xlane.f32.xlu0 %v4628_v44  ;;  %v3838_v11 = vsel %vm2427_vm0, %v15625_v53, 0  ;;  %v20164_v19 = vld [vmem:[#allocation36_spill] sm:$0xff]  ;;  %v20165_v44 = vld [vmem:[#allocation94_spill] sm:$0xff] }
 0x4d1   : > { %4638 = vmax.xlane.f32.xlu1 %v4637_v36  ;;  %v20166_v36 = vld [vmem:[#allocation46_spill] sm:$0xff] }
 0x4d2   : > { %v16321_v22 = vpop.xlane.xlu0 %4527  ;;  %v16323_v1 = vpop.xlane.xlu1 %4548  ;;  %v4631_v5 = vsel %vm2427_vm0, %v16315_v51, -inf }
 0x4d5   : > { %4632 = vmax.xlane.f32.xlu1 %v4631_v5  ;;  %12200 = vmatmul.mubr.msk.bf16.vlgmr.msra.gmra.mxu1 %vm2427_vm0, %v16132_v43  ;;  %v20167_v5 = vld [vmem:[#allocation100_spill] sm:$0xff] }
 0x4d6   : > { %12224 = vmatmul.mubr.msk.bf16.vlgmr.msra.gmra.mxu0 %vm2427_vm0, %v15527_v13  ;;  %12212 = vmatpush3.bf16.xpose.msra.mxu1 %v3841_v40  ;;  %v16335_v31 = vpop.xlane.xlu0 %4521  ;;  %v16345_v27 = vpop.xlane.xlu1 %4566 }
 0x4d7   : > { %12215 = vmatprep.mubr.msk.bf16.mxu1 %vm2427_vm0, %v15680_v34  ;;  %12236 = vmatpush3.bf16.xpose.msra.mxu0 %v4024_v33  ;;  %v4021_v34 = vsel %vm2427_vm0, %v15800_v20, 0 }
 0x4d8   : > { %12239 = vmatprep.mubr.msk.bf16.mxu0 %vm2427_vm0, %v15710_v59  ;;  %12650 = vmatprep.subr.msk.bf16.mxu1 %vm2427_vm0, %v15625_v53  ;;  %v20160_v59 = vld [vmem:[#allocation55_spill] sm:$0xff] }
 0x4d9   : > { %12656 = vmatprep.subr.msk.bf16.mxu0 %vm2427_vm0, %v15800_v20  ;;  %v3963_v53 = vsel %vm2427_vm0, %v20160_v59, 0  ;;  %v20163_v20 = vld [vmem:[#allocation68_spill] sm:$0xff] }
 0x4da   : > { %v16347_v13 = vpop.xlane.xlu0 %4539  ;;  %v16355_v48 = vpop.xlane.xlu1 %4560 }
 0x4de   : > { %12214 = vmatpush3.bf16.xpose.msra.mxu1 %v3838_v11  ;;  %v4534_v43 = vpop.xlane.xlu0 %4533  ;;  %v16365_v42 = vpop.xlane.xlu1 %4590  ;;  %v3960_v11 = vsel %vm2427_vm0, %v20166_v36, 0 }
 0x4df   : > { %12238 = vmatpush3.bf16.xpose.msra.mxu0 %v4021_v34  ;;  %12653 = vmatprep.subr.msk.bf16.mxu1 %vm2427_vm0, %v20160_v59  ;;  %v20168_v34 = vld [vmem:[#allocation88_spill] sm:$0xff] }
 0x4e0   : > { %12659 = vmatprep.subr.msk.bf16.mxu0 %vm2427_vm0, %v20161_v25  ;;  %v4892_v59 = vsub.f32 %v20168_v34, %v16293_v58  ;;  %v4143_v25 = vsel %vm2427_vm0, %v20167_v5, 0  ;;  %v20173_v34 = vld [vmem:[#allocation84_spill] sm:$0xff] }
 0x4e2   : > { %v16359_v2 = vpop.xlane.xlu0 %4551  ;;  %v16383_v33 = vpop.xlane.xlu1 %4578 }
 0x4e5   : > { %12216 = vmatmul.mubr.msk.bf16.vlgmr.msra.gmra.mxu1 %vm2427_vm0, %v20162_v47 }
 0x4e6   : > { %12240 = vmatmul.mubr.msk.bf16.vlgmr.msra.gmra.mxu0 %vm2427_vm0, %v20163_v20  ;;  %12228 = vmatpush3.bf16.xpose.msra.mxu1 %v3963_v53  ;;  %v16371_v60 = vpop.xlane.xlu0 %4545  ;;  %v20169_v53 = vld [vmem:[#allocation83_spill] sm:$0xff] }
 0x4e7   : > { %12231 = vmatprep.mubr.msk.bf16.mxu1 %vm2427_vm0, %v20164_v19  ;;  %12252 = vmatpush3.bf16.xpose.msra.mxu0 %v4146_v37  ;;  %v20170_v20 = vld [vmem:[#allocation79_spill] sm:$0xff]  ;;  %v20171_v19 = vld [vmem:[#allocation34_spill] sm:$0xff] }
 0x4e8   : > { %12255 = vmatprep.mubr.msk.bf16.mxu0 %vm2427_vm0, %v20165_v44  ;;  %12654 = vmatprep.subr.msk.bf16.mxu1 %vm2427_vm0, %v20166_v36  ;;  %v4893_v37 = vsub.f32 %v20170_v20, %v16247_v18  ;;  %v5020_v44 = vmul.f32 1.442695, %v4892_v59  ;;  %v16397_v36 = vpop.xlane.xlu1 %4584  ;;  %v4085_v18 = vsel %vm2427_vm0, %v20169_v53, 0  ;;  %v20175_v20 = vld [vmem:[#allocation105_spill] sm:$0xff] }
 0x4e9   : > { %12660 = vmatprep.subr.msk.bf16.mxu0 %vm2427_vm0, %v20167_v5  ;;  %v4900_v59 = vsub.f32 %v20175_v20, %v4534_v43  ;;  %v20179_v43 = vld [vmem:[#allocation32_spill] sm:$0xff] }
 0x4ea   : > { %v16381_v40 = vpop.xlane.xlu0 %4563  ;;  %v5022_v58 = vmul.f32 1.442695, %v4893_v37  ;;  %13227 = vpow2.f32 %v5020_v44  ;;  %v4268_v37 = vsel %vm2427_vm0, %v20171_v19, 0 }
 0x4ec   : > { %13229 = vpow2.f32 %v5022_v58  ;;  %v16420_v44 = vpop.xlane.xlu1 %4572  ;;  %v20182_v58 = vld [vmem:[#allocation102_spill] sm:$0xff] }
 0x4ee   : > { %12230 = vmatpush3.bf16.xpose.msra.mxu1 %v3960_v11  ;;  %v4558_v47 = vpop.xlane.xlu0 %4557  ;;  %v20172_v11 = vld [vmem:[#allocation92_spill] sm:$0xff] }
 0x4ef   : > { %12254 = vmatpush3.bf16.xpose.msra.mxu0 %v4143_v25  ;;  %12657 = vmatprep.subr.msk.bf16.mxu1 %vm2427_vm0, %v20169_v53  ;;  %v4895_v5 = vsub.f32 %v20172_v11, %v16307_v63  ;;  %v4894_v25 = vsub.f32 %v20173_v34, %v16279_v56  ;;  %v20177_v11 = vld [vmem:[#allocation69_spill] sm:$0xff] }
 0x4f0   : > { %12663 = vmatprep.subr.msk.bf16.mxu0 %vm2427_vm0, %v20171_v19  ;;  %v20181_v34 = vld [vmem:[#allocation37_spill] sm:$0xff] }
 0x4f1   : > { %v5026_v53 = vmul.f32 1.442695, %v4895_v5  ;;  %v5024_v19 = vmul.f32 1.442695, %v4894_v25  ;;  %v20183_v5 = vld [vmem:[#allocation85_spill] sm:$0xff]  ;;  %v4908_v25 = vsub.f32 %v16052_v45, %v4558_v47 }
 0x4f2   : > { %v16399_v8 = vpop.xlane.xlu0 %4587 }
 0x4f3   : > { %13231 = vpow2.f32 %v5026_v53 }
 0x4f4   : > { %13233 = vpow2.f32 %v5024_v19 }
 0x4f5   : > { %12232 = vmatmul.mubr.msk.bf16.vlgmr.msra.gmra.mxu1 %vm2427_vm0, %v20174_v61  ;;  %v20178_v61 = vld [vmem:[#allocation89_spill] sm:$0xff] }
 0x4f6   : > { %12256 = vmatmul.mubr.msk.bf16.vlgmr.msra.gmra.mxu0 %vm2427_vm0, %v20176_v41  ;;  %12244 = vmatpush3.bf16.xpose.msra.mxu1 %v4085_v18  ;;  %v16414_v63 = vpop.xlane.xlu0 %4575  ;;  %v4901_v56 = vsub.f32 %v20178_v61, %v16295_v6  ;;  %v20180_v41 = vld [vmem:[#allocation75_spill] sm:$0xff]  ;;  %v5036_v18 = vmul.f32 1.442695, %v4900_v59  ;;  %v4902_v6 = vsub.f32 %v20182_v58, %v16347_v13  ;;  %v4265_v59 = vsel %vm2427_vm0, %v20181_v34, 0 }
 0x4f7   : > { %12247 = vmatprep.mubr.msk.bf16.mxu1 %vm2427_vm0, %v20177_v11  ;;  %12268 = vmatpush3.bf16.xpose.msra.mxu0 %v4268_v37  ;;  %v4903_v11 = vsub.f32 %v20183_v5, %v16281_v9  ;;  %v4082_v61 = vsel %vm2427_vm0, %v20180_v41, 0  ;;  %v20184_v13 = vld [vmem:[#allocation103_spill] sm:$0xff]  ;;  %v16450_v5 = vpop.eup %13227 }
 0x4f8   : > { %12271 = vmatprep.mubr.msk.bf16.mxu0 %vm2427_vm0, %v20179_v43  ;;  %12658 = vmatprep.subr.msk.bf16.mxu1 %vm2427_vm0, %v20180_v41  ;;  %v5038_v37 = vmul.f32 1.442695, %v4901_v56  ;;  %13235 = vpow2.f32 %v5036_v18  ;;  %v16435_v43 = vpop.xlane.xlu1 %4602  ;;  %v5040_v9 = vmul.f32 1.442695, %v4902_v6  ;;  %v4909_v53 = vsub.f32 %v20184_v13, %v16355_v48  ;;  %v20185_v41 = vld [vmem:[#allocation29_spill] sm:$0xff]  ;;  %20186 = vst [vmem:[#allocation55_spill] sm:$0xff] %v16450_v5 }
 0x4f9   : > { %12664 = vmatprep.subr.msk.bf16.mxu0 %vm2427_vm0, %v20181_v34  ;;  %v5042_v47 = vmul.f32 1.442695, %v4903_v11  ;;  %v5052_v18 = vmul.f32 1.442695, %v4908_v25  ;;  %v16458_v13 = vpop.eup %13229  ;;  %v4910_v11 = vsub.f32 %v16040_v0, %v16381_v40 }
 0x4fa   : > { %v4582_v20 = vpop.xlane.xlu0 %4581  ;;  %13237 = vpow2.f32 %v5038_v37  ;;  %v5054_v37 = vmul.f32 1.442695, %v4909_v53  ;;  %20187 = vst [vmem:[#allocation104_spill] sm:$0xff] %v16458_v13 }
 0x4fb   : > { %13239 = vpow2.f32 %v5040_v9  ;;  %v4207_v9 = vsel %vm2427_vm0, %v16253_v38, 0  ;;  %v4916_v53 = vsub.f32 %v16085_v55, %v4582_v20 }
 0x4fc   : > { %v16454_v6 = vpop.xlane.xlu1 %4596  ;;  %13241 = vpow2.f32 %v5042_v47  ;;  %v5660_v47 = vpack.c.bf16 %v16458_v13, %v16450_v5 }
 0x4fd   : > { %13243 = vpow2.f32 %v5052_v18 }
 0x4fe   : > { %12246 = vmatpush3.bf16.xpose.msra.mxu1 %v4082_v61  ;;  %v16439_v56 = vpop.xlane.xlu0 %4569  ;;  %13245 = vpow2.f32 %v5054_v37  ;;  %v5068_v37 = vmul.f32 1.442695, %v4916_v53  ;;  %v20198_v53 = vld [vmem:[#allocation117_spill] sm:$0xff] }
 0x4ff   : > { %12270 = vmatpush3.bf16.xpose.msra.mxu0 %v4265_v59  ;;  %12661 = vmatprep.subr.msk.bf16.mxu1 %vm2427_vm0, %v16253_v38  ;;  %v4917_v38 = vsub.f32 %v16033_v21, %v16397_v36 }
 0x500   : > { %12283 = vmatprep.subr.bf16.mxu0 %v20185_v41  ;;  %v12121_v45 = vpop.f32.mrf.mxu1  ;;  %v16486_v20 = vpop.xlane.xlu1 %4614 }
 0x501   : > { %v16446_v19 = vmul.f32 0.17677669, %v12121_v45  ;;  %v20188_v45 = vld [vmem:[#allocation77_spill] sm:$0xff]  ;;  %v16489_v18 = vpop.eup %13231 }
 0x502   : > { %v16448_v58 = vpop.xlane.xlu0 %4599  ;;  %v3145_v34 = vpop.f32.mrf.mxu1  ;;  %20191 = vst [vmem:[#allocation44_spill] sm:$0xff] %v16489_v18 }
 0x503   : > { %v16452_v61 = vmul.f32 0.17677669, %v3145_v34  ;;  %v4646_v48 = vsel %vm2427_vm0, %v16446_v19, -inf  ;;  %v20189_v34 = vld [vmem:[#allocation41_spill] sm:$0xff] }
 0x504   : > { %v12122_v59 = vpop.f32.mrf.mxu1  ;;  %4647 = vmax.xlane.f32.xlu1 %v4646_v48 }
 0x505   : > { %v16462_v25 = vmul.f32 0.17677669, %v12122_v59  ;;  %12248 = vmatmul.mubr.msk.bf16.vlgmr.msra.gmra.mxu1 %vm2427_vm0, %v20188_v45  ;;  %v4640_v40 = vsel %vm2427_vm0, %v16452_v61, -inf  ;;  %v20190_v59 = vld [vmem:[#allocation99_spill] sm:$0xff] }
 0x506   : > { %12272 = vmatmul.mubr.msk.bf16.vlgmr.msra.gmra.mxu0 %vm2427_vm0, %v20189_v34  ;;  %12260 = vmatpush3.bf16.xpose.msra.mxu1 %v4207_v9  ;;  %v16473_v0 = vpop.xlane.xlu0 %4593  ;;  %v3148_v48 = vpop.f32.mrf.mxu1  ;;  %v4911_v45 = vsub.f32 %v20190_v59, %v16345_v27  ;;  %v5056_v27 = vmul.f32 1.442695, %v4910_v11  ;;  %v20195_v11 = vld [vmem:[#allocation98_spill] sm:$0xff] }
 0x507   : > { %12263 = vmatprep.mubr.msk.bf16.mxu1 %vm2427_vm0, %v16065_v29  ;;  %12284 = vmatpush3.bf16.msra.mxu0 %v20185_v41  ;;  %v4649_v55 = vsel %vm2427_vm0, %v16462_v25, -inf  ;;  %v16491_v9 = vmul.f32 0.17677669, %v3148_v48  ;;  %v20192_v29 = vld [vmem:[#allocation30_spill] sm:$0xff]  ;;  %v16496_v41 = vpop.eup %13233  ;;  %v20196_v48 = vld [vmem:[#allocation35_spill] sm:$0xff] }
 0x508   : > { %12287 = vmatprep.mubr.msk.bf16.mxu0 %vm2427_vm0, %v5660_v47  ;;  %4641 = vmax.xlane.f32.xlu0 %v4640_v40  ;;  %20193 = vst [vmem:[#allocation68_spill] sm:$0xff] %v16496_v41  ;;  %v16500_v36 = vpop.eup %13235  ;;  %v5058_v34 = vmul.f32 1.442695, %v4911_v45  ;;  %v4896_v47 = vsub.f32 %v20195_v11, %v16335_v31  ;;  %v5070_v40 = vmul.f32 1.442695, %v4917_v38  ;;  %v5661_v59 = vpack.c.bf16 %v16489_v18, %v16496_v41  ;;  %v4609_v31 = vpop.xlane.xlu1 %4608 }
 0x509   : > { %12662 = vmatprep.subr.msk.bf16.mxu1 %vm2427_vm0, %v16192_v24  ;;  %12285 = vmatprep.subr.bf16.mxu0 %v20192_v29  ;;  %20194 = vst [vmem:[#allocation36_spill] sm:$0xff] %v16500_v36  ;;  %v16508_v5 = vpop.eup %13237  ;;  %13247 = vpow2.f32 %v5056_v27  ;;  %v4643_v45 = vsel %vm2427_vm0, %v16491_v9, -inf  ;;  %v4204_v38 = vsel %vm2427_vm0, %v16192_v24, 0 }
 0x50a   : > { %4650 = vmax.xlane.f32.xlu1 %v4649_v55  ;;  %v16498_v21 = vpop.xlane.xlu0 %4611  ;;  %20197 = vst [vmem:[#allocation94_spill] sm:$0xff] %v16508_v5  ;;  %v4918_v55 = vsub.f32 %v20198_v53, %v16399_v8  ;;  %13249 = vpow2.f32 %v5068_v37  ;;  %v5664_v27 = vpack.c.bf16 %v16508_v5, %v16500_v36  ;;  %v5028_v53 = vmul.f32 1.442695, %v4896_v47  ;;  %v16528_v24 = vpop.eup %13239 }
 0x50b   : > { %12286 = vmatpush3.bf16.msra.mxu0 %v20192_v29  ;;  %v20199_v29 = vld [vmem:[#allocation106_spill] sm:$0xff]  ;;  %13251 = vpow2.f32 %v5058_v34  ;;  %20202 = vst [vmem:[#allocation46_spill] sm:$0xff] %v16528_v24  ;;  %v4925_v34 = vsub.f32 %v16104_v35, %v4609_v31 }
 0x50c   : > { %12299 = vmatprep.subr.bf16.mxu0 %v20196_v48  ;;  %v4919_v13 = vsub.f32 %v20199_v29, %v16365_v42  ;;  %v20200_v42 = vld [vmem:[#allocation82_spill] sm:$0xff]  ;;  %13253 = vpow2.f32 %v5070_v40  ;;  %v20203_v29 = vld [vmem:[#allocation39_spill] sm:$0xff] }
 0x50d   : > { %v4897_v37 = vsub.f32 %v20200_v42, %v16270_v17  ;;  %v20206_v17 = vld [vmem:[#allocation81_spill] sm:$0xff]  ;;  %v20207_v42 = vld [vmem:[#allocation95_spill] sm:$0xff]  ;;  %13255 = vpow2.f32 %v5028_v53 }
 0x50e   : > { %4644 = vmax.xlane.f32.xlu1 %v4643_v45  ;;  %12288 = vmatmul.mubr.msk.bf16.vlgmr.msra.gmra.mxu0 %vm2427_vm0, %v5661_v59  ;;  %v4606_v11 = vpop.xlane.xlu0 %4605  ;;  %v20201_v59 = vld [vmem:[#allocation48_spill] sm:$0xff]  ;;  %v5072_v45 = vmul.f32 1.442695, %v4918_v55  ;;  %v4899_v47 = vsub.f32 %v20206_v17, %v16261_v3  ;;  %v4898_v5 = vsub.f32 %v20207_v42, %v16321_v22  ;;  %v20208_v55 = vld [vmem:[#allocation43_spill] sm:$0xff]  ;;  %v4926_v3 = vsub.f32 %v16130_v28, %v16498_v21  ;;  %v20211_v28 = vld [vmem:[#allocation38_spill] sm:$0xff] }
 0x50f   : > { %12262 = vmatpush3.bf16.xpose.msra.mxu1 %v4204_v38  ;;  %12300 = vmatpush3.bf16.msra.mxu0 %v20196_v48  ;;  %v4924_v8 = vsub.f32 %v16140_v32, %v4606_v11  ;;  %v16532_v38 = vpop.eup %13241  ;;  %v5074_v32 = vmul.f32 1.442695, %v4919_v13  ;;  %v5086_v13 = vmul.f32 1.442695, %v4925_v34  ;;  %v4329_v22 = vsel %vm2427_vm0, %v20201_v59, 0 }
 0x510   : > { %12303 = vmatprep.mubr.msk.bf16.mxu0 %vm2427_vm0, %v5664_v27  ;;  %12665 = vmatprep.subr.msk.bf16.mxu1 %vm2427_vm0, %v20201_v59  ;;  %20204 = vst [vmem:[#allocation100_spill] sm:$0xff] %v16532_v38  ;;  %v16534_v11 = vpop.eup %13243  ;;  %v5030_v27 = vmul.f32 1.442695, %v4897_v37  ;;  %v5665_v35 = vpack.c.bf16 %v16532_v38, %v16528_v24  ;;  %13257 = vpow2.f32 %v5072_v45  ;;  %v5034_v45 = vmul.f32 1.442695, %v4899_v47 }
 0x511   : > { %12301 = vmatprep.subr.bf16.mxu0 %v20203_v29  ;;  %20205 = vst [vmem:[#allocation88_spill] sm:$0xff] %v16534_v11  ;;  %v5084_v40 = vmul.f32 1.442695, %v4924_v8  ;;  %v16544_v31 = vpop.eup %13245  ;;  %13259 = vpow2.f32 %v5074_v32  ;;  %v20210_v8 = vld [vmem:[#allocation111_spill] sm:$0xff]  ;;  %v4927_v34 = vsub.f32 %v16100_v57, %v16486_v20  ;;  %v5088_v59 = vmul.f32 1.442695, %v4926_v3 }
 0x512   : > { %20209 = vst [vmem:[#allocation83_spill] sm:$0xff] %v16544_v31  ;;  %v4904_v37 = vsub.f32 %v20210_v8, %v16371_v60  ;;  %v5668_v53 = vpack.c.bf16 %v16544_v31, %v16534_v11  ;;  %v5032_v60 = vmul.f32 1.442695, %v4898_v5  ;;  %v20213_v32 = vld [vmem:[#allocation47_spill] sm:$0xff]  ;;  %v20214_v57 = vld [vmem:[#allocation45_spill] sm:$0xff]  ;;  %v4912_v3 = vsub.f32 %v16096_v23, %v16439_v56  ;;  %v20220_v8 = vld [vmem:[#allocation60_spill] sm:$0xff] }
 0x513   : > { %12302 = vmatpush3.bf16.msra.mxu0 %v20203_v29  ;;  %13261 = vpow2.f32 %v5084_v40  ;;  %v5090_v5 = vmul.f32 1.442695, %v4927_v34 }
 0x514   : > { %12315 = vmatprep.subr.bf16.mxu0 %v20208_v55  ;;  %13263 = vpow2.f32 %v5030_v27  ;;  %v5044_v17 = vmul.f32 1.442695, %v4904_v37  ;;  %v20218_v27 = vld [vmem:[#allocation108_spill] sm:$0xff]  ;;  %v20221_v37 = vld [vmem:[#allocation93_spill] sm:$0xff]  ;;  %v5060_v56 = vmul.f32 1.442695, %v4912_v3 }
 0x515   : > { %13265 = vpow2.f32 %v5086_v13  ;;  %v4906_v42 = vsub.f32 %v20218_v27, %v16359_v2  ;;  %v4326_v2 = vsel %vm2427_vm0, %v20213_v32, 0 }
 0x516   : > { %12264 = vmatmul.mubr.msk.bf16.vlgmr.msra.gmra.mxu1 %vm2427_vm0, %v16207_v54  ;;  %12304 = vmatmul.mubr.msk.bf16.vlgmr.msra.gmra.mxu0 %vm2427_vm0, %v5665_v35  ;;  %v20212_v54 = vld [vmem:[#allocation96_spill] sm:$0xff]  ;;  %v16568_v20 = vpop.eup %13247  ;;  %13267 = vpow2.f32 %v5034_v45  ;;  %v20222_v45 = vld [vmem:[#allocation114_spill] sm:$0xff] }
 0x517   : > { %12276 = vmatpush3.bf16.xpose.msra.mxu1 %v4329_v22  ;;  %12279 = vmatprep.mubr.msk.bf16.mxu1 %vm2427_vm0, %v20211_v28  ;;  %v4905_v21 = vsub.f32 %v20212_v54, %v16323_v1  ;;  %20215 = vst [vmem:[#allocation79_spill] sm:$0xff] %v16568_v20  ;;  %v16570_v47 = vpop.eup %13249  ;;  %13269 = vpow2.f32 %v5032_v60  ;;  %v4907_v22 = vsub.f32 %v20221_v37, %v16309_v16  ;;  %v5048_v23 = vmul.f32 1.442695, %v4906_v42  ;;  %v20224_v28 = vld [vmem:[#allocation31_spill] sm:$0xff]  ;;  %v20225_v60 = vld [vmem:[#allocation62_spill] sm:$0xff]  ;;  %v20233_v37 = vld [vmem:[#allocation109_spill] sm:$0xff] }
 0x518   : > { %12316 = vmatpush3.bf16.msra.mxu0 %v20208_v55  ;;  %12319 = vmatprep.mubr.msk.bf16.mxu0 %vm2427_vm0, %v5668_v53  ;;  %20216 = vst [vmem:[#allocation34_spill] sm:$0xff] %v16570_v47  ;;  %v16572_v40 = vpop.eup %13251  ;;  %13271 = vpow2.f32 %v5088_v59  ;;  %v4913_v34 = vsub.f32 %v20222_v45, %v16420_v44  ;;  %v4920_v42 = vsub.f32 %v16126_v26, %v16473_v0 }
 0x519   : > { %12666 = vmatprep.subr.msk.bf16.mxu1 %vm2427_vm0, %v20213_v32  ;;  %12317 = vmatprep.subr.bf16.mxu0 %v20214_v57  ;;  %20217 = vst [vmem:[#allocation92_spill] sm:$0xff] %v16572_v40  ;;  %v5046_v1 = vmul.f32 1.442695, %v4905_v21  ;;  %v16577_v35 = vpop.eup %13253  ;;  %v5669_v13 = vpack.c.bf16 %v16572_v40, %v16568_v20  ;;  %13273 = vpow2.f32 %v5044_v17  ;;  %v5050_v44 = vmul.f32 1.442695, %v4907_v22  ;;  %v20229_v17 = vld [vmem:[#allocation119_spill] sm:$0xff] }
 0x51a   : > { %20219 = vst [vmem:[#allocation84_spill] sm:$0xff] %v16577_v35  ;;  %v5672_v53 = vpack.c.bf16 %v16577_v35, %v16570_v47  ;;  %13275 = vpow2.f32 %v5090_v5  ;;  %v16595_v16 = vpop.eup %13255  ;;  %v5062_v59 = vmul.f32 1.442695, %v4913_v34  ;;  %v4914_v5 = vsub.f32 %v20229_v17, %v16414_v63  ;;  %v20234_v63 = vld [vmem:[#allocation51_spill] sm:$0xff]  ;;  %v20260_v47 = vld [vmem:[#allocation66_spill] sm:$0xff] }
 0x51b   : > { %13277 = vpow2.f32 %v5046_v1  ;;  %20223 = vst [vmem:[#allocation49_spill] sm:$0xff] %v16595_v16  ;;  %v4915_v22 = vsub.f32 %v20233_v37, %v16383_v33 }
 0x51c   : > { %12318 = vmatpush3.bf16.msra.mxu0 %v20214_v57  ;;  %13279 = vpow2.f32 %v5048_v23  ;;  %v5064_v33 = vmul.f32 1.442695, %v4914_v5  ;;  %v5076_v23 = vmul.f32 1.442695, %v4920_v42  ;;  %v4922_v42 = vsub.f32 %v16109_v50, %v16448_v58 }
 0x51d   : > { %12331 = vmatprep.subr.bf16.mxu0 %v20220_v8  ;;  %v16599_v54 = vpop.eup %13257  ;;  %13281 = vpow2.f32 %v5060_v56 }
 0x51e   : > { %20226 = vst [vmem:[#allocation105_spill] sm:$0xff] %v16599_v54  ;;  %v16601_v21 = vpop.eup %13259  ;;  %13283 = vpow2.f32 %v5050_v44  ;;  %v20240_v44 = vld [vmem:[#allocation64_spill] sm:$0xff]  ;;  %v5080_v58 = vmul.f32 1.442695, %v4922_v42  ;;  %v20254_v42 = vld [vmem:[#allocation86_spill] sm:$0xff] }
 0x51f   : > { %12320 = vmatmul.mubr.msk.bf16.vlgmr.msra.gmra.mxu0 %vm2427_vm0, %v5669_v13  ;;  %12278 = vmatpush3.bf16.xpose.msra.mxu1 %v4326_v2  ;;  %20227 = vst [vmem:[#allocation110_spill] sm:$0xff] %v16601_v21  ;;  %v5673_v27 = vpack.c.bf16 %v16601_v21, %v16599_v54  ;;  %v20231_v13 = vld [vmem:[#allocation52_spill] sm:$0xff]  ;;  %13285 = vpow2.f32 %v5062_v59 }
 0x520   : > { %12332 = vmatpush3.bf16.msra.mxu0 %v20220_v8  ;;  %12335 = vmatprep.mubr.msk.bf16.mxu0 %vm2427_vm0, %v5672_v53  ;;  %v16603_v32 = vpop.eup %13261  ;;  %v20235_v53 = vld [vmem:[#allocation118_spill] sm:$0xff]  ;;  %13287 = vpow2.f32 %v5064_v33 }
 0x521   : > { %12291 = vmatprep.subr.bf16.mxu1 %v20224_v28  ;;  %12333 = vmatprep.subr.bf16.mxu0 %v20225_v60  ;;  %20228 = vst [vmem:[#allocation69_spill] sm:$0xff] %v16603_v32  ;;  %v16608_v1 = vpop.eup %13263  ;;  %v4921_v45 = vsub.f32 %v20235_v53, %v16454_v6  ;;  %v20238_v6 = vld [vmem:[#allocation33_spill] sm:$0xff]  ;;  %13289 = vpow2.f32 %v5076_v23 }
 0x522   : > { %20230 = vst [vmem:[#allocation89_spill] sm:$0xff] %v16608_v1  ;;  %v16615_v3 = vpop.eup %13265  ;;  %v5662_v2 = vpack.c.bf16 %v16608_v1, %v16595_v16 }
 0x523   : > { %20232 = vst [vmem:[#allocation32_spill] sm:$0xff] %v16615_v3  ;;  %v5676_v26 = vpack.c.bf16 %v16615_v3, %v16603_v32  ;;  %v16629_v0 = vpop.eup %13267  ;;  %v5078_v17 = vmul.f32 1.442695, %v4921_v45 }
 0x524   : > { %12334 = vmatpush3.bf16.msra.mxu0 %v20225_v60  ;;  %20236 = vst [vmem:[#allocation75_spill] sm:$0xff] %v16629_v0  ;;  %v16633_v34 = vpop.eup %13269 }
 0x525   : > { %12347 = vmatprep.subr.bf16.mxu0 %v20231_v13  ;;  %20237 = vst [vmem:[#allocation37_spill] sm:$0xff] %v16633_v34  ;;  %v16637_v56 = vpop.eup %13271 }
 0x526   : > { %12280 = vmatmul.mubr.msk.bf16.vlgmr.msra.gmra.mxu1 %vm2427_vm0, %v20234_v63  ;;  %20239 = vst [vmem:[#allocation102_spill] sm:$0xff] %v16637_v56  ;;  %v16640_v59 = vpop.eup %13273  ;;  %v20245_v63 = vld [vmem:[#allocation71_spill] sm:$0xff] }
 0x527   : > { %12336 = vmatmul.mubr.msk.bf16.vlgmr.msra.gmra.mxu0 %vm2427_vm0, %v5673_v27  ;;  %12292 = vmatpush3.bf16.msra.mxu1 %v20224_v28  ;;  %v5066_v28 = vmul.f32 1.442695, %v4915_v22  ;;  %20241 = vst [vmem:[#allocation85_spill] sm:$0xff] %v16640_v59  ;;  %v16643_v5 = vpop.eup %13275  ;;  %v5663_v27 = vpack.c.bf16 %v16629_v0, %v16633_v34 }
 0x528   : > { %12295 = vmatprep.mubr.msk.bf16.mxu1 %vm2427_vm0, %v5662_v2  ;;  %12348 = vmatpush3.bf16.msra.mxu0 %v20231_v13  ;;  %20242 = vst [vmem:[#allocation103_spill] sm:$0xff] %v16643_v5  ;;  %v20243_v13 = vld [vmem:[#allocation40_spill] sm:$0xff]  ;;  %v16651_v37 = vpop.eup %13277  ;;  %v5677_v22 = vpack.c.bf16 %v16643_v5, %v16637_v56 }
 0x529   : > { %12351 = vmatprep.mubr.msk.bf16.mxu0 %vm2427_vm0, %v5676_v26  ;;  %12293 = vmatprep.subr.bf16.mxu1 %v20238_v6  ;;  %20244 = vst [vmem:[#allocation29_spill] sm:$0xff] %v16651_v37  ;;  %13291 = vpow2.f32 %v5066_v28  ;;  %v20246_v2 = vld [vmem:[#allocation116_spill] sm:$0xff]  ;;  %v5666_v50 = vpack.c.bf16 %v16651_v37, %v16640_v59  ;;  %v16665_v45 = vpop.eup %13279  ;;  %v20248_v26 = vld [vmem:[#allocation42_spill] sm:$0xff] }
 0x52a   : > { %12349 = vmatprep.subr.bf16.mxu0 %v20240_v44  ;;  %v4923_v53 = vsub.f32 %v20246_v2, %v16435_v43  ;;  %13293 = vpow2.f32 %v5078_v17  ;;  %20247 = vst [vmem:[#allocation77_spill] sm:$0xff] %v16665_v45  ;;  %v20249_v43 = vld [vmem:[#allocation74_spill] sm:$0xff]  ;;  %v16669_v33 = vpop.eup %13281 }
 0x52b   : > { %12294 = vmatpush3.bf16.msra.mxu1 %v20238_v6  ;;  %20250 = vst [vmem:[#allocation41_spill] sm:$0xff] %v16669_v33  ;;  %v16671_v6 = vpop.eup %13283  ;;  %13295 = vpow2.f32 %v5080_v58  ;;  %v20253_v17 = vld [vmem:[#allocation54_spill] sm:$0xff] }
 0x52c   : > { %12350 = vmatpush3.bf16.msra.mxu0 %v20240_v44  ;;  %12307 = vmatprep.subr.bf16.mxu1 %v20243_v13  ;;  %v5082_v23 = vmul.f32 1.442695, %v4923_v53  ;;  %20251 = vst [vmem:[#allocation99_spill] sm:$0xff] %v16671_v6  ;;  %v16674_v28 = vpop.eup %13285  ;;  %v5667_v44 = vpack.c.bf16 %v16671_v6, %v16665_v45  ;;  %v20255_v58 = vld [vmem:[#allocation50_spill] sm:$0xff] }
 0x52d   : > { %12363 = vmatprep.subr.bf16.mxu0 %v20245_v63  ;;  %20252 = vst [vmem:[#allocation30_spill] sm:$0xff] %v16674_v28 }
 0x52e   : > { %12296 = vmatmul.mubr.msk.bf16.vlgmr.msra.gmra.mxu1 %vm2427_vm0, %v5663_v27  ;;  %13297 = vpow2.f32 %v5082_v23 }
 0x52f   : > { %12352 = vmatmul.mubr.msk.bf16.vlgmr.msra.gmra.mxu0 %vm2427_vm0, %v5677_v22  ;;  %12308 = vmatpush3.bf16.msra.mxu1 %v20243_v13 }
 0x530   : > { %12311 = vmatprep.mubr.msk.bf16.mxu1 %vm2427_vm0, %v5666_v50  ;;  %12364 = vmatpush3.bf16.msra.mxu0 %v20245_v63  ;;  %v5670_v63 = vpack.c.bf16 %v16674_v28, %v16669_v33 }
 0x531   : > { %12309 = vmatprep.subr.bf16.mxu1 %v20248_v26  ;;  %12365 = vmatprep.subr.bf16.mxu0 %v20249_v43 }
 0x533   : > { %12310 = vmatpush3.bf16.msra.mxu1 %v20248_v26 }
 0x534   : > { %12366 = vmatpush3.bf16.msra.mxu0 %v20249_v43  ;;  %12323 = vmatprep.subr.bf16.mxu1 %v20253_v17  ;;  %v12129_v27 = vpop.f32.mrf.mxu0 }
 0x535   : > { %12379 = vmatprep.subr.bf16.mxu0 %v20254_v42  ;;  %v16681_v22 = vmul.f32 0.17677669, %v12129_v27  ;;  %v16693_v27 = vpop.eup %13287 }
 0x536   : > { %12312 = vmatmul.mubr.msk.bf16.vlgmr.msra.gmra.mxu1 %vm2427_vm0, %v5667_v44  ;;  %v3206_v2 = vpop.f32.mrf.mxu0  ;;  %20256 = vst [vmem:[#allocation98_spill] sm:$0xff] %v16693_v27  ;;  %v16697_v23 = vpop.eup %13289 }
 0x537   : > { %12324 = vmatpush3.bf16.msra.mxu1 %v20253_v17  ;;  %12327 = vmatprep.mubr.msk.bf16.mxu1 %vm2427_vm0, %v5670_v63  ;;  %v4658_v53 = vsel %vm2427_vm0, %v16681_v22, -inf  ;;  %v16690_v50 = vmul.f32 0.17677669, %v3206_v2  ;;  %20257 = vst [vmem:[#allocation35_spill] sm:$0xff] %v16697_v23  ;;  %v16699_v35 = vpop.eup %13291 }
 0x538   : > { %12325 = vmatprep.subr.bf16.mxu1 %v20255_v58  ;;  %v12130_v43 = vpop.f32.mrf.mxu0  ;;  %4659 = vmax.xlane.f32.xlu0 %v4658_v53  ;;  %20258 = vst [vmem:[#allocation117_spill] sm:$0xff] %v16699_v35  ;;  %v16706_v54 = vpop.eup %13293  ;;  %v5671_v53 = vpack.c.bf16 %v16699_v35, %v16693_v27  ;;  %v20261_v35 = vld [vmem:[#allocation67_spill] sm:$0xff] }
 0x539   : > { %v16695_v21 = vmul.f32 0.17677669, %v12130_v43  ;;  %20259 = vst [vmem:[#allocation106_spill] sm:$0xff] %v16706_v54  ;;  %v4652_v43 = vsel %vm2427_vm0, %v16690_v50, -inf  ;;  %v5674_v28 = vpack.c.bf16 %v16706_v54, %v16697_v23 }
 0x53a   : > { %v3209_v44 = vpop.f32.mrf.mxu0 }
 0x53b   : > { %12326 = vmatpush3.bf16.msra.mxu1 %v20255_v58  ;;  %v16702_v63 = vmul.f32 0.17677669, %v3209_v44  ;;  %v4661_v2 = vsel %vm2427_vm0, %v16695_v21, -inf }
 0x53c   : > { %12339 = vmatprep.subr.bf16.mxu1 %v20260_v47  ;;  %4662 = vmax.xlane.f32.xlu1 %v4661_v2  ;;  %v16721_v2 = vpop.eup %13295 }
 0x53d   : > { %4653 = vmax.xlane.f32.xlu0 %v4652_v43  ;;  %v4655_v44 = vsel %vm2427_vm0, %v16702_v63, -inf  ;;  %20262 = vst [vmem:[#allocation82_spill] sm:$0xff] %v16721_v2  ;;  %v16723_v33 = vpop.eup %13297  ;;  %v20264_v43 = vld [vmem:[#allocation70_spill] sm:$0xff] }
 0x53e   : > { %12328 = vmatmul.mubr.msk.bf16.vlgmr.msra.gmra.mxu1 %vm2427_vm0, %v5671_v53  ;;  %20263 = vst [vmem:[#allocation48_spill] sm:$0xff] %v16723_v33  ;;  %v5675_v53 = vpack.c.bf16 %v16723_v33, %v16721_v2  ;;  %v20265_v2 = vld [vmem:[#allocation61_spill] sm:$0xff] }
 0x53f   : > { %12340 = vmatpush3.bf16.msra.mxu1 %v20260_v47  ;;  %12343 = vmatprep.mubr.msk.bf16.mxu1 %vm2427_vm0, %v5674_v28 }
 0x540   : > { %12341 = vmatprep.subr.bf16.mxu1 %v20261_v35  ;;  %4656 = vmax.xlane.f32.xlu1 %v4655_v44 }
 0x542   : > { %v4624_v27 = vpop.xlane.xlu0 %4623 }
 0x543   : > { %12342 = vmatpush3.bf16.msra.mxu1 %v20261_v35  ;;  %v4930_v20 = vsub.f32 %v16223_v39, %v4624_v27 }
 0x544   : > { %12355 = vmatprep.subr.bf16.mxu1 %v20264_v43  ;;  %v12145_v54 = vpop.f32.mrf.mxu0 }
 0x545   : > { %v16729_v28 = vmul.f32 0.17677669, %v12145_v54  ;;  %v4627_v23 = vpop.xlane.xlu1 %4626  ;;  %v5096_v27 = vmul.f32 1.442695, %v4930_v20 }
 0x546   : > { %12344 = vmatmul.mubr.msk.bf16.vlgmr.msra.gmra.mxu1 %vm2427_vm0, %v5675_v53  ;;  %v4931_v44 = vsub.f32 %v16245_v62, %v4627_v23  ;;  %v4618_v40 = vpop.xlane.xlu0 %4617  ;;  %v3328_v31 = vpop.f32.mrf.mxu0 }
 0x547   : > { %12356 = vmatpush3.bf16.msra.mxu1 %v20264_v43  ;;  %v4928_v11 = vsub.f32 %v16239_v12, %v4618_v40  ;;  %v16736_v6 = vmul.f32 0.17677669, %v3328_v31  ;;  %v4682_v33 = vsel %vm2427_vm0, %v16729_v28, -inf  ;;  %v20266_v31 = vld [vmem:[#allocation78_spill] sm:$0xff] }
 0x548   : > { %v5098_v54 = vmul.f32 1.442695, %v4931_v44  ;;  %12357 = vmatprep.subr.bf16.mxu1 %v20265_v2  ;;  %4683 = vmax.xlane.f32.xlu1 %v4682_v33  ;;  %v12146_v40 = vpop.f32.mrf.mxu0 }
 0x549   : > { %v5092_v53 = vmul.f32 1.442695, %v4928_v11  ;;  %v4621_v37 = vpop.xlane.xlu1 %4620  ;;  %v4676_v62 = vsel %vm2427_vm0, %v16736_v6, -inf  ;;  %v16748_v44 = vmul.f32 0.17677669, %v12146_v40 }
 0x54a   : > { %v4929_v39 = vsub.f32 %v16249_v52, %v4621_v37  ;;  %4677 = vmax.xlane.f32.xlu0 %v4676_v62  ;;  %13299 = vpow2.f32 %v5098_v54 }
 0x54b   : > { %12358 = vmatpush3.bf16.msra.mxu1 %v20265_v2  ;;  %13301 = vpow2.f32 %v5092_v53  ;;  %v4685_v59 = vsel %vm2427_vm0, %v16748_v44, -inf }
 0x54c   : > { %v5094_v12 = vmul.f32 1.442695, %v4929_v39  ;;  %12371 = vmatprep.subr.bf16.mxu1 %v20266_v31 }
 0x54e   : > { %13303 = vpow2.f32 %v5094_v12  ;;  %v3331_v12 = vpop.f32.mrf.mxu0 }
 0x54f   : > { %13305 = vpow2.f32 %v5096_v27 }
 0x555   : > { %v12137_v33 = vpop.f32.mrf.mxu1  ;;  %v4636_v23 = vpop.xlane.xlu0 %4635 }
 0x556   : > { %v16746_v11 = vmul.f32 0.17677669, %v12137_v33  ;;  %v12161_v36 = vpop.f32.mrf.mxu0 }
 0x557   : > { %v3267_v43 = vpop.f32.mrf.mxu1  ;;  %v16754_v37 = vpop.eup %13299 }
 0x558   : > { %v16750_v52 = vmul.f32 0.17677669, %v3267_v43  ;;  %v4670_v20 = vsel %vm2427_vm0, %v16746_v11, -inf  ;;  %20267 = vst [vmem:[#allocation39_spill] sm:$0xff] %v16754_v37  ;;  %v16756_v54 = vpop.eup %13301 }
 0x559   : > { %4671 = vmax.xlane.f32.xlu1 %v4670_v20  ;;  %v12138_v2 = vpop.f32.mrf.mxu1  ;;  %20268 = vst [vmem:[#allocation81_spill] sm:$0xff] %v16756_v54  ;;  %v4630_v62 = vpop.xlane.xlu0 %4629  ;;  %v4934_v20 = vsub.f32 %v16291_v7, %v4636_v23  ;;  %v16778_v23 = vmul.f32 0.17677669, %v3331_v12  ;;  %v20272_v12 = vld [vmem:[#allocation113_spill] sm:$0xff] }
 0x55a   : > { %v4639_v53 = vpop.xlane.xlu1 %4638  ;;  %v4664_v39 = vsel %vm2427_vm0, %v16750_v52, -inf  ;;  %v4932_v33 = vsub.f32 %v16299_v10, %v4630_v62  ;;  %v16767_v45 = vmul.f32 0.17677669, %v12138_v2 }
 0x55b   : > { %v16760_v27 = vpop.eup %13303  ;;  %v4935_v40 = vsub.f32 %v16303_v30, %v4639_v53  ;;  %4665 = vmax.xlane.f32.xlu0 %v4664_v39  ;;  %v5104_v2 = vmul.f32 1.442695, %v4934_v20  ;;  %v3450_v39 = vpop.f32.mrf.mxu0 }
 0x55c   : > { %20269 = vst [vmem:[#allocation95_spill] sm:$0xff] %v16760_v27  ;;  %v16764_v43 = vpop.eup %13305  ;;  %v5678_v38 = vpack.c.bf16 %v16760_v27, %v16756_v54  ;;  %v5100_v10 = vmul.f32 1.442695, %v4932_v33  ;;  %v4673_v62 = vsel %vm2427_vm0, %v16767_v45, -inf  ;;  %v20271_v33 = vld [vmem:[#allocation87_spill] sm:$0xff] }
 0x55d   : > { %20270 = vst [vmem:[#allocation111_spill] sm:$0xff] %v16764_v43  ;;  %v5679_v24 = vpack.c.bf16 %v16754_v37, %v16764_v43  ;;  %v5106_v30 = vmul.f32 1.442695, %v4935_v40  ;;  %4686 = vmax.xlane.f32.xlu1 %v4685_v59  ;;  %v3270_v40 = vpop.f32.mrf.mxu1 }
 0x55e   : > { %v4633_v53 = vpop.xlane.xlu1 %4632  ;;  %12359 = vmatprep.mubr.msk.bf16.mxu1 %vm2427_vm0, %v5678_v38  ;;  %v12162_v38 = vpop.f32.mrf.mxu0 }
 0x55f   : > { %v4933_v7 = vsub.f32 %v16315_v51, %v4633_v53  ;;  %12360 = vmatmul.mubr.msk.bf16.vlgmr.msra.gmra.mxu1 %vm2427_vm0, %v5679_v24  ;;  %13307 = vpow2.f32 %v5106_v30  ;;  %v16784_v51 = vmul.f32 0.17677669, %v3270_v40  ;;  %v4679_v24 = vsel %vm2427_vm0, %v16778_v23, -inf }
 0x560   : > { %12372 = vmatpush3.bf16.msra.mxu1 %v20266_v31  ;;  %13309 = vpow2.f32 %v5100_v10  ;;  %v16792_v53 = vmul.f32 0.17677669, %v12161_v36  ;;  %v16794_v10 = vmul.f32 0.17677669, %v3450_v39 }
 0x561   : > { %v5102_v59 = vmul.f32 1.442695, %v4933_v7  ;;  %4674 = vmax.xlane.f32.xlu1 %v4673_v62  ;;  %12373 = vmatprep.subr.bf16.mxu1 %v20271_v33  ;;  %v4667_v7 = vsel %vm2427_vm0, %v16784_v51, -inf  ;;  %v3453_v62 = vpop.f32.mrf.mxu0 }
 0x562   : > { %v4706_v36 = vsel %vm2427_vm0, %v16792_v53, -inf  ;;  %v4700_v39 = vsel %vm2427_vm0, %v16794_v10, -inf }
 0x563   : > { %13311 = vpow2.f32 %v5102_v59  ;;  %v16800_v59 = vmul.f32 0.17677669, %v3453_v62 }
 0x564   : > { %13313 = vpow2.f32 %v5104_v2  ;;  %12374 = vmatpush3.bf16.msra.mxu1 %v20271_v33 }
 0x565   : > { %4680 = vmax.xlane.f32.xlu1 %v4679_v24  ;;  %v12153_v31 = vpop.f32.mrf.mxu1  ;;  %12387 = vmatprep.subr.bf16.mxu1 %v20272_v12 }
 0x566   : > { %v16790_v20 = vmul.f32 0.17677669, %v12153_v31  ;;  %v12177_v16 = vpop.f32.mrf.mxu0 }
 0x567   : > { %v3389_v30 = vpop.f32.mrf.mxu1  ;;  %v16834_v18 = vmul.f32 0.17677669, %v12177_v16 }
 0x568   : > { %v4694_v2 = vsel %vm2427_vm0, %v16790_v20, -inf  ;;  %v16802_v33 = vmul.f32 0.17677669, %v3389_v30  ;;  %v4703_v30 = vsel %vm2427_vm0, %v16800_v59, -inf }
 0x569   : > { %4668 = vmax.xlane.f32.xlu1 %v4667_v7  ;;  %4695 = vmax.xlane.f32.xlu0 %v4694_v2  ;;  %v12154_v40 = vpop.f32.mrf.mxu1  ;;  %v16814_v2 = vmul.f32 0.17677669, %v12162_v38 }
 0x56a   : > { %v4688_v62 = vsel %vm2427_vm0, %v16802_v33, -inf  ;;  %v16829_v1 = vmul.f32 0.17677669, %v12154_v40 }
 0x56b   : > { %v3392_v31 = vpop.f32.mrf.mxu1  ;;  %v4709_v41 = vsel %vm2427_vm0, %v16814_v2, -inf }
 0x56c   : > { %v16808_v24 = vpop.eup %13307 }
 0x56d   : > { %4707 = vmax.xlane.f32.xlu1 %v4706_v36  ;;  %4701 = vmax.xlane.f32.xlu0 %v4700_v39  ;;  %20273 = vst [vmem:[#allocation38_spill] sm:$0xff] %v16808_v24  ;;  %v16810_v34 = vpop.eup %13309  ;;  %v16822_v36 = vmul.f32 0.17677669, %v3392_v31  ;;  %v3572_v31 = vpop.f32.mrf.mxu0 }
 0x56e   : > { %20274 = vst [vmem:[#allocation96_spill] sm:$0xff] %v16810_v34 }
 0x56f   : > { %v12178_v16 = vpop.f32.mrf.mxu0 }
 0x570   : > { %v16812_v7 = vpop.eup %13311 }
 0x571   : > { %20275 = vst [vmem:[#allocation47_spill] sm:$0xff] %v16812_v7  ;;  %v16820_v0 = vpop.eup %13313  ;;  %4704 = vmax.xlane.f32.xlu0 %v4703_v30  ;;  %4689 = vmax.xlane.f32.xlu1 %v4688_v62  ;;  %v5680_v39 = vpack.c.bf16 %v16812_v7, %v16810_v34  ;;  %v4691_v30 = vsel %vm2427_vm0, %v16822_v36, -inf  ;;  %v16854_v34 = vmul.f32 0.17677669, %v12178_v16 }
 0x572   : > { %20276 = vst [vmem:[#allocation108_spill] sm:$0xff] %v16820_v0  ;;  %v5681_v38 = vpack.c.bf16 %v16808_v24, %v16820_v0  ;;  %v20277_v0 = vld [vmem:[#allocation97_spill] sm:$0xff] }
 0x573   : > { %12367 = vmatprep.mubr.msk.bf16.mxu0 %vm2427_vm0, %v5680_v39  ;;  %v16840_v39 = vmul.f32 0.17677669, %v3572_v31  ;;  %v4733_v37 = vsel %vm2427_vm0, %v16854_v34, -inf }
 0x574   : > { %12368 = vmatmul.mubr.msk.bf16.vlgmr.msra.gmra.mxu0 %vm2427_vm0, %v5681_v38  ;;  %v4697_v38 = vsel %vm2427_vm0, %v16829_v1, -inf }
 0x575   : > { %12380 = vmatpush3.bf16.msra.mxu0 %v20254_v42  ;;  %4710 = vmax.xlane.f32.xlu1 %v4709_v41  ;;  %v12169_v62 = vpop.f32.mrf.mxu1  ;;  %v4730_v41 = vsel %vm2427_vm0, %v16834_v18, -inf  ;;  %v4724_v31 = vsel %vm2427_vm0, %v16840_v39, -inf }
 0x576   : > { %4692 = vmax.xlane.f32.xlu0 %v4691_v30  ;;  %12381 = vmatprep.subr.bf16.mxu0 %v20277_v0  ;;  %v16844_v24 = vmul.f32 0.17677669, %v12169_v62 }
 0x577   : > { %v3511_v40 = vpop.f32.mrf.mxu1 }
 0x578   : > { %v16850_v30 = vmul.f32 0.17677669, %v3511_v40 }
 0x579   : > { %12382 = vmatpush3.bf16.msra.mxu0 %v20277_v0  ;;  %4698 = vmax.xlane.f32.xlu1 %v4697_v38  ;;  %v12170_v42 = vpop.f32.mrf.mxu1  ;;  %v4718_v0 = vsel %vm2427_vm0, %v16844_v24, -inf  ;;  %v3575_v38 = vpop.f32.mrf.mxu0 }
 0x57a   : > { %4731 = vmax.xlane.f32.xlu0 %v4730_v41  ;;  %12395 = vmatprep.subr.bf16.mxu0 %v16175_v14  ;;  %v16858_v7 = vmul.f32 0.17677669, %v12170_v42  ;;  %v4712_v41 = vsel %vm2427_vm0, %v16850_v30, -inf  ;;  %v16866_v16 = vmul.f32 0.17677669, %v3575_v38 }
 0x57b   : > { %v3514_v62 = vpop.f32.mrf.mxu1  ;;  %v12193_v43 = vpop.f32.mrf.mxu0 }
 0x57c   : > { %v16862_v40 = vmul.f32 0.17677669, %v3514_v62 }
 0x57d   : > { %4725 = vmax.xlane.f32.xlu1 %v4724_v31  ;;  %v4721_v31 = vsel %vm2427_vm0, %v16858_v7, -inf  ;;  %v3694_v42 = vpop.f32.mrf.mxu0 }
 0x57e   : > { %4719 = vmax.xlane.f32.xlu0 %v4718_v0  ;;  %v16870_v0 = vmul.f32 0.17677669, %v12193_v43  ;;  %v4715_v54 = vsel %vm2427_vm0, %v16862_v40, -inf  ;;  %v16874_v5 = vmul.f32 0.17677669, %v3694_v42 }
 0x57f   : > { %v12194_v38 = vpop.f32.mrf.mxu0 }
 0x580   : > { %v4754_v43 = vsel %vm2427_vm0, %v16870_v0, -inf  ;;  %v16886_v56 = vmul.f32 0.17677669, %v12194_v38 }
 0x581   : > { %4713 = vmax.xlane.f32.xlu1 %v4712_v41  ;;  %v3697_v42 = vpop.f32.mrf.mxu0 }
 0x582   : > { %4734 = vmax.xlane.f32.xlu0 %v4733_v37  ;;  %v4727_v37 = vsel %vm2427_vm0, %v16866_v16, -inf  ;;  %v4757_v38 = vsel %vm2427_vm0, %v16886_v56, -inf  ;;  %v16899_v17 = vmul.f32 0.17677669, %v3697_v42 }
 0x585   : > { %4722 = vmax.xlane.f32.xlu1 %v4721_v31  ;;  %v12185_v27 = vpop.f32.mrf.mxu1 }
 0x586   : > { %4716 = vmax.xlane.f32.xlu0 %v4715_v54  ;;  %v16878_v41 = vmul.f32 0.17677669, %v12185_v27  ;;  %v4748_v54 = vsel %vm2427_vm0, %v16874_v5, -inf  ;;  %v12209_v35 = vpop.f32.mrf.mxu0 }
 0x587   : > { %v3633_v62 = vpop.f32.mrf.mxu1  ;;  %v16904_v55 = vmul.f32 0.17677669, %v12209_v35  ;;  %v4751_v35 = vsel %vm2427_vm0, %v16899_v17, -inf }
 0x588   : > { %v16882_v3 = vmul.f32 0.17677669, %v3633_v62  ;;  %v4742_v32 = vsel %vm2427_vm0, %v16878_v41, -inf }
 0x589   : > { %4728 = vmax.xlane.f32.xlu1 %v4727_v37  ;;  %v12186_v31 = vpop.f32.mrf.mxu1  ;;  %20278 = vst [vmem:[#allocation93_spill] sm:$0xff] %v16904_v55 }
 0x58a   : > { %4755 = vmax.xlane.f32.xlu0 %v4754_v43  ;;  %v16890_v8 = vmul.f32 0.17677669, %v12186_v31  ;;  %v4736_v62 = vsel %vm2427_vm0, %v16882_v3, -inf }
 0x58b   : > { %v3636_v27 = vpop.f32.mrf.mxu1 }
 0x58c   : > { %v16894_v43 = vmul.f32 0.17677669, %v3636_v27  ;;  %v4745_v58 = vsel %vm2427_vm0, %v16890_v8, -inf }
 0x58d   : > { %4749 = vmax.xlane.f32.xlu1 %v4748_v54  ;;  %v4648_v37 = vpop.xlane.xlu1 %4647 }
 0x58e   : > { %4743 = vmax.xlane.f32.xlu0 %v4742_v32  ;;  %v3816_v32 = vpop.f32.mrf.mxu0  ;;  %v4938_v27 = vsub.f32 %v16446_v19, %v4648_v37 }
 0x58f   : > { %v16909_v15 = vmul.f32 0.17677669, %v3816_v32 }
 0x590   : > { %v5112_v13 = vmul.f32 1.442695, %v4938_v27 }
 0x591   : > { %v4642_v47 = vpop.xlane.xlu0 %4641  ;;  %4737 = vmax.xlane.f32.xlu1 %v4736_v62  ;;  %v4739_v62 = vsel %vm2427_vm0, %v16894_v43, -inf }
 0x592   : > { %v4936_v54 = vsub.f32 %v16452_v61, %v4642_v47  ;;  %4758 = vmax.xlane.f32.xlu0 %v4757_v38 }
 0x593   : > { %v4651_v60 = vpop.xlane.xlu1 %4650 }
 0x594   : > { %v4939_v31 = vsub.f32 %v16462_v25, %v4651_v60  ;;  %v5108_v61 = vmul.f32 1.442695, %v4936_v54  ;;  %v12210_v25 = vpop.f32.mrf.mxu0 }
 0x595   : > { %4746 = vmax.xlane.f32.xlu1 %v4745_v58  ;;  %v12201_v57 = vpop.f32.mrf.mxu1  ;;  %v4778_v58 = vsel %vm2427_vm0, %v16904_v55, -inf }
 0x596   : > { %4740 = vmax.xlane.f32.xlu0 %v4739_v62  ;;  %v5114_v47 = vmul.f32 1.442695, %v4939_v31  ;;  %v16914_v19 = vmul.f32 0.17677669, %v12201_v57  ;;  %13315 = vpow2.f32 %v5108_v61  ;;  %v3819_v32 = vpop.f32.mrf.mxu0  ;;  %v16922_v62 = vmul.f32 0.17677669, %v12210_v25 }
 0x597   : > { %v4645_v42 = vpop.xlane.xlu1 %4644  ;;  %v3755_v38 = vpop.f32.mrf.mxu1 }
 0x598   : > { %v4937_v60 = vsub.f32 %v16491_v9, %v4645_v42  ;;  %13317 = vpow2.f32 %v5114_v47  ;;  %v16918_v31 = vmul.f32 0.17677669, %v3755_v38  ;;  %v4772_v9 = vsel %vm2427_vm0, %v16909_v15, -inf  ;;  %20279 = vst [vmem:[#allocation114_spill] sm:$0xff] %v16922_v62  ;;  %v12225_v27 = vpop.f32.mrf.mxu0 }
 0x599   : > { %4752 = vmax.xlane.f32.xlu1 %v4751_v35  ;;  %v12202_v54 = vpop.f32.mrf.mxu1  ;;  %v4766_v57 = vsel %vm2427_vm0, %v16914_v19, -inf }
 0x59a   : > { %v5110_v37 = vmul.f32 1.442695, %v4937_v60  ;;  %4779 = vmax.xlane.f32.xlu0 %v4778_v58  ;;  %v16926_v42 = vmul.f32 0.17677669, %v12202_v54  ;;  %v4760_v47 = vsel %vm2427_vm0, %v16918_v31, -inf  ;;  %v4781_v60 = vsel %vm2427_vm0, %v16922_v62, -inf  ;;  %v3938_v25 = vpop.f32.mrf.mxu0 }
 0x59b   : > { %v3758_v61 = vpop.f32.mrf.mxu1  ;;  %v16938_v58 = vmul.f32 0.17677669, %v12225_v27  ;;  %v16962_v62 = vmul.f32 0.17677669, %v3938_v25  ;;  %v20292_v25 = vld [vmem:[#allocation107_spill] sm:$0xff] }
 0x59c   : > { %13319 = vpow2.f32 %v5110_v37  ;;  %20280 = vst [vmem:[#allocation31_spill] sm:$0xff] %v16926_v42  ;;  %v16930_v38 = vmul.f32 0.17677669, %v3758_v61  ;;  %v4769_v35 = vsel %vm2427_vm0, %v16926_v42, -inf }
 0x59d   : > { %13321 = vpow2.f32 %v5112_v13  ;;  %4773 = vmax.xlane.f32.xlu1 %v4772_v9  ;;  %v16934_v13 = vmul.f32 0.17677669, %v3819_v32  ;;  %20283 = vst [vmem:[#allocation109_spill] sm:$0xff] %v16938_v58  ;;  %v12226_v9 = vpop.f32.mrf.mxu0  ;;  %20290 = vst [vmem:[#allocation42_spill] sm:$0xff] %v16962_v62 }
 0x59e   : > { %4767 = vmax.xlane.f32.xlu0 %v4766_v57  ;;  %20281 = vst [vmem:[#allocation119_spill] sm:$0xff] %v16930_v38  ;;  %v4763_v37 = vsel %vm2427_vm0, %v16930_v38, -inf  ;;  %v16952_v27 = vmul.f32 0.17677669, %v12226_v9 }
 0x59f   : > { %20282 = vst [vmem:[#allocation52_spill] sm:$0xff] %v16934_v13  ;;  %v4775_v32 = vsel %vm2427_vm0, %v16934_v13, -inf  ;;  %v3941_v13 = vpop.f32.mrf.mxu0 }
 0x5a0   : > { %20288 = vst [vmem:[#allocation71_spill] sm:$0xff] %v16952_v27 }
 0x5a1   : > { %4761 = vmax.xlane.f32.xlu1 %v4760_v47 }
 0x5a2   : > { %4782 = vmax.xlane.f32.xlu0 %v4781_v60 }
 0x5a3   : > { %v16942_v57 = vpop.eup %13315 }
 0x5a4   : > { %20284 = vst [vmem:[#allocation51_spill] sm:$0xff] %v16942_v57 }
 0x5a5   : > { %4770 = vmax.xlane.f32.xlu1 %v4769_v35  ;;  %v12217_v54 = vpop.f32.mrf.mxu1  ;;  %v16944_v47 = vpop.eup %13317  ;;  %v4802_v35 = vsel %vm2427_vm0, %v16938_v58, -inf }
 0x5a6   : > { %4764 = vmax.xlane.f32.xlu0 %v4763_v37  ;;  %20285 = vst [vmem:[#allocation118_spill] sm:$0xff] %v16944_v47  ;;  %v16946_v60 = vmul.f32 0.17677669, %v12217_v54 }
 0x5a7   : > { %v3877_v61 = vpop.f32.mrf.mxu1 }
 0x5a8   : > { %20286 = vst [vmem:[#allocation33_spill] sm:$0xff] %v16946_v60  ;;  %v4790_v9 = vsel %vm2427_vm0, %v16946_v60, -inf }
 0x5a9   : > { %v16950_v55 = vpop.eup %13319  ;;  %4776 = vmax.xlane.f32.xlu1 %v4775_v32  ;;  %v12218_v37 = vpop.f32.mrf.mxu1 }
 0x5aa   : > { %20287 = vst [vmem:[#allocation64_spill] sm:$0xff] %v16950_v55  ;;  %v16956_v38 = vpop.eup %13321  ;;  %4803 = vmax.xlane.f32.xlu0 %v4802_v35  ;;  %v5682_v42 = vpack.c.bf16 %v16950_v55, %v16942_v57  ;;  %v16967_v32 = vmul.f32 0.17677669, %v12218_v37  ;;  %v4805_v35 = vsel %vm2427_vm0, %v16952_v27, -inf  ;;  %v12241_v57 = vpop.f32.mrf.mxu0 }
 0x5ab   : > { %20289 = vst [vmem:[#allocation116_spill] sm:$0xff] %v16956_v38  ;;  %v5683_v54 = vpack.c.bf16 %v16944_v47, %v16956_v38  ;;  %v3880_v55 = vpop.f32.mrf.mxu1  ;;  %v16974_v38 = vmul.f32 0.17677669, %v3877_v61 }
 0x5ac   : > { %12375 = vmatprep.mubr.msk.bf16.mxu1 %vm2427_vm0, %v5682_v42  ;;  %20291 = vst [vmem:[#allocation74_spill] sm:$0xff] %v16967_v32  ;;  %v4796_v42 = vsel %vm2427_vm0, %v16962_v62, -inf  ;;  %v16978_v37 = vmul.f32 0.17677669, %v3880_v55  ;;  %v4060_v47 = vpop.f32.mrf.mxu0 }
 0x5ad   : > { %12376 = vmatmul.mubr.msk.bf16.vlgmr.msra.gmra.mxu1 %vm2427_vm0, %v5683_v54  ;;  %4791 = vmax.xlane.f32.xlu1 %v4790_v9  ;;  %20293 = vst [vmem:[#allocation86_spill] sm:$0xff] %v16974_v38  ;;  %v4793_v54 = vsel %vm2427_vm0, %v16967_v32, -inf  ;;  %v4784_v61 = vsel %vm2427_vm0, %v16974_v38, -inf  ;;  %v16988_v9 = vmul.f32 0.17677669, %v4060_v47 }
 0x5ae   : > { %12388 = vmatpush3.bf16.msra.mxu1 %v20272_v12  ;;  %4806 = vmax.xlane.f32.xlu0 %v4805_v35  ;;  %20294 = vst [vmem:[#allocation70_spill] sm:$0xff] %v16978_v37  ;;  %v16984_v12 = vmul.f32 0.17677669, %v3941_v13  ;;  %v4787_v35 = vsel %vm2427_vm0, %v16978_v37, -inf }
 0x5af   : > { %12389 = vmatprep.subr.bf16.mxu1 %v20292_v25  ;;  %20296 = vst [vmem:[#allocation78_spill] sm:$0xff] %v16988_v9 }
 0x5b0   : > { %20295 = vst [vmem:[#allocation61_spill] sm:$0xff] %v16984_v12 }
 0x5b1   : > { %4797 = vmax.xlane.f32.xlu1 %v4796_v42 }
 0x5b2   : > { %12390 = vmatpush3.bf16.msra.mxu1 %v20292_v25  ;;  %4794 = vmax.xlane.f32.xlu0 %v4793_v54  ;;  %v4799_v25 = vsel %vm2427_vm0, %v16984_v12, -inf  ;;  %v4820_v54 = vsel %vm2427_vm0, %v16988_v9, -inf }
 0x5b3   : > { %12403 = vmatprep.subr.bf16.mxu1 %v16215_v49 }
 0x5b5   : > { %4785 = vmax.xlane.f32.xlu1 %v4784_v61  ;;  %v12233_v55 = vpop.f32.mrf.mxu1  ;;  %v17000_v61 = vmul.f32 0.17677669, %v12241_v57 }
 0x5b6   : > { %4788 = vmax.xlane.f32.xlu0 %v4787_v35  ;;  %v16992_v58 = vmul.f32 0.17677669, %v12233_v55 }
 0x5b7   : > { %v3999_v42 = vpop.f32.mrf.mxu1  ;;  %20299 = vst [vmem:[#allocation97_spill] sm:$0xff] %v17000_v61 }
 0x5b8   : > { %20297 = vst [vmem:[#allocation87_spill] sm:$0xff] %v16992_v58  ;;  %v4814_v35 = vsel %vm2427_vm0, %v16992_v58, -inf  ;;  %v17008_v12 = vmul.f32 0.17677669, %v3999_v42 }
 0x5b9   : > { %4800 = vmax.xlane.f32.xlu1 %v4799_v25  ;;  %v12234_v13 = vpop.f32.mrf.mxu1  ;;  %v12242_v25 = vpop.f32.mrf.mxu0 }
 0x5ba   : > { %v16998_v38 = vmul.f32 0.17677669, %v12234_v13  ;;  %4821 = vmax.xlane.f32.xlu0 %v4820_v54  ;;  %20301 = vst [vmem:[#allocation124_spill] sm:$0xff] %v17008_v12  ;;  %v4826_v13 = vsel %vm2427_vm0, %v17000_v61, -inf  ;;  %v17014_v9 = vmul.f32 0.17677669, %v12242_v25 }
 0x5bb   : > { %v4002_v47 = vpop.f32.mrf.mxu1  ;;  %v4063_v58 = vpop.f32.mrf.mxu0 }
 0x5bc   : > { %20298 = vst [vmem:[#allocation113_spill] sm:$0xff] %v16998_v38  ;;  %v4817_v55 = vsel %vm2427_vm0, %v16998_v38, -inf  ;;  %v17006_v37 = vmul.f32 0.17677669, %v4002_v47  ;;  %v4808_v47 = vsel %vm2427_vm0, %v17008_v12, -inf  ;;  %v4829_v27 = vsel %vm2427_vm0, %v17014_v9, -inf }
 0x5bd   : > { %4815 = vmax.xlane.f32.xlu1 %v4814_v35  ;;  %v17019_v62 = vmul.f32 0.17677669, %v4063_v58 }
 0x5be   : > { %20300 = vst [vmem:[#allocation107_spill] sm:$0xff] %v17006_v37  ;;  %4818 = vmax.xlane.f32.xlu0 %v4817_v55  ;;  %v4811_v57 = vsel %vm2427_vm0, %v17006_v37, -inf }
 0x5c1   : > { %4827 = vmax.xlane.f32.xlu1 %v4826_v13  ;;  %v4660_v54 = vpop.xlane.xlu0 %4659 }
 0x5c2   : > { %4812 = vmax.xlane.f32.xlu0 %v4811_v57  ;;  %v4942_v13 = vsub.f32 %v16681_v22, %v4660_v54 }
 0x5c4   : > { %v5120_v58 = vmul.f32 1.442695, %v4942_v13 }
 0x5c5   : > { %4809 = vmax.xlane.f32.xlu1 %v4808_v47  ;;  %v12249_v35 = vpop.f32.mrf.mxu1  ;;  %v4663_v55 = vpop.xlane.xlu1 %4662 }
 0x5c6   : > { %v4943_v42 = vsub.f32 %v16695_v21, %v4663_v55  ;;  %v4654_v38 = vpop.xlane.xlu0 %4653  ;;  %v17027_v60 = vmul.f32 0.17677669, %v12249_v35 }
 0x5c7   : > { %v4940_v61 = vsub.f32 %v16690_v50, %v4654_v38  ;;  %v4121_v37 = vpop.f32.mrf.mxu1 }
 0x5c8   : > { %v5122_v57 = vmul.f32 1.442695, %v4943_v42  ;;  %v17023_v25 = vmul.f32 0.17677669, %v4121_v37 }
 0x5c9   : > { %v5116_v12 = vmul.f32 1.442695, %v4940_v61  ;;  %4830 = vmax.xlane.f32.xlu1 %v4829_v27  ;;  %v12250_v47 = vpop.f32.mrf.mxu1  ;;  %v4657_v32 = vpop.xlane.xlu1 %4656  ;;  %v4823_v61 = vsel %vm2427_vm0, %v17019_v62, -inf }
 0x5ca   : > { %v4941_v21 = vsub.f32 %v16702_v63, %v4657_v32  ;;  %v4832_v22 = vsel %vm2427_vm0, %v17023_v25, -inf  ;;  %13323 = vpow2.f32 %v5122_v57  ;;  %v17036_v27 = vmul.f32 0.17677669, %v12250_v47 }
 0x5cb   : > { %v4124_v50 = vpop.f32.mrf.mxu1  ;;  %4833 = vmax.xlane.f32.xlu0 %v4832_v22  ;;  %13325 = vpow2.f32 %v5116_v12  ;;  %v4838_v63 = vsel %vm2427_vm0, %v17027_v60, -inf  ;;  %v20304_v22 = vld [vmem:[#allocation59_spill] sm:$0xff] }
 0x5cc   : > { %v5118_v38 = vmul.f32 1.442695, %v4941_v21  ;;  %v17032_v37 = vmul.f32 0.17677669, %v4124_v50  ;;  %v4841_v54 = vsel %vm2427_vm0, %v17036_v27, -inf }
 0x5cd   : > { %4824 = vmax.xlane.f32.xlu1 %v4823_v61 }
 0x5ce   : > { %13327 = vpow2.f32 %v5118_v38  ;;  %v4835_v32 = vsel %vm2427_vm0, %v17032_v37, -inf }
 0x5cf   : > { %13329 = vpow2.f32 %v5120_v58  ;;  %4839 = vmax.xlane.f32.xlu0 %v4838_v63 }
 0x5d1   : > { %4836 = vmax.xlane.f32.xlu1 %v4835_v32  ;;  %v4684_v47 = vpop.xlane.xlu1 %4683 }
 0x5d2   : > { %v4950_v32 = vsub.f32 %v16729_v28, %v4684_v47 }
 0x5d3   : > { %4842 = vmax.xlane.f32.xlu0 %v4841_v54  ;;  %v4678_v58 = vpop.xlane.xlu0 %4677 }
 0x5d4   : > { %v4948_v38 = vsub.f32 %v16736_v6, %v4678_v58 }
 0x5d6   : > { %v5132_v54 = vmul.f32 1.442695, %v4948_v38 }
 0x5d7   : > { %v17044_v35 = vpop.eup %13323 }
 0x5d8   : > { %20302 = vst [vmem:[#allocation125_spill] sm:$0xff] %v17044_v35  ;;  %v17046_v12 = vpop.eup %13325  ;;  %13331 = vpow2.f32 %v5132_v54 }
 0x5db   : > { %v17048_v55 = vpop.eup %13327 }
 0x5dc   : > { %v17050_v42 = vpop.eup %13329  ;;  %v5684_v13 = vpack.c.bf16 %v17048_v55, %v17046_v12 }
 0x5dd   : > { %20303 = vst [vmem:[#allocation126_spill] sm:$0xff] %v17050_v42  ;;  %v5685_v57 = vpack.c.bf16 %v17044_v35, %v17050_v42  ;;  %v5136_v35 = vmul.f32 1.442695, %v4950_v32 }
 0x5de   : > { %12383 = vmatprep.mubr.msk.bf16.mxu0 %vm2427_vm0, %v5684_v13 }
 0x5df   : > { %12384 = vmatmul.mubr.msk.bf16.vlgmr.msra.gmra.mxu0 %vm2427_vm0, %v5685_v57 }
 0x5e0   : > { %12396 = vmatpush3.bf16.msra.mxu0 %v16175_v14 }
 0x5e1   : > { %12397 = vmatprep.subr.bf16.mxu0 %v16098_v46 }
 0x5e2   : > { %v4672_v21 = vpop.xlane.xlu1 %4671  ;;  %2387 = vrot.lane.b32.xlu1 %v20203_v29, %s14282_s22 }
 0x5e3   : > { %v4946_v6 = vsub.f32 %v16746_v11, %v4672_v21 }
 0x5e4   : > { %12398 = vmatpush3.bf16.msra.mxu0 %v16098_v46  ;;  %v4666_v61 = vpop.xlane.xlu0 %4665 }
 0x5e5   : > { %12411 = vmatprep.subr.bf16.mxu0 %v20304_v22  ;;  %v4944_v29 = vsub.f32 %v16750_v52, %v4666_v61  ;;  %v17074_v52 = vpop.f32.mrf.mxu0 }
 0x5e6   : > { %v4687_v50 = vpop.xlane.xlu1 %4686 }
 0x5e7   : > { %v4951_v14 = vsub.f32 %v16748_v44, %v4687_v50  ;;  %v4182_v21 = vpop.f32.mrf.mxu0 }
 0x5e9   : > { %2389 = vrot.lane.b32.xlu0 %v20196_v48, %s14282_s22  ;;  %v5138_v13 = vmul.f32 1.442695, %v4951_v14  ;;  %v5124_v48 = vmul.f32 1.442695, %v4944_v29  ;;  %v12258_v54 = vpop.f32.mrf.mxu0 }
 0x5ea   : > { %v4675_v63 = vpop.xlane.xlu1 %4674 }
 0x5eb   : > { %v4947_v46 = vsub.f32 %v16767_v45, %v4675_v63  ;;  %13333 = vpow2.f32 %v5138_v13  ;;  %v5128_v45 = vmul.f32 1.442695, %v4946_v6  ;;  %v17080_v13 = vpop.eup %13331 }
 0x5ec   : > { %20305 = vst [vmem:[#allocation59_spill] sm:$0xff] %v17080_v13 }
 0x5ed   : > { %v5130_v44 = vmul.f32 1.442695, %v4947_v46 }
 0x5ee   : > { %v4681_v57 = vpop.xlane.xlu1 %4680 }
 0x5ef   : > { %v4949_v42 = vsub.f32 %v16778_v23, %v4681_v57 }
 0x5f1   : > { %v5134_v58 = vmul.f32 1.442695, %v4949_v42 }
 0x5f2   : > { %v4669_v50 = vpop.xlane.xlu1 %4668  ;;  %v4696_v47 = vpop.xlane.xlu0 %4695 }
 0x5f3   : > { %13335 = vpow2.f32 %v5134_v58  ;;  %v4945_v28 = vsub.f32 %v16784_v51, %v4669_v50  ;;  %v4954_v46 = vsub.f32 %v16790_v20, %v4696_v47 }
 0x5f4   : > { %13337 = vpow2.f32 %v5136_v35 }
 0x5f5   : > { %13339 = vpow2.f32 %v5124_v48  ;;  %v5126_v38 = vmul.f32 1.442695, %v4945_v28  ;;  %v17091_v28 = vmul.f32 0.17677669, %v4182_v21 }
 0x5f6   : > { %13341 = vpow2.f32 %v5130_v44  ;;  %v4708_v23 = vpop.xlane.xlu1 %4707  ;;  %v4702_v11 = vpop.xlane.xlu0 %4701 }
 0x5f7   : > { %13343 = vpow2.f32 %v5126_v38  ;;  %v4956_v42 = vsub.f32 %v16794_v10, %v4702_v11  ;;  %v4958_v61 = vsub.f32 %v16792_v53, %v4708_v23  ;;  %v5144_v38 = vmul.f32 1.442695, %v4954_v46  ;;  %v20313_v46 = vld [vmem:[#allocation56_spill] sm:$0xff] }
 0x5f8   : > { %13345 = vpow2.f32 %v5128_v45  ;;  %v17083_v58 = vpop.eup %13333 }
 0x5f9   : > { %v5148_v63 = vmul.f32 1.442695, %v4956_v42  ;;  %v5152_v29 = vmul.f32 1.442695, %v4958_v61  ;;  %20306 = vst [vmem:[#allocation127_spill] sm:$0xff] %v17083_v58 }
 0x5fa   : > { %v4690_v14 = vpop.xlane.xlu1 %4689  ;;  %v4705_v32 = vpop.xlane.xlu0 %4704 }
 0x5fb   : > { %v4952_v51 = vsub.f32 %v16802_v33, %v4690_v14  ;;  %v4957_v35 = vsub.f32 %v16800_v59, %v4705_v32  ;;  %13347 = vpow2.f32 %v5148_v63  ;;  %v4185_v33 = vpop.f32.mrf.mxu0  ;;  %v4844_v32 = vsel %vm2427_vm0, %v17091_v28, -inf }
 0x5fd   : > { %v5140_v57 = vmul.f32 1.442695, %v4952_v51  ;;  %v5150_v6 = vmul.f32 1.442695, %v4957_v35  ;;  %v17117_v35 = vmul.f32 0.17677669, %v12258_v54 }
 0x5fe   : > { %v4711_v48 = vpop.xlane.xlu1 %4710 }
 0x5ff   : > { %v4959_v53 = vsub.f32 %v16814_v2, %v4711_v48  ;;  %v4693_v10 = vpop.xlane.xlu0 %4692  ;;  %13349 = vpow2.f32 %v5150_v6  ;;  %v17123_v6 = vmul.f32 0.17677669, %v17074_v52  ;;  %v20314_v52 = vld [vmem:[#allocation73_spill] sm:$0xff] }
 0x600   : > { %v17086_v44 = vpop.eup %13335  ;;  %v4953_v59 = vsub.f32 %v16822_v36, %v4693_v10  ;;  %13351 = vpow2.f32 %v5152_v29  ;;  %v17101_v36 = vmul.f32 0.17677669, %v4185_v33  ;;  %v4853_v10 = vsel %vm2427_vm0, %v17117_v35, -inf }
 0x601   : > { %20307 = vst [vmem:[#allocation128_spill] sm:$0xff] %v17086_v44  ;;  %v17089_v50 = vpop.eup %13337  ;;  %v5154_v20 = vmul.f32 1.442695, %v4959_v53  ;;  %v5688_v47 = vpack.c.bf16 %v17086_v44, %v17080_v13  ;;  %13353 = vpow2.f32 %v5140_v57 }
 0x602   : > { %20308 = vst [vmem:[#allocation129_spill] sm:$0xff] %v17089_v50  ;;  %v17095_v45 = vpop.eup %13339  ;;  %v5689_v2 = vpack.c.bf16 %v17083_v58, %v17089_v50  ;;  %v5142_v23 = vmul.f32 1.442695, %v4953_v59  ;;  %v4699_v11 = vpop.xlane.xlu1 %4698  ;;  %v4847_v48 = vsel %vm2427_vm0, %v17101_v36, -inf }
 0x603   : > { %20309 = vst [vmem:[#allocation130_spill] sm:$0xff] %v17095_v45  ;;  %v17099_v42 = vpop.eup %13341  ;;  %13355 = vpow2.f32 %v5154_v20  ;;  %v4955_v21 = vsub.f32 %v16829_v1, %v4699_v11  ;;  %v17104_v61 = vpop.xlane.xlu0 %4731  ;;  %12399 = vmatprep.mubr.msk.bf16.mxu0 %vm2427_vm0, %v5688_v47  ;;  %v4850_v20 = vsel %vm2427_vm0, %v17123_v6, -inf  ;;  %v20315_v11 = vld [vmem:[#allocation72_spill] sm:$0xff] }
 0x604   : > { %20310 = vst [vmem:[#allocation131_spill] sm:$0xff] %v17099_v42  ;;  %v17107_v14 = vpop.eup %13343  ;;  %13357 = vpow2.f32 %v5142_v23  ;;  %12400 = vmatmul.mubr.msk.bf16.vlgmr.msra.gmra.mxu0 %vm2427_vm0, %v5689_v2 }
 0x605   : > { %20311 = vst [vmem:[#allocation132_spill] sm:$0xff] %v17107_v14  ;;  %v17110_v63 = vpop.eup %13345  ;;  %v5146_v51 = vmul.f32 1.442695, %v4955_v21  ;;  %12412 = vmatpush3.bf16.msra.mxu0 %v20304_v22  ;;  %v5686_v1 = vpack.c.bf16 %v17107_v14, %v17095_v45  ;;  %13359 = vpow2.f32 %v5144_v38 }
 0x606   : > { %20312 = vst [vmem:[#allocation133_spill] sm:$0xff] %v17110_v63  ;;  %v5687_v29 = vpack.c.bf16 %v17099_v42, %v17110_v63  ;;  %12413 = vmatprep.subr.bf16.mxu0 %v20313_v46  ;;  %v4726_v57 = vpop.xlane.xlu1 %4725  ;;  %4845 = vmax.xlane.f32.xlu1 %v4844_v32 }
 0x607   : > { %13361 = vpow2.f32 %v5146_v51  ;;  %v4720_v22 = vpop.xlane.xlu0 %4719  ;;  %12391 = vmatprep.mubr.msk.bf16.mxu1 %vm2427_vm0, %v5686_v1  ;;  %v4964_v47 = vsub.f32 %v16840_v39, %v4726_v57 }
 0x608   : > { %4848 = vmax.xlane.f32.xlu0 %v4847_v48  ;;  %12392 = vmatmul.mubr.msk.bf16.vlgmr.msra.gmra.mxu1 %vm2427_vm0, %v5687_v29  ;;  %v4962_v54 = vsub.f32 %v16844_v24, %v4720_v22  ;;  %v17139_v24 = vpop.eup %13347 }
 0x609   : > { %12404 = vmatpush3.bf16.msra.mxu1 %v16215_v49  ;;  %12414 = vmatpush3.bf16.msra.mxu0 %v20313_v46  ;;  %v5164_v22 = vmul.f32 1.442695, %v4964_v47 }
 0x60a   : > { %12405 = vmatprep.subr.bf16.mxu1 %v16268_v4  ;;  %12427 = vmatprep.subr.bf16.mxu0 %v20314_v52  ;;  %v4714_v53 = vpop.xlane.xlu1 %4713  ;;  %v5160_v2 = vmul.f32 1.442695, %v4962_v54 }
 0x60b   : > { %v4960_v33 = vsub.f32 %v16850_v30, %v4714_v53  ;;  %4854 = vmax.xlane.f32.xlu1 %v4853_v10  ;;  %v4735_v59 = vpop.xlane.xlu0 %4734 }
 0x60c   : > { %4851 = vmax.xlane.f32.xlu0 %v4850_v20  ;;  %v17141_v49 = vpop.eup %13349  ;;  %v4967_v30 = vsub.f32 %v16854_v34, %v4735_v59  ;;  %13363 = vpow2.f32 %v5160_v2  ;;  %v20320_v2 = vld [vmem:[#allocation76_spill] sm:$0xff] }
 0x60d   : > { %12406 = vmatpush3.bf16.msra.mxu1 %v16268_v4  ;;  %v17145_v38 = vpop.eup %13351  ;;  %v5156_v23 = vmul.f32 1.442695, %v4960_v33  ;;  %v5692_v51 = vpack.c.bf16 %v17141_v49, %v17139_v24  ;;  %v4966_v4 = vsub.f32 %v16834_v18, %v17104_v61 }
 0x60e   : > { %12419 = vmatprep.subr.bf16.mxu1 %v20315_v11  ;;  %v4723_v21 = vpop.xlane.xlu1 %4722  ;;  %v17151_v32 = vpop.eup %13353 }
 0x60f   : > { %20316 = vst [vmem:[#allocation56_spill] sm:$0xff] %v17151_v32  ;;  %v4963_v1 = vsub.f32 %v16858_v7, %v4723_v21  ;;  %v4717_v29 = vpop.xlane.xlu0 %4716  ;;  %12415 = vmatprep.mubr.msk.bf16.mxu0 %vm2427_vm0, %v5692_v51  ;;  %13365 = vpow2.f32 %v5156_v23  ;;  %v5170_v7 = vmul.f32 1.442695, %v4967_v30  ;;  %v5168_v59 = vmul.f32 1.442695, %v4966_v4  ;;  %v20321_v30 = vld [vmem:[#allocation63_spill] sm:$0xff] }
 0x610   : > { %v17154_v39 = vpop.eup %13355  ;;  %v4961_v46 = vsub.f32 %v16862_v40, %v4717_v29  ;;  %v20322_v21 = vld [vmem:[#allocation90_spill] sm:$0xff] }
 0x611   : > { %v17160_v34 = vpop.eup %13357  ;;  %v5693_v57 = vpack.c.bf16 %v17154_v39, %v17145_v38  ;;  %v5162_v48 = vmul.f32 1.442695, %v4963_v1 }
 0x612   : > { %20317 = vst [vmem:[#allocation73_spill] sm:$0xff] %v17160_v34  ;;  %v5158_v54 = vmul.f32 1.442695, %v4961_v46  ;;  %v4729_v53 = vpop.xlane.xlu1 %4728  ;;  %v5690_v10 = vpack.c.bf16 %v17160_v34, %v17151_v32  ;;  %v17166_v18 = vpop.eup %13359  ;;  %v20323_v46 = vld [vmem:[#allocation80_spill] sm:$0xff]  ;;  %v20343_v32 = vld [vmem:[#allocation53_spill] sm:$0xff] }
 0x613   : > { %20318 = vst [vmem:[#allocation72_spill] sm:$0xff] %v17166_v18  ;;  %13367 = vpow2.f32 %v5162_v48  ;;  %v4965_v40 = vsub.f32 %v16866_v16, %v4729_v53  ;;  %v4756_v61 = vpop.xlane.xlu0 %4755  ;;  %12416 = vmatmul.mubr.msk.bf16.vlgmr.msra.gmra.mxu0 %vm2427_vm0, %v5693_v57 }
 0x614   : > { %v17170_v33 = vpop.eup %13361  ;;  %13369 = vpow2.f32 %v5158_v54  ;;  %12407 = vmatprep.mubr.msk.bf16.mxu1 %vm2427_vm0, %v5690_v10  ;;  %12428 = vmatpush3.bf16.msra.mxu0 %v20314_v52 }
 0x615   : > { %20319 = vst [vmem:[#allocation134_spill] sm:$0xff] %v17170_v33  ;;  %v5691_v20 = vpack.c.bf16 %v17170_v33, %v17166_v18  ;;  %13371 = vpow2.f32 %v5164_v22  ;;  %v5166_v47 = vmul.f32 1.442695, %v4965_v40  ;;  %12429 = vmatprep.subr.bf16.mxu0 %v20320_v2  ;;  %v20340_v18 = vld [vmem:[#allocation71_spill] sm:$0xff] }
 0x616   : > { %13373 = vpow2.f32 %v5170_v7  ;;  %v4750_v16 = vpop.xlane.xlu1 %4749 }
 0x617   : > { %13375 = vpow2.f32 %v5166_v47  ;;  %v4744_v23 = vpop.xlane.xlu0 %4743  ;;  %12408 = vmatmul.mubr.msk.bf16.vlgmr.msra.gmra.mxu1 %vm2427_vm0, %v5691_v20  ;;  %v4972_v4 = vsub.f32 %v16874_v5, %v4750_v16  ;;  %v20324_v16 = vld [vmem:[#allocation40_spill] sm:$0xff] }
 0x618   : > { %13377 = vpow2.f32 %v5168_v59  ;;  %12420 = vmatpush3.bf16.msra.mxu1 %v20315_v11  ;;  %12430 = vmatpush3.bf16.msra.mxu0 %v20320_v2  ;;  %v4970_v52 = vsub.f32 %v16878_v41, %v4744_v23 }
 0x619   : > { %12421 = vmatprep.subr.bf16.mxu1 %v20321_v30  ;;  %12443 = vmatprep.subr.bf16.mxu0 %v20322_v21  ;;  %v17189_v57 = vpop.eup %13363  ;;  %v5180_v59 = vmul.f32 1.442695, %v4972_v4 }
 0x61a   : > { %v4738_v51 = vpop.xlane.xlu1 %4737  ;;  %v5176_v11 = vmul.f32 1.442695, %v4970_v52 }
 0x61b   : > { %v4968_v1 = vsub.f32 %v16882_v3, %v4738_v51  ;;  %v4759_v29 = vpop.xlane.xlu0 %4758 }
 0x61c   : > { %2391 = vrot.lane.b32.xlu1 %v20248_v26, %s14282_s22  ;;  %12422 = vmatpush3.bf16.msra.mxu1 %v20321_v30  ;;  %v4975_v22 = vsub.f32 %v16886_v56, %v4759_v29  ;;  %v17192_v7 = vpop.eup %13365  ;;  %v4974_v26 = vsub.f32 %v16870_v0, %v4756_v61  ;;  %13379 = vpow2.f32 %v5176_v11  ;;  %v20325_v11 = vld [vmem:[#allocation91_spill] sm:$0xff] }
 0x61d   : > { %12435 = vmatprep.subr.bf16.mxu1 %v20323_v46  ;;  %v5172_v41 = vmul.f32 1.442695, %v4968_v1 }
 0x61e   : > { %v4747_v48 = vpop.xlane.xlu1 %4746  ;;  %v5186_v47 = vmul.f32 1.442695, %v4975_v22  ;;  %v5184_v30 = vmul.f32 1.442695, %v4974_v26 }
 0x61f   : > { %v4971_v3 = vsub.f32 %v16890_v8, %v4747_v48  ;;  %v4741_v54 = vpop.xlane.xlu0 %4740  ;;  %13381 = vpow2.f32 %v5172_v41  ;;  %v20326_v48 = vld [vmem:[#allocation101_spill] sm:$0xff] }
 0x620   : > { %v17195_v53 = vpop.eup %13367  ;;  %v4969_v5 = vsub.f32 %v16894_v43, %v4741_v54 }
 0x621   : > { %v17199_v10 = vpop.eup %13369  ;;  %v5695_v40 = vpack.c.bf16 %v17195_v53, %v17189_v57  ;;  %v5178_v56 = vmul.f32 1.442695, %v4971_v3 }
 0x622   : > { %v17203_v20 = vpop.eup %13371  ;;  %v5174_v8 = vmul.f32 1.442695, %v4969_v5  ;;  %v4753_v2 = vpop.xlane.xlu1 %4752  ;;  %2393 = vrot.lane.b32.xlu0 %v20324_v16, %s14282_s22  ;;  %v5694_v0 = vpack.c.bf16 %v17199_v10, %v17192_v7 }
 0x623   : > { %v17209_v43 = vpop.eup %13373  ;;  %13383 = vpow2.f32 %v5178_v56  ;;  %v4973_v61 = vsub.f32 %v16899_v17, %v4753_v2  ;;  %v4780_v23 = vpop.xlane.xlu0 %4779  ;;  %v20328_v56 = vld [vmem:[#allocation114_spill] sm:$0xff] }
 0x624   : > { %v17212_v52 = vpop.eup %13375  ;;  %13385 = vpow2.f32 %v5174_v8  ;;  %12423 = vmatprep.mubr.msk.bf16.mxu1 %vm2427_vm0, %v5694_v0  ;;  %v17232_v5 = vpop.f32.mrf.mxu1  ;;  %v20329_v8 = vld [vmem:[#allocation122_spill] sm:$0xff]  ;;  %v20330_v0 = vld [vmem:[#allocation31_spill] sm:$0xff] }
 0x625   : > { %v17215_v51 = vpop.eup %13377  ;;  %13387 = vpow2.f32 %v5180_v59  ;;  %v5182_v1 = vmul.f32 1.442695, %v4973_v61  ;;  %12424 = vmatmul.mubr.msk.bf16.vlgmr.msra.gmra.mxu1 %vm2427_vm0, %v5695_v40  ;;  %v5696_v29 = vpack.c.bf16 %v17212_v52, %v17203_v20 }
 0x626   : > { %v5697_v4 = vpack.c.bf16 %v17209_v43, %v17215_v51  ;;  %13389 = vpow2.f32 %v5186_v47  ;;  %12436 = vmatpush3.bf16.msra.mxu1 %v20323_v46  ;;  %v4774_v17 = vpop.xlane.xlu1 %4773  ;;  %v20327_v46 = vld [vmem:[#allocation115_spill] sm:$0xff] }
 0x627   : > { %13391 = vpow2.f32 %v5182_v1  ;;  %12437 = vmatprep.subr.bf16.mxu1 %v20325_v11  ;;  %v4768_v41 = vpop.xlane.xlu0 %4767  ;;  %12431 = vmatprep.mubr.msk.bf16.mxu0 %vm2427_vm0, %v5696_v29  ;;  %v4980_v40 = vsub.f32 %v16909_v15, %v4774_v17  ;;  %v20331_v1 = vld [vmem:[#allocation93_spill] sm:$0xff]  ;;  %v20332_v29 = vld [vmem:[#allocation119_spill] sm:$0xff] }
 0x628   : > { %13393 = vpow2.f32 %v5184_v30  ;;  %12432 = vmatmul.mubr.msk.bf16.vlgmr.msra.gmra.mxu0 %vm2427_vm0, %v5697_v4  ;;  %v4978_v22 = vsub.f32 %v16914_v19, %v4768_v41  ;;  %v4982_v15 = vsub.f32 %v20331_v1, %v4780_v23 }
 0x629   : > { %12444 = vmatpush3.bf16.msra.mxu0 %v20322_v21  ;;  %v17236_v19 = vpop.eup %13379 }
 0x62a   : > { %12438 = vmatpush3.bf16.msra.mxu1 %v20325_v11  ;;  %12445 = vmatprep.subr.bf16.mxu0 %v20326_v48  ;;  %v4762_v3 = vpop.xlane.xlu1 %4761  ;;  %v5192_v59 = vmul.f32 1.442695, %v4978_v22  ;;  %v4243_v11 = vpop.f32.mrf.mxu1  ;;  %v5196_v22 = vmul.f32 1.442695, %v4980_v40  ;;  %v5200_v40 = vmul.f32 1.442695, %v4982_v15 }
 0x62b   : > { %12451 = vmatprep.subr.bf16.mxu1 %v20327_v46  ;;  %v4976_v54 = vsub.f32 %v16918_v31, %v4762_v3  ;;  %v4783_v26 = vpop.xlane.xlu0 %4782 }
 0x62c   : > { %v4983_v47 = vsub.f32 %v20328_v56, %v4783_v26  ;;  %v17240_v16 = vpop.eup %13381  ;;  %13395 = vpow2.f32 %v5192_v59 }
 0x62d   : > { %12446 = vmatpush3.bf16.msra.mxu0 %v20326_v48  ;;  %v5188_v21 = vmul.f32 1.442695, %v4976_v54 }
 0x62e   : > { %12459 = vmatprep.subr.bf16.mxu0 %v20329_v8  ;;  %v4771_v2 = vpop.xlane.xlu1 %4770  ;;  %v5202_v54 = vmul.f32 1.442695, %v4983_v47 }
 0x62f   : > { %v4979_v31 = vsub.f32 %v20330_v0, %v4771_v2  ;;  %v4765_v61 = vpop.xlane.xlu0 %4764  ;;  %13397 = vpow2.f32 %v5188_v21  ;;  %v20333_v0 = vld [vmem:[#allocation52_spill] sm:$0xff]  ;;  %v12266_v21 = vpop.f32.mrf.mxu1 }
 0x630   : > { %v17243_v30 = vpop.eup %13383  ;;  %v4977_v4 = vsub.f32 %v20332_v29, %v4765_v61  ;;  %v17292_v50 = vmul.f32 0.17677669, %v12266_v21 }
 0x631   : > { %v17247_v17 = vpop.eup %13385  ;;  %v5699_v41 = vpack.c.bf16 %v17243_v30, %v17236_v19  ;;  %v5194_v48 = vmul.f32 1.442695, %v4979_v31 }
 0x632   : > { %v17251_v3 = vpop.eup %13387  ;;  %v5190_v26 = vmul.f32 1.442695, %v4977_v4  ;;  %v4777_v56 = vpop.xlane.xlu1 %4776  ;;  %v5698_v23 = vpack.c.bf16 %v17247_v17, %v17240_v16 }
 0x633   : > { %v17255_v2 = vpop.eup %13389  ;;  %13399 = vpow2.f32 %v5194_v48  ;;  %v4981_v61 = vsub.f32 %v20333_v0, %v4777_v56  ;;  %v17258_v1 = vpop.xlane.xlu0 %4803  ;;  %v20335_v48 = vld [vmem:[#allocation112_spill] sm:$0xff]  ;;  %v20338_v0 = vld [vmem:[#allocation121_spill] sm:$0xff] }
 0x634   : > { %v17260_v29 = vpop.eup %13391  ;;  %13401 = vpow2.f32 %v5190_v26  ;;  %12439 = vmatprep.mubr.msk.bf16.mxu1 %vm2427_vm0, %v5698_v23  ;;  %v17278_v23 = vmul.f32 0.17677669, %v4243_v11 }
 0x635   : > { %v17263_v59 = vpop.eup %13393  ;;  %13403 = vpow2.f32 %v5196_v22  ;;  %v5198_v47 = vmul.f32 1.442695, %v4981_v61  ;;  %12440 = vmatmul.mubr.msk.bf16.vlgmr.msra.gmra.mxu1 %vm2427_vm0, %v5699_v41  ;;  %v5700_v31 = vpack.c.bf16 %v17260_v29, %v17251_v3  ;;  %v4246_v41 = vpop.f32.mrf.mxu1  ;;  %v20336_v22 = vld [vmem:[#allocation33_spill] sm:$0xff] }
 0x636   : > { %20334 = vst [vmem:[#allocation76_spill] sm:$0xff] %v17263_v59  ;;  %v5701_v4 = vpack.c.bf16 %v17255_v2, %v17263_v59  ;;  %13405 = vpow2.f32 %v5202_v54  ;;  %12452 = vmatpush3.bf16.msra.mxu1 %v20327_v46  ;;  %v4792_v15 = vpop.xlane.xlu1 %4791  ;;  %v20337_v54 = vld [vmem:[#allocation120_spill] sm:$0xff] }
 0x637   : > { %13407 = vpow2.f32 %v5198_v47  ;;  %12453 = vmatprep.subr.bf16.mxu1 %v20335_v48  ;;  %v4807_v26 = vpop.xlane.xlu0 %4806  ;;  %12447 = vmatprep.mubr.msk.bf16.mxu0 %vm2427_vm0, %v5700_v31  ;;  %v4986_v56 = vsub.f32 %v20336_v22, %v4792_v15  ;;  %v17281_v47 = vmul.f32 0.17677669, %v4246_v41  ;;  %v20342_v15 = vld [vmem:[#allocation42_spill] sm:$0xff] }
 0x638   : > { %13409 = vpow2.f32 %v5200_v40  ;;  %12448 = vmatmul.mubr.msk.bf16.vlgmr.msra.gmra.mxu0 %vm2427_vm0, %v5701_v4  ;;  %v20339_v40 = vld [vmem:[#allocation74_spill] sm:$0xff]  ;;  %v4991_v33 = vsub.f32 %v20340_v18, %v4807_v26  ;;  %v4856_v18 = vsel %vm2427_vm0, %v17278_v23, -inf }
 0x639   : > { %12460 = vmatpush3.bf16.msra.mxu0 %v20329_v8  ;;  %v5208_v4 = vmul.f32 1.442695, %v4986_v56  ;;  %v17286_v8 = vpop.eup %13395  ;;  %v20345_v41 = vld [vmem:[#allocation86_spill] sm:$0xff]  ;;  %v17300_v56 = vmul.f32 0.17677669, %v17232_v5  ;;  %v4859_v21 = vsel %vm2427_vm0, %v17281_v47, -inf }
 0x63a   : > { %12454 = vmatpush3.bf16.msra.mxu1 %v20335_v48  ;;  %12461 = vmatprep.subr.bf16.mxu0 %v20337_v54  ;;  %v4798_v46 = vpop.xlane.xlu1 %4797  ;;  %20341 = vst [vmem:[#allocation63_spill] sm:$0xff] %v17286_v8 }
 0x63b   : > { %12467 = vmatprep.subr.bf16.mxu1 %v20338_v0  ;;  %v4795_v61 = vpop.xlane.xlu0 %4794  ;;  %v4988_v48 = vsub.f32 %v20342_v15, %v4798_v46  ;;  %13411 = vpow2.f32 %v5208_v4 }
 0x63c   : > { %v4987_v31 = vsub.f32 %v20339_v40, %v4795_v61  ;;  %v17290_v34 = vpop.eup %13397  ;;  %v20348_v40 = vld [vmem:[#allocation70_spill] sm:$0xff] }
 0x63d   : > { %12462 = vmatpush3.bf16.msra.mxu0 %v20337_v54  ;;  %20344 = vst [vmem:[#allocation90_spill] sm:$0xff] %v17290_v34  ;;  %v20347_v54 = vld [vmem:[#allocation109_spill] sm:$0xff]  ;;  %v5212_v44 = vmul.f32 1.442695, %v4988_v48  ;;  %v4862_v48 = vsel %vm2427_vm0, %v17300_v56, -inf }
 0x63e   : > { %v5210_v22 = vmul.f32 1.442695, %v4987_v31  ;;  %12475 = vmatprep.subr.bf16.mxu0 %v20343_v32  ;;  %v4786_v11 = vpop.xlane.xlu1 %4785  ;;  %v4990_v46 = vsub.f32 %v20347_v54, %v17258_v1 }
 0x63f   : > { %v4984_v58 = vsub.f32 %v20345_v41, %v4786_v11  ;;  %v4789_v61 = vpop.xlane.xlu0 %4788  ;;  %v5218_v41 = vmul.f32 1.442695, %v4991_v33  ;;  %v4865_v33 = vsel %vm2427_vm0, %v17292_v50, -inf }
 0x640   : > { %v17297_v26 = vpop.eup %13399  ;;  %v4985_v31 = vsub.f32 %v20348_v40, %v4789_v61  ;;  %4857 = vmax.xlane.f32.xlu1 %v4856_v18  ;;  %13413 = vpow2.f32 %v5210_v22  ;;  %v20352_v40 = vld [vmem:[#allocation61_spill] sm:$0xff]  ;;  %v5216_v4 = vmul.f32 1.442695, %v4990_v46 }
 0x641   : > { %20346 = vst [vmem:[#allocation80_spill] sm:$0xff] %v17297_v26  ;;  %v17307_v15 = vpop.eup %13401  ;;  %v5703_v11 = vpack.c.bf16 %v17297_v26, %v17286_v8  ;;  %v5204_v13 = vmul.f32 1.442695, %v4984_v58  ;;  %4860 = vmax.xlane.f32.xlu0 %v4859_v21 }
 0x642   : > { %20349 = vst [vmem:[#allocation40_spill] sm:$0xff] %v17307_v15  ;;  %v17311_v5 = vpop.eup %13403  ;;  %v5206_v1 = vmul.f32 1.442695, %v4985_v31  ;;  %v4801_v54 = vpop.xlane.xlu1 %4800  ;;  %v5702_v61 = vpack.c.bf16 %v17307_v15, %v17290_v34 }
 0x643   : > { %20350 = vst [vmem:[#allocation91_spill] sm:$0xff] %v17311_v5  ;;  %v17315_v18 = vpop.eup %13405  ;;  %13415 = vpow2.f32 %v5204_v13  ;;  %v4989_v63 = vsub.f32 %v20352_v40, %v4801_v54  ;;  %v4822_v42 = vpop.xlane.xlu0 %4821  ;;  %v20359_v40 = vld [vmem:[#allocation58_spill] sm:$0xff] }
 0x644   : > { %20351 = vst [vmem:[#allocation101_spill] sm:$0xff] %v17315_v18  ;;  %v17320_v58 = vpop.eup %13407  ;;  %13417 = vpow2.f32 %v5206_v1  ;;  %4866 = vmax.xlane.f32.xlu1 %v4865_v33  ;;  %12455 = vmatprep.mubr.msk.bf16.mxu1 %vm2427_vm0, %v5702_v61  ;;  %v20355_v1 = vld [vmem:[#allocation123_spill] sm:$0xff] }
 0x645   : > { %20353 = vst [vmem:[#allocation115_spill] sm:$0xff] %v17320_v58  ;;  %v17325_v22 = vpop.eup %13409  ;;  %13419 = vpow2.f32 %v5218_v41  ;;  %v5214_v13 = vmul.f32 1.442695, %v4989_v63  ;;  %12456 = vmatmul.mubr.msk.bf16.vlgmr.msra.gmra.mxu1 %vm2427_vm0, %v5703_v11  ;;  %4863 = vmax.xlane.f32.xlu0 %v4862_v48  ;;  %v5704_v31 = vpack.c.bf16 %v17320_v58, %v17311_v5  ;;  %v20356_v63 = vld [vmem:[#allocation87_spill] sm:$0xff]  ;;  %v20357_v41 = vld [vmem:[#allocation113_spill] sm:$0xff] }
 0x646   : > { %20354 = vst [vmem:[#allocation114_spill] sm:$0xff] %v17325_v22  ;;  %v5705_v46 = vpack.c.bf16 %v17315_v18, %v17325_v22  ;;  %13421 = vpow2.f32 %v5212_v44  ;;  %12468 = vmatpush3.bf16.msra.mxu1 %v20338_v0  ;;  %v4816_v21 = vpop.xlane.xlu1 %4815  ;;  %v20358_v44 = vld [vmem:[#allocation57_spill] sm:$0xff]  ;;  %v20366_v18 = vld [vmem:[#allocation78_spill] sm:$0xff] }
 0x647   : > { %13423 = vpow2.f32 %v5214_v13  ;;  %12469 = vmatprep.subr.bf16.mxu1 %v20355_v1  ;;  %v4819_v54 = vpop.xlane.xlu0 %4818  ;;  %12463 = vmatprep.mubr.msk.bf16.mxu0 %vm2427_vm0, %v5704_v31  ;;  %v4994_v11 = vsub.f32 %v20356_v63, %v4816_v21  ;;  %v20360_v13 = vld [vmem:[#allocation107_spill] sm:$0xff] }
 0x648   : > { %13425 = vpow2.f32 %v5216_v4  ;;  %12464 = vmatmul.mubr.msk.bf16.vlgmr.msra.gmra.mxu0 %vm2427_vm0, %v5705_v46  ;;  %v4995_v61 = vsub.f32 %v20357_v41, %v4819_v54  ;;  %v17344_v21 = vpop.eup %13411 }
 0x649   : > { %12476 = vmatpush3.bf16.msra.mxu0 %v20343_v32  ;;  %v5224_v48 = vmul.f32 1.442695, %v4994_v11  ;;  %20361 = vst [vmem:[#allocation122_spill] sm:$0xff] %v17344_v21  ;;  %v20363_v32 = vld [vmem:[#allocation124_spill] sm:$0xff]  ;;  %v4996_v11 = vsub.f32 %v20366_v18, %v4822_v42  ;;  %v20367_v42 = vld [vmem:[#allocation97_spill] sm:$0xff] }
 0x64a   : > { %12470 = vmatpush3.bf16.msra.mxu1 %v20355_v1  ;;  %12477 = vmatprep.subr.bf16.mxu0 %v20358_v44  ;;  %v4828_v0 = vpop.xlane.xlu1 %4827  ;;  %v5226_v4 = vmul.f32 1.442695, %v4995_v61 }
 0x64b   : > { %12483 = vmatprep.subr.bf16.mxu1 %v20359_v40  ;;  %v4813_v33 = vpop.xlane.xlu0 %4812  ;;  %13427 = vpow2.f32 %v5224_v48  ;;  %v4998_v18 = vsub.f32 %v20367_v42, %v4828_v0  ;;  %v20369_v42 = vld [vmem:[#allocation65_spill] sm:$0xff] }
 0x64c   : > { %v4993_v31 = vsub.f32 %v20360_v13, %v4813_v33  ;;  %13429 = vpow2.f32 %v5226_v4 }
 0x64d   : > { %12478 = vmatpush3.bf16.msra.mxu0 %v20358_v44  ;;  %v17346_v63 = vpop.eup %13413 }
 0x64e   : > { %v5222_v46 = vmul.f32 1.442695, %v4993_v31  ;;  %v4810_v54 = vpop.xlane.xlu1 %4809  ;;  %20362 = vst [vmem:[#allocation31_spill] sm:$0xff] %v17346_v63 }
 0x64f   : > { %v4992_v1 = vsub.f32 %v20363_v32, %v4810_v54  ;;  %v5707_v54 = vpack.c.bf16 %v17346_v63, %v17344_v21 }
 0x650   : > { %v17349_v41 = vpop.eup %13415  ;;  %13431 = vpow2.f32 %v5222_v46 }
 0x651   : > { %20364 = vst [vmem:[#allocation93_spill] sm:$0xff] %v17349_v41  ;;  %v17351_v22 = vpop.eup %13417  ;;  %v5220_v33 = vmul.f32 1.442695, %v4992_v1  ;;  %v5228_v1 = vmul.f32 1.442695, %v4996_v11 }
 0x652   : > { %20365 = vst [vmem:[#allocation119_spill] sm:$0xff] %v17351_v22  ;;  %v17354_v61 = vpop.eup %13419  ;;  %v4831_v44 = vpop.xlane.xlu1 %4830  ;;  %v5706_v13 = vpack.c.bf16 %v17351_v22, %v17349_v41  ;;  %v20368_v41 = vld [vmem:[#allocation45_spill] sm:$0xff] }
 0x653   : > { %v17358_v31 = vpop.eup %13421  ;;  %13433 = vpow2.f32 %v5220_v33  ;;  %v4999_v48 = vsub.f32 %v17014_v9, %v4831_v44 }
 0x654   : > { %v17363_v32 = vpop.eup %13423  ;;  %12471 = vmatprep.mubr.msk.bf16.mxu1 %vm2427_vm0, %v5706_v13  ;;  %v4834_v4 = vpop.xlane.xlu0 %4833  ;;  %13435 = vpow2.f32 %v5228_v1 }
 0x655   : > { %v17367_v46 = vpop.eup %13425  ;;  %2395 = vrot.lane.b32.xlu1 %v20368_v41, %s14282_s22  ;;  %12472 = vmatmul.mubr.msk.bf16.vlgmr.msra.gmra.mxu1 %vm2427_vm0, %v5707_v54  ;;  %v5708_v33 = vpack.c.bf16 %v17363_v32, %v17358_v31  ;;  %v5234_v44 = vmul.f32 1.442695, %v4999_v48  ;;  %v5000_v0 = vsub.f32 %v17023_v25, %v4834_v4  ;;  %v5232_v41 = vmul.f32 1.442695, %v4998_v18  ;;  %v20370_v48 = vld [vmem:[#allocation43_spill] sm:$0xff] }
 0x656   : > { %v5709_v9 = vpack.c.bf16 %v17354_v61, %v17367_v46  ;;  %12484 = vmatpush3.bf16.msra.mxu1 %v20359_v40  ;;  %v4825_v13 = vpop.xlane.xlu1 %4824 }
 0x657   : > { %12485 = vmatprep.subr.bf16.mxu1 %v20369_v42  ;;  %v4997_v11 = vsub.f32 %v17019_v62, %v4825_v13  ;;  %12479 = vmatprep.mubr.msk.bf16.mxu0 %vm2427_vm0, %v5708_v33  ;;  %13437 = vpow2.f32 %v5234_v44  ;;  %v5236_v63 = vmul.f32 1.442695, %v5000_v0  ;;  %v12273_v13 = vpop.f32.mrf.mxu0 }
 0x658   : > { %12480 = vmatmul.mubr.msk.bf16.vlgmr.msra.gmra.mxu0 %vm2427_vm0, %v5709_v9  ;;  %v4840_v54 = vpop.xlane.xlu0 %4839  ;;  %v17386_v4 = vpop.eup %13427  ;;  %v17429_v8 = vmul.f32 0.17677669, %v12273_v13 }
 0x659   : > { %v5230_v21 = vmul.f32 1.442695, %v4997_v11  ;;  %v17388_v33 = vpop.eup %13429 }
 0x65a   : > { %12486 = vmatpush3.bf16.msra.mxu1 %v20369_v42  ;;  %v4837_v40 = vpop.xlane.xlu1 %4836 }
 0x65b   : > { %13439 = vpow2.f32 %v5230_v21  ;;  %v5001_v25 = vsub.f32 %v17032_v37, %v4837_v40  ;;  %2397 = vrot.lane.b32.xlu0 %v20370_v48, %s14282_s22  ;;  %v5711_v21 = vpack.c.bf16 %v17388_v33, %v17386_v4 }
 0x65c   : > { %13441 = vpow2.f32 %v5232_v41  ;;  %v4843_v62 = vpop.xlane.xlu0 %4842 }
 0x65d   : > { %v5238_v18 = vmul.f32 1.442695, %v5001_v25  ;;  %13443 = vpow2.f32 %v5236_v63  ;;  %v17390_v1 = vpop.eup %13431  ;;  %v4304_v25 = vpop.f32.mrf.mxu0 }
 0x65e   : > { %v2388_v0 = vpop.permute.xlu1 %2387  ;;  %v17421_v22 = vmul.f32 0.17677669, %v4304_v25  ;;  %v4874_v25 = vsel %vm2427_vm0, %v17429_v8, -inf }
 0x65f   : > { %13445 = vpow2.f32 %v5238_v18 }
 0x660   : > { %v17392_v9 = vpop.eup %13433  ;;  %v2390_v44 = vpop.permute.xlu0 %2389 }
 0x661   : > { %12491 = vmatprep.subr.bf16.mxu0 %v2390_v44  ;;  %v5710_v37 = vpack.c.bf16 %v17390_v1, %v17392_v9  ;;  %v17400_v63 = vpop.eup %13435 }
 0x662   : > { %12492 = vmatpush3.bf16.msra.mxu0 %v2390_v44 }
 0x663   : > { %12487 = vmatprep.mubr.msk.bf16.mxu1 %vm2427_vm0, %v5710_v37  ;;  %12493 = vmatprep.subr.bf16.mxu0 %v2388_v0 }
 0x664   : > { %12488 = vmatmul.mubr.msk.bf16.vlgmr.msra.gmra.mxu1 %vm2427_vm0, %v5711_v21  ;;  %v17402_v42 = vpop.eup %13437  ;;  %v12274_v21 = vpop.f32.mrf.mxu0 }
 0x665   : > { %v17425_v58 = vmul.f32 0.17677669, %v12274_v21  ;;  %v5003_v21 = vsub.f32 %v17036_v27, %v4843_v62 }
 0x666   : > { %12494 = vmatpush3.bf16.msra.mxu0 %v2388_v0  ;;  %v4307_v0 = vpop.f32.mrf.mxu0 }
 0x667   : > { %v17423_v5 = vmul.f32 0.17677669, %v4307_v0  ;;  %v5002_v0 = vsub.f32 %v17027_v60, %v4840_v54  ;;  %v5242_v26 = vmul.f32 1.442695, %v5003_v21 }
 0x668   : > { %v17404_v11 = vpop.eup %13439 }
 0x669   : > { %v17406_v41 = vpop.eup %13441  ;;  %v5712_v40 = vpack.c.bf16 %v17404_v11, %v17400_v63  ;;  %v5240_v13 = vmul.f32 1.442695, %v5002_v0  ;;  %13447 = vpow2.f32 %v5242_v26 }
 0x66a   : > { %v5713_v48 = vpack.c.bf16 %v17402_v42, %v17406_v41  ;;  %v17412_v18 = vpop.eup %13443 }
 0x66b   : > { %12495 = vmatprep.mubr.msk.bf16.mxu0 %vm2427_vm0, %v5712_v40  ;;  %v4868_v40 = vsel %vm2427_vm0, %v17421_v22, -inf  ;;  %13449 = vpow2.f32 %v5240_v13 }
 0x66c   : > { %v17415_v44 = vpop.eup %13445  ;;  %12496 = vmatmul.mubr.msk.bf16.vlgmr.msra.gmra.mxu0 %vm2427_vm0, %v5713_v48  ;;  %v4871_v48 = vsel %vm2427_vm0, %v17423_v5, -inf }
 0x66d   : > { %v5714_v37 = vpack.c.bf16 %v17415_v44, %v17412_v18 }
 0x66f   : > { %12503 = vmatprep.mubr.msk.bf16.mxu1 %vm2427_vm0, %v5714_v37  ;;  %v4877_v37 = vsel %vm2427_vm0, %v17425_v58, -inf }
 0x676   : > { %v17445_v26 = vpop.eup %13447 }
 0x679   : > { %4869 = vmax.xlane.f32.xlu1 %v4868_v40  ;;  %v20371_v40 = vld [vmem:[#allocation50_spill] sm:$0xff] }
 0x67a   : > { %4872 = vmax.xlane.f32.xlu0 %v4871_v48 }
 0x67d   : > { %4878 = vmax.xlane.f32.xlu1 %v4877_v37 }
 0x67e   : > { %4875 = vmax.xlane.f32.xlu0 %v4874_v25  ;;  %v20372_v25 = vld [vmem:[#allocation54_spill] sm:$0xff] }
 0x68e   : > { %2399 = vrot.lane.b32.xlu1 %v20371_v40, %s14282_s22 }
 0x68f   : > { %v4846_v34 = vpop.xlane.xlu1 %4845 }
 0x690   : > { %v5004_v48 = vsub.f32 %v17091_v28, %v4846_v34  ;;  %v17447_v28 = vpop.eup %13449  ;;  %v12281_v34 = vpop.f32.mrf.mxu1 }
 0x691   : > { %v4849_v15 = vpop.xlane.xlu0 %4848 }
 0x692   : > { %v5244_v37 = vmul.f32 1.442695, %v5004_v48  ;;  %v5005_v45 = vsub.f32 %v17101_v36, %v4849_v15 }
 0x694   : > { %v5246_v14 = vmul.f32 1.442695, %v5005_v45  ;;  %2401 = vrot.lane.b32.xlu0 %v20372_v25, %s14282_s22  ;;  %13451 = vpow2.f32 %v5244_v37  ;;  %v4855_v60 = vpop.xlane.xlu1 %4854  ;;  %v5715_v45 = vpack.c.bf16 %v17445_v26, %v17447_v28 }
 0x695   : > { %v4852_v27 = vpop.xlane.xlu0 %4851 }
 0x696   : > { %13453 = vpow2.f32 %v5246_v14  ;;  %v4365_v14 = vpop.f32.mrf.mxu1 }
 0x697   : > { %v17459_v40 = vmul.f32 0.17677669, %v4365_v14 }
 0x698   : > { %v2392_v62 = vpop.permute.xlu1 %2391  ;;  %v12282_v0 = vpop.f32.mrf.mxu1 }
 0x699   : > { %v2394_v54 = vpop.permute.xlu0 %2393  ;;  %v17463_v37 = vmul.f32 0.17677669, %v12282_v0  ;;  %v4880_v25 = vsel %vm2427_vm0, %v17459_v40, -inf  ;;  %v5007_v0 = vsub.f32 %v17117_v35, %v4855_v60 }
 0x69a   : > { %12499 = vmatprep.subr.bf16.mxu1 %v2394_v54  ;;  %v4368_v13 = vpop.f32.mrf.mxu1 }
 0x69b   : > { %12500 = vmatpush3.bf16.msra.mxu1 %v2394_v54  ;;  %v17461_v48 = vmul.f32 0.17677669, %v4368_v13  ;;  %v17467_v54 = vmul.f32 0.17677669, %v12281_v34  ;;  %v20375_v34 = vld [vmem:[#allocation62_spill] sm:$0xff] }
 0x69c   : > { %12501 = vmatprep.subr.bf16.mxu1 %v2392_v62 }
 0x69d   : > { %v4886_v14 = vsel %vm2427_vm0, %v17467_v54, -inf }
 0x69f   : > { %12502 = vmatpush3.bf16.msra.mxu1 %v2392_v62  ;;  %v4883_v62 = vsel %vm2427_vm0, %v17461_v48, -inf }
 0x6a1   : > { %v17451_v36 = vpop.eup %13451 }
 0x6a2   : > { %20373 = vst [vmem:[#allocation52_spill] sm:$0xff] %v17451_v36  ;;  %12504 = vmatmul.mubr.msk.bf16.vlgmr.msra.gmra.mxu1 %vm2427_vm0, %v5715_v45  ;;  %v4889_v45 = vsel %vm2427_vm0, %v17463_v37, -inf }
 0x6a3   : > { %v17454_v15 = vpop.eup %13453 }
 0x6a4   : > { %20374 = vst [vmem:[#allocation112_spill] sm:$0xff] %v17454_v15  ;;  %v5716_v21 = vpack.c.bf16 %v17454_v15, %v17451_v36  ;;  %v20376_v15 = vld [vmem:[#allocation66_spill] sm:$0xff] }
 0x6a6   : > { %12511 = vmatprep.mubr.msk.bf16.mxu0 %vm2427_vm0, %v5716_v21  ;;  %v5006_v21 = vsub.f32 %v17123_v6, %v4852_v27  ;;  %v20377_v6 = vld [vmem:[#allocation60_spill] sm:$0xff]  ;;  %v20378_v27 = vld [vmem:[#allocation67_spill] sm:$0xff] }
 0x6a8   : > { %v5248_v13 = vmul.f32 1.442695, %v5006_v21 }
 0x6aa   : > { %13455 = vpow2.f32 %v5248_v13 }
 0x6b2   : > { %4881 = vmax.xlane.f32.xlu1 %v4880_v25  ;;  %v5250_v25 = vmul.f32 1.442695, %v5007_v0 }
 0x6b3   : > { %4884 = vmax.xlane.f32.xlu0 %v4883_v62 }
 0x6b4   : > { %13457 = vpow2.f32 %v5250_v25  ;;  %v17501_v25 = vpop.f32.mrf.mxu0 }
 0x6b5   : > { %20379 = vst [vmem:[#allocation33_spill] sm:$0xff] %v17501_v25 }
 0x6b6   : > { %4890 = vmax.xlane.f32.xlu1 %v4889_v45 }
 0x6b7   : > { %4887 = vmax.xlane.f32.xlu0 %v4886_v14 }
 0x6c7   : > { %2403 = vrot.lane.b32.xlu1 %v20375_v34, %s14282_s22 }
 0x6c9   : > { %v4858_v36 = vpop.xlane.xlu1 %4857 }
 0x6ca   : > { %v5008_v62 = vsub.f32 %v17278_v23, %v4858_v36  ;;  %v4861_v45 = vpop.xlane.xlu0 %4860 }
 0x6cb   : > { %2409 = vrot.lane.b32.xlu1 %v20376_v15, %s14282_s22  ;;  %v5009_v14 = vsub.f32 %v17281_v47, %v4861_v45  ;;  %v17487_v15 = vpop.eup %13455  ;;  %v20381_v45 = vld [vmem:[#allocation69_spill] sm:$0xff] }
 0x6cc   : > { %v5252_v59 = vmul.f32 1.442695, %v5008_v62  ;;  %v17489_v0 = vpop.eup %13457  ;;  %v17503_v62 = vpop.f32.mrf.mxu0 }
 0x6cd   : > { %2405 = vrot.lane.b32.xlu0 %v20377_v6, %s14282_s22  ;;  %v5254_v35 = vmul.f32 1.442695, %v5009_v14  ;;  %v4867_v60 = vpop.xlane.xlu1 %4866  ;;  %v5717_v47 = vpack.c.bf16 %v17489_v0, %v17487_v15  ;;  %20380 = vst [vmem:[#allocation120_spill] sm:$0xff] %v17503_v62  ;;  %v5372_v14 = vsel %vm2427_vm0, %v20381_v45, 0.0  ;;  %v5471_v45 = vsel %vm2427_vm0, %v17141_v49, 0.0 }
 0x6ce   : > { %13459 = vpow2.f32 %v5252_v59  ;;  %v4864_v21 = vpop.xlane.xlu0 %4863  ;;  %v17507_v6 = vpop.f32.mrf.mxu0 }
 0x6cf   : > { %2407 = vrot.lane.b32.xlu1 %v20378_v27, %s14282_s22  ;;  %13461 = vpow2.f32 %v5254_v35  ;;  %v20382_v35 = vld [vmem:[#allocation102_spill] sm:$0xff] }
 0x6d0   : > { %v5378_v27 = vsel %vm2427_vm0, %v20382_v35, 0.0 }
 0x6d1   : > { %v2396_v36 = vpop.permute.xlu1 %2395 }
 0x6d2   : > { %v2398_v23 = vpop.permute.xlu0 %2397 }
 0x6d3   : > { %12507 = vmatprep.subr.bf16.mxu0 %v2398_v23 }
 0x6d4   : > { %12508 = vmatpush3.bf16.msra.mxu0 %v2398_v23  ;;  %v17511_v23 = vpop.f32.mrf.mxu0 }
 0x6d5   : > { %12509 = vmatprep.subr.bf16.mxu0 %v2396_v36 }
 0x6d6   : > { %v17517_v62 = vpop.f32.mrf.mxu0 }
 0x6d7   : > { %20385 = vst [vmem:[#allocation121_spill] sm:$0xff] %v17517_v62 }
 0x6d8   : > { %12510 = vmatpush3.bf16.msra.mxu0 %v2396_v36  ;;  %v20383_v36 = vld [vmem:[#allocation32_spill] sm:$0xff]  ;;  %v17523_v35 = vpop.f32.mrf.mxu0 }
 0x6d9   : > { %20386 = vst [vmem:[#allocation74_spill] sm:$0xff] %v17523_v35 }
 0x6da   : > { %v17531_v49 = vpop.f32.mrf.mxu0 }
 0x6db   : > { %v17493_v59 = vpop.eup %13459  ;;  %12512 = vmatmul.mubr.msk.bf16.vlgmr.msra.gmra.mxu0 %vm2427_vm0, %v5717_v47  ;;  %v5375_v47 = vsel %vm2427_vm0, %v20383_v36, 0.0  ;;  %v5477_v36 = vsel %vm2427_vm0, %v17154_v39, 0.0  ;;  %20387 = vst [vmem:[#allocation71_spill] sm:$0xff] %v17531_v49 }
 0x6dc   : > { %v17496_v13 = vpop.eup %13461  ;;  %v17537_v39 = vpop.f32.mrf.mxu0 }
 0x6dd   : > { %v5718_v34 = vpack.c.bf16 %v17496_v13, %v17493_v59  ;;  %20388 = vst [vmem:[#allocation42_spill] sm:$0xff] %v17537_v39 }
 0x6df   : > { %12519 = vmatprep.mubr.msk.bf16.mxu1 %vm2427_vm0, %v5718_v34  ;;  %v20384_v34 = vld [vmem:[#allocation103_spill] sm:$0xff] }
 0x6e0   : > { %v5381_v25 = vsel %vm2427_vm0, %v20384_v34, 0.0 }
 0x6ec   : > { %5373 = vadd.xlane.f32.xlu0 %v5372_v14  ;;  %v5468_v14 = vsel %vm2427_vm0, %v17139_v24, 0.0  ;;  %v5567_v24 = vsel %vm2427_vm0, %v17363_v32, 0.0  ;;  %v5570_v32 = vsel %vm2427_vm0, %v17367_v46, 0.0 }
 0x6f0   : > { %5379 = vadd.xlane.f32.xlu0 %v5378_v27  ;;  %v5010_v27 = vsub.f32 %v17300_v56, %v4864_v21  ;;  %v5564_v56 = vsel %vm2427_vm0, %v17358_v31, 0.0  ;;  %v17545_v31 = vpop.f32.mrf.mxu0 }
 0x6f1   : > { %20389 = vst [vmem:[#allocation53_spill] sm:$0xff] %v17545_v31 }
 0x6f2   : > { %v5256_v34 = vmul.f32 1.442695, %v5010_v27 }
 0x6f3   : > { %5376 = vadd.xlane.f32.xlu1 %v5375_v47  ;;  %v5011_v47 = vsub.f32 %v17292_v50, %v4867_v60  ;;  %v5573_v50 = vsel %vm2427_vm0, %v17354_v61, 0.0 }
 0x6f4   : > { %5382 = vadd.xlane.f32.xlu0 %v5381_v25  ;;  %v5474_v25 = vsel %vm2427_vm0, %v17145_v38, 0.0  ;;  %13463 = vpow2.f32 %v5256_v34  ;;  %v20391_v34 = vld [vmem:[#allocation81_spill] sm:$0xff] }
 0x6f5   : > { %v5258_v21 = vmul.f32 1.442695, %v5011_v47  ;;  %v5384_v46 = vsel %vm2427_vm0, %v20391_v34, 0.0  ;;  %v5489_v34 = vsel %vm2427_vm0, %v17195_v53, 0.0  ;;  %v5576_v53 = vsel %vm2427_vm0, %v17392_v9, 0.0  ;;  %v20401_v9 = vld [vmem:[#allocation96_spill] sm:$0xff] }
 0x6f7   : > { %5472 = vadd.xlane.f32.xlu1 %v5471_v45  ;;  %13465 = vpow2.f32 %v5258_v21 }
 0x6f8   : > { %5469 = vadd.xlane.f32.xlu0 %v5468_v14 }
 0x6fb   : > { %5478 = vadd.xlane.f32.xlu1 %v5477_v36 }
 0x6fc   : > { %5475 = vadd.xlane.f32.xlu0 %v5474_v25  ;;  %v20390_v25 = vld [vmem:[#allocation95_spill] sm:$0xff] }
 0x6fd   : > { %v5387_v47 = vsel %vm2427_vm0, %v20390_v25, 0.0 }
 0x6ff   : > { %5568 = vadd.xlane.f32.xlu1 %v5567_v24  ;;  %v20393_v24 = vld [vmem:[#allocation39_spill] sm:$0xff] }
 0x700   : > { %5565 = vadd.xlane.f32.xlu0 %v5564_v56  ;;  %v5393_v56 = vsel %vm2427_vm0, %v20393_v24, 0.0 }
 0x702   : > { %v4870_v45 = vpop.xlane.xlu1 %4869 }
 0x703   : > { %v5012_v38 = vsub.f32 %v17421_v22, %v4870_v45  ;;  %5574 = vadd.xlane.f32.xlu1 %v5573_v50  ;;  %v4873_v60 = vpop.xlane.xlu0 %4872  ;;  %v20394_v45 = vld [vmem:[#allocation111_spill] sm:$0xff] }
 0x704   : > { %v5013_v14 = vsub.f32 %v17423_v5, %v4873_v60  ;;  %5571 = vadd.xlane.f32.xlu0 %v5570_v32  ;;  %v17555_v5 = vpop.f32.mrf.mxu0  ;;  %v5390_v50 = vsel %vm2427_vm0, %v20394_v45, 0.0  ;;  %v5483_v32 = vsel %vm2427_vm0, %v17199_v10, 0.0  ;;  %v5486_v10 = vsel %vm2427_vm0, %v17189_v57, 0.0 }
 0x705   : > { %v5260_v27 = vmul.f32 1.442695, %v5012_v38  ;;  %20392 = vst [vmem:[#allocation86_spill] sm:$0xff] %v17555_v5  ;;  %v5585_v45 = vsel %vm2427_vm0, %v17388_v33, 0.0  ;;  %v20452_v5 = vld [vmem:[#allocation90_spill] sm:$0xff] }
 0x706   : > { %v5262_v36 = vmul.f32 1.442695, %v5013_v14  ;;  %v17549_v61 = vpop.xlane.xlu1 %4878  ;;  %v17561_v38 = vpop.f32.mrf.mxu0 }
 0x707   : > { %13467 = vpow2.f32 %v5260_v27  ;;  %5388 = vadd.xlane.f32.xlu1 %v5387_v47  ;;  %v17551_v22 = vpop.xlane.xlu0 %4875  ;;  %20395 = vst [vmem:[#allocation109_spill] sm:$0xff] %v17561_v38  ;;  %v17565_v14 = vpop.eup %13463  ;;  %v5480_v27 = vsel %vm2427_vm0, %v17192_v7, 0.0 }
 0x708   : > { %13469 = vpow2.f32 %v5262_v36  ;;  %5385 = vadd.xlane.f32.xlu0 %v5384_v46  ;;  %v17569_v36 = vpop.eup %13465  ;;  %v17571_v25 = vpop.f32.mrf.mxu0 }
 0x709   : > { %20396 = vst [vmem:[#allocation70_spill] sm:$0xff] %v17571_v25  ;;  %v5719_v47 = vpack.c.bf16 %v17569_v36, %v17565_v14 }
 0x70a   : > { %v2400_v60 = vpop.permute.xlu1 %2399  ;;  %v17584_v24 = vpop.f32.mrf.mxu0 }
 0x70b   : > { %5394 = vadd.xlane.f32.xlu1 %v5393_v56  ;;  %v2402_v21 = vpop.permute.xlu0 %2401  ;;  %20397 = vst [vmem:[#allocation61_spill] sm:$0xff] %v17584_v24  ;;  %v5579_v56 = vsel %vm2427_vm0, %v17390_v1, 0.0 }
 0x70c   : > { %5391 = vadd.xlane.f32.xlu0 %v5390_v50  ;;  %12515 = vmatprep.subr.bf16.mxu1 %v2402_v21  ;;  %v17593_v57 = vpop.f32.mrf.mxu0  ;;  %v5582_v50 = vsel %vm2427_vm0, %v17386_v4, 0.0 }
 0x70d   : > { %12516 = vmatpush3.bf16.msra.mxu1 %v2402_v21  ;;  %20398 = vst [vmem:[#allocation123_spill] sm:$0xff] %v17593_v57 }
 0x70e   : > { %12517 = vmatprep.subr.bf16.mxu1 %v2400_v60  ;;  %v17599_v1 = vpop.f32.mrf.mxu0 }
 0x70f   : > { %5484 = vadd.xlane.f32.xlu1 %v5483_v32  ;;  %20399 = vst [vmem:[#allocation87_spill] sm:$0xff] %v17599_v1  ;;  %v20434_v1 = vld [vmem:[#allocation52_spill] sm:$0xff] }
 0x710   : > { %5481 = vadd.xlane.f32.xlu0 %v5480_v27  ;;  %v5396_v27 = vsel %vm2427_vm0, %v20401_v9, 0.0 }
 0x711   : > { %12518 = vmatpush3.bf16.msra.mxu1 %v2400_v60  ;;  %v20400_v60 = vld [vmem:[#allocation47_spill] sm:$0xff] }
 0x712   : > { %v5399_v32 = vsel %vm2427_vm0, %v20400_v60, 0.0  ;;  %v5498_v60 = vsel %vm2427_vm0, %v17215_v51, 0.0  ;;  %v5014_v51 = vsub.f32 %v17429_v8, %v17551_v22  ;;  %v20407_v22 = vld [vmem:[#allocation118_spill] sm:$0xff] }
 0x713   : > { %5490 = vadd.xlane.f32.xlu1 %v5489_v34  ;;  %v20403_v34 = vld [vmem:[#allocation38_spill] sm:$0xff] }
 0x714   : > { %v17579_v46 = vpop.eup %13467  ;;  %5487 = vadd.xlane.f32.xlu0 %v5486_v10  ;;  %12520 = vmatmul.mubr.msk.bf16.vlgmr.msra.gmra.mxu1 %vm2427_vm0, %v5719_v47  ;;  %v17605_v47 = vpop.f32.mrf.mxu0  ;;  %v5405_v33 = vsel %vm2427_vm0, %v20403_v34, 0.0  ;;  %v20404_v10 = vld [vmem:[#allocation108_spill] sm:$0xff]  ;;  %v5594_v34 = vsel %vm2427_vm0, %v17406_v41, 0.0 }
 0x715   : > { %v17582_v7 = vpop.eup %13469  ;;  %20402 = vst [vmem:[#allocation113_spill] sm:$0xff] %v17605_v47  ;;  %v5402_v4 = vsel %vm2427_vm0, %v20404_v10, 0.0 }
 0x716   : > { %v5720_v21 = vpack.c.bf16 %v17582_v7, %v17579_v46 }
 0x717   : > { %5580 = vadd.xlane.f32.xlu1 %v5579_v56  ;;  %v17611_v56 = vpop.f32.mrf.mxu0 }
 0x718   : > { %5577 = vadd.xlane.f32.xlu0 %v5576_v53  ;;  %12527 = vmatprep.mubr.msk.bf16.mxu0 %vm2427_vm0, %v5720_v21  ;;  %v5495_v21 = vsel %vm2427_vm0, %v17212_v52, 0.0  ;;  %v5492_v53 = vsel %vm2427_vm0, %v17203_v20, 0.0  ;;  %v5591_v52 = vsel %vm2427_vm0, %v17404_v11, 0.0  ;;  %v5588_v20 = vsel %vm2427_vm0, %v17400_v63, 0.0  ;;  %v20405_v63 = vld [vmem:[#allocation64_spill] sm:$0xff] }
 0x719   : > { %v5015_v11 = vsub.f32 %v17425_v58, %v17549_v61  ;;  %v20408_v58 = vld [vmem:[#allocation116_spill] sm:$0xff] }
 0x71a   : > { %v5414_v61 = vsel %vm2427_vm0, %v20408_v58, 0.0 }
 0x71b   : > { %5586 = vadd.xlane.f32.xlu1 %v5585_v45  ;;  %v17617_v45 = vpop.f32.mrf.mxu0  ;;  %v5266_v8 = vmul.f32 1.442695, %v5015_v11 }
 0x71c   : > { %5583 = vadd.xlane.f32.xlu0 %v5582_v50  ;;  %v5501_v50 = vsel %vm2427_vm0, %v17209_v43, 0.0  ;;  %v5597_v43 = vsel %vm2427_vm0, %v17402_v42, 0.0  ;;  %v20406_v42 = vld [vmem:[#allocation51_spill] sm:$0xff] }
 0x71f   : > { %5400 = vadd.xlane.f32.xlu1 %v5399_v32  ;;  %v17623_v32 = vpop.f32.mrf.mxu0 }
 0x720   : > { %5397 = vadd.xlane.f32.xlu0 %v5396_v27 }
 0x721   : > { %v17629_v9 = vpop.f32.mrf.mxu0 }
 0x723   : > { %5406 = vadd.xlane.f32.xlu1 %v5405_v33  ;;  %v17633_v27 = vpop.f32.mrf.mxu0  ;;  %v5411_v33 = vsel %vm2427_vm0, %v20405_v63, 0.0 }
 0x724   : > { %5403 = vadd.xlane.f32.xlu0 %v5402_v4  ;;  %v5264_v4 = vmul.f32 1.442695, %v5014_v51  ;;  %v5507_v51 = vsel %vm2427_vm0, %v17247_v17, 0.0 }
 0x725   : > { %v17643_v10 = vpop.f32.mrf.mxu0 }
 0x726   : > { %13471 = vpow2.f32 %v5264_v4  ;;  %v17661_v4 = vpop.f32.mrf.mxu1 }
 0x727   : > { %5496 = vadd.xlane.f32.xlu1 %v5495_v21  ;;  %v5408_v21 = vsel %vm2427_vm0, %v20406_v42, 0.0  ;;  %v17649_v41 = vpop.f32.mrf.mxu0  ;;  %13473 = vpow2.f32 %v5266_v8  ;;  %20409 = vst [vmem:[#allocation57_spill] sm:$0xff] %v17661_v4  ;;  %v5513_v8 = vsel %vm2427_vm0, %v17243_v30, 0.0 }
 0x728   : > { %5493 = vadd.xlane.f32.xlu0 %v5492_v53  ;;  %v5417_v53 = vsel %vm2427_vm0, %v20407_v22, 0.0 }
 0x72b   : > { %5502 = vadd.xlane.f32.xlu1 %v5501_v50 }
 0x72c   : > { %5499 = vadd.xlane.f32.xlu0 %v5498_v60 }
 0x72f   : > { %5592 = vadd.xlane.f32.xlu1 %v5591_v52 }
 0x730   : > { %5589 = vadd.xlane.f32.xlu0 %v5588_v20 }
 0x733   : > { %5598 = vadd.xlane.f32.xlu1 %v5597_v43 }
 0x734   : > { %5595 = vadd.xlane.f32.xlu0 %v5594_v34  ;;  %v17657_v34 = vpop.f32.mrf.mxu0 }
 0x737   : > { %5412 = vadd.xlane.f32.xlu1 %v5411_v33  ;;  %v5504_v33 = vsel %vm2427_vm0, %v17240_v16, 0.0  ;;  %v5510_v16 = vsel %vm2427_vm0, %v17236_v19, 0.0  ;;  %v17679_v19 = vpop.eup %13471 }
 0x738   : > { %5409 = vadd.xlane.f32.xlu0 %v5408_v21 }
 0x73b   : > { %v4882_v50 = vpop.xlane.xlu1 %4881  ;;  %5418 = vadd.xlane.f32.xlu1 %v5417_v53 }
 0x73c   : > { %v5016_v60 = vsub.f32 %v17459_v40, %v4882_v50  ;;  %5415 = vadd.xlane.f32.xlu0 %v5414_v61  ;;  %v4885_v52 = vpop.xlane.xlu0 %4884  ;;  %v17671_v50 = vpop.f32.mrf.mxu1  ;;  %v5600_v61 = vsel %vm2427_vm0, %v17412_v18, 0.0  ;;  %v5606_v18 = vsel %vm2427_vm0, %v17447_v28, 0.0  ;;  %v20417_v28 = vld [vmem:[#allocation55_spill] sm:$0xff] }
 0x73d   : > { %v5017_v20 = vsub.f32 %v17461_v48, %v4885_v52  ;;  %v17664_v48 = vpop.f32.mrf.mxu0 }
 0x73e   : > { %v5268_v43 = vmul.f32 1.442695, %v5016_v60  ;;  %20410 = vst [vmem:[#allocation58_spill] sm:$0xff] %v17664_v48  ;;  %v17681_v60 = vpop.f32.mrf.mxu1 }
 0x73f   : > { %v5270_v11 = vmul.f32 1.442695, %v5017_v20  ;;  %v4891_v63 = vpop.xlane.xlu1 %4890  ;;  %5508 = vadd.xlane.f32.xlu1 %v5507_v51  ;;  %v17673_v58 = vpop.f32.mrf.mxu0  ;;  %20412 = vst [vmem:[#allocation124_spill] sm:$0xff] %v17681_v60  ;;  %v20483_v60 = vld [vmem:[#allocation94_spill] sm:$0xff] }
 0x740   : > { %13475 = vpow2.f32 %v5268_v43  ;;  %v5019_v40 = vsub.f32 %v17463_v37, %v4891_v63  ;;  %5505 = vadd.xlane.f32.xlu0 %v5504_v33  ;;  %v4888_v42 = vpop.xlane.xlu0 %4887  ;;  %20411 = vst [vmem:[#allocation107_spill] sm:$0xff] %v17673_v58  ;;  %v17685_v20 = vpop.eup %13473 }
 0x741   : > { %13477 = vpow2.f32 %v5270_v11  ;;  %v5018_v17 = vsub.f32 %v17467_v54, %v4888_v42  ;;  %v5603_v54 = vsel %vm2427_vm0, %v17415_v44, 0.0  ;;  %v17683_v52 = vpop.f32.mrf.mxu0  ;;  %v5609_v44 = vsel %vm2427_vm0, %v17445_v26, 0.0  ;;  %v17693_v11 = vpop.f32.mrf.mxu1 }
 0x742   : > { %v5274_v21 = vmul.f32 1.442695, %v5019_v40  ;;  %20413 = vst [vmem:[#allocation78_spill] sm:$0xff] %v17683_v52  ;;  %v5721_v43 = vpack.c.bf16 %v17685_v20, %v17679_v19  ;;  %v20415_v40 = vld [vmem:[#allocation104_spill] sm:$0xff] }
 0x743   : > { %v5272_v22 = vmul.f32 1.442695, %v5018_v17  ;;  %v2404_v53 = vpop.permute.xlu1 %2403  ;;  %5514 = vadd.xlane.f32.xlu1 %v5513_v8  ;;  %v17697_v33 = vpop.f32.mrf.mxu0  ;;  %v5279_v42 = vsel %vm2427_vm0, %v20415_v40, 0.0  ;;  %v20423_v40 = vmov 0  }
 0x744   : > { %13479 = vpow2.f32 %v5274_v21  ;;  %5511 = vadd.xlane.f32.xlu0 %v5510_v16  ;;  %v2406_v37 = vpop.permute.xlu0 %2405  ;;  %20414 = vst [vmem:[#allocation97_spill] sm:$0xff] %v17697_v33  ;;  %v5276_v21 = vsel %vm2427_vm0, %v20417_v28, 0.0  ;;  %v5420_v28 = vsel %vm2427_vm0, %v17046_v12, 0.0  ;;  %v5519_v12 = vsel %vm2427_vm0, %v17260_v29, 0.0 }
 0x745   : > { %13481 = vpow2.f32 %v5272_v22  ;;  %12523 = vmatprep.subr.bf16.mxu0 %v2406_v37  ;;  %v17704_v17 = vpop.f32.mrf.mxu0  ;;  %v17710_v22 = vpop.f32.mrf.mxu1 }
 0x746   : > { %12524 = vmatpush3.bf16.msra.mxu0 %v2406_v37  ;;  %20416 = vst [vmem:[#allocation45_spill] sm:$0xff] %v17704_v17  ;;  %20418 = vst [vmem:[#allocation65_spill] sm:$0xff] %v17710_v22  ;;  %v20419_v37 = vld [vmem:[#allocation44_spill] sm:$0xff]  ;;  %v20455_v17 = vld [vmem:[#allocation63_spill] sm:$0xff] }
 0x747   : > { %v2410_v30 = vpop.permute.xlu1 %2409  ;;  %5604 = vadd.xlane.f32.xlu1 %v5603_v54  ;;  %12525 = vmatprep.subr.bf16.mxu0 %v2404_v53  ;;  %v5285_v54 = vsel %vm2427_vm0, %v20419_v37, 0.0 }
 0x748   : > { %12531 = vmatprep.subr.bf16.mxu1 %v2410_v30  ;;  %5601 = vadd.xlane.f32.xlu0 %v5600_v61 }
 0x749   : > { %12532 = vmatpush3.bf16.msra.mxu1 %v2410_v30  ;;  %v17719_v30 = vpop.f32.mrf.mxu0 }
 0x74a   : > { %12526 = vmatpush3.bf16.msra.mxu0 %v2404_v53  ;;  %20420 = vst [vmem:[#allocation43_spill] sm:$0xff] %v17719_v30 }
 0x74b   : > { %v2408_v51 = vpop.permute.xlu1 %2407  ;;  %5610 = vadd.xlane.f32.xlu1 %v5609_v44  ;;  %v20421_v44 = vld [vmem:[#allocation68_spill] sm:$0xff] }
 0x74c   : > { %12533 = vmatprep.subr.bf16.mxu1 %v2408_v51  ;;  %5607 = vadd.xlane.f32.xlu0 %v5606_v18  ;;  %v5423_v18 = vsel %vm2427_vm0, %v17048_v55, 0.0 }
 0x74d   : > { %v17695_v63 = vpop.eup %13475  ;;  %12534 = vmatpush3.bf16.msra.mxu1 %v2408_v51  ;;  %12528 = vmatmul.mubr.msk.bf16.vlgmr.msra.gmra.mxu0 %vm2427_vm0, %v5721_v43  ;;  %v5282_v43 = vsel %vm2427_vm0, %v20421_v44, 0.0  ;;  %v17725_v51 = vpop.f32.mrf.mxu1 }
 0x74e   : > { %v17700_v26 = vpop.eup %13477  ;;  %20422 = vst [vmem:[#allocation50_spill] sm:$0xff] %v17725_v51 }
 0x74f   : > { %5280 = vadd.xlane.f32.xlu1 %v5279_v42  ;;  %v5722_v8 = vpack.c.bf16 %v17700_v26, %v17695_v63  ;;  %v17731_v42 = vpop.f32.mrf.mxu0 }
 0x750   : > { %5277 = vadd.xlane.f32.xlu0 %v5276_v21  ;;  %20424 = vst [vmem:[#allocation54_spill] sm:$0xff] %v17731_v42  ;;  %v17735_v21 = vpop.f32.mrf.mxu1 }
 0x751   : > { %v17712_v53 = vpop.eup %13479  ;;  %12535 = vmatprep.mubr.msk.bf16.mxu1 %vm2427_vm0, %v5722_v8  ;;  %20425 = vst [vmem:[#allocation62_spill] sm:$0xff] %v17735_v21  ;;  %v20426_v8 = vld [vmem:[#allocation125_spill] sm:$0xff]  ;;  %v5534_v21 = vsel %vm2427_vm0, %v20455_v17, 0.0 }
 0x752   : > { %v17715_v16 = vpop.eup %13481  ;;  %v5429_v37 = vsel %vm2427_vm0, %v20426_v8, 0.0  ;;  %v17743_v44 = vpop.f32.mrf.mxu1 }
 0x753   : > { %v5723_v61 = vpack.c.bf16 %v17712_v53, %v17715_v16  ;;  %5286 = vadd.xlane.f32.xlu1 %v5285_v54  ;;  %v17739_v54 = vpop.f32.mrf.mxu0  ;;  %20429 = vst [vmem:[#allocation60_spill] sm:$0xff] %v17743_v44 }
 0x754   : > { %5283 = vadd.xlane.f32.xlu0 %v5282_v43  ;;  %20427 = vst [vmem:[#allocation66_spill] sm:$0xff] %v17739_v54 }
 0x755   : > { %12536 = vmatmul.mubr.msk.bf16.vlgmr.msra.gmra.mxu1 %vm2427_vm0, %v5723_v61  ;;  %v20428_v61 = vld [vmem:[#allocation126_spill] sm:$0xff]  ;;  %v17745_v43 = vpop.f32.mrf.mxu0 }
 0x756   : > { %9226 = vmatprep.mubr.bf16.mxu1 %v20423_v40  ;;  %v5426_v55 = vsel %vm2427_vm0, %v20428_v61, 0.0  ;;  %v20431_v61 = vld [vmem:[#allocation76_spill] sm:$0xff] }
 0x757   : > { %5424 = vadd.xlane.f32.xlu1 %v5423_v18  ;;  %v5516_v18 = vsel %vm2427_vm0, %v17251_v3, 0.0  ;;  %v17753_v8 = vpop.f32.mrf.mxu0 }
 0x758   : > { %5421 = vadd.xlane.f32.xlu0 %v5420_v28  ;;  %v17751_v28 = vpop.f32.mrf.mxu1 }
 0x759   : > { %20430 = vst [vmem:[#allocation67_spill] sm:$0xff] %v17751_v28  ;;  %v17761_v29 = vpop.f32.mrf.mxu0 }
 0x75a   : > { %v17759_v40 = vpop.f32.mrf.mxu1 }
 0x75b   : > { %5430 = vadd.xlane.f32.xlu1 %v5429_v37  ;;  %v5525_v37 = vsel %vm2427_vm0, %v17255_v2, 0.0  ;;  %20432 = vst [vmem:[#allocation69_spill] sm:$0xff] %v17759_v40  ;;  %v17769_v2 = vpop.f32.mrf.mxu0 }
 0x75c   : > { %5427 = vadd.xlane.f32.xlu0 %v5426_v55  ;;  %v5522_v55 = vsel %vm2427_vm0, %v20431_v61, 0.0  ;;  %v17767_v24 = vpop.f32.mrf.mxu1 }
 0x75d   : > { %20435 = vst [vmem:[#allocation102_spill] sm:$0xff] %v17767_v24  ;;  %v17773_v61 = vpop.f32.mrf.mxu0 }
 0x75e   : > { %v17777_v47 = vpop.f32.mrf.mxu1 }
 0x75f   : > { %5520 = vadd.xlane.f32.xlu1 %v5519_v12  ;;  %v20433_v12 = vld [vmem:[#allocation112_spill] sm:$0xff]  ;;  %20436 = vst [vmem:[#allocation32_spill] sm:$0xff] %v17777_v47 }
 0x760   : > { %5517 = vadd.xlane.f32.xlu0 %v5516_v18  ;;  %v5615_v3 = vsel %vm2427_vm0, %v20433_v12, 0.0  ;;  %v5612_v18 = vsel %vm2427_vm0, %v20434_v1, 0.0  ;;  %v20437_v12 = vld [vmem:[#allocation89_spill] sm:$0xff]  ;;  %v17785_v24 = vpop.f32.mrf.mxu1 }
 0x761   : > { %v5291_v1 = vsel %vm2427_vm0, %v20437_v12, 0.0  ;;  %20439 = vst [vmem:[#allocation103_spill] sm:$0xff] %v17785_v24 }
 0x762   : > { %v17793_v47 = vpop.f32.mrf.mxu1 }
 0x763   : > { %5526 = vadd.xlane.f32.xlu1 %v5525_v37  ;;  %v5621_v37 = vsel %vm2427_vm0, %v17489_v0, 0.0  ;;  %v20440_v0 = vld [vmem:[#allocation75_spill] sm:$0xff]  ;;  %20442 = vst [vmem:[#allocation95_spill] sm:$0xff] %v17793_v47 }
 0x764   : > { %5523 = vadd.xlane.f32.xlu0 %v5522_v55  ;;  %v5618_v55 = vsel %vm2427_vm0, %v17487_v15, 0.0  ;;  %v20441_v15 = vld [vmem:[#allocation37_spill] sm:$0xff] }
 0x767   : > { %5616 = vadd.xlane.f32.xlu1 %v5615_v3  ;;  %v17781_v3 = vpop.f32.mrf.mxu0 }
 0x768   : > { %5613 = vadd.xlane.f32.xlu0 %v5612_v18  ;;  %v20438_v18 = vld [vmem:[#allocation49_spill] sm:$0xff] }
 0x769   : > { %v5288_v57 = vsel %vm2427_vm0, %v20438_v18, 0.0  ;;  %v17789_v28 = vpop.f32.mrf.mxu0 }
 0x76b   : > { %5622 = vadd.xlane.f32.xlu1 %v5621_v37  ;;  %v5297_v37 = vsel %vm2427_vm0, %v20440_v0, 0.0  ;;  %v17797_v18 = vpop.f32.mrf.mxu0  ;;  %v17801_v0 = vpop.f32.mrf.mxu1 }
 0x76c   : > { %5619 = vadd.xlane.f32.xlu0 %v5618_v55  ;;  %v5294_v55 = vsel %vm2427_vm0, %v20441_v15, 0.0  ;;  %20445 = vst [vmem:[#allocation81_spill] sm:$0xff] %v17801_v0  ;;  %v20447_v15 = vld [vmem:[#allocation131_spill] sm:$0xff] }
 0x76d   : > { %v5441_v47 = vsel %vm2427_vm0, %v20447_v15, 0.0  ;;  %v5528_v15 = vsel %vm2427_vm0, %v20452_v5, 0.0 }
 0x76f   : > { %5292 = vadd.xlane.f32.xlu1 %v5291_v1  ;;  %v20443_v1 = vld [vmem:[#allocation132_spill] sm:$0xff] }
 0x770   : > { %5289 = vadd.xlane.f32.xlu0 %v5288_v57  ;;  %v5435_v40 = vsel %vm2427_vm0, %v20443_v1, 0.0  ;;  %v20444_v57 = vld [vmem:[#allocation130_spill] sm:$0xff]  ;;  %v17809_v1 = vpop.f32.mrf.mxu1 }
 0x771   : > { %v5432_v24 = vsel %vm2427_vm0, %v20444_v57, 0.0  ;;  %20449 = vst [vmem:[#allocation111_spill] sm:$0xff] %v17809_v1 }
 0x772   : > { %v17813_v25 = vpop.f32.mrf.mxu1 }
 0x773   : > { %5298 = vadd.xlane.f32.xlu1 %v5297_v37  ;;  %v17803_v37 = vpop.f32.mrf.mxu0 }
 0x774   : > { %5295 = vadd.xlane.f32.xlu0 %v5294_v55  ;;  %20446 = vst [vmem:[#allocation39_spill] sm:$0xff] %v17803_v37  ;;  %v20448_v55 = vld [vmem:[#allocation133_spill] sm:$0xff]  ;;  %v17821_v1 = vpop.f32.mrf.mxu1 }
 0x775   : > { %v5374_v12 = vpop.xlane.xlu0 %5373  ;;  %v5438_v31 = vsel %vm2427_vm0, %v20448_v55, 0.0 }
 0x776   : > { %v17829_v22 = vpop.f32.mrf.mxu1 }
 0x777   : > { %5436 = vadd.xlane.f32.xlu1 %v5435_v40  ;;  %v17811_v40 = vpop.f32.mrf.mxu0 }
 0x778   : > { %5433 = vadd.xlane.f32.xlu0 %v5432_v24  ;;  %20450 = vst [vmem:[#allocation47_spill] sm:$0xff] %v17811_v40  ;;  %v20451_v24 = vld [vmem:[#allocation40_spill] sm:$0xff]  ;;  %v17838_v51 = vpop.f32.mrf.mxu1 }
 0x779   : > { %v5380_v38 = vpop.xlane.xlu0 %5379  ;;  %v5531_v0 = vsel %vm2427_vm0, %v20451_v24, 0.0  ;;  %v17819_v30 = vpop.f32.mrf.mxu0 }
 0x77a   : > { %20453 = vst [vmem:[#allocation96_spill] sm:$0xff] %v17819_v30 }
 0x77b   : > { %5442 = vadd.xlane.f32.xlu1 %v5441_v47 }
 0x77c   : > { %v5377_v54 = vpop.xlane.xlu1 %5376  ;;  %5439 = vadd.xlane.f32.xlu0 %v5438_v31  ;;  %v20454_v31 = vld [vmem:[#allocation80_spill] sm:$0xff] }
 0x77d   : > { %v5383_v57 = vpop.xlane.xlu0 %5382  ;;  %v5537_v42 = vsel %vm2427_vm0, %v20454_v31, 0.0 }
 0x77e   : > { %13483 = vrcp.f32 %v5383_v57  ;;  %v5633_v57 = vsel %vm2427_vm0, %v17569_v36, 0.0 }
 0x77f   : > { %5532 = vadd.xlane.f32.xlu1 %v5531_v0  ;;  %v17827_v0 = vpop.f32.mrf.mxu0  ;;  %13485 = vrcp.f32 %v5380_v38 }
 0x780   : > { %v5473_v47 = vpop.xlane.xlu1 %5472  ;;  %5529 = vadd.xlane.f32.xlu0 %v5528_v15  ;;  %20456 = vst [vmem:[#allocation38_spill] sm:$0xff] %v17827_v0  ;;  %v5627_v15 = vsel %vm2427_vm0, %v17496_v13, 0.0  ;;  %v5630_v13 = vsel %vm2427_vm0, %v17565_v14, 0.0 }
 0x781   : > { %v5470_v55 = vpop.xlane.xlu0 %5469  ;;  %v17833_v44 = vpop.f32.mrf.mxu0 }
 0x782   : > { %20457 = vst [vmem:[#allocation108_spill] sm:$0xff] %v17833_v44  ;;  %13487 = vrcp.f32 %v5470_v55 }
 0x783   : > { %5538 = vadd.xlane.f32.xlu1 %v5537_v42  ;;  %v5624_v42 = vsel %vm2427_vm0, %v17493_v59, 0.0  ;;  %v17842_v49 = vpop.f32.mrf.mxu0  ;;  %13489 = vrcp.f32 %v5377_v54  ;;  %v17846_v59 = vpop.f32.mrf.mxu1 }
 0x784   : > { %v5479_v24 = vpop.xlane.xlu1 %5478  ;;  %5535 = vadd.xlane.f32.xlu0 %v5534_v21  ;;  %v13075_v21 = vld [vmem:[%s14633_s13 + $0x38] sm:$0xff]   ;;  %20458 = vst [vmem:[#allocation64_spill] sm:$0xff] %v17842_v49  ;;  %20459 = vst [vmem:[#allocation51_spill] sm:$0xff] %v17846_v59  ;;  %13491 = vrcp.f32 %v5473_v47 }
 0x785   : > { %v5476_v5 = vpop.xlane.xlu0 %5475  ;;  %12539 = vmatprep.subr.bf16.mxu0 %v13075_v21  ;;  %13493 = vrcp.f32 %v5374_v12  ;;  %v17849_v36 = vpop.f32.mrf.mxu0  ;;  %v20481_v59 = vld [vmem:[#allocation46_spill] sm:$0xff] }
 0x786   : > { %12540 = vmatpush3.bf16.msra.mxu0 %v13075_v21  ;;  %13495 = vrcp.f32 %v5476_v5  ;;  %20460 = vst [vmem:[#allocation118_spill] sm:$0xff] %v17849_v36  ;;  %v17851_v54 = vpop.f32.mrf.mxu1 }
 0x787   : > { %5628 = vadd.xlane.f32.xlu1 %v5627_v15  ;;  %v13076_v15 = vld [vmem:[%s14633_s13 + $0x30] sm:$0xff]   ;;  %13497 = vrcp.f32 %v5479_v24  ;;  %20461 = vst [vmem:[#allocation116_spill] sm:$0xff] %v17851_v54  ;;  %v17858_v21 = vpop.f32.mrf.mxu0 }
 0x788   : > { %v5569_v31 = vpop.xlane.xlu1 %5568  ;;  %5625 = vadd.xlane.f32.xlu0 %v5624_v42  ;;  %12541 = vmatprep.subr.bf16.mxu0 %v13076_v15  ;;  %v13077_v42 = vld [vmem:[%s14633_s13 + $0x28] sm:$0xff]   ;;  %20462 = vst [vmem:[#allocation104_spill] sm:$0xff] %v17858_v21  ;;  %v17860_v5 = vpop.f32.mrf.mxu1 }
 0x789   : > { %v5566_v17 = vpop.xlane.xlu0 %5565  ;;  %20463 = vst [vmem:[#allocation55_spill] sm:$0xff] %v17860_v5 }
 0x78a   : > { %13499 = vrcp.f32 %v5566_v17  ;;  %12542 = vmatpush3.bf16.msra.mxu0 %v13076_v15  ;;  %v13078_v15 = vld [vmem:[%s14633_s13 + $0x20] sm:$0xff]   ;;  %v17868_v44 = vpop.f32.mrf.mxu1 }
 0x78b   : > { %5634 = vadd.xlane.f32.xlu1 %v5633_v57  ;;  %13501 = vrcp.f32 %v5569_v31  ;;  %v13484_v12 = vpop.eup %13483  ;;  %12543 = vmatprep.subr.bf16.mxu0 %v13077_v42  ;;  %v12481_v57 = vpop.f32.mrf.mxu0  ;;  %20464 = vst [vmem:[#allocation44_spill] sm:$0xff] %v17868_v44 }
 0x78c   : > { %v5575_v38 = vpop.xlane.xlu1 %5574  ;;  %5631 = vadd.xlane.f32.xlu0 %v5630_v13  ;;  %v13486_v17 = vpop.eup %13485  ;;  %v7555_v31 = vmul.f32 %v13484_v12, %v17623_v32  ;;  %v13079_v12 = vld [vmem:[%s14633_s13 + $0x18] sm:$0xff]  }
 0x78d   : > { %v5572_v55 = vpop.xlane.xlu0 %5571  ;;  %v17875_v37 = vpop.f32.mrf.mxu1 }
 0x78e   : > { %13503 = vrcp.f32 %v5572_v55  ;;  %12544 = vmatpush3.bf16.msra.mxu0 %v13077_v42  ;;  %v7084_v42 = vpop.f32.mrf.mxu0  ;;  %20465 = vst [vmem:[#allocation68_spill] sm:$0xff] %v17875_v37 }
 0x78f   : > { %13505 = vrcp.f32 %v5575_v38  ;;  %v13488_v36 = vpop.eup %13487  ;;  %12545 = vmatprep.subr.bf16.mxu0 %v13078_v15  ;;  %v7553_v38 = vmul.f32 %v13486_v17, %v17611_v56 }
 0x790   : > { %v17853_v14 = vpop.xlane.xlu1 %5388  ;;  %v13490_v55 = vpop.eup %13489  ;;  %v7613_v32 = vmul.f32 %v13488_v36, %v17753_v8 }
 0x791   : > { %v17855_v47 = vpop.xlane.xlu0 %5385  ;;  %v13492_v49 = vpop.eup %13491  ;;  %v12808_v33 = vpack.i.bf16 %v7555_v31, %v7553_v38  ;;  %v7551_v17 = vmul.f32 %v13490_v55, %v17629_v9  ;;  %v13080_v31 = vld [vmem:[%s14633_s13 + $0x10] sm:$0xff]  }
 0x792   : > { %12546 = vmatpush3.bf16.msra.mxu0 %v13078_v15  ;;  %v13494_v30 = vpop.eup %13493  ;;  %v7615_v56 = vmul.f32 %v13492_v49, %v17769_v2  ;;  %v12482_v39 = vpop.f32.mrf.mxu0 }
 0x793   : > { %v13496_v0 = vpop.eup %13495  ;;  %12547 = vmatprep.subr.bf16.mxu0 %v13079_v12  ;;  %v17887_v8 = vpop.f32.mrf.mxu1  ;;  %v7549_v37 = vmul.f32 %v13494_v30, %v17617_v45 }
 0x794   : > { %v17862_v24 = vpop.xlane.xlu1 %5394  ;;  %v13498_v58 = vpop.eup %13497  ;;  %20466 = vst [vmem:[#allocation125_spill] sm:$0xff] %v17887_v8  ;;  %v12813_v36 = vpack.i.bf16 %v7615_v56, %v7613_v32  ;;  %v7617_v52 = vmul.f32 %v13496_v0, %v17745_v43  ;;  %v13081_v0 = vld [vmem:[%s14633_s13 + $0x8] sm:$0xff]  }
 0x795   : > { %v17864_v13 = vpop.xlane.xlu0 %5391  ;;  %v12803_v9 = vpack.i.bf16 %v7551_v17, %v7549_v37  ;;  %v7619_v2 = vmul.f32 %v13498_v58, %v17761_v29  ;;  %v7087_v48 = vpop.f32.mrf.mxu0 }
 0x796   : > { %12548 = vmatpush3.bf16.msra.mxu0 %v13079_v12  ;;  %v17897_v32 = vpop.f32.mrf.mxu1  ;;  %13507 = vrcp.f32 %v17864_v13  ;;  %v5645_v13 = vsel %vm2427_vm0, %v17685_v20, 0.0 }
 0x797   : > { %v13500_v15 = vpop.eup %13499  ;;  %12549 = vmatprep.subr.bf16.mxu0 %v13080_v31  ;;  %20467 = vst [vmem:[#allocation126_spill] sm:$0xff] %v17897_v32  ;;  %v12818_v45 = vpack.i.bf16 %v7619_v2, %v7617_v52  ;;  %13509 = vrcp.f32 %v17862_v24 }
 0x798   : > { %v17870_v21 = vpop.xlane.xlu1 %5484  ;;  %v13502_v38 = vpop.eup %13501  ;;  %v7677_v55 = vmul.f32 %v13500_v15, %v7084_v42  ;;  %v13082_v15 = vld [vmem:[%s14633_s13] sm:$0xff]  }
 0x799   : > { %v17873_v62 = vpop.xlane.xlu0 %5481  ;;  %v7679_v30 = vmul.f32 %v13502_v38, %v7087_v48  ;;  %v17906_v42 = vpop.f32.mrf.mxu1 }
 0x79a   : > { %12550 = vmatpush3.bf16.msra.mxu0 %v13080_v31  ;;  %20468 = vst [vmem:[#allocation76_spill] sm:$0xff] %v17906_v42  ;;  %v20477_v42 = vld [vmem:[#allocation36_spill] sm:$0xff]  ;;  %13511 = vrcp.f32 %v17873_v62 }
 0x79b   : > { %v12823_v58 = vpack.i.bf16 %v7679_v30, %v7677_v55  ;;  %12551 = vmatprep.subr.bf16.mxu0 %v13081_v0  ;;  %v17910_v52 = vpop.f32.mrf.mxu1  ;;  %v5300_v8 = vsel %vm2427_vm0, %v20477_v42, 0.0  ;;  %13513 = vrcp.f32 %v17855_v47 }
 0x79c   : > { %v17879_v40 = vpop.xlane.xlu1 %5490  ;;  %12809 = vrot.lane.b32.xlu1 %v12808_v33, %s14282_s22  ;;  %v13504_v33 = vpop.eup %13503  ;;  %20469 = vst [vmem:[#allocation112_spill] sm:$0xff] %v17910_v52  ;;  %13515 = vrcp.f32 %v17870_v21 }
 0x79d   : > { %v17884_v35 = vpop.xlane.xlu0 %5487  ;;  %v13506_v12 = vpop.eup %13505  ;;  %v7681_v43 = vmul.f32 %v13504_v33, %v12481_v57  ;;  %13517 = vrcp.f32 %v17853_v14 }
 0x79e   : > { %v7683_v29 = vmul.f32 %v13506_v12, %v12482_v39  ;;  %12552 = vmatpush3.bf16.msra.mxu0 %v13081_v0  ;;  %v17917_v39 = vpop.f32.mrf.mxu1  ;;  %13519 = vrcp.f32 %v17884_v35 }
 0x79f   : > { %12553 = vmatprep.subr.bf16.mxu0 %v13082_v15  ;;  %20470 = vst [vmem:[#allocation52_spill] sm:$0xff] %v17917_v39  ;;  %13521 = vrcp.f32 %v17879_v40 }
 0x7a0   : > { %v17891_v49 = vpop.xlane.xlu1 %5580  ;;  %12814 = vrot.lane.b32.xlu1 %v12813_v36, %s14284_s17  ;;  %v12828_v17 = vpack.i.bf16 %v7683_v29, %v7681_v43  ;;  %v17923_v36 = vpop.f32.mrf.mxu1 }
 0x7a1   : > { %v17895_v44 = vpop.xlane.xlu0 %5577  ;;  %20471 = vst [vmem:[#allocation89_spill] sm:$0xff] %v17923_v36 }
 0x7a2   : > { %12804 = vrot.lane.b32.xlu0 %v12803_v9, %s14282_s22  ;;  %12554 = vmatpush3.bf16.msra.mxu0 %v13082_v15  ;;  %v17929_v2 = vpop.f32.mrf.mxu1  ;;  %13523 = vrcp.f32 %v17895_v44 }
 0x7a3   : > { %20472 = vst [vmem:[#allocation49_spill] sm:$0xff] %v17929_v2  ;;  %13525 = vrcp.f32 %v17891_v49 }
 0x7a4   : > { %v17901_v56 = vpop.xlane.xlu1 %5586  ;;  %12819 = vrot.lane.b32.xlu1 %v12818_v45, %s14284_s17  ;;  %v17935_v45 = vpop.f32.mrf.mxu1 }
 0x7a5   : > { %v17904_v37 = vpop.xlane.xlu0 %5583 }
 0x7a6   : > { %12824 = vrot.lane.b32.xlu0 %v12823_v58, %s14283_s16  ;;  %v17941_v0 = vpop.f32.mrf.mxu1  ;;  %13527 = vrcp.f32 %v17904_v37 }
 0x7a7   : > { %13529 = vrcp.f32 %v17901_v56 }
 0x7a8   : > { %v17912_v48 = vpop.xlane.xlu1 %5400  ;;  %12829 = vrot.lane.b32.xlu1 %v12828_v17, %s14283_s16  ;;  %v17947_v17 = vpop.f32.mrf.mxu1 }
 0x7a9   : > { %v17915_v57 = vpop.xlane.xlu0 %5397 }
 0x7aa   : > { %v17953_v52 = vpop.f32.mrf.mxu1 }
 0x7ac   : > { %v17919_v31 = vpop.xlane.xlu1 %5406  ;;  %v17955_v2 = vpop.f32.mrf.mxu1 }
 0x7ad   : > { %v17921_v38 = vpop.xlane.xlu0 %5403  ;;  %20475 = vst [vmem:[#allocation132_spill] sm:$0xff] %v17955_v2  ;;  %v5303_v2 = vsel %vm2427_vm0, %v20483_v60, 0.0  ;;  %v20491_v60 = vld [vmem:[#allocation59_spill] sm:$0xff] }
 0x7ae   : > { %v17963_v54 = vpop.f32.mrf.mxu1 }
 0x7af   : > { %20479 = vst [vmem:[#allocation133_spill] sm:$0xff] %v17963_v54 }
 0x7b0   : > { %v17925_v33 = vpop.xlane.xlu1 %5496 }
 0x7b1   : > { %v17927_v9 = vpop.xlane.xlu0 %5493 }
 0x7b4   : > { %v17931_v55 = vpop.xlane.xlu1 %5502 }
 0x7b5   : > { %v17933_v12 = vpop.xlane.xlu0 %5499 }
 0x7b8   : > { %v17937_v30 = vpop.xlane.xlu1 %5592 }
 0x7b9   : > { %v17939_v43 = vpop.xlane.xlu0 %5589 }
 0x7bc   : > { %v17943_v58 = vpop.xlane.xlu1 %5598 }
 0x7bd   : > { %v17945_v29 = vpop.xlane.xlu0 %5595 }
 0x7c0   : > { %v17949_v15 = vpop.xlane.xlu1 %5412 }
 0x7c1   : > { %20473 = vst [vmem:[#allocation75_spill] sm:$0xff] %v17949_v15  ;;  %v17951_v36 = vpop.xlane.xlu0 %5409  ;;  %v5306_v15 = vsel %vm2427_vm0, %v20481_v59, 0.0 }
 0x7c2   : > { %20474 = vst [vmem:[#allocation37_spill] sm:$0xff] %v17951_v36  ;;  %v17973_v36 = vpop.f32.mrf.mxu1 }
 0x7c3   : > { %20484 = vst [vmem:[#allocation80_spill] sm:$0xff] %v17973_v36  ;;  %v5444_v36 = vsel %vm2427_vm0, %v20491_v60, 0.0  ;;  %v20499_v60 = vld [vmem:[#allocation115_spill] sm:$0xff] }
 0x7c4   : > { %v17957_v39 = vpop.xlane.xlu1 %5418 }
 0x7c5   : > { %20476 = vst [vmem:[#allocation130_spill] sm:$0xff] %v17957_v39  ;;  %5301 = vadd.xlane.f32.xlu0 %v5300_v8  ;;  %v17961_v32 = vpop.xlane.xlu0 %5415  ;;  %v20486_v8 = vld [vmem:[#allocation100_spill] sm:$0xff] }
 0x7c6   : > { %20478 = vst [vmem:[#allocation131_spill] sm:$0xff] %v17961_v32  ;;  %v5309_v42 = vsel %vm2427_vm0, %v20486_v8, 0.0  ;;  %v20494_v8 = vld [vmem:[#allocation127_spill] sm:$0xff] }
 0x7c8   : > { %v17965_v5 = vpop.xlane.xlu1 %5508 }
 0x7c9   : > { %20480 = vst [vmem:[#allocation40_spill] sm:$0xff] %v17965_v5  ;;  %5307 = vadd.xlane.f32.xlu0 %v5306_v15  ;;  %v17969_v4 = vpop.xlane.xlu0 %5505  ;;  %v20488_v5 = vld [vmem:[#allocation128_spill] sm:$0xff]  ;;  %v17983_v15 = vpop.f32.mrf.mxu1 }
 0x7ca   : > { %20482 = vst [vmem:[#allocation90_spill] sm:$0xff] %v17969_v4  ;;  %v5447_v59 = vsel %vm2427_vm0, %v20488_v5, 0.0  ;;  %20489 = vst [vmem:[#allocation46_spill] sm:$0xff] %v17983_v15  ;;  %v20496_v5 = vld [vmem:[#allocation129_spill] sm:$0xff] }
 0x7cb   : > { %v5450_v15 = vsel %vm2427_vm0, %v20496_v5, 0.0  ;;  %v20502_v5 = vld [vmem:[#allocation101_spill] sm:$0xff] }
 0x7cc   : > { %v17975_v39 = vpop.xlane.xlu1 %5514  ;;  %5304 = vadd.xlane.f32.xlu1 %v5303_v2  ;;  %v17991_v2 = vpop.f32.mrf.mxu1 }
 0x7cd   : > { %20485 = vst [vmem:[#allocation63_spill] sm:$0xff] %v17975_v39  ;;  %5310 = vadd.xlane.f32.xlu0 %v5309_v42  ;;  %v17979_v54 = vpop.xlane.xlu0 %5511  ;;  %20493 = vst [vmem:[#allocation128_spill] sm:$0xff] %v17991_v2  ;;  %v5453_v42 = vsel %vm2427_vm0, %v20494_v8, 0.0  ;;  %v20500_v2 = vld [vmem:[#allocation91_spill] sm:$0xff] }
 0x7ce   : > { %20487 = vst [vmem:[#allocation36_spill] sm:$0xff] %v17979_v54  ;;  %v5540_v8 = vsel %vm2427_vm0, %v20500_v2, 0.0  ;;  %v5639_v2 = vsel %vm2427_vm0, %v17582_v7, 0.0 }
 0x7d0   : > { %v17985_v4 = vpop.xlane.xlu1 %5604  ;;  %5448 = vadd.xlane.f32.xlu1 %v5447_v59  ;;  %v18001_v59 = vpop.f32.mrf.mxu1 }
 0x7d1   : > { %20490 = vst [vmem:[#allocation94_spill] sm:$0xff] %v17985_v4  ;;  %5445 = vadd.xlane.f32.xlu0 %v5444_v36  ;;  %v17989_v39 = vpop.xlane.xlu0 %5601  ;;  %20498 = vst [vmem:[#allocation129_spill] sm:$0xff] %v18001_v59  ;;  %v5543_v36 = vsel %vm2427_vm0, %v20499_v60, 0.0  ;;  %v20503_v59 = vld [vmem:[#allocation114_spill] sm:$0xff] }
 0x7d2   : > { %20492 = vst [vmem:[#allocation100_spill] sm:$0xff] %v17989_v39  ;;  %v5546_v60 = vsel %vm2427_vm0, %v20503_v59, 0.0 }
 0x7d4   : > { %v17995_v54 = vpop.xlane.xlu1 %5610  ;;  %5454 = vadd.xlane.f32.xlu1 %v5453_v42  ;;  %v18011_v42 = vpop.f32.mrf.mxu1 }
 0x7d5   : > { %20495 = vst [vmem:[#allocation59_spill] sm:$0xff] %v17995_v54  ;;  %5451 = vadd.xlane.f32.xlu0 %v5450_v15  ;;  %v17999_v4 = vpop.xlane.xlu0 %5607  ;;  %20501 = vst [vmem:[#allocation115_spill] sm:$0xff] %v18011_v42  ;;  %v5549_v15 = vsel %vm2427_vm0, %v20502_v5, 0.0  ;;  %v5636_v5 = vsel %vm2427_vm0, %v17579_v46, 0.0  ;;  %v5642_v46 = vsel %vm2427_vm0, %v17679_v19, 0.0  ;;  %v13508_v19 = vpop.eup %13507 }
 0x7d6   : > { %20497 = vst [vmem:[#allocation127_spill] sm:$0xff] %v17999_v4  ;;  %v13510_v40 = vpop.eup %13509 }
 0x7d7   : > { %v13512_v44 = vpop.eup %13511  ;;  %v7563_v37 = vmul.f32 %v13510_v40, %v17829_v22 }
 0x7d8   : > { %v18005_v39 = vpop.xlane.xlu1 %5280  ;;  %5544 = vadd.xlane.f32.xlu1 %v5543_v36  ;;  %v18021_v36 = vpop.f32.mrf.mxu1  ;;  %v7621_v56 = vmul.f32 %v13512_v44, %v17941_v0 }
 0x7d9   : > { %5541 = vadd.xlane.f32.xlu0 %v5540_v8  ;;  %v18009_v54 = vpop.xlane.xlu0 %5277  ;;  %20504 = vst [vmem:[#allocation91_spill] sm:$0xff] %v18021_v36  ;;  %13531 = vrcp.f32 %v18005_v39 }
 0x7da   : > { %v18026_v8 = vpop.f32.mrf.mxu1  ;;  %13533 = vrcp.f32 %v18009_v54 }
 0x7db   : > { %20505 = vst [vmem:[#allocation101_spill] sm:$0xff] %v18026_v8 }
 0x7dc   : > { %v18015_v4 = vpop.xlane.xlu1 %5286  ;;  %5550 = vadd.xlane.f32.xlu1 %v5549_v15  ;;  %v18038_v15 = vpop.f32.mrf.mxu1 }
 0x7dd   : > { %5547 = vadd.xlane.f32.xlu0 %v5546_v60  ;;  %v18019_v32 = vpop.xlane.xlu0 %5283  ;;  %20506 = vst [vmem:[#allocation114_spill] sm:$0xff] %v18038_v15  ;;  %13535 = vrcp.f32 %v18015_v4 }
 0x7de   : > { %v18050_v62 = vpop.f32.mrf.mxu1  ;;  %13537 = vrcp.f32 %v18019_v32 }
 0x7df   : > { %20507 = vst [vmem:[#allocation135_spill] sm:$0xff] %v18050_v62  ;;  %13539 = vrcp.f32 %v17921_v38  ;;  %v5654_v38 = vsel %vm2427_vm0, %v17715_v16, 0.0 }
 0x7e0   : > { %v18028_v42 = vpop.xlane.xlu1 %5424  ;;  %5640 = vadd.xlane.f32.xlu1 %v5639_v2  ;;  %v18060_v21 = vpop.f32.mrf.mxu1  ;;  %v7561_v2 = vmul.f32 %v13508_v19, %v17813_v25  ;;  %13541 = vrcp.f32 %v17919_v31 }
 0x7e1   : > { %5637 = vadd.xlane.f32.xlu0 %v5636_v5  ;;  %v18033_v59 = vpop.xlane.xlu0 %5421  ;;  %20508 = vst [vmem:[#allocation136_spill] sm:$0xff] %v18060_v21  ;;  %13543 = vrcp.f32 %v17927_v9 }
 0x7e2   : > { %v12489_v60 = vpop.f32.mrf.mxu1  ;;  %v12838_v21 = vpack.i.bf16 %v7563_v37, %v7561_v2 }
 0x7e4   : > { %v18041_v7 = vpop.xlane.xlu1 %5430  ;;  %5646 = vadd.xlane.f32.xlu1 %v5645_v13  ;;  %v13514_v13 = vpop.eup %13513  ;;  %13545 = vrcp.f32 %v17915_v57 }
 0x7e5   : > { %5643 = vadd.xlane.f32.xlu0 %v5642_v46  ;;  %v18046_v24 = vpop.xlane.xlu0 %5427  ;;  %v13516_v46 = vpop.eup %13515  ;;  %13547 = vrcp.f32 %v17925_v33 }
 0x7e6   : > { %v7139_v62 = vpop.f32.mrf.mxu1  ;;  %v13518_v8 = vpop.eup %13517  ;;  %v7623_v19 = vmul.f32 %v13516_v46, %v17953_v52  ;;  %13549 = vrcp.f32 %v17912_v48 }
 0x7e7   : > { %v13520_v15 = vpop.eup %13519  ;;  %v7559_v2 = vmul.f32 %v13518_v8, %v17838_v51  ;;  %13551 = vrcp.f32 %v17933_v12 }
 0x7e8   : > { %v18053_v20 = vpop.xlane.xlu1 %5520  ;;  %v12490_v22 = vpop.f32.mrf.mxu1  ;;  %v7625_v0 = vmul.f32 %v13520_v15, %v17935_v45 }
 0x7e9   : > { %v18056_v47 = vpop.xlane.xlu0 %5517 }
 0x7ec   : > { %v18062_v14 = vpop.xlane.xlu1 %5526 }
 0x7ed   : > { %20509 = vst [vmem:[#allocation137_spill] sm:$0xff] %v18062_v14  ;;  %v18065_v35 = vpop.xlane.xlu0 %5523  ;;  %v12843_v14 = vpack.i.bf16 %v7623_v19, %v7621_v56 }
 0x7ee   : > { %20510 = vst [vmem:[#allocation138_spill] sm:$0xff] %v18065_v35  ;;  %v13522_v35 = vpop.eup %13521  ;;  %13553 = vrcp.f32 %v17931_v55 }
 0x7ef   : > { %v7627_v52 = vmul.f32 %v13522_v35, %v17947_v17 }
 0x7f0   : > { %v18068_v5 = vpop.xlane.xlu1 %5616 }
 0x7f1   : > { %20511 = vst [vmem:[#allocation139_spill] sm:$0xff] %v18068_v5  ;;  %v18070_v49 = vpop.xlane.xlu0 %5613  ;;  %v13524_v5 = vpop.eup %13523  ;;  %v12848_v56 = vpack.i.bf16 %v7627_v52, %v7625_v0  ;;  %13555 = vrcp.f32 %v17939_v43 }
 0x7f2   : > { %20512 = vst [vmem:[#allocation140_spill] sm:$0xff] %v18070_v49  ;;  %v7557_v49 = vmul.f32 %v13514_v13, %v17821_v1  ;;  %v13526_v40 = vpop.eup %13525  ;;  %v7685_v46 = vmul.f32 %v13524_v5, %v7139_v62  ;;  %v7142_v13 = vpop.f32.mrf.mxu1  ;;  %13557 = vrcp.f32 %v17937_v30 }
 0x7f3   : > { %v13528_v44 = vpop.eup %13527  ;;  %v7687_v19 = vmul.f32 %v13526_v40, %v7142_v13  ;;  %v20522_v13 = vld [vmem:[#allocation120_spill] sm:$0xff]  ;;  %13559 = vrcp.f32 %v17945_v29 }
 0x7f4   : > { %v18074_v36 = vpop.xlane.xlu1 %5622  ;;  %v13530_v1 = vpop.eup %13529  ;;  %v7689_v51 = vmul.f32 %v13528_v44, %v12489_v60  ;;  %13561 = vrcp.f32 %v17943_v58 }
 0x7f5   : > { %20513 = vst [vmem:[#allocation141_spill] sm:$0xff] %v18074_v36  ;;  %12839 = vrot.lane.b32.xlu1 %v12838_v21, %s14282_s22  ;;  %v18077_v25 = vpop.xlane.xlu0 %5619  ;;  %v12833_v36 = vpack.i.bf16 %v7559_v2, %v7557_v49  ;;  %v12853_v15 = vpack.i.bf16 %v7687_v19, %v7685_v46  ;;  %v13532_v39 = vpop.eup %13531 }
 0x7f6   : > { %v13534_v46 = vpop.eup %13533  ;;  %v7487_v19 = vmul.f32 %v13532_v39, %v17511_v23 }
 0x7f8   : > { %v18083_v37 = vpop.xlane.xlu1 %5292 }
 0x7f9   : > { %12844 = vrot.lane.b32.xlu1 %v12843_v14, %s14284_s17  ;;  %v18086_v21 = vpop.xlane.xlu0 %5289  ;;  %v7691_v14 = vmul.f32 %v13530_v1, %v12490_v22  ;;  %13563 = vrcp.f32 %v18083_v37 }
 0x7fa   : > { %13565 = vrcp.f32 %v18086_v21 }
 0x7fb   : > { %12834 = vrot.lane.b32.xlu0 %v12833_v36, %s14282_s22  ;;  %v12858_v49 = vpack.i.bf16 %v7691_v14, %v7689_v51 }
 0x7fc   : > { %v18090_v8 = vpop.xlane.xlu1 %5298 }
 0x7fd   : > { %12849 = vrot.lane.b32.xlu1 %v12848_v56, %s14284_s17  ;;  %v18093_v45 = vpop.xlane.xlu0 %5295  ;;  %v7485_v56 = vmul.f32 %v13534_v46, %v20522_v13  ;;  %v13536_v46 = vpop.eup %13535  ;;  %13567 = vrcp.f32 %v18090_v8 }
 0x7ff   : > { %12854 = vrot.lane.b32.xlu0 %v12853_v15, %s14283_s16 }
 0x800   : > { %v18096_v17 = vpop.xlane.xlu1 %5436 }
 0x801   : > { %12859 = vrot.lane.b32.xlu1 %v12858_v49, %s14283_s16  ;;  %v18099_v62 = vpop.xlane.xlu0 %5433 }
 0x804   : > { %v18101_v36 = vpop.xlane.xlu1 %5442 }
 0x805   : > { %v18103_v35 = vpop.xlane.xlu0 %5439 }
 0x808   : > { %v18105_v60 = vpop.xlane.xlu1 %5532 }
 0x809   : > { %20514 = vst [vmem:[#allocation142_spill] sm:$0xff] %v18105_v60  ;;  %v18108_v5 = vpop.xlane.xlu0 %5529 }
 0x80a   : > { %20515 = vst [vmem:[#allocation143_spill] sm:$0xff] %v18108_v5 }
 0x80c   : > { %v18111_v22 = vpop.xlane.xlu1 %5538 }
 0x80d   : > { %20516 = vst [vmem:[#allocation144_spill] sm:$0xff] %v18111_v22  ;;  %v18113_v40 = vpop.xlane.xlu0 %5535 }
 0x80e   : > { %20517 = vst [vmem:[#allocation145_spill] sm:$0xff] %v18113_v40 }
 0x810   : > { %v18115_v2 = vpop.xlane.xlu1 %5628 }
 0x811   : > { %20518 = vst [vmem:[#allocation146_spill] sm:$0xff] %v18115_v2  ;;  %v18117_v0 = vpop.xlane.xlu0 %5625 }
 0x812   : > { %20519 = vst [vmem:[#allocation147_spill] sm:$0xff] %v18117_v0 }
 0x814   : > { %v18121_v44 = vpop.xlane.xlu1 %5634 }
 0x815   : > { %20520 = vst [vmem:[#allocation148_spill] sm:$0xff] %v18121_v44  ;;  %v18123_v52 = vpop.xlane.xlu0 %5631 }
 0x816   : > { %20521 = vst [vmem:[#allocation149_spill] sm:$0xff] %v18123_v52  ;;  %v20523_v52 = vld [vmem:[#allocation85_spill] sm:$0xff] }
 0x817   : > { %v5312_v2 = vsel %vm2427_vm0, %v20523_v52, 0.0 }
 0x818   : > { %v12810_v1 = vpop.permute.xlu1 %12809 }
 0x819   : > { %v12805_v54 = vpop.permute.xlu0 %12804 }
 0x81a   : > { %v12807_v51 = vunpack.i.h.bf16 %v12805_v54  ;;  %v12806_v15 = vunpack.i.l.bf16 %v12805_v54  ;;  %v13538_v54 = vpop.eup %13537  ;;  %13569 = vrcp.f32 %v18093_v45 }
 0x81c   : > { %v8125_v14 = vsel %vm2427_vm0, %v7487_v19, %v12807_v51  ;;  %v8124_v4 = vsel %vm2427_vm0, %v7485_v56, %v12806_v15  ;;  %v12815_v49 = vpop.permute.xlu1 %12814  ;;  %v12812_v51 = vunpack.i.h.bf16 %v12810_v1  ;;  %v12811_v15 = vunpack.i.l.bf16 %v12810_v1 }
 0x81d   : > { %v12817_v32 = vunpack.i.h.bf16 %v12815_v49  ;;  %v12816_v44 = vunpack.i.l.bf16 %v12815_v49  ;;  %v12825_v0 = vpop.permute.xlu0 %12824  ;;  %v20524_v49 = vld [vmem:[#allocation77_spill] sm:$0xff] }
 0x81e   : > { %v12827_v40 = vunpack.i.h.bf16 %v12825_v0  ;;  %v12826_v22 = vunpack.i.l.bf16 %v12825_v0  ;;  %5313 = vadd.xlane.f32.xlu0 %v5312_v2  ;;  %v5318_v52 = vsel %vm2427_vm0, %v20524_v49, 0.0  ;;  %v7491_v2 = vmul.f32 %v13536_v46, %v17507_v6  ;;  %v20528_v49 = vld [vmem:[#allocation73_spill] sm:$0xff] }
 0x81f   : > { %v8157_v23 = vsel %vm8156_vm1, %v8124_v4, %v12816_v44  ;;  %v8158_v39 = vsel %vm8156_vm1, %v8125_v14, %v12817_v32  ;;  %v20525_v44 = vld [vmem:[#allocation33_spill] sm:$0xff] }
 0x820   : > { %v12820_v13 = vpop.permute.xlu1 %12819  ;;  %v8190_v56 = vsel %vm8189_vm2, %v8157_v23, %v12826_v22  ;;  %v8191_v19 = vsel %vm8189_vm2, %v8158_v39, %v12827_v40  ;;  %v7489_v4 = vmul.f32 %v13538_v54, %v20525_v44  ;;  %v20526_v32 = vld [vmem:[#allocation29_spill] sm:$0xff]  ;;  %v20527_v23 = vld [vmem:[#allocation99_spill] sm:$0xff]  ;;  %v8127_v1 = vsel %vm2427_vm0, %v7491_v2, %v12812_v51  ;;  %v20529_v51 = vld [vmem:[#allocation56_spill] sm:$0xff] }
 0x821   : > { %v8222_v60 = vpack.c.bf16 %v8191_v19, %v8190_v56  ;;  %v12822_v5 = vunpack.i.h.bf16 %v12820_v13  ;;  %v12821_v0 = vunpack.i.l.bf16 %v12820_v13  ;;  %v5315_v22 = vsel %vm2427_vm0, %v20526_v32, 0.0  ;;  %v20530_v2 = vld [vmem:[#allocation134_spill] sm:$0xff]  ;;  %v20533_v32 = vld [vmem:[#allocation93_spill] sm:$0xff] }
 0x822   : > { %5319 = vadd.xlane.f32.xlu0 %v5318_v52  ;;  %v5321_v40 = vsel %vm2427_vm0, %v20527_v23, 0.0  ;;  %v8126_v39 = vsel %vm2427_vm0, %v7489_v4, %v12811_v15  ;;  %v5459_v52 = vsel %vm2427_vm0, %v20528_v49, 0.0  ;;  %v5456_v15 = vsel %vm2427_vm0, %v20529_v51, 0.0  ;;  %v20532_v4 = vld [vmem:[#allocation119_spill] sm:$0xff] }
 0x823   : > { %12555 = vmatprep.mubr.bf16.mxu0 %v8222_v60  ;;  %v8160_v13 = vsel %vm8156_vm1, %v8127_v1, %v12822_v5  ;;  %v8159_v6 = vsel %vm8156_vm1, %v8126_v39, %v12821_v0  ;;  %v5465_v5 = vsel %vm2427_vm0, %v20530_v2, 0.0  ;;  %v20531_v0 = vld [vmem:[#allocation72_spill] sm:$0xff]  ;;  %v20534_v23 = vld [vmem:[#allocation31_spill] sm:$0xff]  ;;  %v20535_v1 = vld [vmem:[#allocation122_spill] sm:$0xff] }
 0x824   : > { %v12830_v14 = vpop.permute.xlu1 %12829  ;;  %v5462_v44 = vsel %vm2427_vm0, %v20531_v0, 0.0  ;;  %v5558_v39 = vsel %vm2427_vm0, %v20535_v1, 0.0 }
 0x825   : > { %v12832_v56 = vunpack.i.h.bf16 %v12830_v14  ;;  %v12831_v19 = vunpack.i.l.bf16 %v12830_v14  ;;  %5316 = vadd.xlane.f32.xlu1 %v5315_v22  ;;  %v5555_v14 = vsel %vm2427_vm0, %v20532_v4, 0.0  ;;  %v5552_v22 = vsel %vm2427_vm0, %v20533_v32, 0.0 }
 0x826   : > { %5322 = vadd.xlane.f32.xlu0 %v5321_v40  ;;  %v5561_v40 = vsel %vm2427_vm0, %v20534_v23, 0.0 }
 0x827   : > { %v8193_v60 = vsel %vm8189_vm2, %v8160_v13, %v12832_v56  ;;  %v8192_v46 = vsel %vm8189_vm2, %v8159_v6, %v12831_v19  ;;  %v5651_v56 = vsel %vm2427_vm0, %v17700_v26, 0.0  ;;  %v5648_v19 = vsel %vm2427_vm0, %v17695_v63, 0.0  ;;  %v13540_v63 = vpop.eup %13539 }
 0x828   : > { %v8223_v54 = vpack.c.bf16 %v8193_v60, %v8192_v46  ;;  %v5657_v13 = vsel %vm2427_vm0, %v17712_v53, 0.0  ;;  %v13542_v26 = vpop.eup %13541  ;;  %v12497_v53 = vpop.f32.mrf.mxu0  ;;  %v7569_v16 = vmul.f32 %v13540_v63, %v17633_v27 }
 0x829   : > { %5460 = vadd.xlane.f32.xlu1 %v5459_v52  ;;  %v13544_v57 = vpop.eup %13543  ;;  %v7571_v48 = vmul.f32 %v13542_v26, %v17649_v41 }
 0x82a   : > { %12556 = vmatmul.mubr.bf16.vlgmr.msra.gmra.mxu0 %v8223_v54  ;;  %5457 = vadd.xlane.f32.xlu0 %v5456_v15  ;;  %v13546_v31 = vpop.eup %13545  ;;  %v7194_v9 = vpop.f32.mrf.mxu0  ;;  %v7629_v43 = vmul.f32 %v13544_v57, %v17781_v3 }
 0x82b   : > { %v13548_v33 = vpop.eup %13547  ;;  %v12868_v12 = vpack.i.bf16 %v7571_v48, %v7569_v16  ;;  %v7565_v27 = vmul.f32 %v13546_v31, %v17643_v10 }
 0x82c   : > { %v13550_v55 = vpop.eup %13549  ;;  %v7631_v58 = vmul.f32 %v13548_v33, %v17797_v18  ;;  %v12498_v46 = vpop.f32.mrf.mxu0 }
 0x82d   : > { %5466 = vadd.xlane.f32.xlu1 %v5465_v5  ;;  %v13552_v30 = vpop.eup %13551  ;;  %v7567_v49 = vmul.f32 %v13550_v55, %v17657_v34 }
 0x82e   : > { %5463 = vadd.xlane.f32.xlu0 %v5462_v44  ;;  %v13554_v6 = vpop.eup %13553  ;;  %v12873_v41 = vpack.i.bf16 %v7631_v58, %v7629_v43  ;;  %v7633_v52 = vmul.f32 %v13552_v30, %v17773_v61  ;;  %v7197_v0 = vpop.f32.mrf.mxu0 }
 0x82f   : > { %v13556_v60 = vpop.eup %13555  ;;  %v12863_v15 = vpack.i.bf16 %v7567_v49, %v7565_v27  ;;  %v7635_v2 = vmul.f32 %v13554_v6, %v17789_v28  ;;  %v20536_v6 = vld [vmem:[#allocation88_spill] sm:$0xff] }
 0x830   : > { %v13558_v54 = vpop.eup %13557  ;;  %v7693_v5 = vmul.f32 %v13556_v60, %v7194_v9  ;;  %v5324_v58 = vsel %vm2427_vm0, %v20536_v6, 0.0 }
 0x831   : > { %5556 = vadd.xlane.f32.xlu1 %v5555_v14  ;;  %v13560_v51 = vpop.eup %13559  ;;  %v12878_v10 = vpack.i.bf16 %v7635_v2, %v7633_v52  ;;  %v7695_v44 = vmul.f32 %v13558_v54, %v7197_v0 }
 0x832   : > { %5553 = vadd.xlane.f32.xlu0 %v5552_v22  ;;  %v13562_v18 = vpop.eup %13561  ;;  %v7697_v4 = vmul.f32 %v13560_v51, %v12497_v53 }
 0x833   : > { %v12883_v61 = vpack.i.bf16 %v7695_v44, %v7693_v5  ;;  %v7699_v32 = vmul.f32 %v13562_v18, %v12498_v46  ;;  %v13564_v37 = vpop.eup %13563  ;;  %v20538_v5 = vld [vmem:[#allocation79_spill] sm:$0xff] }
 0x834   : > { %v13566_v16 = vpop.eup %13565  ;;  %v7495_v48 = vmul.f32 %v13564_v37, %v17693_v11  ;;  %v5330_v18 = vsel %vm2427_vm0, %v20538_v5, 0.0  ;;  %v20542_v37 = vld [vmem:[#allocation57_spill] sm:$0xff] }
 0x835   : > { %5562 = vadd.xlane.f32.xlu1 %v5561_v40  ;;  %v12888_v22 = vpack.i.bf16 %v7699_v32, %v7697_v4  ;;  %v7493_v31 = vmul.f32 %v13566_v16, %v17671_v50  ;;  %v13568_v46 = vpop.eup %13567  ;;  %v20541_v32 = vld [vmem:[#allocation124_spill] sm:$0xff] }
 0x836   : > { %5559 = vadd.xlane.f32.xlu0 %v5558_v39  ;;  %v13570_v54 = vpop.eup %13569 }
 0x837   : > { %v7497_v16 = vmul.f32 %v13570_v54, %v20542_v37  ;;  %v20550_v54 = vld [vmem:[#allocation100_spill] sm:$0xff] }
 0x839   : > { %5652 = vadd.xlane.f32.xlu1 %v5651_v56 }
 0x83a   : > { %5649 = vadd.xlane.f32.xlu0 %v5648_v19 }
 0x83d   : > { %5658 = vadd.xlane.f32.xlu1 %v5657_v13 }
 0x83e   : > { %5655 = vadd.xlane.f32.xlu0 %v5654_v38 }
 0x84e   : > { %12869 = vrot.lane.b32.xlu1 %v12868_v12, %s14282_s22  ;;  %v18189_v29 = vpop.xlane.xlu0 %5301 }
 0x852   : > { %12874 = vrot.lane.b32.xlu1 %v12873_v41, %s14284_s17  ;;  %v18196_v3 = vpop.xlane.xlu0 %5307  ;;  %v20537_v41 = vld [vmem:[#allocation131_spill] sm:$0xff] }
 0x853   : > { %13571 = vrcp.f32 %v20537_v41  ;;  %v20551_v41 = vld [vmem:[#allocation94_spill] sm:$0xff] }
 0x854   : > { %12864 = vrot.lane.b32.xlu0 %v12863_v15, %s14282_s22 }
 0x855   : > { %v18200_v14 = vpop.xlane.xlu1 %5304 }
 0x856   : > { %12879 = vrot.lane.b32.xlu1 %v12878_v10, %s14284_s17  ;;  %v18203_v34 = vpop.xlane.xlu0 %5310  ;;  %v20539_v10 = vld [vmem:[#allocation130_spill] sm:$0xff] }
 0x857   : > { %13573 = vrcp.f32 %v20539_v10 }
 0x858   : > { %12884 = vrot.lane.b32.xlu0 %v12883_v61, %s14283_s16  ;;  %v20540_v61 = vld [vmem:[#allocation37_spill] sm:$0xff] }
 0x859   : > { %v18206_v28 = vpop.xlane.xlu1 %5448  ;;  %13575 = vrcp.f32 %v20540_v61 }
 0x85a   : > { %12889 = vrot.lane.b32.xlu1 %v12888_v22, %s14283_s16  ;;  %v18209_v23 = vpop.xlane.xlu0 %5445  ;;  %v7499_v22 = vmul.f32 %v13568_v46, %v20541_v32  ;;  %v20548_v46 = vld [vmem:[#allocation36_spill] sm:$0xff] }
 0x85d   : > { %v18211_v40 = vpop.xlane.xlu1 %5454 }
 0x85e   : > { %v18213_v1 = vpop.xlane.xlu0 %5451 }
 0x861   : > { %v18215_v39 = vpop.xlane.xlu1 %5544 }
 0x862   : > { %v18218_v56 = vpop.xlane.xlu0 %5541 }
 0x865   : > { %v18221_v19 = vpop.xlane.xlu1 %5550 }
 0x866   : > { %v18223_v13 = vpop.xlane.xlu0 %5547 }
 0x869   : > { %v18225_v38 = vpop.xlane.xlu1 %5640 }
 0x86a   : > { %v18227_v63 = vpop.xlane.xlu0 %5637 }
 0x86d   : > { %v18231_v26 = vpop.xlane.xlu1 %5646 }
 0x86e   : > { %v18233_v53 = vpop.xlane.xlu0 %5643 }
 0x871   : > { %v12840_v57 = vpop.permute.xlu1 %12839 }
 0x872   : > { %v12835_v21 = vpop.permute.xlu0 %12834  ;;  %v12842_v15 = vunpack.i.h.bf16 %v12840_v57  ;;  %v12841_v2 = vunpack.i.l.bf16 %v12840_v57  ;;  %v20544_v57 = vld [vmem:[#allocation83_spill] sm:$0xff] }
 0x873   : > { %v12837_v33 = vunpack.i.h.bf16 %v12835_v21  ;;  %v12836_v9 = vunpack.i.l.bf16 %v12835_v21  ;;  %v20543_v21 = vld [vmem:[#allocation90_spill] sm:$0xff] }
 0x874   : > { %13577 = vrcp.f32 %v20543_v21 }
 0x875   : > { %v8129_v55 = vsel %vm2427_vm0, %v7495_v48, %v12837_v33  ;;  %v8128_v8 = vsel %vm2427_vm0, %v7493_v31, %v12836_v9  ;;  %v12845_v12 = vpop.permute.xlu1 %12844  ;;  %v5327_v48 = vsel %vm2427_vm0, %v20544_v57, 0.0  ;;  %v20545_v33 = vld [vmem:[#allocation92_spill] sm:$0xff] }
 0x876   : > { %v12847_v45 = vunpack.i.h.bf16 %v12845_v12  ;;  %v12846_v43 = vunpack.i.l.bf16 %v12845_v12  ;;  %v12855_v30 = vpop.permute.xlu0 %12854  ;;  %v5333_v9 = vsel %vm2427_vm0, %v20545_v33, 0.0 }
 0x877   : > { %v12857_v27 = vunpack.i.h.bf16 %v12855_v30  ;;  %v12856_v60 = vunpack.i.l.bf16 %v12855_v30  ;;  %5325 = vadd.xlane.f32.xlu0 %v5324_v58  ;;  %v20547_v58 = vld [vmem:[#allocation75_spill] sm:$0xff] }
 0x878   : > { %v8161_v50 = vsel %vm8156_vm1, %v8128_v8, %v12846_v43  ;;  %v8162_v11 = vsel %vm8156_vm1, %v8129_v55, %v12847_v45  ;;  %v8131_v55 = vsel %vm2427_vm0, %v7499_v22, %v12842_v15  ;;  %v8130_v8 = vsel %vm2427_vm0, %v7497_v16, %v12841_v2  ;;  %v20546_v43 = vld [vmem:[#allocation40_spill] sm:$0xff]  ;;  %v12505_v2 = vpop.f32.mrf.mxu1  ;;  %v20556_v16 = vld [vmem:[#allocation133_spill] sm:$0xff] }
 0x879   : > { %v12850_v49 = vpop.permute.xlu1 %12849  ;;  %v8194_v52 = vsel %vm8189_vm2, %v8161_v50, %v12856_v60  ;;  %v8195_v51 = vsel %vm8189_vm2, %v8162_v11, %v12857_v27  ;;  %13579 = vrcp.f32 %v20546_v43  ;;  %v20549_v11 = vld [vmem:[#allocation63_spill] sm:$0xff] }
 0x87a   : > { %v8224_v0 = vpack.c.bf16 %v8195_v51, %v8194_v52  ;;  %v12852_v44 = vunpack.i.h.bf16 %v12850_v49  ;;  %v12851_v4 = vunpack.i.l.bf16 %v12850_v49  ;;  %13581 = vrcp.f32 %v20547_v58  ;;  %v20552_v49 = vld [vmem:[#allocation127_spill] sm:$0xff]  ;;  %v13572_v52 = vpop.eup %13571  ;;  %v7249_v32 = vpop.f32.mrf.mxu1  ;;  %v20560_v58 = vld [vmem:[#allocation132_spill] sm:$0xff] }
 0x87b   : > { %5331 = vadd.xlane.f32.xlu0 %v5330_v18  ;;  %13583 = vrcp.f32 %v20548_v46  ;;  %v20553_v51 = vld [vmem:[#allocation59_spill] sm:$0xff]  ;;  %v13574_v15 = vpop.eup %13573 }
 0x87c   : > { %12559 = vmatprep.mubr.bf16.mxu0 %v8224_v0  ;;  %v8164_v30 = vsel %vm8156_vm1, %v8131_v55, %v12852_v44  ;;  %v8163_v6 = vsel %vm8156_vm1, %v8130_v8, %v12851_v4  ;;  %13585 = vrcp.f32 %v20549_v11  ;;  %v13576_v5 = vpop.eup %13575  ;;  %v20554_v18 = vld [vmem:[#allocation51_spill] sm:$0xff] }
 0x87d   : > { %v12860_v31 = vpop.permute.xlu1 %12859  ;;  %13587 = vrcp.f32 %v20550_v54  ;;  %v7577_v0 = vmul.f32 %v13572_v52, %v20554_v18  ;;  %v20555_v44 = vld [vmem:[#allocation55_spill] sm:$0xff] }
 0x87e   : > { %v12862_v12 = vunpack.i.h.bf16 %v12860_v31  ;;  %v12861_v45 = vunpack.i.l.bf16 %v12860_v31  ;;  %5328 = vadd.xlane.f32.xlu1 %v5327_v48  ;;  %13589 = vrcp.f32 %v20551_v41  ;;  %v7579_v4 = vmul.f32 %v13574_v15, %v20555_v44  ;;  %v20557_v48 = vld [vmem:[#allocation46_spill] sm:$0xff] }
 0x87f   : > { %5334 = vadd.xlane.f32.xlu0 %v5333_v9  ;;  %13591 = vrcp.f32 %v20552_v49  ;;  %v20558_v9 = vld [vmem:[#allocation116_spill] sm:$0xff] }
 0x880   : > { %v8197_v27 = vsel %vm8189_vm2, %v8164_v30, %v12862_v12  ;;  %v8196_v60 = vsel %vm8189_vm2, %v8163_v6, %v12861_v45  ;;  %13593 = vrcp.f32 %v20553_v51  ;;  %v12898_v37 = vpack.i.bf16 %v7579_v4, %v7577_v0  ;;  %v12506_v12 = vpop.f32.mrf.mxu1  ;;  %v20559_v30 = vld [vmem:[#allocation44_spill] sm:$0xff] }
 0x881   : > { %v8225_v50 = vpack.c.bf16 %v8197_v27, %v8196_v60  ;;  %v13578_v10 = vpop.eup %13577  ;;  %v7573_v55 = vmul.f32 %v13576_v5, %v20558_v9  ;;  %13595 = vrcp.f32 %v18028_v42  ;;  %v20565_v9 = vld [vmem:[#allocation117_spill] sm:$0xff] }
 0x882   : > { %v7637_v21 = vmul.f32 %v13578_v10, %v20556_v16  ;;  %v7252_v49 = vpop.f32.mrf.mxu1  ;;  %v20562_v16 = vld [vmem:[#allocation41_spill] sm:$0xff]  ;;  %13597 = vrcp.f32 %v18041_v7  ;;  %v20564_v7 = vld [vmem:[#allocation30_spill] sm:$0xff] }
 0x883   : > { %12560 = vmatmul.mubr.bf16.gmra.mxu0 %v8225_v50  ;;  %v20561_v50 = vld [vmem:[#allocation80_spill] sm:$0xff]  ;;  %13599 = vrcp.f32 %v18046_v24  ;;  %v5339_v24 = vsel %vm2427_vm0, %v20564_v7, 0.0 }
 0x884   : > { %13601 = vrcp.f32 %v18189_v29 }
 0x885   : > { %13603 = vrcp.f32 %v18200_v14  ;;  %v20567_v14 = vld [vmem:[#allocation138_spill] sm:$0xff] }
 0x886   : > { %v13580_v61 = vpop.eup %13579  ;;  %13605 = vrcp.f32 %v18033_v59  ;;  %v20568_v59 = vld [vmem:[#allocation139_spill] sm:$0xff] }
 0x887   : > { %v13582_v22 = vpop.eup %13581  ;;  %v7639_v33 = vmul.f32 %v13580_v61, %v20557_v48  ;;  %v20563_v48 = vld [vmem:[#allocation98_spill] sm:$0xff]  ;;  %13607 = vrcp.f32 %v18056_v47 }
 0x888   : > { %v13584_v31 = vpop.eup %13583  ;;  %v7575_v6 = vmul.f32 %v13582_v22, %v20559_v30  ;;  %13609 = vrcp.f32 %v18053_v20 }
 0x889   : > { %v13586_v57 = vpop.eup %13585  ;;  %v12903_v43 = vpack.i.bf16 %v7639_v33, %v7637_v21  ;;  %v7641_v27 = vmul.f32 %v13584_v31, %v20560_v58  ;;  %v5336_v21 = vsel %vm2427_vm0, %v20562_v16, 0.0  ;;  %v5342_v33 = vsel %vm2427_vm0, %v20563_v48, 0.0 }
 0x88a   : > { %v13588_v8 = vpop.eup %13587  ;;  %v12893_v46 = vpack.i.bf16 %v7575_v6, %v7573_v55  ;;  %v7643_v11 = vmul.f32 %v13586_v57, %v20561_v50  ;;  %v5345_v55 = vsel %vm2427_vm0, %v20565_v9, 0.0  ;;  %v12513_v50 = vpop.f32.mrf.mxu0 }
 0x88b   : > { %v13590_v45 = vpop.eup %13589  ;;  %v7701_v54 = vmul.f32 %v13588_v8, %v7249_v32  ;;  %v20566_v8 = vld [vmem:[#allocation137_spill] sm:$0xff] }
 0x88c   : > { %v13592_v60 = vpop.eup %13591  ;;  %v12908_v52 = vpack.i.bf16 %v7643_v11, %v7641_v27  ;;  %v7703_v51 = vmul.f32 %v13590_v45, %v7252_v49  ;;  %13611 = vrcp.f32 %v20566_v8 }
 0x88d   : > { %v13594_v41 = vpop.eup %13593  ;;  %v7705_v15 = vmul.f32 %v13592_v60, %v12505_v2  ;;  %13613 = vrcp.f32 %v20567_v14  ;;  %v20574_v60 = vld [vmem:[#allocation141_spill] sm:$0xff]  ;;  %v20579_v14 = vld [vmem:[#allocation47_spill] sm:$0xff] }
 0x88e   : > { %v12913_v5 = vpack.i.bf16 %v7703_v51, %v7701_v54  ;;  %v7707_v18 = vmul.f32 %v13594_v41, %v12506_v12  ;;  %13615 = vrcp.f32 %v20568_v59  ;;  %v20570_v12 = vld [vmem:[#allocation140_spill] sm:$0xff]  ;;  %v13596_v20 = vpop.eup %13595  ;;  %v20575_v41 = vld [vmem:[#allocation58_spill] sm:$0xff] }
 0x88f   : > { %12899 = vrot.lane.b32.xlu1 %v12898_v37, %s14282_s22  ;;  %13617 = vrcp.f32 %v20570_v12 }
 0x890   : > { %v12918_v0 = vpack.i.bf16 %v7707_v18, %v7705_v15  ;;  %13619 = vrcp.f32 %v18196_v3  ;;  %v20578_v18 = vld [vmem:[#allocation42_spill] sm:$0xff] }
 0x891   : > { %13621 = vrcp.f32 %v18203_v34  ;;  %v20576_v34 = vld [vmem:[#allocation78_spill] sm:$0xff] }
 0x892   : > { %13623 = vrcp.f32 %v18077_v25  ;;  %v20577_v25 = vld [vmem:[#allocation74_spill] sm:$0xff] }
 0x893   : > { %12904 = vrot.lane.b32.xlu1 %v12903_v43, %s14284_s17  ;;  %v13598_v43 = vpop.eup %13597  ;;  %13625 = vrcp.f32 %v20574_v60 }
 0x894   : > { %v13600_v6 = vpop.eup %13599  ;;  %v7587_v51 = vmul.f32 %v13598_v43, %v20576_v34  ;;  %13627 = vrcp.f32 %v18096_v17 }
 0x895   : > { %12894 = vrot.lane.b32.xlu0 %v12893_v46, %s14282_s22  ;;  %v13602_v27 = vpop.eup %13601  ;;  %v7585_v3 = vmul.f32 %v13600_v6, %v20575_v41  ;;  %13629 = vrcp.f32 %v18101_v36 }
 0x896   : > { %v13604_v46 = vpop.eup %13603  ;;  %13631 = vrcp.f32 %v18103_v35  ;;  %v20592_v35 = vld [vmem:[#allocation110_spill] sm:$0xff] }
 0x897   : > { %12909 = vrot.lane.b32.xlu1 %v12908_v52, %s14284_s17  ;;  %v13606_v11 = vpop.eup %13605  ;;  %v12928_v8 = vpack.i.bf16 %v7587_v51, %v7585_v3 }
 0x898   : > { %v13608_v49 = vpop.eup %13607 }
 0x899   : > { %12914 = vrot.lane.b32.xlu0 %v12913_v5, %s14283_s16  ;;  %v13610_v15 = vpop.eup %13609  ;;  %v7501_v5 = vmul.f32 %v13602_v27, %v20577_v25  ;;  %v7645_v59 = vmul.f32 %v13608_v49, %v20579_v14  ;;  %v20580_v27 = vld [vmem:[#allocation107_spill] sm:$0xff]  ;;  %v20581_v25 = vld [vmem:[#allocation38_spill] sm:$0xff]  ;;  %v20582_v49 = vld [vmem:[#allocation97_spill] sm:$0xff] }
 0x89a   : > { %v13612_v48 = vpop.eup %13611  ;;  %v7581_v41 = vmul.f32 %v13606_v11, %v20580_v27  ;;  %v7583_v51 = vmul.f32 %v13596_v20, %v20582_v49 }
 0x89b   : > { %12919 = vrot.lane.b32.xlu1 %v12918_v0, %s14283_s16  ;;  %v7503_v0 = vmul.f32 %v13604_v46, %v20578_v18  ;;  %v13614_v7 = vpop.eup %13613  ;;  %v7647_v18 = vmul.f32 %v13610_v15, %v20581_v25 }
 0x89c   : > { %v13616_v12 = vpop.eup %13615 }
 0x89d   : > { %v13618_v46 = vpop.eup %13617  ;;  %v12933_v14 = vpack.i.bf16 %v7647_v18, %v7645_v59  ;;  %v20585_v18 = vld [vmem:[#allocation121_spill] sm:$0xff] }
 0x8a7   : > { %v18285_v10 = vpop.xlane.xlu0 %5313 }
 0x8a8   : > { %13633 = vrcp.f32 %v18285_v10  ;;  %v5357_v10 = vsel %vm2427_vm0, %v20592_v35, 0.0 }
 0x8ab   : > { %v18287_v44 = vpop.xlane.xlu0 %5319 }
 0x8ae   : > { %v18289_v4 = vpop.xlane.xlu1 %5316 }
 0x8af   : > { %v18291_v61 = vpop.xlane.xlu0 %5322  ;;  %13635 = vrcp.f32 %v18289_v4  ;;  %v20594_v4 = vld [vmem:[#allocation145_spill] sm:$0xff] }
 0x8b0   : > { %13637 = vrcp.f32 %v18099_v62  ;;  %v20596_v62 = vld [vmem:[#allocation147_spill] sm:$0xff] }
 0x8b2   : > { %v18293_v32 = vpop.xlane.xlu1 %5460 }
 0x8b3   : > { %v18295_v2 = vpop.xlane.xlu0 %5457 }
 0x8b6   : > { %v18297_v22 = vpop.xlane.xlu1 %5466 }
 0x8b7   : > { %v18299_v37 = vpop.xlane.xlu0 %5463 }
 0x8b8   : > { %5337 = vadd.xlane.f32.xlu0 %v5336_v21 }
 0x8ba   : > { %v18306_v31 = vpop.xlane.xlu1 %5556 }
 0x8bb   : > { %v18309_v57 = vpop.xlane.xlu0 %5553 }
 0x8bc   : > { %5343 = vadd.xlane.f32.xlu0 %v5342_v33  ;;  %v7304_v33 = vpop.f32.mrf.mxu0 }
 0x8be   : > { %v18316_v42 = vpop.xlane.xlu1 %5562 }
 0x8bf   : > { %5340 = vadd.xlane.f32.xlu1 %v5339_v24  ;;  %v18321_v29 = vpop.xlane.xlu0 %5559 }
 0x8c0   : > { %5346 = vadd.xlane.f32.xlu0 %v5345_v55 }
 0x8c2   : > { %v18328_v47 = vpop.xlane.xlu1 %5652 }
 0x8c3   : > { %20569 = vst [vmem:[#allocation120_spill] sm:$0xff] %v18328_v47  ;;  %v18331_v45 = vpop.xlane.xlu0 %5649  ;;  %v12923_v47 = vpack.i.bf16 %v7583_v51, %v7581_v41 }
 0x8c4   : > { %20571 = vst [vmem:[#allocation85_spill] sm:$0xff] %v18331_v45 }
 0x8c6   : > { %v18336_v30 = vpop.xlane.xlu1 %5658 }
 0x8c7   : > { %20572 = vst [vmem:[#allocation77_spill] sm:$0xff] %v18336_v30  ;;  %v18338_v58 = vpop.xlane.xlu0 %5655 }
 0x8c8   : > { %20573 = vst [vmem:[#allocation33_spill] sm:$0xff] %v18338_v58 }
 0x8ca   : > { %v12870_v54 = vpop.permute.xlu1 %12869 }
 0x8cb   : > { %v12865_v52 = vpop.permute.xlu0 %12864  ;;  %v12872_v58 = vunpack.i.h.bf16 %v12870_v54  ;;  %v12871_v15 = vunpack.i.l.bf16 %v12870_v54 }
 0x8cc   : > { %v12867_v16 = vunpack.i.h.bf16 %v12865_v52  ;;  %v12866_v21 = vunpack.i.l.bf16 %v12865_v52 }
 0x8ce   : > { %v8133_v24 = vsel %vm2427_vm0, %v7503_v0, %v12867_v16  ;;  %v8132_v9 = vsel %vm2427_vm0, %v7501_v5, %v12866_v21  ;;  %v12875_v55 = vpop.permute.xlu1 %12874  ;;  %v13620_v0 = vpop.eup %13619 }
 0x8cf   : > { %v12877_v43 = vunpack.i.h.bf16 %v12875_v55  ;;  %v12876_v6 = vunpack.i.l.bf16 %v12875_v55  ;;  %v12885_v60 = vpop.permute.xlu0 %12884  ;;  %v12514_v16 = vpop.f32.mrf.mxu0 }
 0x8d0   : > { %12929 = vrot.lane.b32.xlu1 %v12928_v8, %s14282_s22  ;;  %v12887_v52 = vunpack.i.h.bf16 %v12885_v60  ;;  %v12886_v34 = vunpack.i.l.bf16 %v12885_v60  ;;  %v13622_v21 = vpop.eup %13621  ;;  %v20583_v8 = vld [vmem:[#allocation39_spill] sm:$0xff] }
 0x8d1   : > { %v8165_v5 = vsel %vm8156_vm1, %v8132_v9, %v12876_v6  ;;  %v8166_v3 = vsel %vm8156_vm1, %v8133_v24, %v12877_v43  ;;  %v7649_v30 = vmul.f32 %v13614_v7, %v20583_v8  ;;  %v13624_v60 = vpop.eup %13623  ;;  %v20584_v24 = vld [vmem:[#allocation96_spill] sm:$0xff]  ;;  %v7709_v43 = vmul.f32 %v13618_v46, %v7304_v33  ;;  %v7307_v59 = vpop.f32.mrf.mxu0  ;;  %v20591_v8 = vld [vmem:[#allocation142_spill] sm:$0xff] }
 0x8d2   : > { %v12880_v55 = vpop.permute.xlu1 %12879  ;;  %v8198_v11 = vsel %vm8189_vm2, %v8165_v5, %v12886_v34  ;;  %v8199_v27 = vsel %vm8189_vm2, %v8166_v3, %v12887_v52  ;;  %v7651_v20 = vmul.f32 %v13612_v48, %v20584_v24  ;;  %v13626_v6 = vpop.eup %13625  ;;  %v7505_v34 = vmul.f32 %v13620_v0, %v20585_v18  ;;  %v20586_v5 = vld [vmem:[#allocation71_spill] sm:$0xff] }
 0x8d3   : > { %v8226_v25 = vpack.c.bf16 %v8199_v27, %v8198_v11  ;;  %v12882_v45 = vunpack.i.h.bf16 %v12880_v55  ;;  %v12881_v9 = vunpack.i.l.bf16 %v12880_v55  ;;  %v7507_v52 = vmul.f32 %v13622_v21, %v20586_v5  ;;  %v20589_v11 = vld [vmem:[#allocation143_spill] sm:$0xff]  ;;  %v20590_v27 = vld [vmem:[#allocation84_spill] sm:$0xff] }
 0x8d4   : > { %12934 = vrot.lane.b32.xlu1 %v12933_v14, %s14284_s17  ;;  %v12938_v54 = vpack.i.bf16 %v7651_v20, %v7649_v30  ;;  %v7711_v3 = vmul.f32 %v13616_v12, %v7307_v59  ;;  %v7713_v41 = vmul.f32 %v13624_v60, %v12513_v50  ;;  %v8134_v49 = vsel %vm2427_vm0, %v7505_v34, %v12871_v15  ;;  %v20593_v60 = vld [vmem:[#allocation144_spill] sm:$0xff]  ;;  %v20595_v15 = vld [vmem:[#allocation146_spill] sm:$0xff]  ;;  %v20597_v20 = vld [vmem:[#allocation149_spill] sm:$0xff] }
 0x8d5   : > { %12563 = vmatprep.mubr.bf16.mxu0 %v8226_v25  ;;  %v8135_v51 = vsel %vm2427_vm0, %v7507_v52, %v12872_v58  ;;  %v8167_v33 = vsel %vm8156_vm1, %v8134_v49, %v12881_v9  ;;  %v7715_v21 = vmul.f32 %v13626_v6, %v12514_v16  ;;  %v20587_v58 = vld [vmem:[#allocation34_spill] sm:$0xff]  ;;  %13639 = vrcp.f32 %v20589_v11  ;;  %v13628_v9 = vpop.eup %13627  ;;  %v20598_v34 = vld [vmem:[#allocation148_spill] sm:$0xff]  ;;  %v12521_v52 = vpop.f32.mrf.mxu1  ;;  %v20603_v11 = vld [vmem:[#allocation129_spill] sm:$0xff] }
 0x8d6   : > { %v12890_v7 = vpop.permute.xlu1 %12889  ;;  %12924 = vrot.lane.b32.xlu0 %v12923_v47, %s14282_s22  ;;  %v8168_v46 = vsel %vm8156_vm1, %v8135_v51, %v12882_v45  ;;  %v12943_v0 = vpack.i.bf16 %v7711_v3, %v7709_v43  ;;  %v5348_v12 = vsel %vm2427_vm0, %v20587_v58, 0.0  ;;  %v20588_v45 = vld [vmem:[#allocation105_spill] sm:$0xff]  ;;  %v5351_v17 = vsel %vm2427_vm0, %v20590_v27, 0.0  ;;  %v13630_v24 = vpop.eup %13629  ;;  %v20599_v3 = vld [vmem:[#allocation68_spill] sm:$0xff] }
 0x8d7   : > { %v12892_v55 = vunpack.i.h.bf16 %v12890_v7  ;;  %v12891_v48 = vunpack.i.l.bf16 %v12890_v7  ;;  %v12948_v30 = vpack.i.bf16 %v7715_v21, %v7713_v41  ;;  %v5354_v16 = vsel %vm2427_vm0, %v20588_v45, 0.0  ;;  %v13632_v6 = vpop.eup %13631 }
 0x8d8   : > { %12939 = vrot.lane.b32.xlu1 %v12938_v54, %s14284_s17  ;;  %13641 = vrcp.f32 %v20591_v8  ;;  %v13634_v18 = vpop.eup %13633 }
 0x8d9   : > { %v8200_v14 = vsel %vm8189_vm2, %v8167_v33, %v12891_v48  ;;  %v8201_v47 = vsel %vm8189_vm2, %v8168_v46, %v12892_v55  ;;  %13643 = vrcp.f32 %v20593_v60  ;;  %v13636_v5 = vpop.eup %13635  ;;  %v20601_v48 = vld [vmem:[#allocation50_spill] sm:$0xff]  ;;  %v20602_v46 = vld [vmem:[#allocation60_spill] sm:$0xff]  ;;  %v20604_v60 = vld [vmem:[#allocation125_spill] sm:$0xff] }
 0x8da   : > { %12944 = vrot.lane.b32.xlu0 %v12943_v0, %s14283_s16  ;;  %v8227_v50 = vpack.c.bf16 %v8201_v47, %v8200_v14  ;;  %13645 = vrcp.f32 %v20594_v4  ;;  %v13638_v7 = vpop.eup %13637  ;;  %v7509_v33 = vmul.f32 %v13634_v18, %v20601_v48  ;;  %v7511_v0 = vmul.f32 %v13636_v5, %v20602_v46 }
 0x8db   : > { %13647 = vrcp.f32 %v20595_v15  ;;  %v7589_v4 = vmul.f32 %v13638_v7, %v20604_v60  ;;  %v20610_v60 = vld [vmem:[#allocation62_spill] sm:$0xff] }
 0x8dc   : > { %12949 = vrot.lane.b32.xlu1 %v12948_v30, %s14283_s16  ;;  %12564 = vmatmul.mubr.bf16.gmra.mxu0 %v8227_v50  ;;  %13649 = vrcp.f32 %v20596_v62  ;;  %v7359_v30 = vpop.f32.mrf.mxu1 }
 0x8dd   : > { %13651 = vrcp.f32 %v18287_v44  ;;  %v7593_v44 = vmul.f32 %v13632_v6, %v20599_v3 }
 0x8de   : > { %13653 = vrcp.f32 %v18291_v61  ;;  %v20600_v61 = vld [vmem:[#allocation126_spill] sm:$0xff] }
 0x8df   : > { %13655 = vrcp.f32 %v20597_v20  ;;  %v7595_v51 = vmul.f32 %v13630_v24, %v20600_v61  ;;  %v20605_v20 = vld [vmem:[#allocation91_spill] sm:$0xff] }
 0x8e0   : > { %13657 = vrcp.f32 %v20598_v34  ;;  %v12522_v34 = vpop.f32.mrf.mxu1 }
 0x8e1   : > { %13659 = vrcp.f32 %v18209_v23  ;;  %v20613_v23 = vld [vmem:[#allocation106_spill] sm:$0xff] }
 0x8e2   : > { %v13640_v41 = vpop.eup %13639  ;;  %13661 = vrcp.f32 %v18211_v40  ;;  %v5363_v40 = vsel %vm2427_vm0, %v20613_v23, 0.0 }
 0x8e3   : > { %v7653_v27 = vmul.f32 %v13640_v41, %v20603_v11  ;;  %13663 = vrcp.f32 %v18213_v1 }
 0x8e4   : > { %13665 = vrcp.f32 %v18218_v56  ;;  %v20614_v56 = vld [vmem:[#allocation48_spill] sm:$0xff] }
 0x8e5   : > { %v13642_v55 = vpop.eup %13641 }
 0x8e6   : > { %v13644_v47 = vpop.eup %13643  ;;  %v7655_v6 = vmul.f32 %v13642_v55, %v20605_v20 }
 0x8e7   : > { %v13646_v50 = vpop.eup %13645 }
 0x8f9   : > { %5349 = vadd.xlane.f32.xlu0 %v5348_v12 }
 0x8fd   : > { %5355 = vadd.xlane.f32.xlu0 %v5354_v16  ;;  %v12958_v16 = vpack.i.bf16 %v7595_v51, %v7593_v44  ;;  %v20606_v44 = vld [vmem:[#allocation76_spill] sm:$0xff]  ;;  %v12963_v51 = vpack.i.bf16 %v7655_v6, %v7653_v27  ;;  %v7362_v27 = vpop.f32.mrf.mxu1 }
 0x8fe   : > { %v7591_v41 = vmul.f32 %v13628_v9, %v20606_v44 }
 0x900   : > { %5352 = vadd.xlane.f32.xlu1 %v5351_v17  ;;  %v18385_v36 = vpop.xlane.xlu0 %5325  ;;  %v13648_v17 = vpop.eup %13647 }
 0x901   : > { %5358 = vadd.xlane.f32.xlu0 %v5357_v10  ;;  %v13650_v15 = vpop.eup %13649  ;;  %13667 = vrcp.f32 %v18385_v36  ;;  %v5369_v36 = vsel %vm2427_vm0, %v20614_v56, 0.0 }
 0x902   : > { %v13652_v18 = vpop.eup %13651  ;;  %v7717_v11 = vmul.f32 %v13650_v15, %v7359_v30 }
 0x904   : > { %v18393_v25 = vpop.xlane.xlu0 %5331 }
 0x907   : > { %v18398_v43 = vpop.xlane.xlu1 %5328 }
 0x908   : > { %v18400_v59 = vpop.xlane.xlu0 %5334  ;;  %13669 = vrcp.f32 %v18398_v43 }
 0x909   : > { %13671 = vrcp.f32 %v18206_v28 }
 0x90a   : > { %13673 = vrcp.f32 %v18215_v39 }
 0x90b   : > { %v12900_v54 = vpop.permute.xlu1 %12899  ;;  %13675 = vrcp.f32 %v18221_v19 }
 0x90c   : > { %v12895_v49 = vpop.permute.xlu0 %12894  ;;  %v12901_v55 = vunpack.i.l.bf16 %v12900_v54  ;;  %13677 = vrcp.f32 %v18223_v13 }
 0x90d   : > { %v12897_v21 = vunpack.i.h.bf16 %v12895_v49  ;;  %v12896_v14 = vunpack.i.l.bf16 %v12895_v49  ;;  %v13654_v49 = vpop.eup %13653  ;;  %13679 = vrcp.f32 %v18225_v38 }
 0x90e   : > { %13681 = vrcp.f32 %v18227_v63 }
 0x90f   : > { %v8137_v58 = vsel %vm2427_vm0, %v7511_v0, %v12897_v21  ;;  %v8136_v12 = vsel %vm2427_vm0, %v7509_v33, %v12896_v14  ;;  %v12905_v45 = vpop.permute.xlu1 %12904  ;;  %v20607_v33 = vld [vmem:[#allocation128_spill] sm:$0xff]  ;;  %v13656_v0 = vpop.eup %13655  ;;  %v12902_v21 = vunpack.i.h.bf16 %v12900_v54  ;;  %13683 = vrcp.f32 %v18231_v26 }
 0x910   : > { %v12907_v8 = vunpack.i.h.bf16 %v12905_v45  ;;  %v12906_v35 = vunpack.i.l.bf16 %v12905_v45  ;;  %v12915_v10 = vpop.permute.xlu0 %12914  ;;  %v7657_v46 = vmul.f32 %v13646_v50, %v20607_v33  ;;  %v12953_v45 = vpack.i.bf16 %v7591_v41, %v7589_v4 }
 0x911   : > { %12959 = vrot.lane.b32.xlu1 %v12958_v16, %s14282_s22  ;;  %v12917_v62 = vunpack.i.h.bf16 %v12915_v10  ;;  %v12916_v24 = vunpack.i.l.bf16 %v12915_v10  ;;  %v7721_v4 = vmul.f32 %v13656_v0, %v12521_v52  ;;  %13685 = vrcp.f32 %v18393_v25  ;;  %v20615_v25 = vld [vmem:[#allocation45_spill] sm:$0xff] }
 0x912   : > { %v8169_v5 = vsel %vm8156_vm1, %v8136_v12, %v12906_v35  ;;  %v8170_v3 = vsel %vm8156_vm1, %v8137_v58, %v12907_v8  ;;  %v20608_v58 = vld [vmem:[#allocation115_spill] sm:$0xff]  ;;  %v13658_v8 = vpop.eup %13657  ;;  %v20609_v35 = vld [vmem:[#allocation65_spill] sm:$0xff]  ;;  %13687 = vrcp.f32 %v18400_v59 }
 0x913   : > { %v12910_v61 = vpop.permute.xlu1 %12909  ;;  %v8202_v7 = vsel %vm8189_vm2, %v8169_v5, %v12916_v24  ;;  %v8203_v48 = vsel %vm8189_vm2, %v8170_v3, %v12917_v62  ;;  %v7659_v9 = vmul.f32 %v13644_v47, %v20608_v58  ;;  %v7513_v10 = vmul.f32 %v13652_v18, %v20609_v35  ;;  %v13660_v39 = vpop.eup %13659 }
 0x914   : > { %v8228_v14 = vpack.c.bf16 %v8203_v48, %v8202_v7  ;;  %v12912_v16 = vunpack.i.h.bf16 %v12910_v61  ;;  %v12911_v12 = vunpack.i.l.bf16 %v12910_v61  ;;  %v7515_v62 = vmul.f32 %v13654_v49, %v20610_v60  ;;  %v20611_v49 = vld [vmem:[#allocation35_spill] sm:$0xff]  ;;  %v13662_v19 = vpop.eup %13661  ;;  %v18463_v48 = vpop.f32.mrf.mxu0 }
 0x915   : > { %12964 = vrot.lane.b32.xlu1 %v12963_v51, %s14284_s17  ;;  %v12968_v54 = vpack.i.bf16 %v7659_v9, %v7657_v46  ;;  %v7719_v24 = vmul.f32 %v13648_v17, %v7362_v27  ;;  %v8138_v20 = vsel %vm2427_vm0, %v7513_v10, %v12901_v55  ;;  %v7723_v3 = vmul.f32 %v13658_v8, %v12522_v34  ;;  %v20612_v34 = vld [vmem:[#allocation82_spill] sm:$0xff]  ;;  %v13664_v43 = vpop.eup %13663 }
 0x916   : > { %12567 = vmatprep.mubr.bf16.mxu0 %v8228_v14  ;;  %v8139_v6 = vsel %vm2427_vm0, %v7515_v62, %v12902_v21  ;;  %v8171_v30 = vsel %vm8156_vm1, %v8138_v20, %v12911_v12  ;;  %v5360_v61 = vsel %vm2427_vm0, %v20611_v49, 0.0  ;;  %v5366_v51 = vsel %vm2427_vm0, %v20612_v34, 0.0  ;;  %v13666_v13 = vpop.eup %13665  ;;  %v7414_v0 = vpop.f32.mrf.mxu0  ;;  %v20616_v21 = vld [vmem:[#allocation54_spill] sm:$0xff]  ;;  %v20617_v14 = vld [vmem:[#allocation64_spill] sm:$0xff] }
 0x917   : > { %v12920_v50 = vpop.permute.xlu1 %12919  ;;  %12954 = vrot.lane.b32.xlu0 %v12953_v45, %s14282_s22  ;;  %v8172_v15 = vsel %vm8156_vm1, %v8139_v6, %v12912_v16  ;;  %v12973_v18 = vpack.i.bf16 %v7719_v24, %v7717_v11  ;;  %v12978_v52 = vpack.i.bf16 %v7723_v3, %v7721_v4  ;;  %13689 = vrcp.f32 %v18233_v53  ;;  %v13668_v63 = vpop.eup %13667  ;;  %v20620_v9 = vld [vmem:[#allocation70_spill] sm:$0xff]  ;;  %v20622_v24 = vld [vmem:[#allocation104_spill] sm:$0xff] }
 0x918   : > { %v12922_v5 = vunpack.i.h.bf16 %v12920_v50  ;;  %v12921_v47 = vunpack.i.l.bf16 %v12920_v50  ;;  %13691 = vrcp.f32 %v18293_v32  ;;  %v13670_v26 = vpop.eup %13669  ;;  %v7601_v59 = vmul.f32 %v13664_v43, %v20615_v25  ;;  %v20621_v10 = vld [vmem:[#allocation66_spill] sm:$0xff]  ;;  %v12530_v6 = vpop.f32.mrf.mxu0 }
 0x919   : > { %12969 = vrot.lane.b32.xlu1 %v12968_v54, %s14284_s17  ;;  %13693 = vrcp.f32 %v18295_v2  ;;  %v13672_v33 = vpop.eup %13671  ;;  %v7603_v55 = vmul.f32 %v13662_v19, %v20616_v21  ;;  %v7661_v45 = vmul.f32 %v13666_v13, %v20617_v14  ;;  %v20618_v2 = vld [vmem:[#allocation43_spill] sm:$0xff]  ;;  %v7519_v11 = vmul.f32 %v13670_v26, %v20620_v9  ;;  %v20627_v26 = vld [vmem:[#allocation118_spill] sm:$0xff]  ;;  %v12537_v14 = vpop.f32.mrf.mxu1 }
 0x91a   : > { %v8204_v44 = vsel %vm8189_vm2, %v8171_v30, %v12921_v47  ;;  %v8205_v41 = vsel %vm8189_vm2, %v8172_v15, %v12922_v5  ;;  %13695 = vrcp.f32 %v18297_v22  ;;  %v13674_v46 = vpop.eup %13673  ;;  %v7597_v16 = vmul.f32 %v13660_v39, %v20618_v2  ;;  %v20619_v22 = vld [vmem:[#allocation86_spill] sm:$0xff]  ;;  %v7417_v19 = vpop.f32.mrf.mxu0  ;;  %v20630_v2 = vld [vmem:[#allocation109_spill] sm:$0xff] }
 0x91b   : > { %12974 = vrot.lane.b32.xlu0 %v12973_v18, %s14283_s16  ;;  %v8229_v17 = vpack.c.bf16 %v8205_v41, %v8204_v44  ;;  %13697 = vrcp.f32 %v18299_v37  ;;  %v13676_v12 = vpop.eup %13675  ;;  %v7517_v58 = vmul.f32 %v13668_v63, %v20619_v22  ;;  %v12988_v35 = vpack.i.bf16 %v7603_v55, %v7601_v59  ;;  %v20623_v18 = vld [vmem:[#allocation85_spill] sm:$0xff] }
 0x91c   : > { %13699 = vrcp.f32 %v18309_v57  ;;  %v13678_v27 = vpop.eup %13677  ;;  %v7599_v57 = vmul.f32 %v13672_v33, %v20621_v10  ;;  %v7663_v4 = vmul.f32 %v13674_v46, %v20622_v24  ;;  %v7667_v25 = vmul.f32 %v13676_v12, %v20627_v26  ;;  %v20628_v33 = vld [vmem:[#allocation77_spill] sm:$0xff]  ;;  %v7469_v24 = vpop.f32.mrf.mxu1 }
 0x91d   : > { %12979 = vrot.lane.b32.xlu1 %v12978_v52, %s14283_s16  ;;  %12568 = vmatmul.mubr.bf16.gmra.mxu0 %v8229_v17  ;;  %13701 = vrcp.f32 %v18306_v31  ;;  %v13680_v60 = vpop.eup %13679  ;;  %v20624_v52 = vld [vmem:[#allocation120_spill] sm:$0xff] }
 0x91e   : > { %13703 = vrcp.f32 %v18321_v29  ;;  %v13682_v20 = vpop.eup %13681  ;;  %v12983_v30 = vpack.i.bf16 %v7599_v57, %v7597_v16  ;;  %v12993_v44 = vpack.i.bf16 %v7663_v4, %v7661_v45  ;;  %v7727_v21 = vmul.f32 %v13680_v60, %v7417_v19  ;;  %v20638_v19 = vld [vmem:[#allocation135_spill] sm:$0xff] }
 0x91f   : > { %13705 = vrcp.f32 %v18316_v42  ;;  %v13684_v15 = vpop.eup %13683  ;;  %v20625_v42 = vld [vmem:[#allocation108_spill] sm:$0xff] }
 0x920   : > { %13707 = vrcp.f32 %v20623_v18  ;;  %v13686_v41 = vpop.eup %13685  ;;  %v20633_v18 = vld [vmem:[#allocation112_spill] sm:$0xff] }
 0x921   : > { %13709 = vrcp.f32 %v20624_v52  ;;  %v13688_v34 = vpop.eup %13687  ;;  %v20635_v52 = vld [vmem:[#allocation114_spill] sm:$0xff] }
 0x922   : > { %v7523_v16 = vmul.f32 %v13688_v34, %v20630_v2 }
 0x924   : > { %v13690_v39 = vpop.eup %13689 }
 0x925   : > { %v13692_v59 = vpop.eup %13691  ;;  %v7729_v9 = vmul.f32 %v13690_v39, %v18463_v48 }
 0x926   : > { %v13694_v55 = vpop.eup %13693 }
 0x927   : > { %v13696_v22 = vpop.eup %13695 }
 0x93a   : > { %5361 = vadd.xlane.f32.xlu0 %v5360_v61  ;;  %v7665_v61 = vmul.f32 %v13678_v27, %v20625_v42  ;;  %v12538_v42 = vpop.f32.mrf.mxu1 }
 0x93c   : > { %v12998_v12 = vpack.i.bf16 %v7667_v25, %v7665_v61  ;;  %v7472_v26 = vpop.f32.mrf.mxu1 }
 0x93e   : > { %5367 = vadd.xlane.f32.xlu0 %v5366_v51  ;;  %v20626_v51 = vld [vmem:[#allocation33_spill] sm:$0xff] }
 0x93f   : > { %13711 = vrcp.f32 %v20626_v51  ;;  %v20636_v51 = vld [vmem:[#allocation136_spill] sm:$0xff] }
 0x940   : > { %13713 = vrcp.f32 %v20628_v33 }
 0x941   : > { %5364 = vadd.xlane.f32.xlu1 %v5363_v40  ;;  %v18448_v1 = vpop.xlane.xlu0 %5337 }
 0x942   : > { %5370 = vadd.xlane.f32.xlu0 %v5369_v36  ;;  %v7725_v36 = vmul.f32 %v13682_v20, %v7414_v0  ;;  %v20629_v0 = vld [vmem:[#allocation53_spill] sm:$0xff]  ;;  %13715 = vrcp.f32 %v18448_v1  ;;  %v13805_v1 = vld [vmem:[#allocation2] sm:$0xff] }
 0x943   : > { %v7521_v45 = vmul.f32 %v13686_v41, %v20629_v0 }
 0x945   : > { %v18456_v28 = vpop.xlane.xlu0 %5343 }
 0x948   : > { %v18461_v7 = vpop.xlane.xlu1 %5340 }
 0x949   : > { %v18466_v38 = vpop.xlane.xlu0 %5346  ;;  %13717 = vrcp.f32 %v18461_v7 }
 0x94a   : > { %13719 = vrcp.f32 %v18456_v28 }
 0x94b   : > { %13721 = vrcp.f32 %v18466_v38 }
 0x94c   : > { %v18472_v53 = vpop.permute.xlu1 %12929 }
 0x94d   : > { %v12925_v32 = vpop.permute.xlu0 %12924  ;;  %v12932_v43 = vunpack.i.h.bf16 %v18472_v53  ;;  %v12931_v13 = vunpack.i.l.bf16 %v18472_v53 }
 0x94e   : > { %v12927_v8 = vunpack.i.h.bf16 %v12925_v32  ;;  %v12926_v37 = vunpack.i.l.bf16 %v12925_v32 }
 0x950   : > { %v8141_v62 = vsel %vm2427_vm0, %v7519_v11, %v12927_v8  ;;  %v8140_v50 = vsel %vm2427_vm0, %v7517_v58, %v12926_v37  ;;  %v12935_v54 = vpop.permute.xlu1 %12934  ;;  %v13003_v58 = vpack.i.bf16 %v7727_v21, %v7725_v36  ;;  %v13698_v11 = vpop.eup %13697  ;;  %v8142_v8 = vsel %vm2427_vm0, %v7521_v45, %v12931_v13 }
 0x951   : > { %v12937_v5 = vunpack.i.h.bf16 %v12935_v54  ;;  %v12936_v47 = vunpack.i.l.bf16 %v12935_v54  ;;  %v12945_v31 = vpop.permute.xlu0 %12944  ;;  %v8143_v37 = vsel %vm2427_vm0, %v7523_v16, %v12932_v43  ;;  %v13700_v10 = vpop.eup %13699 }
 0x952   : > { %12989 = vrot.lane.b32.xlu1 %v12988_v35, %s14282_s22  ;;  %v12947_v29 = vunpack.i.h.bf16 %v12945_v31  ;;  %v12946_v3 = vunpack.i.l.bf16 %v12945_v31  ;;  %v13702_v20 = vpop.eup %13701  ;;  %v20632_v31 = vld [vmem:[#allocation49_spill] sm:$0xff] }
 0x953   : > { %v8173_v17 = vsel %vm8156_vm1, %v8140_v50, %v12936_v47  ;;  %v8174_v49 = vsel %vm8156_vm1, %v8141_v62, %v12937_v5  ;;  %v7731_v62 = vmul.f32 %v13684_v15, %v12530_v6  ;;  %v20631_v50 = vld [vmem:[#allocation52_spill] sm:$0xff]  ;;  %v20634_v15 = vld [vmem:[#allocation89_spill] sm:$0xff] }
 0x954   : > { %v12940_v23 = vpop.permute.xlu1 %12939  ;;  %v8206_v40 = vsel %vm8189_vm2, %v8173_v17, %v12946_v3  ;;  %v8207_v56 = vsel %vm8189_vm2, %v8174_v49, %v12947_v29  ;;  %v7605_v54 = vmul.f32 %v13694_v55, %v20631_v50  ;;  %v7609_v29 = vmul.f32 %v13698_v11, %v20633_v18  ;;  %v13704_v3 = vpop.eup %13703 }
 0x955   : > { %v8230_v63 = vpack.c.bf16 %v8207_v56, %v8206_v40  ;;  %v12942_v46 = vunpack.i.h.bf16 %v12940_v23  ;;  %v12941_v32 = vunpack.i.l.bf16 %v12940_v23  ;;  %v13008_v47 = vpack.i.bf16 %v7731_v62, %v7729_v9  ;;  %v20637_v40 = vld [vmem:[#allocation101_spill] sm:$0xff]  ;;  %v12557_v55 = vpop.f32.mrf.mxu0  ;;  %v13804_v9 = vld [vmem:[#allocation2 + $0xd8] sm:$0xff] }
 0x956   : > { %12994 = vrot.lane.b32.xlu1 %v12993_v44, %s14284_s17  ;;  %v13706_v44 = vpop.eup %13705  ;;  %v7611_v41 = vmul.f32 %v13696_v22, %v20634_v15  ;;  %v7669_v17 = vmul.f32 %v13700_v10, %v20635_v52  ;;  %v7671_v23 = vmul.f32 %v13702_v20, %v20636_v51  ;;  %v7673_v56 = vmul.f32 %v13704_v3, %v20637_v40  ;;  %v13806_v10 = vld [vmem:[#allocation2 + $0x18] sm:$0xff]  ;;  %v13808_v20 = vld [vmem:[#allocation2 + $0x50] sm:$0xff]  ;;  %v13809_v15 = vld [vmem:[#allocation2 + $0x48] sm:$0xff] }
 0x957   : > { %12571 = vmatprep.mubr.bf16.mxu0 %v8230_v63  ;;  %v8175_v57 = vsel %vm8156_vm1, %v8142_v8, %v12941_v32  ;;  %v8176_v60 = vsel %vm8156_vm1, %v8143_v37, %v12942_v46  ;;  %v13708_v49 = vpop.eup %13707  ;;  %v7675_v43 = vmul.f32 %v13706_v44, %v20638_v19  ;;  %v8336_v0 = vpop.f32.mrf.mxu0  ;;  %v8465_v11 = vadd.f32 %v13804_v9, %v12557_v55 }
 0x958   : > { %v12950_v53 = vpop.permute.xlu1 %12949  ;;  %12984 = vrot.lane.b32.xlu0 %v12983_v30, %s14282_s22  ;;  %v7607_v30 = vmul.f32 %v13692_v59, %v20632_v31  ;;  %v13710_v61 = vpop.eup %13709  ;;  %v13018_v34 = vpack.i.bf16 %v7611_v41, %v7609_v29  ;;  %v13023_v39 = vpack.i.bf16 %v7671_v23, %v7669_v17  ;;  %v7733_v13 = vmul.f32 %v13708_v49, %v7469_v24  ;;  %v20640_v29 = vld [vmem:[#allocation32_spill] sm:$0xff]  ;;  %v13810_v17 = vld [vmem:[#allocation2 + $0x30] sm:$0xff] }
 0x959   : > { %v12952_v27 = vunpack.i.h.bf16 %v12950_v53  ;;  %v12951_v35 = vunpack.i.l.bf16 %v12950_v53  ;;  %v13712_v36 = vpop.eup %13711  ;;  %v13028_v25 = vpack.i.bf16 %v7675_v43, %v7673_v56  ;;  %v7735_v59 = vmul.f32 %v13710_v61, %v7472_v26  ;;  %v12558_v45 = vpop.f32.mrf.mxu0 }
 0x95a   : > { %12999 = vrot.lane.b32.xlu1 %v12998_v12, %s14284_s17  ;;  %v13013_v6 = vpack.i.bf16 %v7607_v30, %v7605_v54  ;;  %v13714_v63 = vpop.eup %13713  ;;  %v7737_v33 = vmul.f32 %v13712_v36, %v12537_v14  ;;  %v13803_v14 = vld [vmem:[#allocation2 + $0xb0] sm:$0xff] }
 0x95b   : > { %v8208_v48 = vsel %vm8189_vm2, %v8175_v57, %v12951_v35  ;;  %v8209_v4 = vsel %vm8189_vm2, %v8176_v60, %v12952_v27  ;;  %v13033_v46 = vpack.i.bf16 %v7735_v59, %v7733_v13  ;;  %v7739_v32 = vmul.f32 %v13714_v63, %v12538_v42  ;;  %v8339_v2 = vpop.f32.mrf.mxu0  ;;  %v13716_v54 = vpop.eup %13715  ;;  %v20639_v30 = vld [vmem:[#allocation69_spill] sm:$0xff] }
 0x95c   : > { %v8231_v5 = vpack.c.bf16 %v8209_v4, %v8208_v48  ;;  %13004 = vrot.lane.b32.xlu0 %v13003_v58, %s14283_s16  ;;  %v8463_v22 = vadd.f32 %v13803_v14, %v8336_v0  ;;  %v18534_v58 = vld [vmem:[%s741_s0] ss:$0 sm:$0xff]  ;;  %v8464_v7 = vadd.f32 %v13805_v1, %v8339_v2  ;;  %v8466_v57 = vadd.f32 %v13806_v10, %v12558_v45  ;;  %v13718_v28 = vpop.eup %13717  ;;  %v13807_v48 = vld [vmem:[#allocation2 + $0x68] sm:$0xff]  ;;  %v20642_v14 = vld [vmem:[#allocation102_spill] sm:$0xff] }
 0x95d   : > { %v13038_v21 = vpack.i.bf16 %v7739_v32, %v7737_v33  ;;  %v12561_v16 = vpop.f32.mrf.mxu0  ;;  %v18545_v35 = vadd.f32 %v18534_v58, %v8465_v11  ;;  %v7525_v18 = vmul.f32 %v13716_v54, %v20639_v30  ;;  %v7527_v3 = vmul.f32 %v13718_v28, %v20640_v29  ;;  %v13720_v19 = vpop.eup %13719  ;;  %v20641_v2 = vld [vmem:[#allocation67_spill] sm:$0xff]  ;;  %v13813_v29 = vld [vmem:[#allocation2 + $0x88] sm:$0xff] }
 0x95e   : > { %13009 = vrot.lane.b32.xlu1 %v13008_v47, %s14283_s16  ;;  %12572 = vmatmul.mubr.bf16.gmra.mxu0 %v8231_v5  ;;  %v18537_v8 = vadd.f32 %v18534_v58, %v8463_v22  ;;  %v18553_v24 = vadd.f32 %v18534_v58, %v8464_v7  ;;  %v18556_v38 = vadd.f32 %v18534_v58, %v8466_v57  ;;  %v13722_v26 = vpop.eup %13721 }
 0x95f   : > { %v8352_v53 = vpop.f32.mrf.mxu0  ;;  %v8469_v49 = vadd.f32 %v13810_v17, %v12561_v16  ;;  %v7529_v16 = vmul.f32 %v13720_v19, %v20641_v2  ;;  %v7531_v22 = vmul.f32 %v13722_v26, %v20642_v14 }
 0x960   : > { %13014 = vrot.lane.b32.xlu0 %v13013_v6, %s14282_s22  ;;  %v8467_v5 = vadd.f32 %v13808_v20, %v8352_v53 }
 0x961   : > { %v12562_v37 = vpop.f32.mrf.mxu0 }
 0x962   : > { %13019 = vrot.lane.b32.xlu1 %v13018_v34, %s14282_s22  ;;  %v8470_v41 = vadd.f32 %v13809_v15, %v12562_v37  ;;  %v18566_v42 = vadd.f32 %v18534_v58, %v8467_v5 }
 0x963   : > { %v8355_v60 = vpop.f32.mrf.mxu0 }
 0x964   : > { %13024 = vrot.lane.b32.xlu0 %v13023_v39, %s14284_s17  ;;  %v8468_v4 = vadd.f32 %v13807_v48, %v8355_v60  ;;  %v18573_v43 = vadd.f32 %v18534_v58, %v8470_v41 }
 0x966   : > { %13029 = vrot.lane.b32.xlu1 %v13028_v25, %s14284_s17  ;;  %v18563_v52 = vadd.f32 %v18534_v58, %v8468_v4  ;;  %v18578_v25 = vadd.f32 %v18534_v58, %v8469_v49  ;;  %v13811_v4 = vld [vmem:[#allocation2 + $0x80] sm:$0xff] }
 0x968   : > { %13034 = vrot.lane.b32.xlu0 %v13033_v46, %s14283_s16 }
 0x96a   : > { %13039 = vrot.lane.b32.xlu1 %v13038_v21, %s14283_s16 }
 0x982   : > { %v18530_v12 = vpop.xlane.xlu0 %5349 }
 0x983   : > { %13723 = vrcp.f32 %v18530_v12 }
 0x986   : > { %v18539_v27 = vpop.xlane.xlu0 %5355 }
 0x987   : > { %8536 = vadd.xlane.f32.xlu0 %v18537_v8 }
 0x989   : > { %v18547_v62 = vpop.xlane.xlu1 %5352 }
 0x98a   : > { %v18549_v50 = vpop.xlane.xlu0 %5358  ;;  %13725 = vrcp.f32 %v18547_v62 }
 0x98b   : > { %8540 = vadd.xlane.f32.xlu0 %v18545_v35  ;;  %13727 = vrcp.f32 %v18539_v27 }
 0x98c   : > { %13729 = vrcp.f32 %v18549_v50 }
 0x98d   : > { %v12960_v47 = vpop.permute.xlu1 %12959 }
 0x98e   : > { %8538 = vadd.xlane.f32.xlu1 %v18553_v24  ;;  %v12955_v31 = vpop.permute.xlu0 %12954  ;;  %v12962_v32 = vunpack.i.h.bf16 %v12960_v47  ;;  %v12961_v21 = vunpack.i.l.bf16 %v12960_v47  ;;  %v13812_v47 = vld [vmem:[#allocation2 + $0xe8] sm:$0xff] }
 0x98f   : > { %v12957_v44 = vunpack.i.h.bf16 %v12955_v31  ;;  %v12956_v6 = vunpack.i.l.bf16 %v12955_v31  ;;  %8542 = vadd.xlane.f32.xlu0 %v18556_v38 }
 0x990   : > { %v8146_v9 = vsel %vm2427_vm0, %v7529_v16, %v12961_v21  ;;  %v8147_v11 = vsel %vm2427_vm0, %v7531_v22, %v12962_v32 }
 0x991   : > { %v8145_v61 = vsel %vm2427_vm0, %v7527_v3, %v12957_v44  ;;  %v8144_v34 = vsel %vm2427_vm0, %v7525_v18, %v12956_v6  ;;  %v12965_v51 = vpop.permute.xlu1 %12964  ;;  %v13814_v6 = vld [vmem:[#allocation2 + $0xb8] sm:$0xff] }
 0x992   : > { %v12967_v23 = vunpack.i.h.bf16 %v12965_v51  ;;  %v12966_v40 = vunpack.i.l.bf16 %v12965_v51  ;;  %8546 = vadd.xlane.f32.xlu1 %v18563_v52  ;;  %v12975_v56 = vpop.permute.xlu0 %12974 }
 0x993   : > { %v12977_v36 = vunpack.i.h.bf16 %v12975_v56  ;;  %v12976_v39 = vunpack.i.l.bf16 %v12975_v56  ;;  %8544 = vadd.xlane.f32.xlu0 %v18566_v42 }
 0x994   : > { %v8177_v13 = vsel %vm8156_vm1, %v8144_v34, %v12966_v40  ;;  %v8178_v63 = vsel %vm8156_vm1, %v8145_v61, %v12967_v23  ;;  %v13724_v23 = vpop.eup %13723 }
 0x995   : > { %v12970_v59 = vpop.permute.xlu1 %12969  ;;  %v8210_v33 = vsel %vm8189_vm2, %v8177_v13, %v12976_v39  ;;  %v8211_v46 = vsel %vm8189_vm2, %v8178_v63, %v12977_v36  ;;  %v20645_v39 = vld [vmem:[#allocation123_spill] sm:$0xff]  ;;  %v20646_v13 = vld [vmem:[#allocation113_spill] sm:$0xff] }
 0x996   : > { %8550 = vadd.xlane.f32.xlu1 %v18573_v43  ;;  %v8232_v55 = vpack.c.bf16 %v8211_v46, %v8210_v33  ;;  %v12972_v0 = vunpack.i.h.bf16 %v12970_v59  ;;  %v12971_v45 = vunpack.i.l.bf16 %v12970_v59  ;;  %v7533_v19 = vmul.f32 %v13724_v23, %v20645_v39 }
 0x997   : > { %8548 = vadd.xlane.f32.xlu0 %v18578_v25  ;;  %v13726_v40 = vpop.eup %13725 }
 0x998   : > { %12575 = vmatprep.mubr.bf16.mxu0 %v8232_v55  ;;  %v8179_v7 = vsel %vm8156_vm1, %v8146_v9, %v12971_v45  ;;  %v8180_v10 = vsel %vm8156_vm1, %v8147_v11, %v12972_v0  ;;  %v7535_v12 = vmul.f32 %v13726_v40, %v20646_v13  ;;  %v13728_v32 = vpop.eup %13727 }
 0x999   : > { %v12980_v53 = vpop.permute.xlu1 %12979  ;;  %v13730_v0 = vpop.eup %13729 }
 0x99a   : > { %v12982_v37 = vunpack.i.h.bf16 %v12980_v53  ;;  %v12981_v1 = vunpack.i.l.bf16 %v12980_v53 }
 0x99c   : > { %v8212_v57 = vsel %vm8189_vm2, %v8179_v7, %v12981_v1  ;;  %v8213_v60 = vsel %vm8189_vm2, %v8180_v10, %v12982_v37  ;;  %v12565_v54 = vpop.f32.mrf.mxu0  ;;  %v20647_v7 = vld [vmem:[#allocation61_spill] sm:$0xff] }
 0x99d   : > { %v8233_v28 = vpack.c.bf16 %v8213_v60, %v8212_v57  ;;  %v8473_v31 = vadd.f32 %v13812_v47, %v12565_v54  ;;  %v7537_v10 = vmul.f32 %v13728_v32, %v20647_v7  ;;  %v20648_v57 = vld [vmem:[#allocation87_spill] sm:$0xff] }
 0x99e   : > { %v8368_v48 = vpop.f32.mrf.mxu0  ;;  %v7539_v60 = vmul.f32 %v13730_v0, %v20648_v57  ;;  %v20649_v47 = vld [vmem:[#allocation95_spill] sm:$0xff]  ;;  %v13817_v57 = vld [vmem:[#allocation2 + $0xf0] sm:$0xff] }
 0x99f   : > { %v8471_v20 = vadd.f32 %v13811_v4, %v8368_v48  ;;  %12576 = vmatmul.mubr.bf16.gmra.mxu0 %v8233_v28  ;;  %v18597_v44 = vadd.f32 %v18534_v58, %v8473_v31 }
 0x9a0   : > { %v12566_v5 = vpop.f32.mrf.mxu0 }
 0x9a1   : > { %v18593_v30 = vadd.f32 %v18534_v58, %v8471_v20  ;;  %20643 = vst [vmem:[#allocation29_spill] sm:$0xff] %v18597_v44  ;;  %v8474_v15 = vadd.f32 %v13814_v6, %v12566_v5 }
 0x9a2   : > { %v8371_v18 = vpop.f32.mrf.mxu0 }
 0x9a3   : > { %v8472_v3 = vadd.f32 %v13813_v29, %v8371_v18  ;;  %8552 = vadd.xlane.f32.xlu0 %v18593_v30  ;;  %v18605_v17 = vadd.f32 %v18534_v58, %v8474_v15 }
 0x9a5   : > { %v18600_v41 = vadd.f32 %v18534_v58, %v8472_v3 }
 0x9a7   : > { %20644 = vst [vmem:[#allocation99_spill] sm:$0xff] %v18600_v41  ;;  %8556 = vadd.xlane.f32.xlu0 %v18597_v44  ;;  %8554 = vadd.xlane.f32.xlu1 %v18600_v41 }
 0x9ab   : > { %8558 = vadd.xlane.f32.xlu1 %v18605_v17 }
 0x9c3   : > { %v5362_v49 = vpop.xlane.xlu0 %5361 }
 0x9c4   : > { %13731 = vrcp.f32 %v5362_v49 }
 0x9c7   : > { %v5368_v61 = vpop.xlane.xlu0 %5367 }
 0x9ca   : > { %v5365_v34 = vpop.xlane.xlu1 %5364 }
 0x9cb   : > { %v5371_v51 = vpop.xlane.xlu0 %5370  ;;  %13733 = vrcp.f32 %v5365_v34 }
 0x9cc   : > { %13735 = vrcp.f32 %v5368_v61  ;;  %v20650_v61 = vld [vmem:[#allocation111_spill] sm:$0xff] }
 0x9cd   : > { %13737 = vrcp.f32 %v5371_v51 }
 0x9ce   : > { %v12990_v56 = vpop.permute.xlu1 %12989 }
 0x9cf   : > { %v12985_v36 = vpop.permute.xlu0 %12984  ;;  %v12992_v16 = vunpack.i.h.bf16 %v12990_v56  ;;  %v12991_v14 = vunpack.i.l.bf16 %v12990_v56 }
 0x9d0   : > { %v12987_v63 = vunpack.i.h.bf16 %v12985_v36  ;;  %v12986_v62 = vunpack.i.l.bf16 %v12985_v36 }
 0x9d1   : > { %v13732_v1 = vpop.eup %13731  ;;  %v8150_v4 = vsel %vm2427_vm0, %v7537_v10, %v12991_v14  ;;  %v8151_v20 = vsel %vm2427_vm0, %v7539_v60, %v12992_v16 }
 0x9d2   : > { %v8149_v26 = vsel %vm2427_vm0, %v7535_v12, %v12987_v63  ;;  %v8148_v27 = vsel %vm2427_vm0, %v7533_v19, %v12986_v62  ;;  %v12995_v59 = vpop.permute.xlu1 %12994  ;;  %v7541_v31 = vmul.f32 %v13732_v1, %v20649_v47 }
 0x9d3   : > { %v12997_v50 = vunpack.i.h.bf16 %v12995_v59  ;;  %v12996_v33 = vunpack.i.l.bf16 %v12995_v59  ;;  %v13005_v46 = vpop.permute.xlu0 %13004 }
 0x9d4   : > { %v13007_v21 = vunpack.i.h.bf16 %v13005_v46  ;;  %v13006_v55 = vunpack.i.l.bf16 %v13005_v46 }
 0x9d5   : > { %v8181_v45 = vsel %vm8156_vm1, %v8148_v27, %v12996_v33  ;;  %v8182_v2 = vsel %vm8156_vm1, %v8149_v26, %v12997_v50  ;;  %v13815_v27 = vld [vmem:[#allocation2 + $0x60] sm:$0xff] }
 0x9d6   : > { %v13000_v22 = vpop.permute.xlu1 %12999  ;;  %v8214_v53 = vsel %vm8189_vm2, %v8181_v45, %v13006_v55  ;;  %v8215_v9 = vsel %vm8189_vm2, %v8182_v2, %v13007_v21  ;;  %v13816_v45 = vld [vmem:[#allocation2 + $0x8] sm:$0xff] }
 0x9d7   : > { %v13015_v11 = vpop.permute.xlu0 %13014  ;;  %v8234_v37 = vpack.c.bf16 %v8215_v9, %v8214_v53  ;;  %v13002_v54 = vunpack.i.h.bf16 %v13000_v22  ;;  %v13001_v28 = vunpack.i.l.bf16 %v13000_v22 }
 0x9d8   : > { %v13734_v48 = vpop.eup %13733  ;;  %v13016_v18 = vunpack.i.l.bf16 %v13015_v11  ;;  %v13017_v51 = vunpack.i.h.bf16 %v13015_v11 }
 0x9d9   : > { %12579 = vmatprep.mubr.bf16.mxu0 %v8234_v37  ;;  %v8183_v15 = vsel %vm8156_vm1, %v8150_v4, %v13001_v28  ;;  %v8184_v49 = vsel %vm8156_vm1, %v8151_v20, %v13002_v54  ;;  %v7543_v34 = vmul.f32 %v13734_v48, %v20650_v61  ;;  %v13736_v46 = vpop.eup %13735  ;;  %v20651_v54 = vld [vmem:[#allocation103_spill] sm:$0xff]  ;;  %v20652_v48 = vld [vmem:[#allocation81_spill] sm:$0xff] }
 0x9da   : > { %v13010_v5 = vpop.permute.xlu1 %13009  ;;  %v8152_v12 = vsel %vm2427_vm0, %v7541_v31, %v13016_v18  ;;  %v13738_v0 = vpop.eup %13737  ;;  %v7545_v28 = vmul.f32 %v13736_v46, %v20651_v54  ;;  %v13821_v46 = vld [vmem:[#allocation2 + $0x58] sm:$0xff] }
 0x9db   : > { %v13012_v29 = vunpack.i.h.bf16 %v13010_v5  ;;  %v13011_v3 = vunpack.i.l.bf16 %v13010_v5  ;;  %v13025_v6 = vpop.permute.xlu0 %13024  ;;  %v8153_v26 = vsel %vm2427_vm0, %v7543_v34, %v13017_v51  ;;  %v7547_v4 = vmul.f32 %v13738_v0, %v20652_v48  ;;  %v13818_v5 = vld [vmem:[#allocation2 + $0x78] sm:$0xff] }
 0x9dc   : > { %v13027_v56 = vunpack.i.h.bf16 %v13025_v6  ;;  %v13026_v36 = vunpack.i.l.bf16 %v13025_v6  ;;  %v13089_v54 = vld [vmem:[%s14638_s8 + $0xc0] ss:$16 sps:$4 sm:$0xff]   ;;  %v13097_v48 = vld [vmem:[%s14638_s8 + $0xa4] ss:$16 sps:$4 sm:$0xff]  }
 0x9dd   : > { %v8216_v23 = vsel %vm8189_vm2, %v8183_v15, %v13011_v3  ;;  %v8217_v40 = vsel %vm8189_vm2, %v8184_v49, %v13012_v29  ;;  %v12569_v39 = vpop.f32.mrf.mxu0 }
 0x9de   : > { %v8235_v19 = vpack.c.bf16 %v8217_v40, %v8216_v23  ;;  %v13020_v13 = vpop.permute.xlu1 %13019  ;;  %v8185_v32 = vsel %vm8156_vm1, %v8152_v12, %v13026_v36  ;;  %v8186_v21 = vsel %vm8156_vm1, %v8153_v26, %v13027_v56  ;;  %v8477_v2 = vadd.f32 %v13816_v45, %v12569_v39  ;;  %v13820_v26 = vld [vmem:[#allocation2 + $0x40] sm:$0xff]  ;;  %v13822_v45 = vld [vmem:[#allocation2 + $0xc8] sm:$0xff] }
 0x9df   : > { %v8384_v63 = vpop.f32.mrf.mxu0  ;;  %v13035_v62 = vpop.permute.xlu0 %13034  ;;  %v13022_v9 = vunpack.i.h.bf16 %v13020_v13  ;;  %v13021_v11 = vunpack.i.l.bf16 %v13020_v13  ;;  %v20653_v56 = vmov 0   ;;  %v13819_v13 = vld [vmem:[#allocation2 + $0x38] sm:$0xff] }
 0x9e0   : > { %v8475_v59 = vadd.f32 %v13815_v27, %v8384_v63  ;;  %v13037_v50 = vunpack.i.h.bf16 %v13035_v62  ;;  %v13036_v33 = vunpack.i.l.bf16 %v13035_v62  ;;  %12580 = vmatmul.mubr.bf16.gmra.mxu0 %v8235_v19  ;;  %v18643_v20 = vadd.f32 %v18534_v58, %v8477_v2 }
 0x9e1   : > { %v12570_v55 = vpop.f32.mrf.mxu0  ;;  %v8154_v29 = vsel %vm2427_vm0, %v7545_v28, %v13021_v11  ;;  %v8155_v3 = vsel %vm2427_vm0, %v7547_v4, %v13022_v9  ;;  %v13092_v28 = vld [vmem:[%s14638_s8 + $0xc8] ss:$16 sps:$4 sm:$0xff]   ;;  %v13100_v4 = vld [vmem:[%s14638_s8 + $0xac] ss:$16 sps:$4 sm:$0xff]  }
 0x9e2   : > { %v18635_v16 = vadd.f32 %v18534_v58, %v8475_v59  ;;  %v13030_v14 = vpop.permute.xlu1 %13029  ;;  %v8218_v22 = vsel %vm8189_vm2, %v8185_v32, %v13036_v33  ;;  %v8219_v53 = vsel %vm8189_vm2, %v8186_v21, %v13037_v50  ;;  %v8478_v47 = vadd.f32 %v13818_v5, %v12570_v55  ;;  %v13095_v5 = vld [vmem:[%s14638_s8 + $0xa0] ss:$16 sps:$4 sm:$0xff]  }
 0x9e3   : > { %v8387_v37 = vpop.f32.mrf.mxu0  ;;  %v8236_v1 = vpack.c.bf16 %v8219_v53, %v8218_v22  ;;  %v13032_v7 = vunpack.i.h.bf16 %v13030_v14  ;;  %v13031_v10 = vunpack.i.l.bf16 %v13030_v14 }
 0x9e4   : > { %v8476_v60 = vadd.f32 %v13817_v57, %v8387_v37  ;;  %8560 = vadd.xlane.f32.xlu0 %v18635_v16  ;;  %v18657_v23 = vadd.f32 %v18534_v58, %v8478_v47  ;;  %v13085_v37 = vld [vmem:[%s14638_s8 + $0xe4] ss:$16 sps:$4 sm:$0xff]   ;;  %v13098_v47 = vld [vmem:[%s14638_s8 + $0xa8] ss:$16 sps:$4 sm:$0xff]  }
 0x9e5   : > { %12583 = vmatprep.mubr.bf16.mxu0 %v8236_v1  ;;  %v8187_v49 = vsel %vm8156_vm1, %v8154_v29, %v13031_v10  ;;  %v8188_v61 = vsel %vm8156_vm1, %v8155_v3, %v13032_v7  ;;  %v13088_v1 = vld [vmem:[%s14638_s8 + $0xec] ss:$16 sps:$4 sm:$0xff]   ;;  %v13083_v7 = vld [vmem:[%s14638_s8 + $0xe0] ss:$16 sps:$4 sm:$0xff]   ;;  %v13086_v10 = vld [vmem:[%s14638_s8 + $0xe8] ss:$16 sps:$4 sm:$0xff]   ;;  %9194 = vmatprep.subr.bf16.mxu1 %v13085_v37 }
 0x9e6   : > { %v18646_v31 = vadd.f32 %v18534_v58, %v8476_v60  ;;  %v13040_v18 = vpop.permute.xlu1 %13039  ;;  %9387 = vmatprep.subr.bf16.mxu0 %v13088_v1  ;;  %9195 = vmatpush1.bf16.msra.mxu1 %v13083_v7  ;;  %v13091_v57 = vld [vmem:[%s14638_s8 + $0xc4] ss:$16 sps:$4 sm:$0xff]   ;;  %v13094_v60 = vld [vmem:[%s14638_s8 + $0xcc] ss:$16 sps:$4 sm:$0xff]   ;;  %v13101_v3 = vld [vmem:[%s14638_s8 + $0x80] ss:$16 sps:$4 sm:$0xff]  }
 0x9e7   : > { %v13042_v6 = vunpack.i.h.bf16 %v13040_v18  ;;  %v13041_v15 = vunpack.i.l.bf16 %v13040_v18  ;;  %9388 = vmatpush1.bf16.msra.mxu0 %v13086_v10  ;;  %9196 = vmatprep.subr.bf16.mxu1 %v13091_v57  ;;  %v13103_v18 = vld [vmem:[%s14638_s8 + $0x84] ss:$16 sps:$4 sm:$0xff]   ;;  %v13106_v29 = vld [vmem:[%s14638_s8 + $0x8c] ss:$16 sps:$4 sm:$0xff]  }
 0x9e8   : > { %8564 = vadd.xlane.f32.xlu0 %v18643_v20  ;;  %8562 = vadd.xlane.f32.xlu1 %v18646_v31 }
 0x9e9   : > { %v8220_v34 = vsel %vm8189_vm2, %v8187_v49, %v13041_v15  ;;  %v8221_v51 = vsel %vm8189_vm2, %v8188_v61, %v13042_v6  ;;  %9389 = vmatprep.subr.bf16.mxu0 %v13094_v60  ;;  %v13104_v6 = vld [vmem:[%s14638_s8 + $0x88] ss:$16 sps:$4 sm:$0xff]   ;;  %v13109_v15 = vld [vmem:[%s14638_s8 + $0x64] ss:$16 sps:$4 sm:$0xff]   ;;  %v13112_v49 = vld [vmem:[%s14638_s8 + $0x6c] ss:$16 sps:$4 sm:$0xff]  }
 0x9ea   : > { %v8237_v40 = vpack.c.bf16 %v8221_v51, %v8220_v34  ;;  %9197 = vmatpush1.bf16.msra.mxu1 %v13089_v54  ;;  %v13107_v61 = vld [vmem:[%s14638_s8 + $0x60] ss:$16 sps:$4 sm:$0xff]   ;;  %v13110_v34 = vld [vmem:[%s14638_s8 + $0x68] ss:$16 sps:$4 sm:$0xff]   ;;  %v13115_v51 = vld [vmem:[%s14638_s8 + $0x44] ss:$16 sps:$4 sm:$0xff]  }
 0x9eb   : > { %9390 = vmatpush1.bf16.msra.mxu0 %v13092_v28  ;;  %9198 = vmatprep.subr.bf16.mxu1 %v13097_v48  ;;  %v13824_v60 = vld [vmem:[#allocation2 + $0x90] sm:$0xff] }
 0x9ec   : > { %12584 = vmatmul.mubr.bf16.gmra.mxu0 %v8237_v40  ;;  %8566 = vadd.xlane.f32.xlu1 %v18657_v23  ;;  %v13118_v40 = vld [vmem:[%s14638_s8 + $0x4c] ss:$16 sps:$4 sm:$0xff]  }
 0x9ed   : > { %9419 = vmatprep.mubr.bf16.mxu0 %v20653_v56  ;;  %9391 = vmatprep.subr.bf16.mxu0 %v13100_v4 }
 0x9ee   : > { %9199 = vmatpush1.bf16.msra.mxu1 %v13095_v5 }
 0x9ef   : > { %9392 = vmatpush1.bf16.msra.mxu0 %v13098_v47  ;;  %9200 = vmatprep.subr.bf16.mxu1 %v13103_v18  ;;  %v13825_v47 = vld [vmem:[#allocation2 + $0x70] sm:$0xff] }
 0x9f0   : > { %9393 = vmatprep.subr.bf16.mxu0 %v13106_v29 }
 0x9f2   : > { %9201 = vmatpush1.bf16.msra.mxu1 %v13101_v3 }
 0x9f3   : > { %9394 = vmatpush1.bf16.msra.mxu0 %v13104_v6  ;;  %9202 = vmatprep.subr.bf16.mxu1 %v13109_v15 }
 0x9f4   : > { %9395 = vmatprep.subr.bf16.mxu0 %v13112_v49  ;;  %v13826_v49 = vld [vmem:[#allocation2 + $0xc0] sm:$0xff] }
 0x9f6   : > { %9203 = vmatpush1.bf16.msra.mxu1 %v13107_v61 }
 0x9f7   : > { %9396 = vmatpush1.bf16.msra.mxu0 %v13110_v34  ;;  %9204 = vmatprep.subr.bf16.mxu1 %v13115_v51 }
 0x9f8   : > { %9397 = vmatprep.subr.bf16.mxu0 %v13118_v40 }
 0xa10   : > { %v8537_v39 = vpop.xlane.xlu0 %8536 }
 0xa11   : > { %v8600_v63 = vmul.f32 0.0078125, %v8537_v39  ;;  %v13116_v39 = vld [vmem:[%s14638_s8 + $0x48] ss:$16 sps:$4 sm:$0xff]  }
 0xa12   : > { %9398 = vmatpush1.bf16.msra.mxu0 %v13116_v39 }
 0xa13   : > { %v18666_v21 = vsub.f32 %v18537_v8, %v8600_v63  ;;  %v13124_v63 = vld [vmem:[%s14638_s8 + $0x2c] ss:$16 sps:$4 sm:$0xff]  }
 0xa14   : > { %9399 = vmatprep.subr.bf16.mxu0 %v13124_v63 }
 0xa15   : > { %v8664_v9 = vmul.f32 %v18666_v21, %v18666_v21 }
 0xa17   : > { %v8539_v50 = vpop.xlane.xlu1 %8538 }
 0xa18   : > { %v8601_v55 = vmul.f32 0.0078125, %v8539_v50  ;;  %v13128_v50 = vld [vmem:[%s14638_s8 + $0x8] ss:$16 sps:$4 sm:$0xff]  }
 0xa1a   : > { %v18677_v22 = vsub.f32 %v18553_v24, %v8601_v55 }
 0xa1b   : > { %v8547_v4 = vpop.xlane.xlu1 %8546 }
 0xa1c   : > { %v8665_v11 = vmul.f32 %v18677_v22, %v18677_v22  ;;  %v8605_v3 = vmul.f32 0.0078125, %v8547_v4  ;;  %v13829_v4 = vld [vmem:[#allocation2 + $0x10] sm:$0xff] }
 0xa1e   : > { %v12573_v36 = vpop.f32.mrf.mxu0  ;;  %v18745_v51 = vsub.f32 %v18563_v52, %v8605_v3 }
 0xa1f   : > { %v8481_v27 = vadd.f32 %v13820_v26, %v12573_v36  ;;  %v13113_v36 = vld [vmem:[%s14638_s8 + $0x40] ss:$16 sps:$4 sm:$0xff]  }
 0xa20   : > { %v8400_v19 = vpop.f32.mrf.mxu0  ;;  %9205 = vmatpush1.bf16.msra.mxu1 %v13113_v36  ;;  %v13125_v26 = vld [vmem:[%s14638_s8] ss:$16 sps:$4 sm:$0xff]   ;;  %v8669_v39 = vmul.f32 %v18745_v51, %v18745_v51 }
 0xa21   : > { %v8479_v12 = vadd.f32 %v13819_v13, %v8400_v19  ;;  %v18669_v0 = vadd.f32 %v18534_v58, %v8481_v27  ;;  %v13119_v19 = vld [vmem:[%s14638_s8 + $0x20] ss:$16 sps:$4 sm:$0xff]   ;;  %v13121_v13 = vld [vmem:[%s14638_s8 + $0x24] ss:$16 sps:$4 sm:$0xff]   ;;  %v13130_v27 = vld [vmem:[%s14638_s8 + $0xc] ss:$16 sps:$4 sm:$0xff]  }
 0xa22   : > { %v12574_v62 = vpop.f32.mrf.mxu0  ;;  %9206 = vmatprep.subr.bf16.mxu1 %v13121_v13  ;;  %v8551_v13 = vpop.xlane.xlu1 %8550 }
 0xa23   : > { %v18662_v59 = vadd.f32 %v18534_v58, %v8479_v12  ;;  %v8482_v2 = vadd.f32 %v13822_v45, %v12574_v62  ;;  %v13122_v12 = vld [vmem:[%s14638_s8 + $0x28] ss:$16 sps:$4 sm:$0xff]   ;;  %v13127_v62 = vld [vmem:[%s14638_s8 + $0x4] ss:$16 sps:$4 sm:$0xff]  }
 0xa24   : > { %v8403_v33 = vpop.f32.mrf.mxu0  ;;  %9207 = vmatpush1.bf16.msra.mxu1 %v13119_v19  ;;  %9400 = vmatpush1.bf16.msra.mxu0 %v13122_v12 }
 0xa25   : > { %v8480_v32 = vadd.f32 %v13821_v46, %v8403_v33  ;;  %8568 = vadd.xlane.f32.xlu0 %v18662_v59  ;;  %v18680_v53 = vadd.f32 %v18534_v58, %v8482_v2  ;;  %9208 = vmatprep.subr.bf16.mxu1 %v13127_v62  ;;  %v8541_v33 = vpop.xlane.xlu0 %8540  ;;  %v13823_v2 = vld [vmem:[#allocation2 + $0xe0] sm:$0xff] }
 0xa26   : > { %9401 = vmatprep.subr.bf16.mxu0 %v13130_v27  ;;  %v8602_v46 = vmul.f32 0.0078125, %v8541_v33 }
 0xa27   : > { %v18672_v14 = vadd.f32 %v18534_v58, %v8480_v32  ;;  %20654 = vst [vmem:[#allocation73_spill] sm:$0xff] %v18680_v53 }
 0xa28   : > { %9209 = vmatpush1.bf16.msra.mxu1 %v13125_v26  ;;  %9402 = vmatpush1.bf16.msra.mxu0 %v13128_v50 }
 0xa29   : > { %8572 = vadd.xlane.f32.xlu0 %v18669_v0  ;;  %8570 = vadd.xlane.f32.xlu1 %v18672_v14  ;;  %v8543_v32 = vpop.xlane.xlu0 %8542 }
 0xa2a   : > { %v8603_v1 = vmul.f32 0.0078125, %v8543_v32 }
 0xa2c   : > { %v18729_v48 = vsub.f32 %v18556_v38, %v8603_v1 }
 0xa2d   : > { %8696 = vadd.xlane.f32.xlu0 %v8664_v9  ;;  %8574 = vadd.xlane.f32.xlu1 %v18680_v53  ;;  %v8545_v10 = vpop.xlane.xlu0 %8544 }
 0xa2e   : > { %v8604_v5 = vmul.f32 0.0078125, %v8545_v10  ;;  %v8667_v34 = vmul.f32 %v18729_v48, %v18729_v48 }
 0xa30   : > { %v18736_v6 = vsub.f32 %v18566_v42, %v8604_v5  ;;  %v8555_v63 = vpop.xlane.xlu1 %8554 }
 0xa31   : > { %8698 = vadd.xlane.f32.xlu1 %v8665_v11  ;;  %v18720_v11 = vsub.f32 %v18545_v35, %v8602_v46  ;;  %v8549_v19 = vpop.xlane.xlu0 %8548  ;;  %v13827_v46 = vld [vmem:[#allocation2 + $0xa8] sm:$0xff] }
 0xa32   : > { %v8668_v36 = vmul.f32 %v18736_v6, %v18736_v6  ;;  %v8606_v27 = vmul.f32 0.0078125, %v8549_v19 }
 0xa33   : > { %v8666_v28 = vmul.f32 %v18720_v11, %v18720_v11 }
 0xa34   : > { %v8559_v33 = vpop.xlane.xlu1 %8558 }
 0xa35   : > { %v8553_v12 = vpop.xlane.xlu0 %8552 }
 0xa39   : > { %v8557_v62 = vpop.xlane.xlu0 %8556 }
 0xa5f   : > { %v12577_v55 = vpop.f32.mrf.mxu0 }
 0xa60   : > { %v8485_v18 = vadd.f32 %v13825_v47, %v12577_v55  ;;  %v8607_v55 = vmul.f32 0.0078125, %v8551_v13  ;;  %v13830_v13 = vld [vmem:[#allocation2 + $0x28] sm:$0xff] }
 0xa61   : > { %v8416_v45 = vpop.f32.mrf.mxu0 }
 0xa62   : > { %v8483_v9 = vadd.f32 %v13823_v2, %v8416_v45  ;;  %v18739_v15 = vadd.f32 %v18534_v58, %v8485_v18 }
 0xa63   : > { %v12578_v37 = vpop.f32.mrf.mxu0 }
 0xa64   : > { %v18723_v7 = vadd.f32 %v18534_v58, %v8483_v9  ;;  %v8486_v61 = vadd.f32 %v13826_v49, %v12578_v37  ;;  %v18756_v9 = vsub.f32 %v18578_v25, %v8606_v27 }
 0xa65   : > { %v8419_v57 = vpop.f32.mrf.mxu0 }
 0xa66   : > { %20655 = vst [vmem:[#allocation56_spill] sm:$0xff] %v18723_v7  ;;  %v8484_v54 = vadd.f32 %v13824_v60, %v8419_v57  ;;  %8576 = vadd.xlane.f32.xlu0 %v18723_v7  ;;  %v18748_v40 = vadd.f32 %v18534_v58, %v8486_v61  ;;  %v13828_v57 = vld [vmem:[#allocation2 + $0xd0] sm:$0xff]  ;;  %v8670_v18 = vmul.f32 %v18756_v9, %v18756_v9 }
 0xa68   : > { %v18732_v29 = vadd.f32 %v18534_v58, %v8484_v54  ;;  %20657 = vst [vmem:[#allocation72_spill] sm:$0xff] %v18748_v40  ;;  %v18765_v54 = vsub.f32 %v18573_v43, %v8607_v55 }
 0xa6a   : > { %20656 = vst [vmem:[#allocation134_spill] sm:$0xff] %v18732_v29  ;;  %8700 = vadd.xlane.f32.xlu0 %v8666_v28  ;;  %8578 = vadd.xlane.f32.xlu1 %v18732_v29  ;;  %v8608_v28 = vmul.f32 0.0078125, %v8553_v12  ;;  %v8671_v61 = vmul.f32 %v18765_v54, %v18765_v54 }
 0xa6d   : > { %v8561_v45 = vpop.xlane.xlu0 %8560 }
 0xa6e   : > { %8580 = vadd.xlane.f32.xlu0 %v18739_v15  ;;  %8702 = vadd.xlane.f32.xlu1 %v8667_v34  ;;  %v18776_v34 = vsub.f32 %v18593_v30, %v8608_v28 }
 0xa71   : > { %v18761_v10 = vpop.xlane.xlu1 %8562  ;;  %v8565_v3 = vpop.xlane.xlu0 %8564 }
 0xa72   : > { %8704 = vadd.xlane.f32.xlu0 %v8668_v36  ;;  %8582 = vadd.xlane.f32.xlu1 %v18748_v40  ;;  %v8609_v36 = vmul.f32 0.0078125, %v8555_v63  ;;  %v13831_v63 = vld [vmem:[#allocation2 + $0xa0] sm:$0xff] }
 0xa76   : > { %8706 = vadd.xlane.f32.xlu1 %v8669_v39  ;;  %v8567_v39 = vpop.xlane.xlu1 %8566 }
 0xaa0   : > { %v12581_v26 = vpop.f32.mrf.mxu0 }
 0xaa1   : > { %v8489_v5 = vadd.f32 %v13829_v4, %v12581_v26  ;;  %v8611_v4 = vmul.f32 0.0078125, %v8559_v33  ;;  %v8612_v33 = vmul.f32 0.0078125, %v8561_v45 }
 0xaa2   : > { %v8432_v50 = vpop.f32.mrf.mxu0 }
 0xaa3   : > { %v8487_v32 = vadd.f32 %v13827_v46, %v8432_v50  ;;  %v18779_v19 = vadd.f32 %v18534_v58, %v8489_v5  ;;  %v8610_v50 = vmul.f32 0.0078125, %v8557_v62 }
 0xaa4   : > { %v12582_v2 = vpop.f32.mrf.mxu0 }
 0xaa5   : > { %v18759_v37 = vadd.f32 %v18534_v58, %v8487_v32  ;;  %20660 = vst [vmem:[#allocation31_spill] sm:$0xff] %v18779_v19  ;;  %v8490_v12 = vadd.f32 %v13830_v13, %v12582_v2  ;;  %v18783_v32 = vsub.f32 %v18600_v41, %v8609_v36  ;;  %v18792_v62 = vsub.f32 %v18597_v44, %v8610_v50  ;;  %v13833_v50 = vld [vmem:[#allocation2 + $0x20] sm:$0xff] }
 0xaa6   : > { %v8435_v1 = vpop.f32.mrf.mxu0 }
 0xaa7   : > { %20658 = vst [vmem:[#allocation119_spill] sm:$0xff] %v18759_v37  ;;  %v8488_v60 = vadd.f32 %v13828_v57, %v8435_v1  ;;  %8584 = vadd.xlane.f32.xlu0 %v18759_v37  ;;  %v18786_v55 = vadd.f32 %v18534_v58, %v8490_v12  ;;  %v8672_v57 = vmul.f32 %v18776_v34, %v18776_v34 }
 0xaa8   : > { %v8673_v36 = vmul.f32 %v18783_v32, %v18783_v32 }
 0xaa9   : > { %v18768_v47 = vadd.f32 %v18534_v58, %v8488_v60  ;;  %20661 = vst [vmem:[#allocation122_spill] sm:$0xff] %v18786_v55 }
 0xaab   : > { %20659 = vst [vmem:[#allocation93_spill] sm:$0xff] %v18768_v47  ;;  %8708 = vadd.xlane.f32.xlu0 %v8670_v18  ;;  %8586 = vadd.xlane.f32.xlu1 %v18768_v47  ;;  %v13832_v18 = vld [vmem:[#allocation2 + $0xf8] sm:$0xff] }
 0xaac   : > { %v12585_v49 = vpop.f32.mrf.mxu0 }
 0xaae   : > { %v8569_v26 = vpop.xlane.xlu0 %8568  ;;  %v8448_v27 = vpop.f32.mrf.mxu0 }
 0xaaf   : > { %8588 = vadd.xlane.f32.xlu0 %v18779_v19  ;;  %8710 = vadd.xlane.f32.xlu1 %v8671_v61  ;;  %v8491_v1 = vadd.f32 %v13831_v63, %v8448_v27  ;;  %v18801_v63 = vsub.f32 %v18605_v17, %v8611_v4  ;;  %v8614_v4 = vmul.f32 0.0078125, %v8565_v3 }
 0xab0   : > { %v12586_v46 = vpop.f32.mrf.mxu0 }
 0xab1   : > { %v18795_v5 = vadd.f32 %v18534_v58, %v8491_v1  ;;  %v8675_v45 = vmul.f32 %v18801_v63, %v18801_v63  ;;  %v18822_v3 = vsub.f32 %v18643_v20, %v8614_v4 }
 0xab2   : > { %v8573_v60 = vpop.xlane.xlu0 %8572  ;;  %v8571_v2 = vpop.xlane.xlu1 %8570 }
 0xab3   : > { %v8451_v28 = vpop.f32.mrf.mxu0  ;;  %8712 = vadd.xlane.f32.xlu0 %v8672_v57  ;;  %8590 = vadd.xlane.f32.xlu1 %v18786_v55  ;;  %20662 = vst [vmem:[#allocation88_spill] sm:$0xff] %v18795_v5  ;;  %v8493_v57 = vadd.f32 %v13833_v50, %v12585_v49  ;;  %v8613_v49 = vmul.f32 0.0078125, %v18761_v10  ;;  %v8616_v10 = vmul.f32 0.0078125, %v8569_v26  ;;  %v8678_v4 = vmul.f32 %v18822_v3, %v18822_v3 }
 0xab4   : > { %v8492_v61 = vadd.f32 %v13832_v18, %v8451_v28  ;;  %v8674_v28 = vmul.f32 %v18792_v62, %v18792_v62 }
 0xab6   : > { %v8697_v13 = vpop.xlane.xlu0 %8696  ;;  %v8575_v12 = vpop.xlane.xlu1 %8574  ;;  %v18804_v1 = vadd.f32 %v18534_v58, %v8492_v61  ;;  %v18816_v61 = vadd.f32 %v18534_v58, %v8493_v57 }
 0xab7   : > { %v8760_v27 = vmul.f32 0.0078125, %v8697_v13  ;;  %8714 = vadd.xlane.f32.xlu1 %v8673_v36  ;;  %8592 = vadd.xlane.f32.xlu0 %v18795_v5  ;;  %v18810_v36 = vsub.f32 %v18635_v16, %v8612_v33  ;;  %v13834_v13 = vld [vmem:[#allocation2 + $0x98] sm:$0xff] }
 0xab8   : > { %20663 = vst [vmem:[#allocation131_spill] sm:$0xff] %v18804_v1  ;;  %20664 = vst [vmem:[#allocation79_spill] sm:$0xff] %v18816_v61 }
 0xab9   : > { %v8792_v44 = vadd.f32 1e-05, %v8760_v27  ;;  %v8494_v27 = vadd.f32 %v13834_v13, %v12586_v46  ;;  %v8676_v33 = vmul.f32 %v18810_v36, %v18810_v36  ;;  %v18835_v46 = vsub.f32 %v18662_v59, %v8616_v10 }
 0xaba   : > { %v8699_v18 = vpop.xlane.xlu1 %8698  ;;  %v8619_v13 = vmul.f32 0.0078125, %v8575_v12 }
 0xabb   : > { %13739 = vrsqrt.f32 %v8792_v44  ;;  %v8761_v41 = vmul.f32 0.0078125, %v8699_v18  ;;  %8716 = vadd.xlane.f32.xlu0 %v8674_v28  ;;  %8594 = vadd.xlane.f32.xlu1 %v18804_v1  ;;  %v8615_v44 = vmul.f32 0.0078125, %v8567_v39  ;;  %v18825_v28 = vsub.f32 %v18646_v31, %v8613_v49 }
 0xabc   : > { %v18828_v57 = vadd.f32 %v18534_v58, %v8494_v27  ;;  %v8618_v39 = vmul.f32 0.0078125, %v8573_v60  ;;  %v8617_v18 = vmul.f32 0.0078125, %v8571_v2  ;;  %v8680_v27 = vmul.f32 %v18835_v46, %v18835_v46 }
 0xabd   : > { %v8793_v50 = vadd.f32 1e-05, %v8761_v41  ;;  %v18832_v41 = vsub.f32 %v18657_v23, %v8615_v44  ;;  %v8677_v26 = vmul.f32 %v18825_v28, %v18825_v28  ;;  %v18859_v10 = vsub.f32 %v18680_v53, %v8619_v13 }
 0xabe   : > { %20665 = vst [vmem:[#allocation130_spill] sm:$0xff] %v18828_v57  ;;  %v18847_v49 = vsub.f32 %v18672_v14, %v8617_v18  ;;  %v18867_v18 = vld [vmem:[%s757_s7] ss:$0 sm:$0xff] }
 0xabf   : > { %13741 = vrsqrt.f32 %v8793_v50  ;;  %8596 = vadd.xlane.f32.xlu0 %v18816_v61  ;;  %8718 = vadd.xlane.f32.xlu1 %v8675_v45  ;;  %v18842_v45 = vsub.f32 %v18669_v0, %v8618_v39  ;;  %v8679_v60 = vmul.f32 %v18832_v41, %v18832_v41  ;;  %v18854_v50 = vld [vmem:[%s749_s28] ss:$0 sm:$0xff] }
 0xac3   : > { %8720 = vadd.xlane.f32.xlu0 %v8676_v33  ;;  %8598 = vadd.xlane.f32.xlu1 %v18828_v57  ;;  %v8682_v33 = vmul.f32 %v18842_v45, %v18842_v45 }
 0xac7   : > { %8724 = vadd.xlane.f32.xlu0 %v8678_v4  ;;  %8722 = vadd.xlane.f32.xlu1 %v8677_v26  ;;  %v8683_v26 = vmul.f32 %v18859_v10, %v18859_v10 }
 0xac8   : > { %v13740_v58 = vpop.eup %13739 }
 0xac9   : > { %v8856_v2 = vmul.f32 %v13740_v58, %v18666_v21  ;;  %v8681_v21 = vmul.f32 %v18847_v49, %v18847_v49 }
 0xacb   : > { %8728 = vadd.xlane.f32.xlu0 %v8680_v27  ;;  %8726 = vadd.xlane.f32.xlu1 %v8679_v60  ;;  %v8894_v12 = vmul.f32 %v18854_v50, %v8856_v2 }
 0xacc   : > { %v13742_v44 = vpop.eup %13741 }
 0xacd   : > { %v8857_v39 = vmul.f32 %v13742_v44, %v18677_v22  ;;  %v8932_v58 = vadd.f32 %v18867_v18, %v8894_v12 }
 0xacf   : > { %8732 = vadd.xlane.f32.xlu0 %v8682_v33  ;;  %8730 = vadd.xlane.f32.xlu1 %v8681_v21  ;;  %v8895_v4 = vmul.f32 %v18854_v50, %v8857_v39 }
 0xad1   : > { %v8933_v60 = vadd.f32 %v18867_v18, %v8895_v4 }
 0xad3   : > { %8734 = vadd.xlane.f32.xlu1 %v8683_v26  ;;  %v8964_v22 = vpack.c.bf16 %v8933_v60, %v8932_v58 }
 0xad5   : > { %9227 = vmatmul.mubr.bf16.vlgmr.msra.gmra.mxu1 %v8964_v22  ;;  %9420 = vmatmul.mubr.bf16.vlgmr.msra.gmra.mxu0 %v8964_v22 }
 0xad6   : > { %9236 = vmatprep.mubr.bf16.mxu1 %v20653_v56  ;;  %9429 = vmatprep.mubr.bf16.mxu0 %v20653_v56 }
 0xaef   : > { %v8577_v2 = vpop.xlane.xlu0 %8576 }
 0xaf0   : > { %v8620_v13 = vmul.f32 0.0078125, %v8577_v2 }
 0xaf2   : > { %v18877_v27 = vsub.f32 %v18723_v7, %v8620_v13 }
 0xaf3   : > { %v8701_v44 = vpop.xlane.xlu0 %8700  ;;  %v8579_v33 = vpop.xlane.xlu1 %8578 }
 0xaf4   : > { %v8762_v39 = vmul.f32 0.0078125, %v8701_v44  ;;  %v8621_v21 = vmul.f32 0.0078125, %v8579_v33  ;;  %v8684_v12 = vmul.f32 %v18877_v27, %v18877_v27 }
 0xaf6   : > { %v8794_v4 = vadd.f32 1e-05, %v8762_v39  ;;  %v18882_v26 = vsub.f32 %v18732_v29, %v8621_v21  ;;  %8736 = vadd.xlane.f32.xlu0 %v8684_v12 }
 0xaf7   : > { %v8581_v58 = vpop.xlane.xlu0 %8580  ;;  %v8703_v60 = vpop.xlane.xlu1 %8702 }
 0xaf8   : > { %13743 = vrsqrt.f32 %v8794_v4  ;;  %v8622_v22 = vmul.f32 0.0078125, %v8581_v58  ;;  %v8763_v2 = vmul.f32 0.0078125, %v8703_v60  ;;  %v8685_v13 = vmul.f32 %v18882_v26, %v18882_v26 }
 0xafa   : > { %v18887_v7 = vsub.f32 %v18739_v15, %v8622_v22  ;;  %v8795_v44 = vadd.f32 1e-05, %v8763_v2  ;;  %8738 = vadd.xlane.f32.xlu1 %v8685_v13 }
 0xafb   : > { %v8705_v33 = vpop.xlane.xlu0 %8704  ;;  %v8583_v53 = vpop.xlane.xlu1 %8582 }
 0xafc   : > { %13745 = vrsqrt.f32 %v8795_v44  ;;  %v8764_v39 = vmul.f32 0.0078125, %v8705_v33  ;;  %v8623_v21 = vmul.f32 0.0078125, %v8583_v53  ;;  %v8686_v12 = vmul.f32 %v18887_v7, %v18887_v7 }
 0xafe   : > { %v8796_v29 = vadd.f32 1e-05, %v8764_v39  ;;  %v18892_v4 = vsub.f32 %v18748_v40, %v8623_v21  ;;  %8740 = vadd.xlane.f32.xlu0 %v8686_v12 }
 0xaff   : > { %v8707_v58 = vpop.xlane.xlu1 %8706 }
 0xb00   : > { %13747 = vrsqrt.f32 %v8796_v29  ;;  %v8765_v60 = vmul.f32 0.0078125, %v8707_v58  ;;  %v8687_v22 = vmul.f32 %v18892_v4, %v18892_v4 }
 0xb02   : > { %v8797_v2 = vadd.f32 1e-05, %v8765_v60  ;;  %8742 = vadd.xlane.f32.xlu1 %v8687_v22 }
 0xb04   : > { %13749 = vrsqrt.f32 %v8797_v2 }
 0xb05   : > { %v13744_v13 = vpop.eup %13743 }
 0xb06   : > { %v8858_v53 = vmul.f32 %v13744_v13, %v18720_v11 }
 0xb08   : > { %v8896_v39 = vmul.f32 %v18854_v50, %v8858_v53 }
 0xb09   : > { %v13746_v44 = vpop.eup %13745 }
 0xb0a   : > { %v8859_v33 = vmul.f32 %v13746_v44, %v18729_v48  ;;  %v8934_v29 = vadd.f32 %v18867_v18, %v8896_v39 }
 0xb0c   : > { %v8897_v21 = vmul.f32 %v18854_v50, %v8859_v33 }
 0xb0d   : > { %v13748_v12 = vpop.eup %13747 }
 0xb0e   : > { %v8935_v58 = vadd.f32 %v18867_v18, %v8897_v21  ;;  %v8860_v40 = vmul.f32 %v13748_v12, %v18736_v6 }
 0xb10   : > { %v8965_v60 = vpack.c.bf16 %v8935_v58, %v8934_v29  ;;  %v8898_v2 = vmul.f32 %v18854_v50, %v8860_v40 }
 0xb11   : > { %v13750_v22 = vpop.eup %13749 }
 0xb12   : > { %9237 = vmatmul.mubr.bf16.gmra.mxu1 %v8965_v60  ;;  %9430 = vmatmul.mubr.bf16.gmra.mxu0 %v8965_v60  ;;  %v8861_v11 = vmul.f32 %v13750_v22, %v18745_v51  ;;  %v8936_v13 = vadd.f32 %v18867_v18, %v8898_v2 }
 0xb13   : > { %9246 = vmatprep.mubr.bf16.mxu1 %v20653_v56  ;;  %9439 = vmatprep.mubr.bf16.mxu0 %v20653_v56 }
 0xb14   : > { %v8899_v48 = vmul.f32 %v18854_v50, %v8861_v11 }
 0xb16   : > { %v8937_v53 = vadd.f32 %v18867_v18, %v8899_v48 }
 0xb18   : > { %v8966_v44 = vpack.c.bf16 %v8937_v53, %v8936_v13 }
 0xb1a   : > { %9247 = vmatmul.mubr.bf16.gmra.mxu1 %v8966_v44  ;;  %9440 = vmatmul.mubr.bf16.gmra.mxu0 %v8966_v44 }
 0xb1b   : > { %9256 = vmatprep.mubr.bf16.mxu1 %v20653_v56  ;;  %9449 = vmatprep.mubr.bf16.mxu0 %v20653_v56 }
 0xb30   : > { %v8585_v6 = vpop.xlane.xlu0 %8584 }
 0xb31   : > { %v8624_v51 = vmul.f32 0.0078125, %v8585_v6 }
 0xb33   : > { %v18913_v40 = vsub.f32 %v18759_v37, %v8624_v51 }
 0xb34   : > { %v8709_v33 = vpop.xlane.xlu0 %8708  ;;  %v8587_v39 = vpop.xlane.xlu1 %8586 }
 0xb35   : > { %v8766_v21 = vmul.f32 0.0078125, %v8709_v33  ;;  %v8625_v12 = vmul.f32 0.0078125, %v8587_v39  ;;  %v8688_v29 = vmul.f32 %v18913_v40, %v18913_v40 }
 0xb37   : > { %v8798_v58 = vadd.f32 1e-05, %v8766_v21  ;;  %v18918_v60 = vsub.f32 %v18768_v47, %v8625_v12  ;;  %8744 = vadd.xlane.f32.xlu0 %v8688_v29 }
 0xb38   : > { %v8589_v22 = vpop.xlane.xlu0 %8588  ;;  %v8711_v11 = vpop.xlane.xlu1 %8710 }
 0xb39   : > { %13751 = vrsqrt.f32 %v8798_v58  ;;  %v8626_v2 = vmul.f32 0.0078125, %v8589_v22  ;;  %v8767_v48 = vmul.f32 0.0078125, %v8711_v11  ;;  %v8689_v13 = vmul.f32 %v18918_v60, %v18918_v60 }
 0xb3b   : > { %v18923_v53 = vsub.f32 %v18779_v19, %v8626_v2  ;;  %v8799_v44 = vadd.f32 1e-05, %v8767_v48  ;;  %8746 = vadd.xlane.f32.xlu1 %v8689_v13  ;;  %v13132_v19 = vld [vmem:[%s14640_s11 + $0xf8] sm:$0xff]  }
 0xb3c   : > { %v8713_v6 = vpop.xlane.xlu0 %8712  ;;  %v8591_v51 = vpop.xlane.xlu1 %8590  ;;  %11867 = vmatprep.subr.bf16.mxu0 %v13132_v19 }
 0xb3d   : > { %13753 = vrsqrt.f32 %v8799_v44  ;;  %v8768_v33 = vmul.f32 0.0078125, %v8713_v6  ;;  %v8627_v39 = vmul.f32 0.0078125, %v8591_v51  ;;  %v8690_v21 = vmul.f32 %v18923_v53, %v18923_v53 }
 0xb3f   : > { %v8800_v12 = vadd.f32 1e-05, %v8768_v33  ;;  %v18928_v29 = vsub.f32 %v18786_v55, %v8627_v39  ;;  %8748 = vadd.xlane.f32.xlu0 %v8690_v21 }
 0xb40   : > { %v8715_v58 = vpop.xlane.xlu1 %8714  ;;  %v8593_v22 = vpop.xlane.xlu0 %8592 }
 0xb41   : > { %13755 = vrsqrt.f32 %v8800_v12  ;;  %v8769_v11 = vmul.f32 0.0078125, %v8715_v58  ;;  %v8628_v2 = vmul.f32 0.0078125, %v8593_v22  ;;  %v8691_v48 = vmul.f32 %v18928_v29, %v18928_v29 }
 0xb43   : > { %v8801_v13 = vadd.f32 1e-05, %v8769_v11  ;;  %v18933_v44 = vsub.f32 %v18795_v5, %v8628_v2  ;;  %8750 = vadd.xlane.f32.xlu1 %v8691_v48 }
 0xb44   : > { %v8717_v6 = vpop.xlane.xlu0 %8716  ;;  %v8595_v51 = vpop.xlane.xlu1 %8594 }
 0xb45   : > { %13757 = vrsqrt.f32 %v8801_v13  ;;  %v8770_v33 = vmul.f32 0.0078125, %v8717_v6  ;;  %v8629_v39 = vmul.f32 0.0078125, %v8595_v51  ;;  %v8692_v21 = vmul.f32 %v18933_v44, %v18933_v44 }
 0xb46   : > { %v13752_v55 = vpop.eup %13751 }
 0xb47   : > { %v8802_v12 = vadd.f32 1e-05, %v8770_v33  ;;  %v18938_v58 = vsub.f32 %v18804_v1, %v8629_v39  ;;  %8752 = vadd.xlane.f32.xlu0 %v8692_v21  ;;  %v8862_v2 = vmul.f32 %v13752_v55, %v18756_v9 }
 0xb48   : > { %v8597_v22 = vpop.xlane.xlu0 %8596  ;;  %v8719_v11 = vpop.xlane.xlu1 %8718 }
 0xb49   : > { %13759 = vrsqrt.f32 %v8802_v12  ;;  %v8630_v48 = vmul.f32 0.0078125, %v8597_v22  ;;  %v8771_v13 = vmul.f32 0.0078125, %v8719_v11  ;;  %v8693_v6 = vmul.f32 %v18938_v58, %v18938_v58  ;;  %v13131_v11 = vld [vmem:[%s14640_s11 + $0x78] sm:$0xff]  }
 0xb4a   : > { %v13754_v51 = vpop.eup %13753  ;;  %v8900_v9 = vmul.f32 %v18854_v50, %v8862_v2  ;;  %11755 = vmatprep.subr.bf16.mxu1 %v13131_v11 }
 0xb4b   : > { %v18944_v5 = vsub.f32 %v18816_v61, %v8630_v48  ;;  %v8803_v33 = vadd.f32 1e-05, %v8771_v13  ;;  %8754 = vadd.xlane.f32.xlu1 %v8693_v6  ;;  %v8863_v39 = vmul.f32 %v13754_v51, %v18765_v54 }
 0xb4c   : > { %v8721_v21 = vpop.xlane.xlu0 %8720  ;;  %v8599_v1 = vpop.xlane.xlu1 %8598  ;;  %v8938_v51 = vadd.f32 %v18867_v18, %v8900_v9 }
 0xb4d   : > { %13761 = vrsqrt.f32 %v8803_v33  ;;  %v8772_v55 = vmul.f32 0.0078125, %v8721_v21  ;;  %v8631_v12 = vmul.f32 0.0078125, %v8599_v1  ;;  %v8694_v22 = vmul.f32 %v18944_v5, %v18944_v5 }
 0xb4e   : > { %v13756_v47 = vpop.eup %13755  ;;  %v8901_v48 = vmul.f32 %v18854_v50, %v8863_v39 }
 0xb4f   : > { %v8804_v13 = vadd.f32 1e-05, %v8772_v55  ;;  %v18954_v6 = vsub.f32 %v18828_v57, %v8631_v12  ;;  %8756 = vadd.xlane.f32.xlu0 %v8694_v22  ;;  %v8864_v54 = vmul.f32 %v13756_v47, %v18776_v34  ;;  %v13133_v55 = vld [vmem:[%s14640_s11 + $0x38] sm:$0xff]  }
 0xb50   : > { %v8725_v2 = vpop.xlane.xlu0 %8724  ;;  %v8723_v1 = vpop.xlane.xlu1 %8722  ;;  %v8939_v33 = vadd.f32 %v18867_v18, %v8901_v48  ;;  %v13134_v22 = vld [vmem:[%s14640_s11 + $0xb8] sm:$0xff]   ;;  %11756 = vmatpush3.bf16.msra.mxu1 %v13133_v55 }
 0xb51   : > { %13763 = vrsqrt.f32 %v8804_v13  ;;  %v8774_v21 = vmul.f32 0.0078125, %v8725_v2  ;;  %v8773_v61 = vmul.f32 0.0078125, %v8723_v1  ;;  %v8695_v39 = vmul.f32 %v18954_v6, %v18954_v6  ;;  %11868 = vmatpush3.bf16.msra.mxu0 %v13134_v22 }
 0xb52   : > { %v13758_v12 = vpop.eup %13757  ;;  %v8967_v57 = vpack.c.bf16 %v8939_v33, %v8938_v51  ;;  %v8902_v34 = vmul.f32 %v18854_v50, %v8864_v54 }
 0xb53   : > { %v8805_v37 = vadd.f32 1e-05, %v8773_v61  ;;  %8758 = vadd.xlane.f32.xlu1 %v8695_v39  ;;  %v8865_v47 = vmul.f32 %v13758_v12, %v18783_v32  ;;  %v8806_v9 = vadd.f32 1e-05, %v8774_v21 }
 0xb54   : > { %9257 = vmatmul.mubr.bf16.gmra.mxu1 %v8967_v57  ;;  %9450 = vmatmul.mubr.bf16.gmra.mxu0 %v8967_v57  ;;  %v8727_v19 = vpop.xlane.xlu1 %8726  ;;  %v8729_v11 = vpop.xlane.xlu0 %8728  ;;  %v8940_v32 = vadd.f32 %v18867_v18, %v8902_v34 }
 0xb55   : > { %v8775_v48 = vmul.f32 0.0078125, %v8727_v19  ;;  %9266 = vmatprep.mubr.bf16.mxu1 %v20653_v56  ;;  %9459 = vmatprep.mubr.bf16.mxu0 %v20653_v56  ;;  %v8903_v13 = vmul.f32 %v18854_v50, %v8865_v47  ;;  %13765 = vrsqrt.f32 %v8805_v37  ;;  %v8776_v57 = vmul.f32 0.0078125, %v8729_v11 }
 0xb56   : > { %v13760_v2 = vpop.eup %13759  ;;  %13767 = vrsqrt.f32 %v8806_v9 }
 0xb57   : > { %v8807_v61 = vadd.f32 1e-05, %v8775_v48  ;;  %v8941_v54 = vadd.f32 %v18867_v18, %v8903_v13  ;;  %v8866_v1 = vmul.f32 %v13760_v2, %v18792_v62  ;;  %v8808_v22 = vadd.f32 1e-05, %v8776_v57  ;;  %v13135_v2 = vld [vmem:[%s14640_s11 + $0x70] sm:$0xff]  }
 0xb58   : > { %v8731_v51 = vpop.xlane.xlu1 %8730  ;;  %v8733_v47 = vpop.xlane.xlu0 %8732  ;;  %11757 = vmatprep.subr.bf16.mxu1 %v13135_v2 }
 0xb59   : > { %v8777_v33 = vmul.f32 0.0078125, %v8731_v51  ;;  %v8968_v21 = vpack.c.bf16 %v8941_v54, %v8940_v32  ;;  %13769 = vrsqrt.f32 %v8807_v61  ;;  %v8904_v37 = vmul.f32 %v18854_v50, %v8866_v1  ;;  %v13136_v61 = vld [vmem:[%s14640_s11 + $0xf0] sm:$0xff]  }
 0xb5a   : > { %v13762_v39 = vpop.eup %13761  ;;  %v8778_v19 = vmul.f32 0.0078125, %v8733_v47  ;;  %v13137_v54 = vld [vmem:[%s14640_s11 + $0x30] sm:$0xff]   ;;  %11869 = vmatprep.subr.bf16.mxu0 %v13136_v61  ;;  %v13145_v61 = vld [vmem:[%s14640_s11 + $0x20] sm:$0xff]  }
 0xb5b   : > { %v8809_v55 = vadd.f32 1e-05, %v8777_v33  ;;  %v8867_v12 = vmul.f32 %v13762_v39, %v18801_v63  ;;  %v8942_v11 = vadd.f32 %v18867_v18, %v8904_v37  ;;  %v13138_v1 = vld [vmem:[%s14640_s11 + $0xb0] sm:$0xff]   ;;  %11758 = vmatpush3.bf16.msra.mxu1 %v13137_v54 }
 0xb5c   : > { %9267 = vmatmul.mubr.bf16.gmra.mxu1 %v8968_v21  ;;  %9460 = vmatmul.mubr.bf16.gmra.mxu0 %v8968_v21  ;;  %v8735_v62 = vpop.xlane.xlu1 %8734  ;;  %v8810_v33 = vadd.f32 1e-05, %v8778_v19 }
 0xb5d   : > { %9276 = vmatprep.mubr.bf16.mxu1 %v20653_v56  ;;  %9469 = vmatprep.mubr.bf16.mxu0 %v20653_v56  ;;  %v8905_v34 = vmul.f32 %v18854_v50, %v8867_v12  ;;  %13771 = vrsqrt.f32 %v8809_v55  ;;  %v8779_v63 = vmul.f32 0.0078125, %v8735_v62  ;;  %v13139_v62 = vld [vmem:[%s14640_s11 + $0x68] sm:$0xff]  }
 0xb5e   : > { %v13764_v9 = vpop.eup %13763  ;;  %13773 = vrsqrt.f32 %v8808_v22  ;;  %11870 = vmatpush3.bf16.msra.mxu0 %v13138_v1  ;;  %11759 = vmatprep.subr.bf16.mxu1 %v13139_v62 }
 0xb5f   : > { %v8943_v48 = vadd.f32 %v18867_v18, %v8905_v34  ;;  %v8868_v13 = vmul.f32 %v13764_v9, %v18810_v36  ;;  %v8811_v57 = vadd.f32 1e-05, %v8779_v63  ;;  %v13140_v34 = vld [vmem:[%s14640_s11 + $0xe8] sm:$0xff]  }
 0xb60   : > { %v13141_v9 = vld [vmem:[%s14640_s11 + $0x28] sm:$0xff]   ;;  %11871 = vmatprep.subr.bf16.mxu0 %v13140_v34 }
 0xb61   : > { %v8969_v32 = vpack.c.bf16 %v8943_v48, %v8942_v11  ;;  %v8906_v36 = vmul.f32 %v18854_v50, %v8868_v13  ;;  %13775 = vrsqrt.f32 %v8811_v57  ;;  %v13142_v63 = vld [vmem:[%s14640_s11 + $0xa8] sm:$0xff]   ;;  %v13143_v48 = vld [vmem:[%s14640_s11 + $0x60] sm:$0xff]   ;;  %11760 = vmatpush3.bf16.msra.mxu1 %v13141_v9 }
 0xb62   : > { %v13766_v51 = vpop.eup %13765  ;;  %13777 = vrsqrt.f32 %v8810_v33  ;;  %v13144_v13 = vld [vmem:[%s14640_s11 + $0xe0] sm:$0xff]   ;;  %11872 = vmatpush3.bf16.msra.mxu0 %v13142_v63  ;;  %11761 = vmatprep.subr.bf16.mxu1 %v13143_v48  ;;  %v13147_v33 = vld [vmem:[%s14640_s11 + $0x58] sm:$0xff]   ;;  %v13156_v48 = vld [vmem:[%s14640_s11 + $0xc8] sm:$0xff]  }
 0xb63   : > { %v8869_v21 = vmul.f32 %v13766_v51, %v18825_v28  ;;  %v13768_v39 = vpop.eup %13767  ;;  %v8944_v37 = vadd.f32 %v18867_v18, %v8906_v36  ;;  %11873 = vmatprep.subr.bf16.mxu0 %v13144_v13  ;;  %v13149_v36 = vld [vmem:[%s14640_s11 + $0x18] sm:$0xff]   ;;  %v13157_v13 = vld [vmem:[%s14640_s11 + $0x8] sm:$0xff]  }
 0xb64   : > { %9277 = vmatmul.mubr.bf16.gmra.mxu1 %v8969_v32  ;;  %9470 = vmatmul.mubr.bf16.gmra.mxu0 %v8969_v32  ;;  %v8870_v28 = vmul.f32 %v13768_v39, %v18822_v3  ;;  %v13146_v3 = vld [vmem:[%s14640_s11 + $0xa0] sm:$0xff]   ;;  %v13150_v39 = vld [vmem:[%s14640_s11 + $0x98] sm:$0xff]  }
 0xb65   : > { %9286 = vmatprep.mubr.bf16.mxu1 %v20653_v56  ;;  %9479 = vmatprep.mubr.bf16.mxu0 %v20653_v56  ;;  %v8907_v55 = vmul.f32 %v18854_v50, %v8869_v21  ;;  %v13148_v21 = vld [vmem:[%s14640_s11 + $0xd8] sm:$0xff]  }
 0xb66   : > { %v13770_v12 = vpop.eup %13769  ;;  %11762 = vmatpush3.bf16.msra.mxu1 %v13145_v61  ;;  %11874 = vmatpush3.bf16.msra.mxu0 %v13146_v3 }
 0xb67   : > { %v8945_v22 = vadd.f32 %v18867_v18, %v8907_v55  ;;  %v8871_v47 = vmul.f32 %v13770_v12, %v18832_v41  ;;  %v8908_v41 = vmul.f32 %v18854_v50, %v8870_v28  ;;  %11763 = vmatprep.subr.bf16.mxu1 %v13147_v33  ;;  %11875 = vmatprep.subr.bf16.mxu0 %v13148_v21  ;;  %v13153_v28 = vld [vmem:[%s14640_s11 + $0x10] sm:$0xff]  }
 0xb69   : > { %v8970_v19 = vpack.c.bf16 %v8945_v22, %v8944_v37  ;;  %v8909_v11 = vmul.f32 %v18854_v50, %v8871_v47  ;;  %v8946_v57 = vadd.f32 %v18867_v18, %v8908_v41  ;;  %v13152_v37 = vld [vmem:[%s14640_s11 + $0xd0] sm:$0xff]   ;;  %v13160_v41 = vld [vmem:[%s14640_s11 + $0xc0] sm:$0xff]  }
 0xb6a   : > { %v13772_v2 = vpop.eup %13771  ;;  %11764 = vmatpush3.bf16.msra.mxu1 %v13149_v36  ;;  %11876 = vmatpush3.bf16.msra.mxu0 %v13150_v39  ;;  %v13154_v47 = vld [vmem:[%s14640_s11 + $0x90] sm:$0xff]  }
 0xb6b   : > { %v13774_v32 = vpop.eup %13773  ;;  %v8947_v54 = vadd.f32 %v18867_v18, %v8909_v11  ;;  %v8873_v1 = vmul.f32 %v13772_v2, %v18847_v49  ;;  %v13151_v49 = vld [vmem:[%s14640_s11 + $0x50] sm:$0xff]   ;;  %11877 = vmatprep.subr.bf16.mxu0 %v13152_v37  ;;  %v13155_v11 = vld [vmem:[%s14640_s11 + $0x48] sm:$0xff]  }
 0xb6c   : > { %9287 = vmatmul.mubr.bf16.gmra.mxu1 %v8970_v19  ;;  %9480 = vmatmul.mubr.bf16.gmra.mxu0 %v8970_v19  ;;  %v8872_v51 = vmul.f32 %v13774_v32, %v18835_v46  ;;  %v13158_v2 = vld [vmem:[%s14640_s11 + $0x88] sm:$0xff]   ;;  %v13161_v32 = vld [vmem:[%s14640_s11] sm:$0xff]  }
 0xb6d   : > { %9296 = vmatprep.mubr.bf16.mxu1 %v20653_v56  ;;  %9489 = vmatprep.mubr.bf16.mxu0 %v20653_v56  ;;  %v8971_v55 = vpack.c.bf16 %v8947_v54, %v8946_v57  ;;  %v8911_v12 = vmul.f32 %v18854_v50, %v8873_v1  ;;  %v13162_v54 = vld [vmem:[%s14640_s11 + $0x80] sm:$0xff]  }
 0xb6e   : > { %v13776_v22 = vpop.eup %13775  ;;  %v8910_v46 = vmul.f32 %v18854_v50, %v8872_v51  ;;  %11765 = vmatprep.subr.bf16.mxu1 %v13151_v49  ;;  %11878 = vmatpush3.bf16.msra.mxu0 %v13154_v47 }
 0xb6f   : > { %v13778_v62 = vpop.eup %13777  ;;  %v8949_v34 = vadd.f32 %v18867_v18, %v8911_v12  ;;  %v8875_v9 = vmul.f32 %v13776_v22, %v18859_v10  ;;  %11766 = vmatpush3.bf16.msra.mxu1 %v13153_v28  ;;  %11879 = vmatprep.subr.bf16.mxu0 %v13156_v48  ;;  %v13159_v10 = vld [vmem:[%s14640_s11 + $0x40] sm:$0xff]  }
 0xb70   : > { %v8948_v63 = vadd.f32 %v18867_v18, %v8910_v46  ;;  %v8874_v19 = vmul.f32 %v13778_v62, %v18842_v45  ;;  %11767 = vmatprep.subr.bf16.mxu1 %v13155_v11 }
 0xb71   : > { %v8913_v3 = vmul.f32 %v18854_v50, %v8875_v9 }
 0xb72   : > { %v8972_v61 = vpack.c.bf16 %v8949_v34, %v8948_v63  ;;  %11880 = vmatpush3.bf16.msra.mxu0 %v13158_v2  ;;  %v8912_v1 = vmul.f32 %v18854_v50, %v8874_v19 }
 0xb73   : > { %11768 = vmatpush3.bf16.msra.mxu1 %v13157_v13  ;;  %v8951_v45 = vadd.f32 %v18867_v18, %v8913_v3  ;;  %11881 = vmatprep.subr.bf16.mxu0 %v13160_v41 }
 0xb74   : > { %9297 = vmatmul.mubr.bf16.gmra.mxu1 %v8971_v55  ;;  %9490 = vmatmul.mubr.bf16.gmra.mxu0 %v8971_v55  ;;  %v8950_v33 = vadd.f32 %v18867_v18, %v8912_v1 }
 0xb75   : > { %9306 = vmatprep.mubr.bf16.mxu1 %v20653_v56  ;;  %9499 = vmatprep.mubr.bf16.mxu0 %v20653_v56 }
 0xb76   : > { %11769 = vmatprep.subr.bf16.mxu1 %v13159_v10  ;;  %11882 = vmatpush3.bf16.msra.mxu0 %v13162_v54  ;;  %v8973_v36 = vpack.c.bf16 %v8951_v45, %v8950_v33 }
 0xb77   : > { %11770 = vmatpush3.bf16.msra.mxu1 %v13161_v32 }
 0xb7c   : > { %9307 = vmatmul.mubr.bf16.gmra.mxu1 %v8972_v61  ;;  %9500 = vmatmul.mubr.bf16.gmra.mxu0 %v8972_v61 }
 0xb7d   : > { %9316 = vmatprep.mubr.bf16.mxu1 %v20653_v56  ;;  %9509 = vmatprep.mubr.bf16.mxu0 %v20653_v56 }
 0xb7f   : > { %v8737_v57 = vpop.xlane.xlu0 %8736 }
 0xb80   : > { %v8780_v51 = vmul.f32 0.0078125, %v8737_v57 }
 0xb82   : > { %v8812_v21 = vadd.f32 1e-05, %v8780_v51 }
 0xb83   : > { %v8739_v39 = vpop.xlane.xlu1 %8738 }
 0xb84   : > { %13779 = vrsqrt.f32 %v8812_v21  ;;  %9317 = vmatmul.mubr.bf16.gmra.mxu1 %v8973_v36  ;;  %9510 = vmatmul.mubr.bf16.gmra.mxu0 %v8973_v36  ;;  %v8781_v55 = vmul.f32 0.0078125, %v8739_v39 }
 0xb85   : > { %9326 = vmatprep.mubr.bf16.mxu1 %v20653_v56  ;;  %9519 = vmatprep.mubr.bf16.mxu0 %v20653_v56 }
 0xb86   : > { %v8813_v12 = vadd.f32 1e-05, %v8781_v55 }
 0xb87   : > { %v8741_v49 = vpop.xlane.xlu0 %8740 }
 0xb88   : > { %13781 = vrsqrt.f32 %v8813_v12  ;;  %v8782_v37 = vmul.f32 0.0078125, %v8741_v49 }
 0xb8a   : > { %v8814_v22 = vadd.f32 1e-05, %v8782_v37 }
 0xb8b   : > { %v8743_v28 = vpop.xlane.xlu1 %8742 }
 0xb8c   : > { %13783 = vrsqrt.f32 %v8814_v22  ;;  %v8783_v47 = vmul.f32 0.0078125, %v8743_v28 }
 0xb8e   : > { %v8815_v62 = vadd.f32 1e-05, %v8783_v47 }
 0xb90   : > { %13785 = vrsqrt.f32 %v8815_v62 }
 0xb91   : > { %v13780_v46 = vpop.eup %13779 }
 0xb92   : > { %v8876_v34 = vmul.f32 %v13780_v46, %v18877_v27 }
 0xb94   : > { %v8914_v19 = vmul.f32 %v18854_v50, %v8876_v34 }
 0xb95   : > { %v13782_v9 = vpop.eup %13781  ;;  %v19056_v47 = vpop.f32.mrf.mxu1 }
 0xb96   : > { %v8877_v63 = vmul.f32 %v13782_v9, %v18882_v26  ;;  %v8952_v13 = vadd.f32 %v18867_v18, %v8914_v19  ;;  %v19058_v62 = vpop.f32.mrf.mxu0 }
 0xb97   : > { %v19061_v19 = vpop.f32.mrf.mxu1 }
 0xb98   : > { %v8915_v48 = vmul.f32 %v18854_v50, %v8877_v63 }
 0xb99   : > { %v13784_v11 = vpop.eup %13783 }
 0xb9a   : > { %v8953_v2 = vadd.f32 %v18867_v18, %v8915_v48  ;;  %v8878_v61 = vmul.f32 %v13784_v11, %v18887_v7  ;;  %v19063_v11 = vpop.f32.mrf.mxu0 }
 0xb9c   : > { %v8974_v10 = vpack.c.bf16 %v8953_v2, %v8952_v13  ;;  %v8916_v41 = vmul.f32 %v18854_v50, %v8878_v61 }
 0xb9d   : > { %v13786_v3 = vpop.eup %13785 }
 0xb9e   : > { %9327 = vmatmul.mubr.bf16.gmra.mxu1 %v8974_v10  ;;  %9520 = vmatmul.mubr.bf16.gmra.mxu0 %v8974_v10  ;;  %v8879_v27 = vmul.f32 %v13786_v3, %v18892_v4  ;;  %v8954_v32 = vadd.f32 %v18867_v18, %v8916_v41  ;;  %v19067_v41 = vpop.f32.mrf.mxu1 }
 0xb9f   : > { %9336 = vmatprep.mubr.bf16.mxu1 %v20653_v56  ;;  %9529 = vmatprep.mubr.bf16.mxu0 %v20653_v56 }
 0xba0   : > { %v8917_v26 = vmul.f32 %v18854_v50, %v8879_v27 }
 0xba2   : > { %v8955_v54 = vadd.f32 %v18867_v18, %v8917_v26  ;;  %v19069_v26 = vpop.f32.mrf.mxu0 }
 0xba4   : > { %v8975_v1 = vpack.c.bf16 %v8955_v54, %v8954_v32 }
 0xba6   : > { %9337 = vmatmul.mubr.bf16.gmra.mxu1 %v8975_v1  ;;  %9530 = vmatmul.mubr.bf16.gmra.mxu0 %v8975_v1 }
 0xba7   : > { %9346 = vmatprep.mubr.bf16.mxu1 %v20653_v56  ;;  %9539 = vmatprep.mubr.bf16.mxu0 %v20653_v56 }
 0xbc0   : > { %v8745_v7 = vpop.xlane.xlu0 %8744 }
 0xbc1   : > { %v8784_v4 = vmul.f32 0.0078125, %v8745_v7 }
 0xbc3   : > { %v8816_v45 = vadd.f32 1e-05, %v8784_v4 }
 0xbc4   : > { %v8747_v57 = vpop.xlane.xlu1 %8746 }
 0xbc5   : > { %13787 = vrsqrt.f32 %v8816_v45  ;;  %v8785_v51 = vmul.f32 0.0078125, %v8747_v57  ;;  %v9234_v57 = vpop.f32.mrf.mxu1 }
 0xbc7   : > { %v8817_v33 = vadd.f32 1e-05, %v8785_v51  ;;  %v9427_v51 = vpop.f32.mrf.mxu0 }
 0xbc8   : > { %v8749_v21 = vpop.xlane.xlu0 %8748 }
 0xbc9   : > { %13789 = vrsqrt.f32 %v8817_v33  ;;  %v8786_v36 = vmul.f32 0.0078125, %v8749_v21 }
 0xbcb   : > { %v8818_v39 = vadd.f32 1e-05, %v8786_v36 }
 0xbcc   : > { %v8751_v55 = vpop.xlane.xlu1 %8750 }
 0xbcd   : > { %13791 = vrsqrt.f32 %v8818_v39  ;;  %v8787_v12 = vmul.f32 0.0078125, %v8751_v55 }
 0xbcf   : > { %v8819_v49 = vadd.f32 1e-05, %v8787_v12 }
 0xbd0   : > { %v8753_v37 = vpop.xlane.xlu0 %8752 }
 0xbd1   : > { %13793 = vrsqrt.f32 %v8819_v49  ;;  %v8788_v22 = vmul.f32 0.0078125, %v8753_v37 }
 0xbd2   : > { %v13788_v28 = vpop.eup %13787  ;;  %v19076_v39 = vpop.f32.mrf.mxu1 }
 0xbd3   : > { %v8820_v46 = vadd.f32 1e-05, %v8788_v22  ;;  %v8880_v34 = vmul.f32 %v13788_v28, %v18913_v40  ;;  %v19078_v55 = vpop.f32.mrf.mxu0 }
 0xbd4   : > { %v8755_v9 = vpop.xlane.xlu1 %8754  ;;  %v9240_v22 = vpop.f32.mrf.mxu1 }
 0xbd5   : > { %13795 = vrsqrt.f32 %v8820_v46  ;;  %v8789_v48 = vmul.f32 0.0078125, %v8755_v9  ;;  %v8918_v3 = vmul.f32 %v18854_v50, %v8880_v34  ;;  %v9433_v28 = vpop.f32.mrf.mxu0 }
 0xbd6   : > { %v13790_v63 = vpop.eup %13789 }
 0xbd7   : > { %v8881_v13 = vmul.f32 %v13790_v63, %v18918_v60  ;;  %v8821_v2 = vadd.f32 1e-05, %v8789_v48  ;;  %v8956_v1 = vadd.f32 %v18867_v18, %v8918_v3  ;;  %v19087_v63 = vpop.f32.mrf.mxu1  ;;  %v19089_v48 = vpop.f32.mrf.mxu0 }
 0xbd8   : > { %v8757_v61 = vpop.xlane.xlu0 %8756 }
 0xbd9   : > { %v8790_v10 = vmul.f32 0.0078125, %v8757_v61  ;;  %13797 = vrsqrt.f32 %v8821_v2  ;;  %v8919_v40 = vmul.f32 %v18854_v50, %v8881_v13  ;;  %v20666_v61 = vld [vmem:[#allocation28_spill] sm:$0xff] }
 0xbda   : > { %v13792_v27 = vpop.eup %13791  ;;  %v9028_v3 = vsub.s32 3, %v20666_v61 }
 0xbdb   : > { %v8822_v32 = vadd.f32 1e-05, %v8790_v10  ;;  %v8957_v7 = vadd.f32 %v18867_v18, %v8919_v40  ;;  %v8882_v4 = vmul.f32 %v13792_v27, %v18923_v53  ;;  %v9012_v40 = vld [vmem:[%s14629_s6] sm:$0xf] }
 0xbdc   : > { %v8759_v54 = vpop.xlane.xlu1 %8758 }
 0xbdd   : > { %13799 = vrsqrt.f32 %v8822_v32  ;;  %v8791_v60 = vmul.f32 0.0078125, %v8759_v54  ;;  %v8976_v33 = vpack.c.bf16 %v8957_v7, %v8956_v1  ;;  %v8920_v12 = vmul.f32 %v18854_v50, %v8882_v4  ;;  %v9244_v32 = vpop.f32.mrf.mxu1  ;;  %v9437_v54 = vpop.f32.mrf.mxu0 }
 0xbde   : > { %v13794_v45 = vpop.eup %13793  ;;  %v20667_v7 = vsub.s32 1, %v20666_v61  ;;  %v19105_v4 = vrot.slane %v9012_v40, %v9028_v3 }
 0xbdf   : > { %v8823_v21 = vadd.f32 1e-05, %v8791_v60  ;;  %v8883_v36 = vmul.f32 %v13794_v45, %v18928_v29  ;;  %9347 = vmatmul.mubr.bf16.gmra.mxu1 %v8976_v33  ;;  %9540 = vmatmul.mubr.bf16.gmra.mxu0 %v8976_v33  ;;  %v8958_v37 = vadd.f32 %v18867_v18, %v8920_v12 }
 0xbe0   : > { %9356 = vmatprep.mubr.bf16.mxu1 %v20653_v56  ;;  %9549 = vmatprep.mubr.bf16.mxu0 %v20653_v56  ;;  %v19103_v60 = vrot.slane %v9012_v40, %v20667_v7 }
 0xbe1   : > { %13801 = vrsqrt.f32 %v8823_v21  ;;  %v8921_v53 = vmul.f32 %v18854_v50, %v8883_v36  ;;  %v9428_v36 = vadd.f32 %v9427_v51, %v19105_v4 }
 0xbe2   : > { %v13796_v49 = vpop.eup %13795  ;;  %v9235_v21 = vadd.f32 %v9234_v57, %v19103_v60 }
 0xbe3   : > { %v8959_v29 = vadd.f32 %v18867_v18, %v8921_v53  ;;  %v8884_v46 = vmul.f32 %v13796_v49, %v18933_v44  ;;  %v19111_v53 = vpop.f32.mrf.mxu1  ;;  %v19113_v49 = vpop.f32.mrf.mxu0  ;;  %v9587_v51 = vmax.f32 %v9428_v36, 0.0 }
 0xbe4   : > { %v9585_v57 = vmax.f32 %v9235_v21, 0.0 }
 0xbe5   : > { %v8977_v34 = vpack.c.bf16 %v8959_v29, %v8958_v37  ;;  %v8922_v2 = vmul.f32 %v18854_v50, %v8884_v46  ;;  %v9231_v37 = vadd.f32 %v19061_v19, %v19103_v60  ;;  %v9424_v29 = vadd.f32 %v19063_v11, %v19105_v4  ;;  %v9250_v11 = vpop.f32.mrf.mxu1  ;;  %v9443_v3 = vpop.f32.mrf.mxu0 }
 0xbe6   : > { %v13798_v9 = vpop.eup %13797  ;;  %v20669_v19 = vsub.s32 2, %v20666_v61 }
 0xbe7   : > { %9357 = vmatmul.mubr.bf16.gmra.mxu1 %v8977_v34  ;;  %9550 = vmatmul.mubr.bf16.gmra.mxu0 %v8977_v34  ;;  %v8885_v13 = vmul.f32 %v13798_v9, %v18938_v58  ;;  %v8960_v1 = vadd.f32 %v18867_v18, %v8922_v2  ;;  %v20668_v9 = vsub.s32 0, %v20666_v61 }
 0xbe8   : > { %9366 = vmatprep.mubr.bf16.mxu1 %v20653_v56  ;;  %9559 = vmatprep.mubr.bf16.mxu0 %v20653_v56  ;;  %v19130_v2 = vrot.slane %v9012_v40, %v20669_v19 }
 0xbe9   : > { %v8923_v44 = vmul.f32 %v18854_v50, %v8885_v13  ;;  %v19126_v13 = vrot.slane %v9012_v40, %v20668_v9 }
 0xbea   : > { %v13800_v10 = vpop.eup %13799  ;;  %v9422_v40 = vadd.f32 %v19058_v62, %v19130_v2 }
 0xbeb   : > { %v8886_v27 = vmul.f32 %v13800_v10, %v18944_v5  ;;  %v8961_v58 = vadd.f32 %v18867_v18, %v8923_v44  ;;  %v9581_v10 = vmax.f32 %v9231_v37, 0.0  ;;  %v9229_v61 = vadd.f32 %v19056_v47, %v19126_v13 }
 0xbec   : > { %v9239_v19 = vadd.f32 %v19076_v39, %v19126_v13 }
 0xbed   : > { %v8978_v33 = vpack.c.bf16 %v8961_v58, %v8960_v1  ;;  %v8924_v12 = vmul.f32 %v18854_v50, %v8886_v27  ;;  %v9426_v27 = vadd.f32 %v19069_v26, %v19130_v2  ;;  %v9438_v1 = vadd.f32 %v9437_v54, %v19105_v4 }
 0xbee   : > { %v13802_v45 = vpop.eup %13801  ;;  %v9709_v58 = vpack.c.bf16 %v9585_v57, %v9581_v10  ;;  %v9434_v26 = vadd.f32 %v9433_v28, %v19105_v4  ;;  %v9432_v10 = vadd.f32 %v19078_v55, %v19130_v2 }
 0xbef   : > { %v8887_v5 = vmul.f32 %v13802_v45, %v18954_v6  ;;  %9367 = vmatmul.mubr.bf16.gmra.mxu1 %v8978_v33  ;;  %9560 = vmatmul.mubr.bf16.gmra.mxu0 %v8978_v33  ;;  %v8962_v46 = vadd.f32 %v18867_v18, %v8924_v12  ;;  %v9252_v45 = vpop.f32.mrf.mxu1  ;;  %v9445_v33 = vpop.f32.mrf.mxu0  ;;  %v9586_v54 = vmax.f32 %v9426_v27, 0.0  ;;  %v9595_v36 = vmax.f32 %v9438_v1, 0.0 }
 0xbf0   : > { %9376 = vmatprep.mubr.bf16.mxu1 %v20653_v56  ;;  %9569 = vmatprep.mubr.bf16.mxu0 %v20653_v56  ;;  %v9583_v56 = vmax.f32 %v9424_v29, 0.0  ;;  %v9582_v12 = vmax.f32 %v9422_v40, 0.0  ;;  %v9591_v62 = vmax.f32 %v9434_v26, 0.0  ;;  %v9590_v1 = vmax.f32 %v9432_v10, 0.0 }
 0xbf1   : > { %v8925_v6 = vmul.f32 %v18854_v50, %v8887_v5  ;;  %v9233_v50 = vadd.f32 %v19067_v41, %v19126_v13  ;;  %v9241_v41 = vadd.f32 %v9240_v22, %v19103_v60  ;;  %v9580_v5 = vmax.f32 %v9229_v61, 0.0  ;;  %v9254_v47 = vpop.f32.mrf.mxu1  ;;  %v9447_v37 = vpop.f32.mrf.mxu0 }
 0xbf2   : > { %v9711_v7 = vpack.c.bf16 %v9587_v51, %v9583_v56  ;;  %v9710_v57 = vpack.c.bf16 %v9586_v54, %v9582_v12  ;;  %v9243_v51 = vadd.f32 %v19087_v63, %v19126_v13  ;;  %v9436_v22 = vadd.f32 %v19089_v48, %v19130_v2 }
 0xbf3   : > { %v8963_v34 = vadd.f32 %v18867_v18, %v8925_v6  ;;  %v9245_v18 = vadd.f32 %v9244_v32, %v19103_v60  ;;  %v9584_v32 = vmax.f32 %v9233_v50, 0.0  ;;  %v9589_v29 = vmax.f32 %v9241_v41, 0.0 }
 0xbf4   : > { %v9255_v28 = vadd.f32 %v9254_v47, %v19103_v60  ;;  %v9715_v9 = vpack.c.bf16 %v9595_v36, %v9591_v62  ;;  %v9251_v56 = vadd.f32 %v9250_v11, %v19103_v60  ;;  %v9444_v63 = vadd.f32 %v9443_v3, %v19105_v4 }
 0xbf5   : > { %v8979_v44 = vpack.c.bf16 %v8963_v34, %v8962_v46  ;;  %v9593_v21 = vmax.f32 %v9245_v18, 0.0  ;;  %v9708_v6 = vpack.c.bf16 %v9584_v32, %v9580_v5  ;;  %v9448_v46 = vadd.f32 %v9447_v37, %v19105_v4 }
 0xbf6   : > { %v9592_v48 = vmax.f32 %v9243_v51, 0.0  ;;  %v9601_v50 = vmax.f32 %v9255_v28, 0.0  ;;  %v9588_v18 = vmax.f32 %v9239_v19, 0.0  ;;  %v9253_v55 = vadd.f32 %v9252_v45, %v19126_v13 }
 0xbf7   : > { %9377 = vmatmul.mubr.bf16.gmra.mxu1 %v8979_v44  ;;  %9570 = vmatmul.mubr.bf16.gmra.mxu0 %v8979_v44  ;;  %v9713_v34 = vpack.c.bf16 %v9593_v21, %v9589_v29  ;;  %v9594_v44 = vmax.f32 %v9436_v22, 0.0  ;;  %v9603_v27 = vmax.f32 %v9448_v46, 0.0  ;;  %v9446_v40 = vadd.f32 %v9445_v33, %v19130_v2 }
 0xbf8   : > { %10060 = vmatprep.mubr.bf16.mxu1 %v9709_v58  ;;  %10221 = vmatprep.mubr.bf16.mxu0 %v9711_v7  ;;  %v9597_v58 = vmax.f32 %v9251_v56, 0.0  ;;  %v9599_v7 = vmax.f32 %v9444_v63, 0.0  ;;  %v9712_v39 = vpack.c.bf16 %v9592_v48, %v9588_v18  ;;  %v9249_v3 = vadd.f32 %v19111_v53, %v19126_v13 }
 0xbf9   : > { %v9714_v61 = vpack.c.bf16 %v9594_v44, %v9590_v1  ;;  %v9442_v26 = vadd.f32 %v19113_v49, %v19130_v2  ;;  %v9600_v32 = vmax.f32 %v9253_v55, 0.0  ;;  %v9602_v54 = vmax.f32 %v9446_v40, 0.0 }
 0xbfa   : > { %v9717_v41 = vpack.c.bf16 %v9601_v50, %v9597_v58  ;;  %v9719_v11 = vpack.c.bf16 %v9603_v27, %v9599_v7  ;;  %v9596_v21 = vmax.f32 %v9249_v3, 0.0 }
 0xbfb   : > { %v9598_v36 = vmax.f32 %v9442_v26, 0.0 }
 0xbfc   : > { %v9716_v5 = vpack.c.bf16 %v9600_v32, %v9596_v21 }
 0xbfd   : > { %v9718_v45 = vpack.c.bf16 %v9602_v54, %v9598_v36 }
 0xbff   : > { %10061 = vmatmul.mubr.bf16.vlgmr.msra.gmra.mxu1 %v9708_v6  ;;  %10222 = vmatmul.mubr.bf16.vlgmr.msra.gmra.mxu0 %v9710_v57 }
 0xc00   : > { %10068 = vmatprep.mubr.bf16.mxu1 %v9713_v34  ;;  %10229 = vmatprep.mubr.bf16.mxu0 %v9715_v9 }
 0xc07   : > { %10069 = vmatmul.mubr.bf16.gmra.mxu1 %v9712_v39  ;;  %10230 = vmatmul.mubr.bf16.gmra.mxu0 %v9714_v61 }
 0xc08   : > { %10076 = vmatprep.mubr.bf16.mxu1 %v9717_v41  ;;  %10237 = vmatprep.mubr.bf16.mxu0 %v9719_v11 }
 0xc0f   : > { %10077 = vmatmul.mubr.bf16.gmra.mxu1 %v9716_v5  ;;  %10238 = vmatmul.mubr.bf16.gmra.mxu0 %v9718_v45 }
 0xc14   : > { %v9258_v33 = vpop.f32.mrf.mxu1  ;;  %v9451_v12 = vpop.f32.mrf.mxu0 }
 0xc15   : > { %v9259_v51 = vadd.f32 %v9258_v33, %v19126_v13  ;;  %v9452_v22 = vadd.f32 %v9451_v12, %v19130_v2 }
 0xc16   : > { %v9260_v47 = vpop.f32.mrf.mxu1  ;;  %v9453_v37 = vpop.f32.mrf.mxu0 }
 0xc17   : > { %v9261_v49 = vadd.f32 %v9260_v47, %v19103_v60  ;;  %v9454_v62 = vadd.f32 %v9453_v37, %v19105_v4  ;;  %v9604_v18 = vmax.f32 %v9259_v51, 0.0  ;;  %v9606_v1 = vmax.f32 %v9452_v22, 0.0 }
 0xc18   : > { %v9262_v53 = vpop.f32.mrf.mxu1  ;;  %v9455_v29 = vpop.f32.mrf.mxu0 }
 0xc19   : > { %v9263_v6 = vadd.f32 %v9262_v53, %v19126_v13  ;;  %v9456_v57 = vadd.f32 %v9455_v29, %v19130_v2  ;;  %v9605_v48 = vmax.f32 %v9261_v49, 0.0  ;;  %v9607_v44 = vmax.f32 %v9454_v62, 0.0 }
 0xc1a   : > { %v9264_v28 = vpop.f32.mrf.mxu1  ;;  %v9457_v46 = vpop.f32.mrf.mxu0 }
 0xc1b   : > { %v9265_v34 = vadd.f32 %v9264_v28, %v19103_v60  ;;  %v9458_v9 = vadd.f32 %v9457_v46, %v19105_v4  ;;  %v9608_v19 = vmax.f32 %v9263_v6, 0.0  ;;  %v9610_v10 = vmax.f32 %v9456_v57, 0.0 }
 0xc1c   : > { %v9268_v56 = vpop.f32.mrf.mxu1  ;;  %v9461_v63 = vpop.f32.mrf.mxu0 }
 0xc1d   : > { %v9609_v50 = vmax.f32 %v9265_v34, 0.0  ;;  %v9611_v27 = vmax.f32 %v9458_v9, 0.0  ;;  %v9720_v55 = vpack.c.bf16 %v9608_v19, %v9604_v18  ;;  %v9722_v40 = vpack.c.bf16 %v9610_v10, %v9606_v1 }
 0xc1e   : > { %v9270_v58 = vpop.f32.mrf.mxu1  ;;  %v9463_v7 = vpop.f32.mrf.mxu0  ;;  %v9269_v21 = vadd.f32 %v9268_v56, %v19126_v13  ;;  %v9462_v36 = vadd.f32 %v9461_v63, %v19130_v2 }
 0xc1f   : > { %v9721_v39 = vpack.c.bf16 %v9609_v50, %v9605_v48  ;;  %v9723_v61 = vpack.c.bf16 %v9611_v27, %v9607_v44  ;;  %v9271_v41 = vadd.f32 %v9270_v58, %v19103_v60  ;;  %v9464_v26 = vadd.f32 %v9463_v7, %v19105_v4 }
 0xc20   : > { %v9272_v11 = vpop.f32.mrf.mxu1  ;;  %v9465_v3 = vpop.f32.mrf.mxu0  ;;  %v9612_v51 = vmax.f32 %v9269_v21, 0.0  ;;  %v9614_v22 = vmax.f32 %v9462_v36, 0.0 }
 0xc21   : > { %v9273_v32 = vadd.f32 %v9272_v11, %v19126_v13  ;;  %v9466_v54 = vadd.f32 %v9465_v3, %v19130_v2  ;;  %10084 = vmatprep.mubr.bf16.mxu1 %v9721_v39  ;;  %10245 = vmatprep.mubr.bf16.mxu0 %v9723_v61  ;;  %v9613_v49 = vmax.f32 %v9271_v41, 0.0  ;;  %v9615_v62 = vmax.f32 %v9464_v26, 0.0 }
 0xc22   : > { %v9274_v5 = vpop.f32.mrf.mxu1  ;;  %v9467_v45 = vpop.f32.mrf.mxu0  ;;  %10085 = vmatmul.mubr.bf16.gmra.mxu1 %v9720_v55  ;;  %10246 = vmatmul.mubr.bf16.gmra.mxu0 %v9722_v40 }
 0xc23   : > { %v9275_v33 = vadd.f32 %v9274_v5, %v19103_v60  ;;  %v9468_v12 = vadd.f32 %v9467_v45, %v19105_v4  ;;  %v9616_v47 = vmax.f32 %v9273_v32, 0.0  ;;  %v9618_v37 = vmax.f32 %v9466_v54, 0.0 }
 0xc24   : > { %v9278_v53 = vpop.f32.mrf.mxu1  ;;  %v9471_v29 = vpop.f32.mrf.mxu0 }
 0xc25   : > { %v9617_v6 = vmax.f32 %v9275_v33, 0.0  ;;  %v9619_v57 = vmax.f32 %v9468_v12, 0.0  ;;  %v9724_v19 = vpack.c.bf16 %v9616_v47, %v9612_v51  ;;  %v9726_v10 = vpack.c.bf16 %v9618_v37, %v9614_v22 }
 0xc26   : > { %v9280_v28 = vpop.f32.mrf.mxu1  ;;  %v9473_v46 = vpop.f32.mrf.mxu0  ;;  %v9279_v18 = vadd.f32 %v9278_v53, %v19126_v13  ;;  %v9472_v1 = vadd.f32 %v9471_v29, %v19130_v2 }
 0xc27   : > { %v9725_v34 = vpack.c.bf16 %v9617_v6, %v9613_v49  ;;  %v9727_v9 = vpack.c.bf16 %v9619_v57, %v9615_v62  ;;  %v9281_v56 = vadd.f32 %v9280_v28, %v19103_v60  ;;  %v9474_v44 = vadd.f32 %v9473_v46, %v19105_v4 }
 0xc28   : > { %v9282_v63 = vpop.f32.mrf.mxu1  ;;  %v9475_v48 = vpop.f32.mrf.mxu0  ;;  %v9620_v21 = vmax.f32 %v9279_v18, 0.0  ;;  %v9622_v36 = vmax.f32 %v9472_v1, 0.0 }
 0xc29   : > { %v9283_v50 = vadd.f32 %v9282_v63, %v19126_v13  ;;  %v9476_v27 = vadd.f32 %v9475_v48, %v19130_v2  ;;  %10092 = vmatprep.mubr.bf16.mxu1 %v9725_v34  ;;  %10253 = vmatprep.mubr.bf16.mxu0 %v9727_v9  ;;  %v9621_v3 = vmax.f32 %v9281_v56, 0.0  ;;  %v9623_v26 = vmax.f32 %v9474_v44, 0.0 }
 0xc2a   : > { %v9284_v58 = vpop.f32.mrf.mxu1  ;;  %v9477_v7 = vpop.f32.mrf.mxu0  ;;  %10093 = vmatmul.mubr.bf16.gmra.mxu1 %v9724_v19  ;;  %10254 = vmatmul.mubr.bf16.gmra.mxu0 %v9726_v10 }
 0xc2b   : > { %v9285_v39 = vadd.f32 %v9284_v58, %v19103_v60  ;;  %v9478_v61 = vadd.f32 %v9477_v7, %v19105_v4  ;;  %v9624_v55 = vmax.f32 %v9283_v50, 0.0  ;;  %v9626_v40 = vmax.f32 %v9476_v27, 0.0 }
 0xc2c   : > { %v9288_v41 = vpop.f32.mrf.mxu1  ;;  %v9481_v11 = vpop.f32.mrf.mxu0 }
 0xc2d   : > { %v9625_v32 = vmax.f32 %v9285_v39, 0.0  ;;  %v9627_v54 = vmax.f32 %v9478_v61, 0.0  ;;  %v9728_v47 = vpack.c.bf16 %v9624_v55, %v9620_v21  ;;  %v9730_v37 = vpack.c.bf16 %v9626_v40, %v9622_v36 }
 0xc2e   : > { %v9290_v5 = vpop.f32.mrf.mxu1  ;;  %v9483_v45 = vpop.f32.mrf.mxu0  ;;  %v9289_v51 = vadd.f32 %v9288_v41, %v19126_v13  ;;  %v9482_v22 = vadd.f32 %v9481_v11, %v19130_v2 }
 0xc2f   : > { %v9729_v33 = vpack.c.bf16 %v9625_v32, %v9621_v3  ;;  %v9731_v12 = vpack.c.bf16 %v9627_v54, %v9623_v26  ;;  %v9291_v53 = vadd.f32 %v9290_v5, %v19103_v60  ;;  %v9484_v62 = vadd.f32 %v9483_v45, %v19105_v4 }
 0xc30   : > { %v9292_v29 = vpop.f32.mrf.mxu1  ;;  %v9485_v49 = vpop.f32.mrf.mxu0  ;;  %v9628_v18 = vmax.f32 %v9289_v51, 0.0  ;;  %v9630_v1 = vmax.f32 %v9482_v22, 0.0 }
 0xc31   : > { %v9293_v6 = vadd.f32 %v9292_v29, %v19126_v13  ;;  %v9486_v57 = vadd.f32 %v9485_v49, %v19130_v2  ;;  %10100 = vmatprep.mubr.bf16.mxu1 %v9729_v33  ;;  %10261 = vmatprep.mubr.bf16.mxu0 %v9731_v12  ;;  %v9629_v48 = vmax.f32 %v9291_v53, 0.0  ;;  %v9631_v44 = vmax.f32 %v9484_v62, 0.0 }
 0xc32   : > { %v9294_v28 = vpop.f32.mrf.mxu1  ;;  %v9487_v46 = vpop.f32.mrf.mxu0  ;;  %10101 = vmatmul.mubr.bf16.gmra.mxu1 %v9728_v47  ;;  %10262 = vmatmul.mubr.bf16.gmra.mxu0 %v9730_v37 }
 0xc33   : > { %v9295_v34 = vadd.f32 %v9294_v28, %v19103_v60  ;;  %v9488_v9 = vadd.f32 %v9487_v46, %v19105_v4  ;;  %v9632_v19 = vmax.f32 %v9293_v6, 0.0  ;;  %v9634_v10 = vmax.f32 %v9486_v57, 0.0 }
 0xc34   : > { %v9298_v56 = vpop.f32.mrf.mxu1  ;;  %v9491_v63 = vpop.f32.mrf.mxu0 }
 0xc35   : > { %v9633_v50 = vmax.f32 %v9295_v34, 0.0  ;;  %v9635_v27 = vmax.f32 %v9488_v9, 0.0  ;;  %v9732_v55 = vpack.c.bf16 %v9632_v19, %v9628_v18  ;;  %v9734_v40 = vpack.c.bf16 %v9634_v10, %v9630_v1 }
 0xc36   : > { %v9300_v58 = vpop.f32.mrf.mxu1  ;;  %v9493_v7 = vpop.f32.mrf.mxu0  ;;  %v9299_v21 = vadd.f32 %v9298_v56, %v19126_v13  ;;  %v9492_v36 = vadd.f32 %v9491_v63, %v19130_v2 }
 0xc37   : > { %v9733_v39 = vpack.c.bf16 %v9633_v50, %v9629_v48  ;;  %v9735_v61 = vpack.c.bf16 %v9635_v27, %v9631_v44  ;;  %v9301_v41 = vadd.f32 %v9300_v58, %v19103_v60  ;;  %v9494_v26 = vadd.f32 %v9493_v7, %v19105_v4 }
 0xc38   : > { %v9302_v11 = vpop.f32.mrf.mxu1  ;;  %v9495_v3 = vpop.f32.mrf.mxu0  ;;  %v9636_v51 = vmax.f32 %v9299_v21, 0.0  ;;  %v9638_v22 = vmax.f32 %v9492_v36, 0.0 }
 0xc39   : > { %v9303_v32 = vadd.f32 %v9302_v11, %v19126_v13  ;;  %v9496_v54 = vadd.f32 %v9495_v3, %v19130_v2  ;;  %10108 = vmatprep.mubr.bf16.mxu1 %v9733_v39  ;;  %10269 = vmatprep.mubr.bf16.mxu0 %v9735_v61  ;;  %v9637_v49 = vmax.f32 %v9301_v41, 0.0  ;;  %v9639_v62 = vmax.f32 %v9494_v26, 0.0 }
 0xc3a   : > { %v9304_v5 = vpop.f32.mrf.mxu1  ;;  %v9497_v45 = vpop.f32.mrf.mxu0  ;;  %10109 = vmatmul.mubr.bf16.gmra.mxu1 %v9732_v55  ;;  %10270 = vmatmul.mubr.bf16.gmra.mxu0 %v9734_v40 }
 0xc3b   : > { %v9305_v33 = vadd.f32 %v9304_v5, %v19103_v60  ;;  %v9498_v12 = vadd.f32 %v9497_v45, %v19105_v4  ;;  %v9640_v47 = vmax.f32 %v9303_v32, 0.0  ;;  %v9642_v37 = vmax.f32 %v9496_v54, 0.0 }
 0xc3c   : > { %v9308_v53 = vpop.f32.mrf.mxu1  ;;  %v9501_v29 = vpop.f32.mrf.mxu0 }
 0xc3d   : > { %v9641_v6 = vmax.f32 %v9305_v33, 0.0  ;;  %v9643_v57 = vmax.f32 %v9498_v12, 0.0  ;;  %v9736_v19 = vpack.c.bf16 %v9640_v47, %v9636_v51  ;;  %v9738_v10 = vpack.c.bf16 %v9642_v37, %v9638_v22 }
 0xc3e   : > { %v9310_v28 = vpop.f32.mrf.mxu1  ;;  %v9503_v46 = vpop.f32.mrf.mxu0  ;;  %v9309_v18 = vadd.f32 %v9308_v53, %v19126_v13  ;;  %v9502_v1 = vadd.f32 %v9501_v29, %v19130_v2 }
 0xc3f   : > { %v9737_v34 = vpack.c.bf16 %v9641_v6, %v9637_v49  ;;  %v9739_v9 = vpack.c.bf16 %v9643_v57, %v9639_v62  ;;  %v9311_v56 = vadd.f32 %v9310_v28, %v19103_v60  ;;  %v9504_v44 = vadd.f32 %v9503_v46, %v19105_v4 }
 0xc40   : > { %v9312_v63 = vpop.f32.mrf.mxu1  ;;  %v9505_v48 = vpop.f32.mrf.mxu0  ;;  %v9644_v21 = vmax.f32 %v9309_v18, 0.0  ;;  %v9646_v36 = vmax.f32 %v9502_v1, 0.0 }
 0xc41   : > { %v9313_v50 = vadd.f32 %v9312_v63, %v19126_v13  ;;  %v9506_v27 = vadd.f32 %v9505_v48, %v19130_v2  ;;  %10116 = vmatprep.mubr.bf16.mxu1 %v9737_v34  ;;  %10277 = vmatprep.mubr.bf16.mxu0 %v9739_v9  ;;  %v9645_v3 = vmax.f32 %v9311_v56, 0.0  ;;  %v9647_v26 = vmax.f32 %v9504_v44, 0.0 }
 0xc42   : > { %v9314_v58 = vpop.f32.mrf.mxu1  ;;  %v9507_v7 = vpop.f32.mrf.mxu0  ;;  %10117 = vmatmul.mubr.bf16.gmra.mxu1 %v9736_v19  ;;  %10278 = vmatmul.mubr.bf16.gmra.mxu0 %v9738_v10 }
 0xc43   : > { %v9315_v39 = vadd.f32 %v9314_v58, %v19103_v60  ;;  %v9508_v61 = vadd.f32 %v9507_v7, %v19105_v4  ;;  %v9648_v55 = vmax.f32 %v9313_v50, 0.0  ;;  %v9650_v40 = vmax.f32 %v9506_v27, 0.0 }
 0xc44   : > { %v9318_v41 = vpop.f32.mrf.mxu1  ;;  %v9511_v11 = vpop.f32.mrf.mxu0 }
 0xc45   : > { %v9649_v32 = vmax.f32 %v9315_v39, 0.0  ;;  %v9651_v54 = vmax.f32 %v9508_v61, 0.0  ;;  %v9740_v47 = vpack.c.bf16 %v9648_v55, %v9644_v21  ;;  %v9742_v37 = vpack.c.bf16 %v9650_v40, %v9646_v36 }
 0xc46   : > { %v9320_v5 = vpop.f32.mrf.mxu1  ;;  %v9513_v45 = vpop.f32.mrf.mxu0  ;;  %v9319_v51 = vadd.f32 %v9318_v41, %v19126_v13  ;;  %v9512_v22 = vadd.f32 %v9511_v11, %v19130_v2 }
 0xc47   : > { %v9741_v33 = vpack.c.bf16 %v9649_v32, %v9645_v3  ;;  %v9743_v12 = vpack.c.bf16 %v9651_v54, %v9647_v26  ;;  %v9321_v53 = vadd.f32 %v9320_v5, %v19103_v60  ;;  %v9514_v62 = vadd.f32 %v9513_v45, %v19105_v4 }
 0xc48   : > { %v9322_v29 = vpop.f32.mrf.mxu1  ;;  %v9515_v49 = vpop.f32.mrf.mxu0  ;;  %v9652_v50 = vmax.f32 %v9319_v51, 0.0  ;;  %v9654_v27 = vmax.f32 %v9512_v22, 0.0 }
 0xc49   : > { %v9323_v6 = vadd.f32 %v9322_v29, %v19126_v13  ;;  %v9516_v57 = vadd.f32 %v9515_v49, %v19130_v2  ;;  %10124 = vmatprep.mubr.bf16.mxu1 %v9741_v33  ;;  %10285 = vmatprep.mubr.bf16.mxu0 %v9743_v12  ;;  %v9653_v56 = vmax.f32 %v9321_v53, 0.0  ;;  %v9655_v63 = vmax.f32 %v9514_v62, 0.0 }
 0xc4a   : > { %v9324_v28 = vpop.f32.mrf.mxu1  ;;  %v9517_v46 = vpop.f32.mrf.mxu0  ;;  %10125 = vmatmul.mubr.bf16.gmra.mxu1 %v9740_v47  ;;  %10286 = vmatmul.mubr.bf16.gmra.mxu0 %v9742_v37 }
 0xc4b   : > { %v9325_v34 = vadd.f32 %v9324_v28, %v19103_v60  ;;  %v9518_v9 = vadd.f32 %v9517_v46, %v19105_v4  ;;  %v9656_v19 = vmax.f32 %v9323_v6, 0.0  ;;  %v9658_v10 = vmax.f32 %v9516_v57, 0.0 }
 0xc4d   : > { %v9657_v48 = vmax.f32 %v9325_v34, 0.0  ;;  %v9659_v44 = vmax.f32 %v9518_v9, 0.0  ;;  %v9744_v58 = vpack.c.bf16 %v9656_v19, %v9652_v50  ;;  %v9746_v7 = vpack.c.bf16 %v9658_v10, %v9654_v27 }
 0xc4f   : > { %v9745_v18 = vpack.c.bf16 %v9657_v48, %v9653_v56  ;;  %v9747_v1 = vpack.c.bf16 %v9659_v44, %v9655_v63 }
 0xc51   : > { %10132 = vmatprep.mubr.bf16.mxu1 %v9745_v18  ;;  %10293 = vmatprep.mubr.bf16.mxu0 %v9747_v1 }
 0xc52   : > { %10133 = vmatmul.mubr.bf16.gmra.mxu1 %v9744_v58  ;;  %10294 = vmatmul.mubr.bf16.gmra.mxu0 %v9746_v7 }
 0xc5e   : > { %v9328_v39 = vpop.f32.mrf.mxu1  ;;  %v9521_v61 = vpop.f32.mrf.mxu0 }
 0xc5f   : > { %v9329_v21 = vadd.f32 %v9328_v39, %v19126_v13  ;;  %v9522_v36 = vadd.f32 %v9521_v61, %v19130_v2 }
 0xc60   : > { %v9330_v55 = vpop.f32.mrf.mxu1  ;;  %v9523_v40 = vpop.f32.mrf.mxu0 }
 0xc61   : > { %v9331_v3 = vadd.f32 %v9330_v55, %v19103_v60  ;;  %v9524_v26 = vadd.f32 %v9523_v40, %v19105_v4  ;;  %v9660_v51 = vmax.f32 %v9329_v21, 0.0  ;;  %v9662_v22 = vmax.f32 %v9522_v36, 0.0 }
 0xc62   : > { %v9332_v41 = vpop.f32.mrf.mxu1  ;;  %v9525_v11 = vpop.f32.mrf.mxu0 }
 0xc63   : > { %v9333_v32 = vadd.f32 %v9332_v41, %v19126_v13  ;;  %v9526_v54 = vadd.f32 %v9525_v11, %v19130_v2  ;;  %v9661_v49 = vmax.f32 %v9331_v3, 0.0  ;;  %v9663_v62 = vmax.f32 %v9524_v26, 0.0 }
 0xc64   : > { %v9334_v5 = vpop.f32.mrf.mxu1  ;;  %v9527_v45 = vpop.f32.mrf.mxu0 }
 0xc65   : > { %v9335_v33 = vadd.f32 %v9334_v5, %v19103_v60  ;;  %v9528_v12 = vadd.f32 %v9527_v45, %v19105_v4  ;;  %v9664_v47 = vmax.f32 %v9333_v32, 0.0  ;;  %v9666_v37 = vmax.f32 %v9526_v54, 0.0 }
 0xc66   : > { %v9338_v53 = vpop.f32.mrf.mxu1  ;;  %v9531_v29 = vpop.f32.mrf.mxu0 }
 0xc67   : > { %v9665_v6 = vmax.f32 %v9335_v33, 0.0  ;;  %v9667_v57 = vmax.f32 %v9528_v12, 0.0  ;;  %v9748_v19 = vpack.c.bf16 %v9664_v47, %v9660_v51  ;;  %v9750_v10 = vpack.c.bf16 %v9666_v37, %v9662_v22 }
 0xc68   : > { %v9340_v28 = vpop.f32.mrf.mxu1  ;;  %v9533_v46 = vpop.f32.mrf.mxu0  ;;  %v9339_v18 = vadd.f32 %v9338_v53, %v19126_v13  ;;  %v9532_v1 = vadd.f32 %v9531_v29, %v19130_v2 }
 0xc69   : > { %v9749_v34 = vpack.c.bf16 %v9665_v6, %v9661_v49  ;;  %v9751_v9 = vpack.c.bf16 %v9667_v57, %v9663_v62  ;;  %v9341_v56 = vadd.f32 %v9340_v28, %v19103_v60  ;;  %v9534_v44 = vadd.f32 %v9533_v46, %v19105_v4 }
 0xc6a   : > { %v9342_v63 = vpop.f32.mrf.mxu1  ;;  %v9535_v48 = vpop.f32.mrf.mxu0  ;;  %v9668_v32 = vmax.f32 %v9339_v18, 0.0  ;;  %v9670_v54 = vmax.f32 %v9532_v1, 0.0 }
 0xc6b   : > { %v9343_v50 = vadd.f32 %v9342_v63, %v19126_v13  ;;  %v9536_v27 = vadd.f32 %v9535_v48, %v19130_v2  ;;  %10140 = vmatprep.mubr.bf16.mxu1 %v9749_v34  ;;  %10301 = vmatprep.mubr.bf16.mxu0 %v9751_v9  ;;  %v9669_v41 = vmax.f32 %v9341_v56, 0.0  ;;  %v9671_v11 = vmax.f32 %v9534_v44, 0.0 }
 0xc6c   : > { %v9344_v58 = vpop.f32.mrf.mxu1  ;;  %v9537_v7 = vpop.f32.mrf.mxu0  ;;  %10141 = vmatmul.mubr.bf16.gmra.mxu1 %v9748_v19  ;;  %10302 = vmatmul.mubr.bf16.gmra.mxu0 %v9750_v10 }
 0xc6d   : > { %v9345_v39 = vadd.f32 %v9344_v58, %v19103_v60  ;;  %v9538_v61 = vadd.f32 %v9537_v7, %v19105_v4  ;;  %v9672_v55 = vmax.f32 %v9343_v50, 0.0  ;;  %v9674_v40 = vmax.f32 %v9536_v27, 0.0 }
 0xc6f   : > { %v9673_v3 = vmax.f32 %v9345_v39, 0.0  ;;  %v9675_v26 = vmax.f32 %v9538_v61, 0.0  ;;  %v9752_v5 = vpack.c.bf16 %v9672_v55, %v9668_v32  ;;  %v9754_v45 = vpack.c.bf16 %v9674_v40, %v9670_v54 }
 0xc71   : > { %v9753_v21 = vpack.c.bf16 %v9673_v3, %v9669_v41  ;;  %v9755_v36 = vpack.c.bf16 %v9675_v26, %v9671_v11 }
 0xc73   : > { %10148 = vmatprep.mubr.bf16.mxu1 %v9753_v21  ;;  %10309 = vmatprep.mubr.bf16.mxu0 %v9755_v36 }
 0xc74   : > { %10149 = vmatmul.mubr.bf16.gmra.mxu1 %v9752_v5  ;;  %10310 = vmatmul.mubr.bf16.gmra.mxu0 %v9754_v45 }
 0xc9f   : > { %v9348_v33 = vpop.f32.mrf.mxu1  ;;  %v9541_v12 = vpop.f32.mrf.mxu0 }
 0xca0   : > { %v9349_v51 = vadd.f32 %v9348_v33, %v19126_v13  ;;  %v9542_v22 = vadd.f32 %v9541_v12, %v19130_v2 }
 0xca1   : > { %v9350_v47 = vpop.f32.mrf.mxu1  ;;  %v9543_v37 = vpop.f32.mrf.mxu0 }
 0xca2   : > { %v9351_v49 = vadd.f32 %v9350_v47, %v19103_v60  ;;  %v9544_v62 = vadd.f32 %v9543_v37, %v19105_v4  ;;  %v9676_v18 = vmax.f32 %v9349_v51, 0.0  ;;  %v9678_v1 = vmax.f32 %v9542_v22, 0.0 }
 0xca3   : > { %v9352_v53 = vpop.f32.mrf.mxu1  ;;  %v9545_v29 = vpop.f32.mrf.mxu0 }
 0xca4   : > { %v9353_v6 = vadd.f32 %v9352_v53, %v19126_v13  ;;  %v9546_v57 = vadd.f32 %v9545_v29, %v19130_v2  ;;  %v9677_v48 = vmax.f32 %v9351_v49, 0.0  ;;  %v9679_v44 = vmax.f32 %v9544_v62, 0.0 }
 0xca5   : > { %v9354_v28 = vpop.f32.mrf.mxu1  ;;  %v9547_v46 = vpop.f32.mrf.mxu0 }
 0xca6   : > { %v9355_v34 = vadd.f32 %v9354_v28, %v19103_v60  ;;  %v9548_v9 = vadd.f32 %v9547_v46, %v19105_v4  ;;  %v9680_v19 = vmax.f32 %v9353_v6, 0.0  ;;  %v9682_v10 = vmax.f32 %v9546_v57, 0.0 }
 0xca7   : > { %v9358_v56 = vpop.f32.mrf.mxu1  ;;  %v9551_v63 = vpop.f32.mrf.mxu0 }
 0xca8   : > { %v9681_v50 = vmax.f32 %v9355_v34, 0.0  ;;  %v9683_v27 = vmax.f32 %v9548_v9, 0.0  ;;  %v9756_v55 = vpack.c.bf16 %v9680_v19, %v9676_v18  ;;  %v9758_v40 = vpack.c.bf16 %v9682_v10, %v9678_v1 }
 0xca9   : > { %v9360_v58 = vpop.f32.mrf.mxu1  ;;  %v9553_v7 = vpop.f32.mrf.mxu0  ;;  %v9359_v21 = vadd.f32 %v9358_v56, %v19126_v13  ;;  %v9552_v36 = vadd.f32 %v9551_v63, %v19130_v2 }
 0xcaa   : > { %v9757_v39 = vpack.c.bf16 %v9681_v50, %v9677_v48  ;;  %v9759_v61 = vpack.c.bf16 %v9683_v27, %v9679_v44  ;;  %v9361_v41 = vadd.f32 %v9360_v58, %v19103_v60  ;;  %v9554_v26 = vadd.f32 %v9553_v7, %v19105_v4 }
 0xcab   : > { %v9362_v11 = vpop.f32.mrf.mxu1  ;;  %v9555_v3 = vpop.f32.mrf.mxu0  ;;  %v9684_v51 = vmax.f32 %v9359_v21, 0.0  ;;  %v9686_v22 = vmax.f32 %v9552_v36, 0.0 }
 0xcac   : > { %v9363_v32 = vadd.f32 %v9362_v11, %v19126_v13  ;;  %v9556_v54 = vadd.f32 %v9555_v3, %v19130_v2  ;;  %10156 = vmatprep.mubr.bf16.mxu1 %v9757_v39  ;;  %10317 = vmatprep.mubr.bf16.mxu0 %v9759_v61  ;;  %v9685_v49 = vmax.f32 %v9361_v41, 0.0  ;;  %v9687_v62 = vmax.f32 %v9554_v26, 0.0 }
 0xcad   : > { %v9364_v5 = vpop.f32.mrf.mxu1  ;;  %v9557_v45 = vpop.f32.mrf.mxu0  ;;  %10157 = vmatmul.mubr.bf16.gmra.mxu1 %v9756_v55  ;;  %10318 = vmatmul.mubr.bf16.gmra.mxu0 %v9758_v40 }
 0xcae   : > { %v9365_v33 = vadd.f32 %v9364_v5, %v19103_v60  ;;  %v9558_v12 = vadd.f32 %v9557_v45, %v19105_v4  ;;  %v9688_v47 = vmax.f32 %v9363_v32, 0.0  ;;  %v9690_v37 = vmax.f32 %v9556_v54, 0.0 }
 0xcaf   : > { %v9368_v53 = vpop.f32.mrf.mxu1  ;;  %v9561_v29 = vpop.f32.mrf.mxu0 }
 0xcb0   : > { %v9689_v6 = vmax.f32 %v9365_v33, 0.0  ;;  %v9691_v57 = vmax.f32 %v9558_v12, 0.0  ;;  %v9760_v19 = vpack.c.bf16 %v9688_v47, %v9684_v51  ;;  %v9762_v10 = vpack.c.bf16 %v9690_v37, %v9686_v22 }
 0xcb1   : > { %v9370_v28 = vpop.f32.mrf.mxu1  ;;  %v9563_v46 = vpop.f32.mrf.mxu0  ;;  %v9369_v18 = vadd.f32 %v9368_v53, %v19126_v13  ;;  %v9562_v1 = vadd.f32 %v9561_v29, %v19130_v2 }
 0xcb2   : > { %v9761_v34 = vpack.c.bf16 %v9689_v6, %v9685_v49  ;;  %v9763_v9 = vpack.c.bf16 %v9691_v57, %v9687_v62  ;;  %v9371_v56 = vadd.f32 %v9370_v28, %v19103_v60  ;;  %v9564_v44 = vadd.f32 %v9563_v46, %v19105_v4 }
 0xcb3   : > { %v9372_v63 = vpop.f32.mrf.mxu1  ;;  %v9565_v48 = vpop.f32.mrf.mxu0  ;;  %v9692_v21 = vmax.f32 %v9369_v18, 0.0  ;;  %v9694_v36 = vmax.f32 %v9562_v1, 0.0 }
 0xcb4   : > { %v9373_v50 = vadd.f32 %v9372_v63, %v19126_v13  ;;  %v9566_v27 = vadd.f32 %v9565_v48, %v19130_v2  ;;  %10164 = vmatprep.mubr.bf16.mxu1 %v9761_v34  ;;  %10325 = vmatprep.mubr.bf16.mxu0 %v9763_v9  ;;  %v9693_v3 = vmax.f32 %v9371_v56, 0.0  ;;  %v9695_v26 = vmax.f32 %v9564_v44, 0.0 }
 0xcb5   : > { %v9374_v58 = vpop.f32.mrf.mxu1  ;;  %v9567_v7 = vpop.f32.mrf.mxu0  ;;  %10165 = vmatmul.mubr.bf16.gmra.mxu1 %v9760_v19  ;;  %10326 = vmatmul.mubr.bf16.gmra.mxu0 %v9762_v10 }
 0xcb6   : > { %v9375_v39 = vadd.f32 %v9374_v58, %v19103_v60  ;;  %v9568_v61 = vadd.f32 %v9567_v7, %v19105_v4  ;;  %v9696_v55 = vmax.f32 %v9373_v50, 0.0  ;;  %v9698_v40 = vmax.f32 %v9566_v27, 0.0 }
 0xcb7   : > { %v9378_v41 = vpop.f32.mrf.mxu1  ;;  %v9571_v11 = vpop.f32.mrf.mxu0 }
 0xcb8   : > { %v9697_v32 = vmax.f32 %v9375_v39, 0.0  ;;  %v9699_v54 = vmax.f32 %v9568_v61, 0.0  ;;  %v9764_v47 = vpack.c.bf16 %v9696_v55, %v9692_v21  ;;  %v9766_v37 = vpack.c.bf16 %v9698_v40, %v9694_v36 }
 0xcb9   : > { %v9380_v5 = vpop.f32.mrf.mxu1  ;;  %v9573_v45 = vpop.f32.mrf.mxu0  ;;  %v9379_v51 = vadd.f32 %v9378_v41, %v19126_v13  ;;  %v9572_v22 = vadd.f32 %v9571_v11, %v19130_v2  ;;  %v19271_v11 = vld [vmem:[%s878_s29] ss:$0 sm:$0xff] }
 0xcba   : > { %v9765_v33 = vpack.c.bf16 %v9697_v32, %v9693_v3  ;;  %v9767_v12 = vpack.c.bf16 %v9699_v54, %v9695_v26  ;;  %v9381_v53 = vadd.f32 %v9380_v5, %v19103_v60  ;;  %v9574_v62 = vadd.f32 %v9573_v45, %v19105_v4 }
 0xcbb   : > { %v9382_v29 = vpop.f32.mrf.mxu1  ;;  %v9575_v49 = vpop.f32.mrf.mxu0  ;;  %v9702_v18 = vmax.f32 %v9572_v22, 0.0 }
 0xcbc   : > { %v9383_v6 = vadd.f32 %v9382_v29, %v19126_v13  ;;  %v9576_v57 = vadd.f32 %v9575_v49, %v19130_v2  ;;  %10172 = vmatprep.mubr.bf16.mxu1 %v9765_v33  ;;  %10333 = vmatprep.mubr.bf16.mxu0 %v9767_v12  ;;  %v9701_v48 = vmax.f32 %v9381_v53, 0.0  ;;  %v9703_v44 = vmax.f32 %v9574_v62, 0.0 }
 0xcbd   : > { %v9384_v28 = vpop.f32.mrf.mxu1  ;;  %v9577_v46 = vpop.f32.mrf.mxu0  ;;  %10173 = vmatmul.mubr.bf16.gmra.mxu1 %v9764_v47  ;;  %10334 = vmatmul.mubr.bf16.gmra.mxu0 %v9766_v37  ;;  %v9700_v13 = vmax.f32 %v9379_v51, 0.0 }
 0xcbe   : > { %v9385_v34 = vadd.f32 %v9384_v28, %v19103_v60  ;;  %v9578_v9 = vadd.f32 %v9577_v46, %v19105_v4  ;;  %v9704_v19 = vmax.f32 %v9383_v6, 0.0  ;;  %v9706_v10 = vmax.f32 %v9576_v57, 0.0 }
 0xcbf   : > { %v11771_v56 = vpop.f32.mrf.mxu1  ;;  %v11883_v63 = vpop.f32.mrf.mxu0 }
 0xcc0   : > { %v9705_v50 = vmax.f32 %v9385_v34, 0.0  ;;  %v9707_v27 = vmax.f32 %v9578_v9, 0.0  ;;  %v9768_v60 = vpack.c.bf16 %v9704_v19, %v9700_v13  ;;  %v9770_v55 = vpack.c.bf16 %v9706_v10, %v9702_v18 }
 0xcc1   : > { %v11772_v2 = vpop.f32.mrf.mxu1  ;;  %v11884_v1 = vpop.f32.mrf.mxu0 }
 0xcc2   : > { %v9769_v58 = vpack.c.bf16 %v9705_v50, %v9701_v48  ;;  %v9771_v7 = vpack.c.bf16 %v9707_v27, %v9703_v44  ;;  %v11773_v39 = vadd.f32 %v11772_v2, %v11771_v56  ;;  %v11885_v61 = vadd.f32 %v11884_v1, %v11883_v63 }
 0xcc3   : > { %v11774_v4 = vpop.f32.mrf.mxu1  ;;  %v11886_v40 = vpop.f32.mrf.mxu0 }
 0xcc4   : > { %v10224_v41 = vadd.f32 %v11885_v61, %v11773_v39  ;;  %10180 = vmatprep.mubr.bf16.mxu1 %v9769_v58  ;;  %10341 = vmatprep.mubr.bf16.mxu0 %v9771_v7 }
 0xcc5   : > { %v11775_v3 = vpop.f32.mrf.mxu1  ;;  %10181 = vmatmul.mubr.bf16.gmra.mxu1 %v9768_v60  ;;  %v11887_v26 = vpop.f32.mrf.mxu0  ;;  %10342 = vmatmul.mubr.bf16.gmra.mxu0 %v9770_v55 }
 0xcc6   : > { %v10350_v32 = vadd.f32 %v10224_v41, %v18537_v8  ;;  %v11776_v54 = vadd.f32 %v11775_v3, %v11774_v4  ;;  %v11888_v21 = vadd.f32 %v11887_v26, %v11886_v40 }
 0xcc7   : > { %v11777_v36 = vpop.f32.mrf.mxu1  ;;  %v11889_v5 = vpop.f32.mrf.mxu0 }
 0xcc8   : > { %v19275_v45 = vadd.f32 %v19271_v11, %v10350_v32  ;;  %v10227_v33 = vadd.f32 %v11888_v21, %v11776_v54 }
 0xcc9   : > { %v11778_v12 = vpop.f32.mrf.mxu1  ;;  %v11890_v47 = vpop.f32.mrf.mxu0 }
 0xcca   : > { %10421 = vst [vmem:[#allocation2 + $0xb0] sm:$0xff] %v19275_v45  ;;  %v10351_v37 = vadd.f32 %v10227_v33, %v18553_v24  ;;  %v11779_v53 = vadd.f32 %v11778_v12, %v11777_v36  ;;  %v11891_v29 = vadd.f32 %v11890_v47, %v11889_v5 }
 0xccb   : > { %v11780_v49 = vpop.f32.mrf.mxu1  ;;  %v11892_v62 = vpop.f32.mrf.mxu0 }
 0xccc   : > { %v19280_v8 = vadd.f32 %v19271_v11, %v10351_v37  ;;  %v10232_v6 = vadd.f32 %v11891_v29, %v11779_v53 }
 0xccd   : > { %v11781_v57 = vpop.f32.mrf.mxu1  ;;  %v11893_v51 = vpop.f32.mrf.mxu0 }
 0xcce   : > { %10422 = vst [vmem:[#allocation2] sm:$0xff] %v19280_v8  ;;  %v10352_v22 = vadd.f32 %v10232_v6, %v18545_v35  ;;  %v11782_v28 = vadd.f32 %v11781_v57, %v11780_v49  ;;  %v11894_v46 = vadd.f32 %v11893_v51, %v11892_v62 }
 0xccf   : > { %v11783_v34 = vpop.f32.mrf.mxu1  ;;  %v11895_v9 = vpop.f32.mrf.mxu0 }
 0xcd0   : > { %v19285_v24 = vadd.f32 %v19271_v11, %v10352_v22  ;;  %v10235_v19 = vadd.f32 %v11894_v46, %v11782_v28 }
 0xcd1   : > { %v11784_v10 = vpop.f32.mrf.mxu1  ;;  %v11896_v56 = vpop.f32.mrf.mxu0 }
 0xcd2   : > { %10423 = vst [vmem:[#allocation2 + $0xd8] sm:$0xff] %v19285_v24  ;;  %v10353_v63 = vadd.f32 %v10235_v19, %v18556_v38  ;;  %v11785_v48 = vadd.f32 %v11784_v10, %v11783_v34  ;;  %v11897_v44 = vadd.f32 %v11896_v56, %v11895_v9 }
 0xcd3   : > { %v11786_v50 = vpop.f32.mrf.mxu1  ;;  %v11898_v27 = vpop.f32.mrf.mxu0 }
 0xcd4   : > { %v19290_v35 = vadd.f32 %v19271_v11, %v10353_v63  ;;  %v10240_v13 = vadd.f32 %v11897_v44, %v11785_v48 }
 0xcd5   : > { %v11787_v18 = vpop.f32.mrf.mxu1  ;;  %v11899_v2 = vpop.f32.mrf.mxu0 }
 0xcd6   : > { %10424 = vst [vmem:[#allocation2 + $0x18] sm:$0xff] %v19290_v35  ;;  %v10354_v1 = vadd.f32 %v10240_v13, %v18566_v42  ;;  %v11788_v58 = vadd.f32 %v11787_v18, %v11786_v50  ;;  %v11900_v7 = vadd.f32 %v11899_v2, %v11898_v27  ;;  %v20671_v27 = vld [vmem:[#allocation99_spill] sm:$0xff] }
 0xcd8   : > { %v19295_v39 = vadd.f32 %v19271_v11, %v10354_v1  ;;  %v10243_v38 = vadd.f32 %v11900_v7, %v11788_v58 }
 0xcda   : > { %10425 = vst [vmem:[#allocation2 + $0x50] sm:$0xff] %v19295_v39  ;;  %v10355_v61 = vadd.f32 %v10243_v38, %v18563_v52 }
 0xcdc   : > { %v19300_v60 = vadd.f32 %v19271_v11, %v10355_v61 }
 0xcde   : > { %10426 = vst [vmem:[#allocation2 + $0x68] sm:$0xff] %v19300_v60 }
 0xce2   : > { %v11789_v55 = vpop.f32.mrf.mxu1  ;;  %v11901_v4 = vpop.f32.mrf.mxu0 }
 0xce4   : > { %v11790_v40 = vpop.f32.mrf.mxu1  ;;  %v11902_v41 = vpop.f32.mrf.mxu0 }
 0xce5   : > { %v11791_v42 = vadd.f32 %v11790_v40, %v11789_v55  ;;  %v11903_v3 = vadd.f32 %v11902_v41, %v11901_v4  ;;  %v20672_v55 = vld [vmem:[#allocation29_spill] sm:$0xff] }
 0xce6   : > { %v11792_v26 = vpop.f32.mrf.mxu1  ;;  %v11904_v32 = vpop.f32.mrf.mxu0 }
 0xce7   : > { %v10248_v54 = vadd.f32 %v11903_v3, %v11791_v42 }
 0xce8   : > { %v11793_v21 = vpop.f32.mrf.mxu1  ;;  %v11905_v36 = vpop.f32.mrf.mxu0 }
 0xce9   : > { %v10356_v5 = vadd.f32 %v10248_v54, %v18578_v25  ;;  %v11794_v33 = vadd.f32 %v11793_v21, %v11792_v26  ;;  %v11906_v52 = vadd.f32 %v11905_v36, %v11904_v32 }
 0xcea   : > { %v11795_v12 = vpop.f32.mrf.mxu1  ;;  %v11907_v47 = vpop.f32.mrf.mxu0 }
 0xceb   : > { %v19305_v37 = vadd.f32 %v19271_v11, %v10356_v5  ;;  %v10251_v53 = vadd.f32 %v11906_v52, %v11794_v33 }
 0xcec   : > { %v11796_v29 = vpop.f32.mrf.mxu1  ;;  %v11908_v49 = vpop.f32.mrf.mxu0 }
 0xced   : > { %10427 = vst [vmem:[#allocation2 + $0x30] sm:$0xff] %v19305_v37  ;;  %v10357_v62 = vadd.f32 %v10251_v53, %v18573_v43  ;;  %v11797_v6 = vadd.f32 %v11796_v29, %v11795_v12  ;;  %v11909_v57 = vadd.f32 %v11908_v49, %v11907_v47 }
 0xcee   : > { %v11798_v51 = vpop.f32.mrf.mxu1  ;;  %v11910_v22 = vpop.f32.mrf.mxu0 }
 0xcef   : > { %v19310_v25 = vadd.f32 %v19271_v11, %v10357_v62  ;;  %v10256_v28 = vadd.f32 %v11909_v57, %v11797_v6 }
 0xcf0   : > { %v11799_v46 = vpop.f32.mrf.mxu1  ;;  %v11911_v34 = vpop.f32.mrf.mxu0 }
 0xcf1   : > { %10428 = vst [vmem:[#allocation2 + $0x48] sm:$0xff] %v19310_v25  ;;  %v10358_v9 = vadd.f32 %v10256_v28, %v18593_v30  ;;  %v11800_v19 = vadd.f32 %v11799_v46, %v11798_v51  ;;  %v11912_v10 = vadd.f32 %v11911_v34, %v11910_v22 }
 0xcf2   : > { %v11801_v56 = vpop.f32.mrf.mxu1  ;;  %v11913_v63 = vpop.f32.mrf.mxu0 }
 0xcf3   : > { %v19315_v43 = vadd.f32 %v19271_v11, %v10358_v9  ;;  %v10259_v48 = vadd.f32 %v11912_v10, %v11800_v19 }
 0xcf4   : > { %v11802_v44 = vpop.f32.mrf.mxu1  ;;  %v11914_v50 = vpop.f32.mrf.mxu0 }
 0xcf5   : > { %10429 = vst [vmem:[#allocation2 + $0x80] sm:$0xff] %v19315_v43  ;;  %v10359_v13 = vadd.f32 %v10259_v48, %v20671_v27  ;;  %v11803_v18 = vadd.f32 %v11802_v44, %v11801_v56  ;;  %v11915_v2 = vadd.f32 %v11914_v50, %v11913_v63 }
 0xcf6   : > { %v11804_v1 = vpop.f32.mrf.mxu1  ;;  %v11916_v58 = vpop.f32.mrf.mxu0 }
 0xcf7   : > { %v19320_v30 = vadd.f32 %v19271_v11, %v10359_v13  ;;  %v10264_v7 = vadd.f32 %v11915_v2, %v11803_v18 }
 0xcf8   : > { %v11805_v38 = vpop.f32.mrf.mxu1  ;;  %v11917_v61 = vpop.f32.mrf.mxu0 }
 0xcf9   : > { %10430 = vst [vmem:[#allocation2 + $0x88] sm:$0xff] %v19320_v30  ;;  %v10360_v4 = vadd.f32 %v10264_v7, %v20672_v55  ;;  %v11806_v40 = vadd.f32 %v11805_v38, %v11804_v1  ;;  %v11918_v41 = vadd.f32 %v11917_v61, %v11916_v58 }
 0xcfa   : > { %v11807_v42 = vpop.f32.mrf.mxu1  ;;  %v11919_v3 = vpop.f32.mrf.mxu0 }
 0xcfb   : > { %v19325_v26 = vadd.f32 %v19271_v11, %v10360_v4  ;;  %v10267_v32 = vadd.f32 %v11918_v41, %v11806_v40 }
 0xcfc   : > { %v11808_v54 = vpop.f32.mrf.mxu1  ;;  %v11920_v21 = vpop.f32.mrf.mxu0 }
 0xcfd   : > { %10431 = vst [vmem:[#allocation2 + $0xe8] sm:$0xff] %v19325_v26  ;;  %v10361_v36 = vadd.f32 %v10267_v32, %v18605_v17  ;;  %v11809_v5 = vadd.f32 %v11808_v54, %v11807_v42  ;;  %v11921_v33 = vadd.f32 %v11920_v21, %v11919_v3 }
 0xcfe   : > { %v11810_v52 = vpop.f32.mrf.mxu1  ;;  %v11922_v12 = vpop.f32.mrf.mxu0 }
 0xcff   : > { %v19330_v47 = vadd.f32 %v19271_v11, %v10361_v36  ;;  %v10272_v53 = vadd.f32 %v11921_v33, %v11809_v5 }
 0xd00   : > { %v11811_v29 = vpop.f32.mrf.mxu1  ;;  %v11923_v49 = vpop.f32.mrf.mxu0 }
 0xd01   : > { %10432 = vst [vmem:[#allocation2 + $0xb8] sm:$0xff] %v19330_v47  ;;  %v10362_v62 = vadd.f32 %v10272_v53, %v18635_v16  ;;  %v11812_v6 = vadd.f32 %v11811_v29, %v11810_v52  ;;  %v11924_v57 = vadd.f32 %v11923_v49, %v11922_v12 }
 0xd02   : > { %v11813_v51 = vpop.f32.mrf.mxu1  ;;  %v11925_v22 = vpop.f32.mrf.mxu0 }
 0xd03   : > { %v19335_v17 = vadd.f32 %v19271_v11, %v10362_v62  ;;  %v10275_v28 = vadd.f32 %v11924_v57, %v11812_v6 }
 0xd04   : > { %v11814_v46 = vpop.f32.mrf.mxu1  ;;  %v11926_v34 = vpop.f32.mrf.mxu0 }
 0xd05   : > { %10433 = vst [vmem:[#allocation2 + $0x60] sm:$0xff] %v19335_v17  ;;  %v10363_v9 = vadd.f32 %v10275_v28, %v18646_v31  ;;  %v11815_v19 = vadd.f32 %v11814_v46, %v11813_v51  ;;  %v11927_v10 = vadd.f32 %v11926_v34, %v11925_v22 }
 0xd06   : > { %v11816_v56 = vpop.f32.mrf.mxu1  ;;  %v11928_v63 = vpop.f32.mrf.mxu0 }
 0xd07   : > { %v19340_v16 = vadd.f32 %v19271_v11, %v10363_v9  ;;  %v10280_v48 = vadd.f32 %v11927_v10, %v11815_v19  ;;  %v20673_v10 = vld [vmem:[#allocation73_spill] sm:$0xff] }
 0xd08   : > { %v11817_v44 = vpop.f32.mrf.mxu1  ;;  %v11929_v50 = vpop.f32.mrf.mxu0 }
 0xd09   : > { %10434 = vst [vmem:[#allocation2 + $0xf0] sm:$0xff] %v19340_v16  ;;  %v10364_v27 = vadd.f32 %v10280_v48, %v18643_v20  ;;  %v11818_v13 = vadd.f32 %v11817_v44, %v11816_v56  ;;  %v11930_v18 = vadd.f32 %v11929_v50, %v11928_v63 }
 0xd0a   : > { %v11819_v2 = vpop.f32.mrf.mxu1  ;;  %v11931_v1 = vpop.f32.mrf.mxu0 }
 0xd0b   : > { %v19345_v31 = vadd.f32 %v19271_v11, %v10364_v27  ;;  %v10283_v58 = vadd.f32 %v11930_v18, %v11818_v13 }
 0xd0c   : > { %v11820_v7 = vpop.f32.mrf.mxu1  ;;  %v11932_v38 = vpop.f32.mrf.mxu0 }
 0xd0d   : > { %10435 = vst [vmem:[#allocation2 + $0x8] sm:$0xff] %v19345_v31  ;;  %v10365_v61 = vadd.f32 %v10283_v58, %v18657_v23  ;;  %v11821_v55 = vadd.f32 %v11820_v7, %v11819_v2  ;;  %v11933_v4 = vadd.f32 %v11932_v38, %v11931_v1  ;;  %v20674_v38 = vld [vmem:[#allocation56_spill] sm:$0xff] }
 0xd0e   : > { %v11822_v40 = vpop.f32.mrf.mxu1  ;;  %v11934_v41 = vpop.f32.mrf.mxu0 }
 0xd0f   : > { %v19350_v20 = vadd.f32 %v19271_v11, %v10365_v61  ;;  %v10288_v42 = vadd.f32 %v11933_v4, %v11821_v55 }
 0xd10   : > { %v11823_v3 = vpop.f32.mrf.mxu1  ;;  %v11935_v32 = vpop.f32.mrf.mxu0 }
 0xd11   : > { %10436 = vst [vmem:[#allocation2 + $0x78] sm:$0xff] %v19350_v20  ;;  %v10366_v54 = vadd.f32 %v10288_v42, %v18662_v59  ;;  %v11824_v21 = vadd.f32 %v11823_v3, %v11822_v40  ;;  %v11936_v36 = vadd.f32 %v11935_v32, %v11934_v41 }
 0xd12   : > { %v11825_v5 = vpop.f32.mrf.mxu1  ;;  %v11937_v33 = vpop.f32.mrf.mxu0 }
 0xd13   : > { %v19355_v23 = vadd.f32 %v19271_v11, %v10366_v54  ;;  %v10291_v52 = vadd.f32 %v11936_v36, %v11824_v21  ;;  %v20675_v21 = vld [vmem:[#allocation134_spill] sm:$0xff] }
 0xd14   : > { %v11826_v12 = vpop.f32.mrf.mxu1  ;;  %v11938_v53 = vpop.f32.mrf.mxu0 }
 0xd15   : > { %10437 = vst [vmem:[#allocation2 + $0x38] sm:$0xff] %v19355_v23  ;;  %v10367_v29 = vadd.f32 %v10291_v52, %v18672_v14  ;;  %v11827_v49 = vadd.f32 %v11826_v12, %v11825_v5  ;;  %v11939_v62 = vadd.f32 %v11938_v53, %v11937_v33 }
 0xd16   : > { %v11828_v6 = vpop.f32.mrf.mxu1  ;;  %v11940_v57 = vpop.f32.mrf.mxu0 }
 0xd17   : > { %v19360_v59 = vadd.f32 %v19271_v11, %v10367_v29  ;;  %v10296_v51 = vadd.f32 %v11939_v62, %v11827_v49 }
 0xd18   : > { %v11829_v22 = vpop.f32.mrf.mxu1  ;;  %v11941_v28 = vpop.f32.mrf.mxu0 }
 0xd19   : > { %10438 = vst [vmem:[#allocation2 + $0x58] sm:$0xff] %v19360_v59  ;;  %v10368_v46 = vadd.f32 %v10296_v51, %v18669_v0  ;;  %v11830_v34 = vadd.f32 %v11829_v22, %v11828_v6  ;;  %v11942_v9 = vadd.f32 %v11941_v28, %v11940_v57 }
 0xd1b   : > { %v19365_v19 = vadd.f32 %v19271_v11, %v10368_v46  ;;  %v10299_v14 = vadd.f32 %v11942_v9, %v11830_v34  ;;  %v20676_v46 = vld [vmem:[#allocation72_spill] sm:$0xff] }
 0xd1d   : > { %10439 = vst [vmem:[#allocation2 + $0x40] sm:$0xff] %v19365_v19  ;;  %v10369_v56 = vadd.f32 %v10299_v14, %v20673_v10 }
 0xd1f   : > { %v19370_v63 = vadd.f32 %v19271_v11, %v10369_v56 }
 0xd21   : > { %10440 = vst [vmem:[#allocation2 + $0xc8] sm:$0xff] %v19370_v63 }
 0xd2c   : > { %v11831_v48 = vpop.f32.mrf.mxu1  ;;  %v11943_v44 = vpop.f32.mrf.mxu0 }
 0xd2e   : > { %v11832_v50 = vpop.f32.mrf.mxu1  ;;  %v11944_v27 = vpop.f32.mrf.mxu0 }
 0xd2f   : > { %v11833_v0 = vadd.f32 %v11832_v50, %v11831_v48  ;;  %v11945_v13 = vadd.f32 %v11944_v27, %v11943_v44 }
 0xd30   : > { %v11834_v18 = vpop.f32.mrf.mxu1  ;;  %v11946_v2 = vpop.f32.mrf.mxu0 }
 0xd31   : > { %v10304_v1 = vadd.f32 %v11945_v13, %v11833_v0 }
 0xd32   : > { %v11835_v58 = vpop.f32.mrf.mxu1  ;;  %v11947_v7 = vpop.f32.mrf.mxu0 }
 0xd33   : > { %v10370_v61 = vadd.f32 %v10304_v1, %v20674_v38  ;;  %v11836_v55 = vadd.f32 %v11835_v58, %v11834_v18  ;;  %v11948_v4 = vadd.f32 %v11947_v7, %v11946_v2  ;;  %v20677_v2 = vld [vmem:[#allocation119_spill] sm:$0xff] }
 0xd34   : > { %v11837_v40 = vpop.f32.mrf.mxu1  ;;  %v11949_v41 = vpop.f32.mrf.mxu0 }
 0xd35   : > { %v19375_v42 = vadd.f32 %v19271_v11, %v10370_v61  ;;  %v10307_v3 = vadd.f32 %v11948_v4, %v11836_v55 }
 0xd36   : > { %v11838_v32 = vpop.f32.mrf.mxu1  ;;  %v11950_v54 = vpop.f32.mrf.mxu0 }
 0xd37   : > { %10441 = vst [vmem:[#allocation2 + $0xe0] sm:$0xff] %v19375_v42  ;;  %v10371_v36 = vadd.f32 %v10307_v3, %v20675_v21  ;;  %v11839_v5 = vadd.f32 %v11838_v32, %v11837_v40  ;;  %v11951_v33 = vadd.f32 %v11950_v54, %v11949_v41  ;;  %v20678_v3 = vld [vmem:[#allocation93_spill] sm:$0xff] }
 0xd38   : > { %v11840_v52 = vpop.f32.mrf.mxu1  ;;  %v11952_v12 = vpop.f32.mrf.mxu0 }
 0xd39   : > { %v19380_v53 = vadd.f32 %v19271_v11, %v10371_v36  ;;  %v10312_v29 = vadd.f32 %v11951_v33, %v11839_v5 }
 0xd3a   : > { %v11841_v49 = vpop.f32.mrf.mxu1  ;;  %v11953_v62 = vpop.f32.mrf.mxu0 }
 0xd3b   : > { %10442 = vst [vmem:[#allocation2 + $0x90] sm:$0xff] %v19380_v53  ;;  %v10372_v6 = vadd.f32 %v10312_v29, %v18739_v15  ;;  %v11842_v57 = vadd.f32 %v11841_v49, %v11840_v52  ;;  %v11954_v51 = vadd.f32 %v11953_v62, %v11952_v12  ;;  %v20679_v49 = vld [vmem:[#allocation31_spill] sm:$0xff] }
 0xd3d   : > { %v19385_v22 = vadd.f32 %v19271_v11, %v10372_v6  ;;  %v10315_v28 = vadd.f32 %v11954_v51, %v11842_v57 }
 0xd3f   : > { %10443 = vst [vmem:[#allocation2 + $0x70] sm:$0xff] %v19385_v22  ;;  %v10373_v34 = vadd.f32 %v10315_v28, %v20676_v46 }
 0xd41   : > { %v19390_v9 = vadd.f32 %v19271_v11, %v10373_v34 }
 0xd43   : > { %10444 = vst [vmem:[#allocation2 + $0xc0] sm:$0xff] %v19390_v9 }
 0xd6d   : > { %v11843_v14 = vpop.f32.mrf.mxu1  ;;  %v11955_v10 = vpop.f32.mrf.mxu0 }
 0xd6f   : > { %v11844_v56 = vpop.f32.mrf.mxu1  ;;  %v11956_v48 = vpop.f32.mrf.mxu0 }
 0xd70   : > { %v11845_v15 = vadd.f32 %v11844_v56, %v11843_v14  ;;  %v11957_v44 = vadd.f32 %v11956_v48, %v11955_v10  ;;  %v20680_v56 = vld [vmem:[#allocation122_spill] sm:$0xff] }
 0xd71   : > { %v11846_v50 = vpop.f32.mrf.mxu1  ;;  %v11958_v27 = vpop.f32.mrf.mxu0 }
 0xd72   : > { %v10320_v0 = vadd.f32 %v11957_v44, %v11845_v15 }
 0xd73   : > { %v11847_v13 = vpop.f32.mrf.mxu1  ;;  %v11959_v18 = vpop.f32.mrf.mxu0 }
 0xd74   : > { %v10374_v1 = vadd.f32 %v10320_v0, %v20677_v2  ;;  %v11848_v58 = vadd.f32 %v11847_v13, %v11846_v50  ;;  %v11960_v7 = vadd.f32 %v11959_v18, %v11958_v27 }
 0xd75   : > { %v11849_v38 = vpop.f32.mrf.mxu1  ;;  %v11961_v61 = vpop.f32.mrf.mxu0 }
 0xd76   : > { %v19395_v55 = vadd.f32 %v19271_v11, %v10374_v1  ;;  %v10323_v4 = vadd.f32 %v11960_v7, %v11848_v58  ;;  %v20681_v1 = vld [vmem:[#allocation88_spill] sm:$0xff] }
 0xd77   : > { %v11850_v40 = vpop.f32.mrf.mxu1  ;;  %v11962_v41 = vpop.f32.mrf.mxu0 }
 0xd78   : > { %10445 = vst [vmem:[#allocation2 + $0xa8] sm:$0xff] %v19395_v55  ;;  %v10375_v32 = vadd.f32 %v10323_v4, %v20678_v3  ;;  %v11851_v54 = vadd.f32 %v11850_v40, %v11849_v38  ;;  %v11963_v21 = vadd.f32 %v11962_v41, %v11961_v61 }
 0xd79   : > { %v11852_v36 = vpop.f32.mrf.mxu1  ;;  %v11964_v5 = vpop.f32.mrf.mxu0 }
 0xd7a   : > { %v19400_v33 = vadd.f32 %v19271_v11, %v10375_v32  ;;  %v10328_v52 = vadd.f32 %v11963_v21, %v11851_v54  ;;  %v20682_v54 = vld [vmem:[#allocation131_spill] sm:$0xff] }
 0xd7b   : > { %v11853_v12 = vpop.f32.mrf.mxu1  ;;  %v11965_v29 = vpop.f32.mrf.mxu0 }
 0xd7c   : > { %10446 = vst [vmem:[#allocation2 + $0xd0] sm:$0xff] %v19400_v33  ;;  %v10376_v62 = vadd.f32 %v10328_v52, %v20679_v49  ;;  %v11854_v6 = vadd.f32 %v11853_v12, %v11852_v36  ;;  %v11966_v57 = vadd.f32 %v11965_v29, %v11964_v5 }
 0xd7d   : > { %v11855_v51 = vpop.f32.mrf.mxu1  ;;  %v11967_v28 = vpop.f32.mrf.mxu0 }
 0xd7e   : > { %v19405_v46 = vadd.f32 %v19271_v11, %v10376_v62  ;;  %v10331_v34 = vadd.f32 %v11966_v57, %v11854_v6  ;;  %v20683_v57 = vld [vmem:[#allocation79_spill] sm:$0xff] }
 0xd7f   : > { %v11856_v14 = vpop.f32.mrf.mxu1  ;;  %v11968_v10 = vpop.f32.mrf.mxu0 }
 0xd80   : > { %10447 = vst [vmem:[#allocation2 + $0x10] sm:$0xff] %v19405_v46  ;;  %v10377_v48 = vadd.f32 %v10331_v34, %v20680_v56  ;;  %v11857_v15 = vadd.f32 %v11856_v14, %v11855_v51  ;;  %v11969_v44 = vadd.f32 %v11968_v10, %v11967_v28  ;;  %v20684_v56 = vld [vmem:[#allocation130_spill] sm:$0xff] }
 0xd81   : > { %v11858_v50 = vpop.f32.mrf.mxu1  ;;  %v11970_v27 = vpop.f32.mrf.mxu0 }
 0xd82   : > { %v19410_v0 = vadd.f32 %v19271_v11, %v10377_v48  ;;  %v10336_v13 = vadd.f32 %v11969_v44, %v11857_v15 }
 0xd83   : > { %v11859_v18 = vpop.f32.mrf.mxu1  ;;  %v11971_v2 = vpop.f32.mrf.mxu0 }
 0xd84   : > { %10448 = vst [vmem:[#allocation2 + $0x28] sm:$0xff] %v19410_v0  ;;  %v10378_v58 = vadd.f32 %v10336_v13, %v20681_v1  ;;  %v11860_v7 = vadd.f32 %v11859_v18, %v11858_v50  ;;  %v11972_v38 = vadd.f32 %v11971_v2, %v11970_v27 }
 0xd85   : > { %v11861_v61 = vpop.f32.mrf.mxu1  ;;  %v11973_v4 = vpop.f32.mrf.mxu0 }
 0xd86   : > { %v19415_v40 = vadd.f32 %v19271_v11, %v10378_v58  ;;  %v10339_v41 = vadd.f32 %v11972_v38, %v11860_v7 }
 0xd87   : > { %v11862_v3 = vpop.f32.mrf.mxu1  ;;  %v11974_v32 = vpop.f32.mrf.mxu0 }
 0xd88   : > { %10449 = vst [vmem:[#allocation2 + $0xa0] sm:$0xff] %v19415_v40  ;;  %v10379_v21 = vadd.f32 %v10339_v41, %v20682_v54  ;;  %v11863_v36 = vadd.f32 %v11862_v3, %v11861_v61  ;;  %v11975_v5 = vadd.f32 %v11974_v32, %v11973_v4 }
 0xd89   : > { %v11864_v52 = vpop.f32.mrf.mxu1  ;;  %v11976_v12 = vpop.f32.mrf.mxu0 }
 0xd8a   : > { %v19420_v29 = vadd.f32 %v19271_v11, %v10379_v21  ;;  %v10344_v49 = vadd.f32 %v11975_v5, %v11863_v36 }
 0xd8b   : > { %v11865_v62 = vpop.f32.mrf.mxu1  ;;  %v11977_v6 = vpop.f32.mrf.mxu0 }
 0xd8c   : > { %10450 = vst [vmem:[#allocation2 + $0xf8] sm:$0xff] %v19420_v29  ;;  %v10380_v51 = vadd.f32 %v10344_v49, %v20683_v57  ;;  %v11866_v28 = vadd.f32 %v11865_v62, %v11864_v52  ;;  %v11978_v34 = vadd.f32 %v11977_v6, %v11976_v12 }
 0xd8e   : > { %v19425_v14 = vadd.f32 %v19271_v11, %v10380_v51  ;;  %v10347_v10 = vadd.f32 %v11978_v34, %v11866_v28 }
 0xd90   : > { %10451 = vst [vmem:[#allocation2 + $0x20] sm:$0xff] %v19425_v14  ;;  %v10381_v48 = vadd.f32 %v10347_v10, %v20684_v56  ;;  %10456 = sbr.rel (%p11441_p12) target bundleno = 3848 (0xf08), region = 132 }
 0xd92   : > { %v19430_v15 = vadd.f32 %v19271_v11, %v10381_v48 }
 0xd94   : > { %10452 = vst [vmem:[#allocation2 + $0x98] sm:$0xff] %v19430_v15 }
 0xd95   : > { %10459 = vadd.xlane.f32.xlu0 %v19275_v45  ;;  %10463 = vadd.xlane.f32.xlu1 %v19285_v24 }
 0xd99   : > { %10461 = vadd.xlane.f32.xlu0 %v19280_v8  ;;  %10465 = vadd.xlane.f32.xlu1 %v19290_v35 }
 0xd9d   : > { %10467 = vadd.xlane.f32.xlu0 %v19295_v39  ;;  %10469 = vadd.xlane.f32.xlu1 %v19300_v60 }
 0xda1   : > { %10471 = vadd.xlane.f32.xlu0 %v19305_v37  ;;  %10473 = vadd.xlane.f32.xlu1 %v19310_v25 }
 0xda5   : > { %10475 = vadd.xlane.f32.xlu0 %v19315_v43  ;;  %10477 = vadd.xlane.f32.xlu1 %v19320_v30 }
 0xda9   : > { %10479 = vadd.xlane.f32.xlu0 %v19325_v26  ;;  %10481 = vadd.xlane.f32.xlu1 %v19330_v47 }
 0xdad   : > { %10483 = vadd.xlane.f32.xlu0 %v19335_v17  ;;  %10485 = vadd.xlane.f32.xlu1 %v19340_v16 }
 0xdb1   : > { %10487 = vadd.xlane.f32.xlu0 %v19345_v31  ;;  %10489 = vadd.xlane.f32.xlu1 %v19350_v20 }
 0xdb5   : > { %10491 = vadd.xlane.f32.xlu0 %v19355_v23  ;;  %10493 = vadd.xlane.f32.xlu1 %v19360_v59 }
 0xdb9   : > { %10495 = vadd.xlane.f32.xlu0 %v19365_v19  ;;  %10497 = vadd.xlane.f32.xlu1 %v19370_v63 }
 0xdbd   : > { %10499 = vadd.xlane.f32.xlu0 %v19375_v42  ;;  %10501 = vadd.xlane.f32.xlu1 %v19380_v53 }
 0xdc1   : > { %10503 = vadd.xlane.f32.xlu0 %v19385_v22  ;;  %10505 = vadd.xlane.f32.xlu1 %v19390_v9 }
 0xdc5   : > { %10507 = vadd.xlane.f32.xlu0 %v19395_v55  ;;  %10509 = vadd.xlane.f32.xlu1 %v19400_v33 }
 0xdc9   : > { %10511 = vadd.xlane.f32.xlu0 %v19405_v46  ;;  %10513 = vadd.xlane.f32.xlu1 %v19410_v0 }
 0xdcd   : > { %10515 = vadd.xlane.f32.xlu0 %v19415_v40  ;;  %10517 = vadd.xlane.f32.xlu1 %v19420_v29 }
 0xdd1   : > { %10519 = vadd.xlane.f32.xlu0 %v19425_v14  ;;  %10521 = vadd.xlane.f32.xlu1 %v19430_v15 }
 0xe1e   : > { %v10460_v11 = vpop.xlane.xlu0 %10459  ;;  %v10464_v44 = vpop.xlane.xlu1 %10463 }
 0xe1f   : > { %v10523_v50 = vmul.f32 0.0078125, %v10460_v11  ;;  %v10525_v27 = vmul.f32 0.0078125, %v10464_v44 }
 0xe21   : > { %v19467_v13 = vsub.f32 %v19275_v45, %v10523_v50  ;;  %v19470_v18 = vsub.f32 %v19285_v24, %v10525_v27 }
 0xe22   : > { %v10462_v2 = vpop.xlane.xlu0 %10461  ;;  %v10466_v1 = vpop.xlane.xlu1 %10465 }
 0xe23   : > { %v10524_v58 = vmul.f32 0.0078125, %v10462_v2  ;;  %v10587_v7 = vmul.f32 %v19467_v13, %v19467_v13  ;;  %v10526_v38 = vmul.f32 0.0078125, %v10466_v1  ;;  %v10589_v45 = vmul.f32 %v19470_v18, %v19470_v18 }
 0xe25   : > { %v19475_v61 = vsub.f32 %v19280_v8, %v10524_v58  ;;  %10619 = vadd.xlane.f32.xlu0 %v10587_v7  ;;  %v19478_v4 = vsub.f32 %v19290_v35, %v10526_v38 }
 0xe26   : > { %v10468_v41 = vpop.xlane.xlu0 %10467  ;;  %v10470_v24 = vpop.xlane.xlu1 %10469 }
 0xe27   : > { %v10527_v3 = vmul.f32 0.0078125, %v10468_v41  ;;  %v10588_v32 = vmul.f32 %v19475_v61, %v19475_v61  ;;  %v10528_v54 = vmul.f32 0.0078125, %v10470_v24  ;;  %v10590_v35 = vmul.f32 %v19478_v4, %v19478_v4 }
 0xe29   : > { %v19485_v21 = vsub.f32 %v19295_v39, %v10527_v3  ;;  %10623 = vadd.xlane.f32.xlu0 %v10589_v45  ;;  %10621 = vadd.xlane.f32.xlu1 %v10588_v32  ;;  %v19488_v8 = vsub.f32 %v19300_v60, %v10528_v54 }
 0xe2a   : > { %v10472_v36 = vpop.xlane.xlu0 %10471  ;;  %v10474_v5 = vpop.xlane.xlu1 %10473 }
 0xe2b   : > { %v10529_v52 = vmul.f32 0.0078125, %v10472_v36  ;;  %v10591_v12 = vmul.f32 %v19485_v21, %v19485_v21  ;;  %v10530_v49 = vmul.f32 0.0078125, %v10474_v5  ;;  %v10592_v60 = vmul.f32 %v19488_v8, %v19488_v8 }
 0xe2d   : > { %v19495_v62 = vsub.f32 %v19305_v37, %v10529_v52  ;;  %10625 = vadd.xlane.f32.xlu1 %v10590_v35  ;;  %10627 = vadd.xlane.f32.xlu0 %v10591_v12  ;;  %v19498_v39 = vsub.f32 %v19310_v25, %v10530_v49 }
 0xe2e   : > { %v10476_v6 = vpop.xlane.xlu0 %10475  ;;  %v10478_v57 = vpop.xlane.xlu1 %10477 }
 0xe2f   : > { %v10531_v51 = vmul.f32 0.0078125, %v10476_v6  ;;  %v10593_v28 = vmul.f32 %v19495_v62, %v19495_v62  ;;  %v10532_v34 = vmul.f32 0.0078125, %v10478_v57  ;;  %v10594_v25 = vmul.f32 %v19498_v39, %v19498_v39 }
 0xe31   : > { %v19505_v10 = vsub.f32 %v19315_v43, %v10531_v51  ;;  %10629 = vadd.xlane.f32.xlu1 %v10592_v60  ;;  %10631 = vadd.xlane.f32.xlu0 %v10593_v28  ;;  %v19508_v37 = vsub.f32 %v19320_v30, %v10532_v34 }
 0xe32   : > { %v10480_v56 = vpop.xlane.xlu0 %10479  ;;  %v10482_v48 = vpop.xlane.xlu1 %10481 }
 0xe33   : > { %v10533_v11 = vmul.f32 0.0078125, %v10480_v56  ;;  %v10595_v44 = vmul.f32 %v19505_v10, %v19505_v10  ;;  %v10534_v50 = vmul.f32 0.0078125, %v10482_v48  ;;  %v10596_v30 = vmul.f32 %v19508_v37, %v19508_v37 }
 0xe35   : > { %v19515_v27 = vsub.f32 %v19325_v26, %v10533_v11  ;;  %10633 = vadd.xlane.f32.xlu1 %v10594_v25  ;;  %10635 = vadd.xlane.f32.xlu0 %v10595_v44  ;;  %v19518_v43 = vsub.f32 %v19330_v47, %v10534_v50 }
 0xe36   : > { %v10484_v2 = vpop.xlane.xlu0 %10483  ;;  %v10486_v1 = vpop.xlane.xlu1 %10485 }
 0xe37   : > { %v10535_v58 = vmul.f32 0.0078125, %v10484_v2  ;;  %v10597_v7 = vmul.f32 %v19515_v27, %v19515_v27  ;;  %v10536_v38 = vmul.f32 0.0078125, %v10486_v1  ;;  %v10598_v47 = vmul.f32 %v19518_v43, %v19518_v43 }
 0xe39   : > { %v19525_v45 = vsub.f32 %v19335_v17, %v10535_v58  ;;  %10637 = vadd.xlane.f32.xlu1 %v10596_v30  ;;  %10639 = vadd.xlane.f32.xlu0 %v10597_v7  ;;  %v19528_v26 = vsub.f32 %v19340_v16, %v10536_v38 }
 0xe3a   : > { %v10488_v41 = vpop.xlane.xlu0 %10487  ;;  %v10490_v24 = vpop.xlane.xlu1 %10489 }
 0xe3b   : > { %v10537_v3 = vmul.f32 0.0078125, %v10488_v41  ;;  %v10599_v32 = vmul.f32 %v19525_v45, %v19525_v45  ;;  %v10538_v54 = vmul.f32 0.0078125, %v10490_v24  ;;  %v10600_v16 = vmul.f32 %v19528_v26, %v19528_v26 }
 0xe3d   : > { %v19535_v35 = vsub.f32 %v19345_v31, %v10537_v3  ;;  %10641 = vadd.xlane.f32.xlu1 %v10598_v47  ;;  %10643 = vadd.xlane.f32.xlu0 %v10599_v32  ;;  %v19538_v17 = vsub.f32 %v19350_v20, %v10538_v54 }
 0xe3e   : > { %v10492_v36 = vpop.xlane.xlu0 %10491  ;;  %v10494_v5 = vpop.xlane.xlu1 %10493 }
 0xe3f   : > { %v10539_v52 = vmul.f32 0.0078125, %v10492_v36  ;;  %v10601_v12 = vmul.f32 %v19535_v35, %v19535_v35  ;;  %v10540_v49 = vmul.f32 0.0078125, %v10494_v5  ;;  %v10602_v20 = vmul.f32 %v19538_v17, %v19538_v17 }
 0xe41   : > { %v19545_v60 = vsub.f32 %v19355_v23, %v10539_v52  ;;  %10645 = vadd.xlane.f32.xlu1 %v10600_v16  ;;  %10647 = vadd.xlane.f32.xlu0 %v10601_v12  ;;  %v19548_v31 = vsub.f32 %v19360_v59, %v10540_v49 }
 0xe42   : > { %v10496_v6 = vpop.xlane.xlu0 %10495  ;;  %v10498_v57 = vpop.xlane.xlu1 %10497 }
 0xe43   : > { %v10541_v51 = vmul.f32 0.0078125, %v10496_v6  ;;  %v10603_v28 = vmul.f32 %v19545_v60, %v19545_v60  ;;  %v10542_v34 = vmul.f32 0.0078125, %v10498_v57  ;;  %v10604_v59 = vmul.f32 %v19548_v31, %v19548_v31 }
 0xe45   : > { %v19555_v25 = vsub.f32 %v19365_v19, %v10541_v51  ;;  %10649 = vadd.xlane.f32.xlu1 %v10602_v20  ;;  %10651 = vadd.xlane.f32.xlu0 %v10603_v28  ;;  %v19558_v23 = vsub.f32 %v19370_v63, %v10542_v34 }
 0xe46   : > { %v10500_v56 = vpop.xlane.xlu0 %10499  ;;  %v10502_v48 = vpop.xlane.xlu1 %10501 }
 0xe47   : > { %v10543_v11 = vmul.f32 0.0078125, %v10500_v56  ;;  %v10605_v44 = vmul.f32 %v19555_v25, %v19555_v25  ;;  %v10544_v50 = vmul.f32 0.0078125, %v10502_v48  ;;  %v10606_v63 = vmul.f32 %v19558_v23, %v19558_v23 }
 0xe49   : > { %v19565_v30 = vsub.f32 %v19375_v42, %v10543_v11  ;;  %10653 = vadd.xlane.f32.xlu1 %v10604_v59  ;;  %10655 = vadd.xlane.f32.xlu0 %v10605_v44  ;;  %v19568_v19 = vsub.f32 %v19380_v53, %v10544_v50 }
 0xe4a   : > { %v10504_v2 = vpop.xlane.xlu0 %10503  ;;  %v10506_v1 = vpop.xlane.xlu1 %10505 }
 0xe4b   : > { %v10545_v58 = vmul.f32 0.0078125, %v10504_v2  ;;  %v10607_v7 = vmul.f32 %v19565_v30, %v19565_v30  ;;  %v10546_v38 = vmul.f32 0.0078125, %v10506_v1  ;;  %v10608_v53 = vmul.f32 %v19568_v19, %v19568_v19 }
 0xe4d   : > { %v19575_v47 = vsub.f32 %v19385_v22, %v10545_v58  ;;  %10657 = vadd.xlane.f32.xlu1 %v10606_v63  ;;  %10659 = vadd.xlane.f32.xlu0 %v10607_v7  ;;  %v19578_v42 = vsub.f32 %v19390_v9, %v10546_v38 }
 0xe4e   : > { %v10508_v41 = vpop.xlane.xlu0 %10507  ;;  %v10510_v24 = vpop.xlane.xlu1 %10509 }
 0xe4f   : > { %v10547_v3 = vmul.f32 0.0078125, %v10508_v41  ;;  %v10609_v32 = vmul.f32 %v19575_v47, %v19575_v47  ;;  %v10548_v54 = vmul.f32 0.0078125, %v10510_v24  ;;  %v10610_v9 = vmul.f32 %v19578_v42, %v19578_v42 }
 0xe51   : > { %v19585_v16 = vsub.f32 %v19395_v55, %v10547_v3  ;;  %10661 = vadd.xlane.f32.xlu1 %v10608_v53  ;;  %10663 = vadd.xlane.f32.xlu0 %v10609_v32  ;;  %v19588_v22 = vsub.f32 %v19400_v33, %v10548_v54 }
 0xe52   : > { %v10512_v36 = vpop.xlane.xlu0 %10511  ;;  %v10514_v5 = vpop.xlane.xlu1 %10513 }
 0xe53   : > { %v10549_v52 = vmul.f32 0.0078125, %v10512_v36  ;;  %v10611_v12 = vmul.f32 %v19585_v16, %v19585_v16  ;;  %v10550_v49 = vmul.f32 0.0078125, %v10514_v5  ;;  %v10612_v33 = vmul.f32 %v19588_v22, %v19588_v22 }
 0xe55   : > { %v19595_v20 = vsub.f32 %v19405_v46, %v10549_v52  ;;  %10665 = vadd.xlane.f32.xlu1 %v10610_v9  ;;  %10667 = vadd.xlane.f32.xlu0 %v10611_v12  ;;  %v19598_v55 = vsub.f32 %v19410_v0, %v10550_v49 }
 0xe56   : > { %v10516_v6 = vpop.xlane.xlu0 %10515  ;;  %v10518_v57 = vpop.xlane.xlu1 %10517 }
 0xe57   : > { %v10551_v51 = vmul.f32 0.0078125, %v10516_v6  ;;  %v10613_v28 = vmul.f32 %v19595_v20, %v19595_v20  ;;  %v10552_v34 = vmul.f32 0.0078125, %v10518_v57  ;;  %v10614_v0 = vmul.f32 %v19598_v55, %v19598_v55 }
 0xe59   : > { %v19605_v59 = vsub.f32 %v19415_v40, %v10551_v51  ;;  %10669 = vadd.xlane.f32.xlu1 %v10612_v33  ;;  %10671 = vadd.xlane.f32.xlu0 %v10613_v28  ;;  %v19608_v46 = vsub.f32 %v19420_v29, %v10552_v34 }
 0xe5a   : > { %v10520_v56 = vpop.xlane.xlu0 %10519  ;;  %v10522_v48 = vpop.xlane.xlu1 %10521 }
 0xe5b   : > { %v10553_v11 = vmul.f32 0.0078125, %v10520_v56  ;;  %v10615_v44 = vmul.f32 %v19605_v59, %v19605_v59  ;;  %v10554_v50 = vmul.f32 0.0078125, %v10522_v48  ;;  %v10616_v29 = vmul.f32 %v19608_v46, %v19608_v46 }
 0xe5d   : > { %v19615_v63 = vsub.f32 %v19425_v14, %v10553_v11  ;;  %10673 = vadd.xlane.f32.xlu1 %v10614_v0  ;;  %10675 = vadd.xlane.f32.xlu0 %v10615_v44  ;;  %v19618_v40 = vsub.f32 %v19430_v15, %v10554_v50  ;;  %v19629_v11 = vld [vmem:[%s20686_s23] ss:$0 sm:$0xff] }
 0xe5f   : > { %v10617_v2 = vmul.f32 %v19615_v63, %v19615_v63  ;;  %v10618_v1 = vmul.f32 %v19618_v40, %v19618_v40 }
 0xe61   : > { %10677 = vadd.xlane.f32.xlu1 %v10616_v29  ;;  %10679 = vadd.xlane.f32.xlu0 %v10617_v2  ;;  %v19635_v2 = vld [vmem:[%s20687_s15] ss:$0 sm:$0xff] }
 0xe65   : > { %10681 = vadd.xlane.f32.xlu1 %v10618_v1 }
 0xeae   : > { %v10620_v58 = vpop.xlane.xlu0 %10619 }
 0xeaf   : > { %v10683_v14 = vmul.f32 0.0078125, %v10620_v58 }
 0xeb1   : > { %v10715_v7 = vadd.f32 1e-05, %v10683_v14 }
 0xeb2   : > { %v10622_v38 = vpop.xlane.xlu1 %10621  ;;  %v10624_v53 = vpop.xlane.xlu0 %10623 }
 0xeb3   : > { %13835 = vrsqrt.f32 %v10715_v7  ;;  %v10684_v15 = vmul.f32 0.0078125, %v10622_v38  ;;  %v10685_v41 = vmul.f32 0.0078125, %v10624_v53 }
 0xeb5   : > { %v10716_v24 = vadd.f32 1e-05, %v10684_v15  ;;  %v10717_v3 = vadd.f32 1e-05, %v10685_v41 }
 0xeb6   : > { %v10626_v32 = vpop.xlane.xlu1 %10625  ;;  %v10628_v54 = vpop.xlane.xlu0 %10627 }
 0xeb7   : > { %13837 = vrsqrt.f32 %v10716_v24  ;;  %v10686_v9 = vmul.f32 0.0078125, %v10626_v32  ;;  %v10687_v36 = vmul.f32 0.0078125, %v10628_v54 }
 0xeb8   : > { %13839 = vrsqrt.f32 %v10717_v3 }
 0xeb9   : > { %v10718_v5 = vadd.f32 1e-05, %v10686_v9  ;;  %v10719_v52 = vadd.f32 1e-05, %v10687_v36 }
 0xeba   : > { %v10630_v12 = vpop.xlane.xlu1 %10629  ;;  %v10632_v49 = vpop.xlane.xlu0 %10631 }
 0xebb   : > { %13841 = vrsqrt.f32 %v10718_v5  ;;  %v10688_v33 = vmul.f32 0.0078125, %v10630_v12  ;;  %v10689_v6 = vmul.f32 0.0078125, %v10632_v49 }
 0xebc   : > { %13843 = vrsqrt.f32 %v10719_v52 }
 0xebd   : > { %v10720_v57 = vadd.f32 1e-05, %v10688_v33  ;;  %v10721_v51 = vadd.f32 1e-05, %v10689_v6 }
 0xebe   : > { %v10634_v28 = vpop.xlane.xlu1 %10633  ;;  %v10636_v34 = vpop.xlane.xlu0 %10635 }
 0xebf   : > { %13845 = vrsqrt.f32 %v10720_v57  ;;  %v10690_v0 = vmul.f32 0.0078125, %v10634_v28  ;;  %v10691_v56 = vmul.f32 0.0078125, %v10636_v34 }
 0xec0   : > { %v13836_v48 = vpop.eup %13835  ;;  %13847 = vrsqrt.f32 %v10721_v51 }
 0xec1   : > { %v10779_v44 = vmul.f32 %v13836_v48, %v19467_v13  ;;  %v10722_v50 = vadd.f32 1e-05, %v10690_v0  ;;  %v10723_v29 = vadd.f32 1e-05, %v10691_v56 }
 0xec2   : > { %v10638_v1 = vpop.xlane.xlu1 %10637  ;;  %v10640_v58 = vpop.xlane.xlu0 %10639 }
 0xec3   : > { %v10817_v14 = vmul.f32 %v19629_v11, %v10779_v44  ;;  %13849 = vrsqrt.f32 %v10722_v50  ;;  %v10692_v7 = vmul.f32 0.0078125, %v10638_v1  ;;  %v10693_v38 = vmul.f32 0.0078125, %v10640_v58 }
 0xec4   : > { %v13838_v53 = vpop.eup %13837  ;;  %13851 = vrsqrt.f32 %v10723_v29 }
 0xec5   : > { %v13840_v15 = vpop.eup %13839  ;;  %v10855_v41 = vadd.f32 %v19635_v2, %v10817_v14  ;;  %v10780_v13 = vmul.f32 %v13838_v53, %v19475_v61  ;;  %v10724_v24 = vadd.f32 1e-05, %v10692_v7  ;;  %v10725_v3 = vadd.f32 1e-05, %v10693_v38 }
 0xec6   : > { %v10781_v32 = vmul.f32 %v13840_v15, %v19470_v18  ;;  %v10642_v54 = vpop.xlane.xlu1 %10641  ;;  %v10644_v9 = vpop.xlane.xlu0 %10643 }
 0xec7   : > { %10887 = vst [vmem:[#allocation16] sm:$0xff] %v10855_v41  ;;  %v10818_v36 = vmul.f32 %v19629_v11, %v10780_v13  ;;  %13853 = vrsqrt.f32 %v10724_v24  ;;  %v10694_v5 = vmul.f32 0.0078125, %v10642_v54  ;;  %v10695_v52 = vmul.f32 0.0078125, %v10644_v9 }
 0xec8   : > { %v13842_v12 = vpop.eup %13841  ;;  %v10819_v49 = vmul.f32 %v19629_v11, %v10781_v32  ;;  %13855 = vrsqrt.f32 %v10725_v3 }
 0xec9   : > { %v13844_v33 = vpop.eup %13843  ;;  %v10856_v6 = vadd.f32 %v19635_v2, %v10818_v36  ;;  %v10782_v61 = vmul.f32 %v13842_v12, %v19478_v4  ;;  %v10726_v57 = vadd.f32 1e-05, %v10694_v5  ;;  %v10727_v51 = vadd.f32 1e-05, %v10695_v52 }
 0xeca   : > { %v10857_v18 = vadd.f32 %v19635_v2, %v10819_v49  ;;  %v10783_v28 = vmul.f32 %v13844_v33, %v19485_v21  ;;  %v10646_v34 = vpop.xlane.xlu1 %10645  ;;  %v10648_v0 = vpop.xlane.xlu0 %10647 }
 0xecb   : > { %10888 = vst [vmem:[#allocation16 + $0x8] sm:$0xff] %v10856_v6  ;;  %v10820_v56 = vmul.f32 %v19629_v11, %v10782_v61  ;;  %13857 = vrsqrt.f32 %v10726_v57  ;;  %v10696_v48 = vmul.f32 0.0078125, %v10646_v34  ;;  %v10697_v44 = vmul.f32 0.0078125, %v10648_v0 }
 0xecc   : > { %v13846_v50 = vpop.eup %13845  ;;  %10889 = vst [vmem:[#allocation16 + $0x10] sm:$0xff] %v10857_v18  ;;  %v10821_v29 = vmul.f32 %v19629_v11, %v10783_v28  ;;  %13859 = vrsqrt.f32 %v10727_v51 }
 0xecd   : > { %v13848_v4 = vpop.eup %13847  ;;  %v10858_v1 = vadd.f32 %v19635_v2, %v10820_v56  ;;  %v10784_v58 = vmul.f32 %v13846_v50, %v19488_v8  ;;  %v10728_v14 = vadd.f32 1e-05, %v10696_v48  ;;  %v10729_v21 = vadd.f32 1e-05, %v10697_v44 }
 0xece   : > { %v10859_v7 = vadd.f32 %v19635_v2, %v10821_v29  ;;  %v10785_v38 = vmul.f32 %v13848_v4, %v19495_v62  ;;  %v10650_v53 = vpop.xlane.xlu1 %10649  ;;  %v10652_v15 = vpop.xlane.xlu0 %10651 }
 0xecf   : > { %10890 = vst [vmem:[#allocation16 + $0x18] sm:$0xff] %v10858_v1  ;;  %v10822_v41 = vmul.f32 %v19629_v11, %v10784_v58  ;;  %13861 = vrsqrt.f32 %v10728_v14  ;;  %v10698_v13 = vmul.f32 0.0078125, %v10650_v53  ;;  %v10699_v24 = vmul.f32 0.0078125, %v10652_v15 }
 0xed0   : > { %v13850_v3 = vpop.eup %13849  ;;  %10891 = vst [vmem:[#allocation16 + $0x20] sm:$0xff] %v10859_v7  ;;  %v10823_v32 = vmul.f32 %v19629_v11, %v10785_v38  ;;  %13863 = vrsqrt.f32 %v10729_v21 }
 0xed1   : > { %v13852_v8 = vpop.eup %13851  ;;  %v10860_v54 = vadd.f32 %v19635_v2, %v10822_v41  ;;  %v10786_v9 = vmul.f32 %v13850_v3, %v19498_v39  ;;  %v10730_v36 = vadd.f32 1e-05, %v10698_v13  ;;  %v10731_v62 = vadd.f32 1e-05, %v10699_v24 }
 0xed2   : > { %v10861_v5 = vadd.f32 %v19635_v2, %v10823_v32  ;;  %v10787_v52 = vmul.f32 %v13852_v8, %v19505_v10  ;;  %v10654_v12 = vpop.xlane.xlu1 %10653  ;;  %v10656_v49 = vpop.xlane.xlu0 %10655 }
 0xed3   : > { %10892 = vst [vmem:[#allocation16 + $0x28] sm:$0xff] %v10860_v54  ;;  %v10824_v33 = vmul.f32 %v19629_v11, %v10786_v9  ;;  %13865 = vrsqrt.f32 %v10730_v36  ;;  %v10700_v6 = vmul.f32 0.0078125, %v10654_v12  ;;  %v10701_v61 = vmul.f32 0.0078125, %v10656_v49 }
 0xed4   : > { %v13854_v57 = vpop.eup %13853  ;;  %10893 = vst [vmem:[#allocation16 + $0x30] sm:$0xff] %v10861_v5  ;;  %v10825_v51 = vmul.f32 %v19629_v11, %v10787_v52  ;;  %13867 = vrsqrt.f32 %v10731_v62 }
 0xed5   : > { %v13856_v39 = vpop.eup %13855  ;;  %v10862_v18 = vadd.f32 %v19635_v2, %v10824_v33  ;;  %v10788_v28 = vmul.f32 %v13854_v57, %v19508_v37  ;;  %v10732_v34 = vadd.f32 1e-05, %v10700_v6  ;;  %v10733_v10 = vadd.f32 1e-05, %v10701_v61 }
 0xed6   : > { %v10863_v0 = vadd.f32 %v19635_v2, %v10825_v51  ;;  %v10789_v56 = vmul.f32 %v13856_v39, %v19515_v27  ;;  %v10658_v48 = vpop.xlane.xlu1 %10657  ;;  %v10660_v44 = vpop.xlane.xlu0 %10659 }
 0xed7   : > { %10894 = vst [vmem:[#allocation16 + $0x38] sm:$0xff] %v10862_v18  ;;  %v10826_v50 = vmul.f32 %v19629_v11, %v10788_v28  ;;  %13869 = vrsqrt.f32 %v10732_v34  ;;  %v10702_v29 = vmul.f32 0.0078125, %v10658_v48  ;;  %v10703_v4 = vmul.f32 0.0078125, %v10660_v44 }
 0xed8   : > { %v13858_v1 = vpop.eup %13857  ;;  %10895 = vst [vmem:[#allocation16 + $0x40] sm:$0xff] %v10863_v0  ;;  %v10827_v58 = vmul.f32 %v19629_v11, %v10789_v56  ;;  %13871 = vrsqrt.f32 %v10733_v10 }
 0xed9   : > { %v13860_v37 = vpop.eup %13859  ;;  %v10864_v14 = vadd.f32 %v19635_v2, %v10826_v50  ;;  %v10790_v21 = vmul.f32 %v13858_v1, %v19518_v43  ;;  %v10734_v7 = vadd.f32 1e-05, %v10702_v29  ;;  %v10735_v27 = vadd.f32 1e-05, %v10703_v4 }
 0xeda   : > { %v10865_v38 = vadd.f32 %v19635_v2, %v10827_v58  ;;  %v10791_v53 = vmul.f32 %v13860_v37, %v19525_v45  ;;  %v10662_v15 = vpop.xlane.xlu1 %10661  ;;  %v10664_v41 = vpop.xlane.xlu0 %10663 }
 0xedb   : > { %10896 = vst [vmem:[#allocation16 + $0x48] sm:$0xff] %v10864_v14  ;;  %v10828_v13 = vmul.f32 %v19629_v11, %v10790_v21  ;;  %13873 = vrsqrt.f32 %v10734_v7  ;;  %v10704_v24 = vmul.f32 0.0078125, %v10662_v15  ;;  %v10705_v3 = vmul.f32 0.0078125, %v10664_v41 }
 0xedc   : > { %v13862_v32 = vpop.eup %13861  ;;  %10897 = vst [vmem:[#allocation16 + $0x50] sm:$0xff] %v10865_v38  ;;  %v10829_v8 = vmul.f32 %v19629_v11, %v10791_v53  ;;  %13875 = vrsqrt.f32 %v10735_v27 }
 0xedd   : > { %v13864_v43 = vpop.eup %13863  ;;  %v10866_v54 = vadd.f32 %v19635_v2, %v10828_v13  ;;  %v10792_v9 = vmul.f32 %v13862_v32, %v19528_v26  ;;  %v10736_v36 = vadd.f32 1e-05, %v10704_v24  ;;  %v10737_v45 = vadd.f32 1e-05, %v10705_v3 }
 0xede   : > { %v10867_v62 = vadd.f32 %v19635_v2, %v10829_v8  ;;  %v10793_v5 = vmul.f32 %v13864_v43, %v19535_v35  ;;  %v10666_v52 = vpop.xlane.xlu1 %10665  ;;  %v10668_v12 = vpop.xlane.xlu0 %10667 }
 0xedf   : > { %10898 = vst [vmem:[#allocation16 + $0x58] sm:$0xff] %v10866_v54  ;;  %v10830_v49 = vmul.f32 %v19629_v11, %v10792_v9  ;;  %13877 = vrsqrt.f32 %v10736_v36  ;;  %v10706_v33 = vmul.f32 0.0078125, %v10666_v52  ;;  %v10707_v6 = vmul.f32 0.0078125, %v10668_v12 }
 0xee0   : > { %v13866_v61 = vpop.eup %13865  ;;  %10899 = vst [vmem:[#allocation16 + $0x60] sm:$0xff] %v10867_v62  ;;  %v10831_v57 = vmul.f32 %v19629_v11, %v10793_v5  ;;  %13879 = vrsqrt.f32 %v10737_v45 }
 0xee1   : > { %v13868_v26 = vpop.eup %13867  ;;  %v10868_v51 = vadd.f32 %v19635_v2, %v10830_v49  ;;  %v10794_v39 = vmul.f32 %v13866_v61, %v19538_v17  ;;  %v10738_v18 = vadd.f32 1e-05, %v10706_v33  ;;  %v10739_v35 = vadd.f32 1e-05, %v10707_v6 }
 0xee2   : > { %v10869_v28 = vadd.f32 %v19635_v2, %v10831_v57  ;;  %v10795_v34 = vmul.f32 %v13868_v26, %v19545_v60  ;;  %v10670_v10 = vpop.xlane.xlu1 %10669  ;;  %v10672_v0 = vpop.xlane.xlu0 %10671 }
 0xee3   : > { %10900 = vst [vmem:[#allocation16 + $0x68] sm:$0xff] %v10868_v51  ;;  %v10832_v56 = vmul.f32 %v19629_v11, %v10794_v39  ;;  %13881 = vrsqrt.f32 %v10738_v18  ;;  %v10708_v48 = vmul.f32 0.0078125, %v10670_v10  ;;  %v10709_v44 = vmul.f32 0.0078125, %v10672_v0 }
 0xee4   : > { %v13870_v50 = vpop.eup %13869  ;;  %10901 = vst [vmem:[#allocation16 + $0x70] sm:$0xff] %v10869_v28  ;;  %v10833_v29 = vmul.f32 %v19629_v11, %v10795_v34  ;;  %13883 = vrsqrt.f32 %v10739_v35 }
 0xee5   : > { %v13872_v17 = vpop.eup %13871  ;;  %v10870_v4 = vadd.f32 %v19635_v2, %v10832_v56  ;;  %v10796_v1 = vmul.f32 %v13870_v50, %v19548_v31  ;;  %v10740_v58 = vadd.f32 1e-05, %v10708_v48  ;;  %v10741_v60 = vadd.f32 1e-05, %v10709_v44 }
 0xee6   : > { %v10871_v37 = vadd.f32 %v19635_v2, %v10833_v29  ;;  %v10797_v14 = vmul.f32 %v13872_v17, %v19555_v25  ;;  %v10674_v21 = vpop.xlane.xlu1 %10673  ;;  %v10676_v7 = vpop.xlane.xlu0 %10675 }
 0xee7   : > { %10902 = vst [vmem:[#allocation16 + $0x78] sm:$0xff] %v10870_v4  ;;  %v10834_v27 = vmul.f32 %v19629_v11, %v10796_v1  ;;  %13885 = vrsqrt.f32 %v10740_v58  ;;  %v10710_v38 = vmul.f32 0.0078125, %v10674_v21  ;;  %v10711_v53 = vmul.f32 0.0078125, %v10676_v7 }
 0xee8   : > { %v13874_v15 = vpop.eup %13873  ;;  %10903 = vst [vmem:[#allocation16 + $0x80] sm:$0xff] %v10871_v37  ;;  %v10835_v41 = vmul.f32 %v19629_v11, %v10797_v14  ;;  %13887 = vrsqrt.f32 %v10741_v60 }
 0xee9   : > { %v13876_v31 = vpop.eup %13875  ;;  %v10872_v13 = vadd.f32 %v19635_v2, %v10834_v27  ;;  %v10798_v24 = vmul.f32 %v13874_v15, %v19558_v23  ;;  %v10742_v3 = vadd.f32 1e-05, %v10710_v38  ;;  %v10743_v25 = vadd.f32 1e-05, %v10711_v53 }
 0xeea   : > { %v10873_v32 = vadd.f32 %v19635_v2, %v10835_v41  ;;  %v10799_v8 = vmul.f32 %v13876_v31, %v19565_v30  ;;  %v10678_v43 = vpop.xlane.xlu1 %10677  ;;  %v10680_v54 = vpop.xlane.xlu0 %10679 }
 0xeeb   : > { %10904 = vst [vmem:[#allocation16 + $0x88] sm:$0xff] %v10872_v13  ;;  %v10836_v9 = vmul.f32 %v19629_v11, %v10798_v24  ;;  %13889 = vrsqrt.f32 %v10742_v3  ;;  %v10712_v36 = vmul.f32 0.0078125, %v10678_v43  ;;  %v10713_v45 = vmul.f32 0.0078125, %v10680_v54 }
 0xeec   : > { %v13878_v62 = vpop.eup %13877  ;;  %10905 = vst [vmem:[#allocation16 + $0x90] sm:$0xff] %v10873_v32  ;;  %v10837_v5 = vmul.f32 %v19629_v11, %v10799_v8  ;;  %13891 = vrsqrt.f32 %v10743_v25 }
 0xeed   : > { %v13880_v23 = vpop.eup %13879  ;;  %v10874_v52 = vadd.f32 %v19635_v2, %v10836_v9  ;;  %v10800_v12 = vmul.f32 %v13878_v62, %v19568_v19  ;;  %v10744_v49 = vadd.f32 1e-05, %v10712_v36  ;;  %v10745_v30 = vadd.f32 1e-05, %v10713_v45 }
 0xeee   : > { %v10875_v33 = vadd.f32 %v19635_v2, %v10837_v5  ;;  %v10801_v6 = vmul.f32 %v13880_v23, %v19575_v47  ;;  %v10682_v61 = vpop.xlane.xlu1 %10681 }
 0xeef   : > { %10906 = vst [vmem:[#allocation16 + $0x98] sm:$0xff] %v10874_v52  ;;  %v10838_v57 = vmul.f32 %v19629_v11, %v10800_v12  ;;  %13893 = vrsqrt.f32 %v10744_v49  ;;  %v10714_v26 = vmul.f32 0.0078125, %v10682_v61 }
 0xef0   : > { %v13882_v51 = vpop.eup %13881  ;;  %10907 = vst [vmem:[#allocation16 + $0xa0] sm:$0xff] %v10875_v33  ;;  %v10839_v39 = vmul.f32 %v19629_v11, %v10801_v6  ;;  %13895 = vrsqrt.f32 %v10745_v30 }
 0xef1   : > { %v13884_v18 = vpop.eup %13883  ;;  %v10876_v19 = vadd.f32 %v19635_v2, %v10838_v57  ;;  %v10802_v35 = vmul.f32 %v13882_v51, %v19578_v42  ;;  %v10746_v28 = vadd.f32 1e-05, %v10714_v26 }
 0xef2   : > { %v10877_v34 = vadd.f32 %v19635_v2, %v10839_v39  ;;  %v10803_v47 = vmul.f32 %v13884_v18, %v19585_v16 }
 0xef3   : > { %10908 = vst [vmem:[#allocation16 + $0xa8] sm:$0xff] %v10876_v19  ;;  %v10840_v10 = vmul.f32 %v19629_v11, %v10802_v35  ;;  %13897 = vrsqrt.f32 %v10746_v28 }
 0xef4   : > { %v13886_v0 = vpop.eup %13885  ;;  %10909 = vst [vmem:[#allocation16 + $0xb0] sm:$0xff] %v10877_v34  ;;  %v10841_v56 = vmul.f32 %v19629_v11, %v10803_v47 }
 0xef5   : > { %v13888_v48 = vpop.eup %13887  ;;  %v10878_v44 = vadd.f32 %v19635_v2, %v10840_v10  ;;  %v10804_v50 = vmul.f32 %v13886_v0, %v19588_v22 }
 0xef6   : > { %v10879_v42 = vadd.f32 %v19635_v2, %v10841_v56  ;;  %v10805_v29 = vmul.f32 %v13888_v48, %v19595_v20 }
 0xef7   : > { %10910 = vst [vmem:[#allocation16 + $0xb8] sm:$0xff] %v10878_v44  ;;  %v10842_v16 = vmul.f32 %v19629_v11, %v10804_v50 }
 0xef8   : > { %v13890_v17 = vpop.eup %13889  ;;  %10911 = vst [vmem:[#allocation16 + $0xc0] sm:$0xff] %v10879_v42  ;;  %v10843_v4 = vmul.f32 %v19629_v11, %v10805_v29 }
 0xef9   : > { %v13892_v1 = vpop.eup %13891  ;;  %v10880_v58 = vadd.f32 %v19635_v2, %v10842_v16  ;;  %v10806_v60 = vmul.f32 %v13890_v17, %v19598_v55 }
 0xefa   : > { %v10881_v37 = vadd.f32 %v19635_v2, %v10843_v4  ;;  %v10807_v22 = vmul.f32 %v13892_v1, %v19605_v59 }
 0xefb   : > { %10912 = vst [vmem:[#allocation16 + $0xc8] sm:$0xff] %v10880_v58  ;;  %v10844_v14 = vmul.f32 %v19629_v11, %v10806_v60 }
 0xefc   : > { %v13894_v20 = vpop.eup %13893  ;;  %10913 = vst [vmem:[#allocation16 + $0xd0] sm:$0xff] %v10881_v37  ;;  %v10845_v21 = vmul.f32 %v19629_v11, %v10807_v22 }
 0xefd   : > { %v13896_v7 = vpop.eup %13895  ;;  %v10882_v27 = vadd.f32 %v19635_v2, %v10844_v14  ;;  %v10808_v38 = vmul.f32 %v13894_v20, %v19608_v46 }
 0xefe   : > { %v10883_v53 = vadd.f32 %v19635_v2, %v10845_v21  ;;  %v10809_v55 = vmul.f32 %v13896_v7, %v19615_v63 }
 0xeff   : > { %10914 = vst [vmem:[#allocation16 + $0xd8] sm:$0xff] %v10882_v27  ;;  %v10846_v15 = vmul.f32 %v19629_v11, %v10808_v38 }
 0xf00   : > { %v13898_v59 = vpop.eup %13897  ;;  %10915 = vst [vmem:[#allocation16 + $0xe0] sm:$0xff] %v10883_v53  ;;  %v10847_v41 = vmul.f32 %v19629_v11, %v10809_v55 }
 0xf01   : > { %v10884_v31 = vadd.f32 %v19635_v2, %v10846_v15  ;;  %v10810_v13 = vmul.f32 %v13898_v59, %v19618_v40 }
 0xf02   : > { %v10885_v24 = vadd.f32 %v19635_v2, %v10847_v41 }
 0xf03   : > { %10916 = vst [vmem:[#allocation16 + $0xe8] sm:$0xff] %v10884_v31  ;;  %v10848_v46 = vmul.f32 %v19629_v11, %v10810_v13 }
 0xf04   : > { %10917 = vst [vmem:[#allocation16 + $0xf0] sm:$0xff] %v10885_v24 }
 0xf05   : > { %v10886_v3 = vadd.f32 %v19635_v2, %v10848_v46 }
 0xf07   : > { %10918 = vst [vmem:[#allocation16 + $0xf8] sm:$0xff] %v10886_v3 }
 0xf08 PF: > { %p12736_p0 = scmp.eq.s32.totalorder %s14402_s27, 1  ;;  %s14285_s18 = smov [#allocation16]  }
 0xf09   : > { %s10929_s19 = sshll.u32 %s14285_s18, 4  ;;  %s10930_s19 = int_to_ptr.vmem [resolvable:$true] %s10929_s19 }
 0xf0a   : > { %s14175_s20 = scalar_lea.vmem %s10930_s19, 4096  ;;  %p14182_p5 = scmp.lt.s32.totalorder %s10930_s19, %s10930_s19 }
 0xf0b   : > { %p14176_p13 = scmp.ne.s32.totalorder %s10930_s19, %s14175_s20  ;;  %p14183_p7 = scmp.lt.s32.totalorder %s14175_s20, %s14175_s20 }
 0xf0d   : > { %p14177_p1 = pnand %p14176_p13, %p12736_p0  ;;  %p14184_p9 = por %p14183_p7, %p14182_p5 }
 0xf0f   : > { %p14178_p2 = pneg %p14177_p1 }
 0xf11   : > { %p14185_p11 = pnand %p14184_p9, %p14178_p2 }
 0xf13   : > { %14188 = shalt.err (!%p14185_p11)
}
 0xf14   : > { %s14286_s30 = smov 128   ;;  %s14287_s5 = smov 8  }
 0xf15   : > { %s20688_s11 = sld [smem:[#allocation163_spill]] }
 0xf1b   : > { %12696 = dma.vmem_to_hbm [thread:$0]  (%p12736_p0), %s10930_s19, 4096, %s20688_s11, [#allocation5], %s14286_s30, %s14286_s30, %s14287_s5  }
 0xf1c   : > { %14236 = dma.done.wait (%p12736_p0), [#allocation5], 4096  }
 0xf1d   : > { %14238 = vsyncadd (%p12736_p0), [#allocation5], 4294963200 }
 0xf1e PF: > { %s20689_s1 = sld [smem:[#allocation24_spill]]  ;;  %s20694_s24 = smov %s14257_s25 }
 0xf1f   : > { %s20690_s21 = sld [smem:[#allocation21_spill]] }
 0xf20   : > { %s20691_s22 = sld [smem:[#allocation22_spill]] }
 0xf21   : > { %s20692_s23 = sld [smem:[#allocation27_spill]] }
 0xf22   : > { %s20693_s3 = sld [smem:[#allocation26_spill]] }
 0xf24   : > { %s29_s26 = sadd.s32 1, %s20689_s1  }
 0xf25   : > { %p26_p10 = scmp.ge.s32.totalorder %s29_s26, 4  }
 0xf27   :  { %28 = sbr.rel (!%p26_p10) target bundleno = 20 (0x14), region = 227 }
 0xf28   : > { %s20695_s25 = smov %s20693_s3 }
 0xf2c   :  { %10945 = vsyncpa [#allocation4], 1 }
 0xf2d   :  { %10947 = vsyncpa [#allocation4 + $0x1], 1 }
 0xf2e   :  { %10948 = vsyncpa [#allocation7], 1 }
 0xf2f   :  { %10949 = vsyncpa [#allocation5], 1 }
 0xf30   :  { %10951 = vsyncpa [#allocation5 + $0x1], 1 }

</bundles_post_ra>
